<compile_context>
chip_gen: v6e
topology: v6e:2x2x1
jax: 0.10.0
libtpu: 0.0.40
codegen_flags: <defaults>
</compile_context>

<pallas_src>
import functools

import jax
import jax.numpy as jnp
from jax.experimental import pallas as pl
from jax.experimental.pallas import tpu as pltpu

# ------------------------- small synthetic config ---------------------------
B = 2              # batch
T_AUDIO = 32       # encoder (audio) sequence length
N_MELS = 64        # audio feature dim
D_MODEL = 128      # model width
N_HEADS = 8
D_KV = 16          # per-head dim
D_INNER = N_HEADS * D_KV     # 128
D_FF = 256
VOCAB = 512        # stands in for 32128
L_DEC = 16         # stands in for max_length=256
N_ENC_LAYERS = 1
N_DEC_LAYERS = 2
PAD_ID = 0
DEC_START_ID = 0   # T5 decoder_start_token_id == pad id
REL_BUCKETS = 32
REL_MAX_DIST = 128
EPS_SMOOTH = 0.1
IGNORE_INDEX = -100
NEG_INF = -1e9
LN_EPS = 1e-6


def _mxu_lanes():
    # v2-v5 MXUs are 128-wide; v6e/v7x are 256-wide.  Used to size streamed tiles.
    kind = jax.devices()[0].device_kind.lower()
    return 128 if any(v in kind for v in ("v2", "v3", "v4", "v5")) else 256


def _pick_vocab_tile(V):
    lanes = _mxu_lanes()
    for t in (lanes, 128):
        if V % t == 0:
            return t
    return V


# ------------------------- in-kernel helper functions ------------------------
def _rmsnorm(x, g):
    """T5 RMSNorm in fp32 (no mean subtraction)."""
    var = jnp.mean(x * x, axis=-1, keepdims=True)
    return x * jax.lax.rsqrt(var + LN_EPS) * g


def _mm(a, w):
    """bf16 MXU operands, fp32 accumulation."""
    return jnp.dot(a.astype(w.dtype), w, preferred_element_type=jnp.float32)


def _mha(q, k, v, bias):
    """Head-batched attention: ONE reshape/transpose to [H, L, dk], batched einsums,
    one lane-dense merge at the end.  T5 attention: no 1/sqrt(dk) scaling."""
    Lq, Lk = q.shape[0], k.shape[0]
    qh = jnp.swapaxes(q.reshape(Lq, N_HEADS, D_KV), 0, 1).astype(jnp.bfloat16)
    kh = jnp.swapaxes(k.reshape(Lk, N_HEADS, D_KV), 0, 1).astype(jnp.bfloat16)
    vh = jnp.swapaxes(v.reshape(Lk, N_HEADS, D_KV), 0, 1).astype(jnp.bfloat16)
    s = jnp.einsum("hqd,hkd->hqk", qh, kh,
                   preferred_element_type=jnp.float32)          # [H, Lq, Lk] fp32
    if bias is not None:
        s = s + bias                                            # fp32 bias/mask add
    s = s - jnp.max(s, axis=-1, keepdims=True)
    p = jnp.exp(s)
    p = p * pl.reciprocal(jnp.sum(p, axis=-1, keepdims=True), approx=True)
    o = jnp.einsum("hqk,hkd->hqd", p.astype(jnp.bfloat16), vh,
                   preferred_element_type=jnp.float32)          # [H, Lq, dk]
    return jnp.swapaxes(o, 0, 1).reshape(Lq, D_INNER)


# ------------------------------ Pallas kernels ------------------------------
def _in_proj_kernel(x_ref, w_ref, o_ref):
    o_ref[...] = jnp.dot(x_ref[...].astype(w_ref.dtype), w_ref[...],
                         preferred_element_type=jnp.float32).astype(o_ref.dtype)


def audio_in_proj(x, w):
    M, _ = x.shape
    N = w.shape[1]
    return pl.pallas_call(
        _in_proj_kernel,
        out_shape=jax.ShapeDtypeStruct((M, N), jnp.bfloat16),
    )(x, w)


def _enc_layer_kernel(x_ref, ln1_ref, wqkv_ref, so_ref, ln2_ref, wi_ref, wo_ref,
                      o_ref):
    """Fused encoder layer (self-attn sublayer + FFN sublayer), one batch elem/step."""
    x = x_ref[0].astype(jnp.float32)                            # [T, D]
    # --- self-attention sublayer (stand-in encoder: no rel-pos bias, no padding)
    qkv = _mm(_rmsnorm(x, ln1_ref[0]), wqkv_ref[...])           # [T, 3*D_INNER]
    attn = _mha(qkv[:, :D_INNER], qkv[:, D_INNER:2 * D_INNER],
                qkv[:, 2 * D_INNER:], None)
    x = x + _mm(attn, so_ref[...])
    # --- FFN sublayer
    h = jnp.maximum(_mm(_rmsnorm(x, ln2_ref[0]), wi_ref[...]), 0.0)
    x = x + _mm(h, wo_ref[...])
    o_ref[0] = x.astype(o_ref.dtype)


def _dec_layer_kernel(x_ref, pb_ref, mask_ref, enc_ref,
                      ln1_ref, wqkv_ref, so_ref,
                      ln2_ref, wq_ref, encln_ref, wkv_ref, co_ref,
                      ln3_ref, wi_ref, wo_ref, o_ref):
    """Fused decoder layer: self-attn + cross-attn + FFN, one batch elem per step."""
    x = x_ref[0].astype(jnp.float32)                            # [L, D]
    L = x.shape[0]
    # --- self-attention sublayer (causal + key-padding mask + shared rel-pos bias)
    qkv = _mm(_rmsnorm(x, ln1_ref[0]), wqkv_ref[...])           # [L, 3*D_INNER]
    ctx = jax.lax.broadcasted_iota(jnp.int32, (L, L), 0)
    mem = jax.lax.broadcasted_iota(jnp.int32, (L, L), 1)
    causal = (mem <= ctx).astype(jnp.float32)                   # [L, L]
    keym = mask_ref[0].astype(jnp.float32)                      # [1, L]
    bias = pb_ref[...] + ((1.0 - causal * keym) * NEG_INF)[None, :, :]  # [H, L, L]
    attn = _mha(qkv[:, :D_INNER], qkv[:, D_INNER:2 * D_INNER],
                qkv[:, 2 * D_INNER:], bias)
    x = x + _mm(attn, so_ref[...])
    # --- cross-attention sublayer (encoder final rmsnorm fused into KV projection;
    #     no encoder mask: reference passes attention_mask=None for the encoder)
    q = _mm(_rmsnorm(x, ln2_ref[0]), wq_ref[...])               # [L, D_INNER]
    enc = enc_ref[0].astype(jnp.float32)                        # [T, D]
    kv = _mm(_rmsnorm(enc, encln_ref[0]), wkv_ref[...])         # [T, 2*D_INNER]
    cattn = _mha(q, kv[:, :D_INNER], kv[:, D_INNER:], None)
    x = x + _mm(cattn, co_ref[...])
    # --- FFN sublayer
    h = jnp.maximum(_mm(_rmsnorm(x, ln3_ref[0]), wi_ref[...]), 0.0)
    x = x + _mm(h, wo_ref[...])
    o_ref[0] = x.astype(o_ref.dtype)


def _lm_ce_kernel(vocab, x_ref, g_ref, tgt_ref, w_ref, loss_ref,
                  xn_ref, m_ref, s_ref, zs_ref, tval_ref):
    """Fused final-RMSNorm + LM head + label-smoothed CE.

    Streams [D, tv] vocab tiles; logits live only in VMEM.  Online logsumexp,
    per-row target-logit and logit-sum accumulators; loss finalized on last tile.
    The rmsnorm of the hidden states is computed once (step 0) into xn_ref.
    """
    j = pl.program_id(0)
    tv = w_ref.shape[1]

    @pl.when(j == 0)
    def _():
        xx = x_ref[...].astype(jnp.float32)
        var = jnp.mean(xx * xx, axis=-1, keepdims=True)
        xn_ref[...] = (xx * jax.lax.rsqrt(var + LN_EPS) * g_ref[...]).astype(xn_ref.dtype)
        m_ref[...] = jnp.full(m_ref.shape, -jnp.inf, jnp.float32)
        s_ref[...] = jnp.zeros_like(s_ref)
        zs_ref[...] = jnp.zeros_like(zs_ref)
        tval_ref[...] = jnp.zeros_like(tval_ref)

    logits = jnp.dot(xn_ref[...], w_ref[...],
                     preferred_element_type=jnp.float32)        # [N, tv] fp32
    tgt = tgt_ref[...]                                          # [N, 1] int32
    m_new = jnp.maximum(m_ref[...], jnp.max(logits, axis=-1, keepdims=True))
    s_ref[...] = (s_ref[...] * jnp.exp(m_ref[...] - m_new)
                  + jnp.sum(jnp.exp(logits - m_new), axis=-1, keepdims=True))
    m_ref[...] = m_new
    zs_ref[...] += jnp.sum(logits, axis=-1, keepdims=True)
    col = j * tv + jax.lax.broadcasted_iota(jnp.int32, logits.shape, 1)
    tval_ref[...] += jnp.sum(jnp.where(col == tgt, logits, 0.0),
                             axis=-1, keepdims=True)

    @pl.when(j == pl.num_programs(0) - 1)
    def _():
        lse = m_ref[...] + jnp.log(s_ref[...])
        nll = lse - tval_ref[...]
        smooth = lse - zs_ref[...] / vocab
        per = (1.0 - EPS_SMOOTH) * nll + EPS_SMOOTH * smooth
        valid = (tgt != IGNORE_INDEX).astype(jnp.float32)
        tot = jnp.sum(per * valid)
        cnt = jnp.sum(valid)
        loss_ref[...] = (tot / jnp.maximum(cnt, 1.0)).reshape(1, 1)


# ------------------------------ call wrappers --------------------------------
def _const_spec(a):
    """Constant-index block: never re-fetched between consecutive grid steps."""
    return pl.BlockSpec(a.shape, lambda b, _nd=a.ndim: (0,) * _nd)


def encoder_layer(x, params, i):
    Bx, T, D = x.shape
    p = f"enc{i}_"
    weights = (params[p + "ln1"].reshape(1, D), params[p + "self_wqkv"],
               params[p + "self_o"], params[p + "ln2"].reshape(1, D),
               params[p + "wi"], params[p + "wo"])
    in_specs = ([pl.BlockSpec((1, T, D), lambda b: (b, 0, 0))]
                + [_const_spec(w) for w in weights])
    return pl.pallas_call(
        _enc_layer_kernel,
        out_shape=jax.ShapeDtypeStruct((Bx, T, D), jnp.bfloat16),
        grid=(Bx,),
        in_specs=in_specs,
        out_specs=pl.BlockSpec((1, T, D), lambda b: (b, 0, 0)),
        compiler_params=pltpu.CompilerParams(dimension_semantics=("parallel",)),
    )(x, *weights)


def decoder_layer(x, params, i, pos_bias, mask, enc_hidden, enc_ln):
    Bx, L, D = x.shape
    T = enc_hidden.shape[1]
    p = f"dec{i}_"
    weights = (params[p + "ln1"].reshape(1, D), params[p + "self_wqkv"],
               params[p + "self_o"], params[p + "ln2"].reshape(1, D),
               params[p + "cross_q"], enc_ln.reshape(1, D),
               params[p + "cross_wkv"], params[p + "cross_o"],
               params[p + "ln3"].reshape(1, D), params[p + "wi"], params[p + "wo"])
    in_specs = ([pl.BlockSpec((1, L, D), lambda b: (b, 0, 0)),
                 pl.BlockSpec(pos_bias.shape, lambda b: (0, 0, 0)),
                 pl.BlockSpec((1, 1, L), lambda b: (b, 0, 0)),
                 pl.BlockSpec((1, T, D), lambda b: (b, 0, 0))]
                + [_const_spec(w) for w in weights])
    return pl.pallas_call(
        _dec_layer_kernel,
        out_shape=jax.ShapeDtypeStruct((Bx, L, D), jnp.bfloat16),
        grid=(Bx,),
        in_specs=in_specs,
        out_specs=pl.BlockSpec((1, L, D), lambda b: (b, 0, 0)),
        compiler_params=pltpu.CompilerParams(dimension_semantics=("parallel",)),
    )(x, pos_bias, mask, enc_hidden, *weights)


def lm_head_ce_loss(x, g, w, targets):
    """x: [N, D] bf16 hidden, g: [D] fp32 final-norm gain, w: [D, V] bf16 lm head,
    targets: [N] int32 (-100 = ignore) -> scalar mean label-smoothed CE."""
    N, D = x.shape
    V = w.shape[1]
    tv = _pick_vocab_tile(V)
    loss = pl.pallas_call(
        functools.partial(_lm_ce_kernel, float(V)),
        out_shape=jax.ShapeDtypeStruct((1, 1), jnp.float32),
        grid=(V // tv,),
        in_specs=[pl.BlockSpec((N, D), lambda j: (0, 0)),
                  pl.BlockSpec((1, D), lambda j: (0, 0)),
                  pl.BlockSpec((N, 1), lambda j: (0, 0)),
                  pl.BlockSpec((D, tv), lambda j: (0, j))],
        out_specs=pl.BlockSpec((1, 1), lambda j: (0, 0)),
        scratch_shapes=[pltpu.VMEM((N, D), jnp.bfloat16),   # normalized hidden
                        pltpu.VMEM((N, 1), jnp.float32),    # running max
                        pltpu.VMEM((N, 1), jnp.float32),    # running sum-exp
                        pltpu.VMEM((N, 1), jnp.float32),    # sum of logits
                        pltpu.VMEM((N, 1), jnp.float32)],   # target logit
        compiler_params=pltpu.CompilerParams(dimension_semantics=("arbitrary",)),
    )(x, g.reshape(1, D), targets.reshape(N, 1).astype(jnp.int32), w)
    return loss[0, 0]


# ----------------------------- model glue (JAX) -----------------------------
def _rel_pos_bucket(relative_position, num_buckets, max_distance):
    # T5 relative position bucketing, causal (bidirectional=False)
    relative_position = -jnp.minimum(relative_position, 0)
    max_exact = num_buckets // 2
    is_small = relative_position < max_exact
    rp_f = jnp.maximum(relative_position, 1).astype(jnp.float32)
    rp_large = max_exact + (
        jnp.log(rp_f / max_exact)
        / jnp.log(max_distance / max_exact)
        * (num_buckets - max_exact)
    ).astype(jnp.int32)
    rp_large = jnp.minimum(rp_large, num_buckets - 1)
    return jnp.where(is_small, relative_position, rp_large)


def decoder_pos_bias(rel_table, L):
    """rel_table: [REL_BUCKETS, H] -> shared position bias [H, L, L] (batch-free)."""
    ctx = jnp.arange(L)[:, None]
    mem = jnp.arange(L)[None, :]
    buckets = _rel_pos_bucket(mem - ctx, REL_BUCKETS, REL_MAX_DIST)   # [L, L]
    pos = rel_table[buckets]                       # [L, L, H]
    return jnp.transpose(pos, (2, 0, 1)).astype(jnp.float32)          # [H, L, L]


def audio_encoder(params, audio):
    """Synthetic AudioEncoderModel: mel features -> [B, T_AUDIO, D_MODEL] bf16 (pre
    final-norm; the final encoder RMSNorm is fused into each decoder cross-KV proj)."""
    Ba, T, F = audio.shape
    x = audio_in_proj(audio.reshape(-1, F),
                      params["enc_in_proj"]).reshape(Ba, T, D_MODEL)
    for i in range(N_ENC_LAYERS):
        x = encoder_layer(x, params, i)
    return x


def shift_tokens_right(input_ids, pad_token_id, decoder_start_token_id):
    shifted = jnp.zeros_like(input_ids)
    shifted = shifted.at[:, 1:].set(input_ids[:, :-1])
    shifted = shifted.at[:, 0].set(decoder_start_token_id)
    return jnp.where(shifted == IGNORE_INDEX, pad_token_id, shifted)


def t5_caption_forward(params, audio, input_ids, attention_mask):
    """Mirrors T5CaptionModel.forward: audio -> encoder; text -> decoder -> loss."""
    enc_out = audio_encoder(params, audio)
    decoder_targets = jnp.where(input_ids == PAD_ID, IGNORE_INDEX, input_ids)
    decoder_input_ids = shift_tokens_right(decoder_targets, PAD_ID, DEC_START_ID)

    Bd, L = decoder_input_ids.shape
    # embedding gather stays in plain JAX (no clean dense-tile Pallas equivalent)
    x = jnp.take(params["embed"], decoder_input_ids, axis=0).astype(jnp.bfloat16)
    pos_bias = decoder_pos_bias(params["rel_bias"], L)          # [H, L, L], tiny
    maskf = attention_mask.astype(jnp.float32)[:, None, :]      # [B, 1, L]
    for i in range(N_DEC_LAYERS):
        x = decoder_layer(x, params, i, pos_bias, maskf, enc_out, params["enc_ln_f"])
    # final decoder rmsnorm + tied LM head + label-smoothed CE in ONE fused kernel
    return lm_head_ce_loss(x.reshape(-1, D_MODEL), params["dec_ln_f"],
                           params["lm_head"], decoder_targets.reshape(-1))


# ------------------------------ parameter init ------------------------------
def init_params(key):
    p = {}
    counter = [0]

    def nrm(shape, scale=0.02, dtype=jnp.bfloat16):
        counter[0] += 1
        w = scale * jax.random.normal(jax.random.fold_in(key, counter[0]),
                                      shape, jnp.float32)
        return w.astype(dtype)

    p["enc_in_proj"] = nrm((N_MELS, D_MODEL))
    p["enc_ln_f"] = jnp.ones((D_MODEL,), jnp.float32)
    for i in range(N_ENC_LAYERS):
        pre = f"enc{i}_"
        p[pre + "ln1"] = jnp.ones((D_MODEL,), jnp.float32)
        p[pre + "ln2"] = jnp.ones((D_MODEL,), jnp.float32)
        p[pre + "self_wqkv"] = nrm((D_MODEL, 3 * D_INNER))      # fused Q|K|V
        p[pre + "self_o"] = nrm((D_INNER, D_MODEL))
        p[pre + "wi"] = nrm((D_MODEL, D_FF))
        p[pre + "wo"] = nrm((D_FF, D_MODEL))

    p["embed"] = nrm((VOCAB, D_MODEL), scale=1.0, dtype=jnp.float32)
    # pre-transposed tied LM head with d_model**-0.5 scale folded in (no .T in forward)
    p["lm_head"] = (p["embed"].T * (D_MODEL ** -0.5)).astype(jnp.bfloat16)
    p["rel_bias"] = nrm((REL_BUCKETS, N_HEADS), dtype=jnp.float32)
    p["dec_ln_f"] = jnp.ones((D_MODEL,), jnp.float32)
    for i in range(N_DEC_LAYERS):
        pre = f"dec{i}_"
        p[pre + "ln1"] = jnp.ones((D_MODEL,), jnp.float32)
        p[pre + "ln2"] = jnp.ones((D_MODEL,), jnp.float32)
        p[pre + "ln3"] = jnp.ones((D_MODEL,), jnp.float32)
        p[pre + "self_wqkv"] = nrm((D_MODEL, 3 * D_INNER))      # fused Q|K|V
        p[pre + "self_o"] = nrm((D_INNER, D_MODEL))
        p[pre + "cross_q"] = nrm((D_MODEL, D_INNER))
        p[pre + "cross_wkv"] = nrm((D_MODEL, 2 * D_INNER))      # fused K|V
        p[pre + "cross_o"] = nrm((D_INNER, D_MODEL))
        p[pre + "wi"] = nrm((D_MODEL, D_FF))
        p[pre + "wo"] = nrm((D_FF, D_MODEL))
    return p


# ----------------------------------- main ------------------------------------
if __name__ == "__main__":
    key = jax.random.PRNGKey(0)
    k_param, k_audio, k_tok = jax.random.split(key, 3)

    params = init_params(k_param)
    audio = jax.random.normal(k_audio, (B, T_AUDIO, N_MELS), jnp.float32)

    # synthetic "tokenizer output": token ids with right-padding + attention mask
    ids = jax.random.randint(k_tok, (B, L_DEC), 1, VOCAB).astype(jnp.int32)
    lengths = jnp.array([L_DEC - 3, L_DEC - 6], jnp.int32)
    pos = jnp.arange(L_DEC)[None, :]
    attention_mask = (pos < lengths[:, None]).astype(jnp.int32)
    input_ids = jnp.where(attention_mask == 1, ids, PAD_ID)

    loss = jax.jit(t5_caption_forward)(params, audio, input_ids, attention_mask)
    jax.block_until_ready(loss)
    assert loss.shape == () and bool(jnp.isfinite(loss))
    print("KERNEL_OK")
</pallas_src>

<mosaic_0001>
module attributes {stable_mosaic.version = 11 : i64} {
  func.func @_in_proj_kernel(%arg0: memref<64x64xf32, #tpu.memory_space<vmem>>, %arg1: memref<64x128xbf16, #tpu.memory_space<vmem>>, %arg2: memref<64x128xbf16, #tpu.memory_space<vmem>>) attributes {dimension_semantics = [], scalar_prefetch = 0 : i64, scratch_operands = 0 : i64, tpu.core_type = #tpu.core_type<tc>} {
    %c0 = arith.constant 0 : index
    %c0_0 = arith.constant 0 : index
    %0 = vector.load %arg0[%c0, %c0_0] : memref<64x64xf32, #tpu.memory_space<vmem>>, vector<64x64xf32>
    %1 = arith.truncf %0 : vector<64x64xf32> to vector<64x64xbf16>
    %c0_1 = arith.constant 0 : index
    %c0_2 = arith.constant 0 : index
    %2 = vector.load %arg1[%c0_1, %c0_2] : memref<64x128xbf16, #tpu.memory_space<vmem>>, vector<64x128xbf16>
    %cst = arith.constant dense<0.000000e+00> : vector<64x128xf32>
    %3 = tpu.matmul %1, %2, %cst {dimension_numbers = #tpu.dot_dimension_numbers<[1], [0], [0], [1], [0, 0, 1, 1], [], []>} : vector<64x64xbf16>, vector<64x128xbf16>, vector<64x128xf32> -> vector<64x128xf32>
    %4 = arith.truncf %3 : vector<64x128xf32> to vector<64x128xbf16>
    %c0_3 = arith.constant 0 : index
    %c0_4 = arith.constant 0 : index
    %5 = vector.load %arg2[%c0_3, %c0_4] : memref<64x128xbf16, #tpu.memory_space<vmem>>, vector<64x128xbf16>
    tpu.vector_store %arg2[%c0_3, %c0_4], %4 {strides = array<i32>} : memref<64x128xbf16, #tpu.memory_space<vmem>>, vector<64x128xbf16>,
    return
  }
}

module attributes {stable_mosaic.version = 11 : i64} {
  func.func @_enc_layer_kernel(%arg0: i32, %arg1: memref<1x32x128xbf16, #tpu.memory_space<vmem>>, %arg2: memref<1x128xf32, #tpu.memory_space<vmem>>, %arg3: memref<128x384xbf16, #tpu.memory_space<vmem>>, %arg4: memref<128x128xbf16, #tpu.memory_space<vmem>>, %arg5: memref<1x128xf32, #tpu.memory_space<vmem>>, %arg6: memref<128x256xbf16, #tpu.memory_space<vmem>>, %arg7: memref<256x128xbf16, #tpu.memory_space<vmem>>, %arg8: memref<1x32x128xbf16, #tpu.memory_space<vmem>>) attributes {dimension_semantics = [#tpu.dimension_semantics<parallel>], iteration_bounds = array<i64: 2>, scalar_prefetch = 0 : i64, scratch_operands = 0 : i64, tpu.core_type = #tpu.core_type<tc>, window_params = [{transform_indices = @transform_0, window_bounds = array<i64: 1, 32, 128>}, {pipeline_mode = #tpu.pipeline_mode<synchronous>, transform_indices = @transform_1, window_bounds = array<i64: 1, 128>}, {pipeline_mode = #tpu.pipeline_mode<synchronous>, transform_indices = @transform_2, window_bounds = array<i64: 128, 384>}, {pipeline_mode = #tpu.pipeline_mode<synchronous>, transform_indices = @transform_3, window_bounds = array<i64: 128, 128>}, {pipeline_mode = #tpu.pipeline_mode<synchronous>, transform_indices = @transform_4, window_bounds = array<i64: 1, 128>}, {pipeline_mode = #tpu.pipeline_mode<synchronous>, transform_indices = @transform_5, window_bounds = array<i64: 128, 256>}, {pipeline_mode = #tpu.pipeline_mode<synchronous>, transform_indices = @transform_6, window_bounds = array<i64: 256, 128>}, {transform_indices = @transform_7, window_bounds = array<i64: 1, 32, 128>}]} {
    %c0 = arith.constant 0 : index
    %c0_0 = arith.constant 0 : index
    %c0_1 = arith.constant 0 : index
    %0 = vector.load %arg1[%c0, %c0_0, %c0_1] : memref<1x32x128xbf16, #tpu.memory_space<vmem>>, vector<1x32x128xbf16>
    %1 = vector.shape_cast %0 : vector<1x32x128xbf16> to vector<32x128xbf16>
    %2 = arith.extf %1 : vector<32x128xbf16> to vector<32x128xf32>
    %c0_2 = arith.constant 0 : index
    %c0_3 = arith.constant 0 : index
    %3 = vector.load %arg2[%c0_2, %c0_3] : memref<1x128xf32, #tpu.memory_space<vmem>>, vector<1x128xf32>
    %4 = vector.shape_cast %3 : vector<1x128xf32> to vector<128xf32>
    %5 = arith.mulf %2, %2 : vector<32x128xf32>
    %cst = arith.constant dense<0.000000e+00> : vector<32xf32>
    %6 = vector.multi_reduction <add>, %5, %cst [1] : vector<32x128xf32> to vector<32xf32>
    %7 = vector.shape_cast %6 : vector<32xf32> to vector<32x1xf32>
    %cst_4 = arith.constant 1.280000e+02 : f32
    %8 = vector.broadcast %cst_4 : f32 to vector<32x1xf32>
    %9 = arith.divf %7, %8 : vector<32x1xf32>
    %cst_5 = arith.constant 9.99999997E-7 : f32
    %10 = vector.broadcast %cst_5 : f32 to vector<32x1xf32>
    %11 = arith.addf %9, %10 : vector<32x1xf32>
    %12 = math.rsqrt %11 : vector<32x1xf32>
    %13 = vector.broadcast %12 : vector<32x1xf32> to vector<32x128xf32>
    %14 = arith.mulf %2, %13 : vector<32x128xf32>
    %15 = vector.shape_cast %4 : vector<128xf32> to vector<1x128xf32>
    %16 = vector.broadcast %15 : vector<1x128xf32> to vector<32x128xf32>
    %17 = arith.mulf %14, %16 : vector<32x128xf32>
    %c0_6 = arith.constant 0 : index
    %c0_7 = arith.constant 0 : index
    %18 = vector.load %arg3[%c0_6, %c0_7] : memref<128x384xbf16, #tpu.memory_space<vmem>>, vector<128x384xbf16>
    %19 = arith.truncf %17 : vector<32x128xf32> to vector<32x128xbf16>
    %cst_8 = arith.constant dense<0.000000e+00> : vector<32x384xf32>
    %20 = tpu.matmul %19, %18, %cst_8 {dimension_numbers = #tpu.dot_dimension_numbers<[1], [0], [0], [1], [0, 0, 1, 1], [], []>} : vector<32x128xbf16>, vector<128x384xbf16>, vector<32x384xf32> -> vector<32x384xf32>
    %21 = vector.extract_strided_slice %20 {offsets = [0, 0], sizes = [32, 128], strides = [1, 1]} : vector<32x384xf32> to vector<32x128xf32>
    %22 = vector.extract_strided_slice %20 {offsets = [0, 128], sizes = [32, 128], strides = [1, 1]} : vector<32x384xf32> to vector<32x128xf32>
    %23 = vector.extract_strided_slice %20 {offsets = [0, 256], sizes = [32, 128], strides = [1, 1]} : vector<32x384xf32> to vector<32x128xf32>
    %24 = vector.shape_cast %21 : vector<32x128xf32> to vector<32x8x16xf32>
    %25 = tpu.transpose %24, [1, 0, 2] : vector<32x8x16xf32> -> vector<8x32x16xf32>
    %26 = arith.truncf %25 : vector<8x32x16xf32> to vector<8x32x16xbf16>
    %27 = vector.shape_cast %22 : vector<32x128xf32> to vector<32x8x16xf32>
    %28 = tpu.transpose %27, [1, 0, 2] : vector<32x8x16xf32> -> vector<8x32x16xf32>
    %29 = arith.truncf %28 : vector<8x32x16xf32> to vector<8x32x16xbf16>
    %30 = vector.shape_cast %23 : vector<32x128xf32> to vector<32x8x16xf32>
    %31 = tpu.transpose %30, [1, 0, 2] : vector<32x8x16xf32> -> vector<8x32x16xf32>
    %32 = arith.truncf %31 : vector<8x32x16xf32> to vector<8x32x16xbf16>
    "tpu.trace_start"() <{level = 10 : i32, message = "hqd,hkd->hqk"}> : () -> ()
    %cst_9 = arith.constant dense<0.000000e+00> : vector<8x32x32xf32>
    %33 = tpu.matmul %26, %29, %cst_9 {dimension_numbers = #tpu.dot_dimension_numbers<[2], [2], [1], [1], [0, 0, 0, 1, 1, 1], [0], [0]>} : vector<8x32x16xbf16>, vector<8x32x16xbf16>, vector<8x32x32xf32> -> vector<8x32x32xf32>
    "tpu.trace_stop"() : () -> ()
    %cst_10 = arith.constant dense<0xFF800000> : vector<8x32xf32>
    %34 = vector.multi_reduction <maximumf>, %33, %cst_10 [2] : vector<8x32x32xf32> to vector<8x32xf32>
    %35 = vector.shape_cast %34 : vector<8x32xf32> to vector<8x32x1xf32>
    %36 = vector.broadcast %35 : vector<8x32x1xf32> to vector<8x32x32xf32>
    %37 = arith.subf %33, %36 : vector<8x32x32xf32>
    %38 = math.exp %37 : vector<8x32x32xf32>
    %cst_11 = arith.constant dense<0.000000e+00> : vector<8x32xf32>
    %39 = vector.multi_reduction <add>, %38, %cst_11 [2] : vector<8x32x32xf32> to vector<8x32xf32>
    %40 = vector.shape_cast %39 : vector<8x32xf32> to vector<8x32x1xf32>
    %41 = tpu.reciprocal %40 {approx = true} : vector<8x32x1xf32> -> vector<8x32x1xf32>
    %42 = vector.broadcast %41 : vector<8x32x1xf32> to vector<8x32x32xf32>
    %43 = arith.mulf %38, %42 : vector<8x32x32xf32>
    %44 = arith.truncf %43 : vector<8x32x32xf32> to vector<8x32x32xbf16>
    "tpu.trace_start"() <{level = 10 : i32, message = "hqk,hkd->hqd"}> : () -> ()
    %cst_12 = arith.constant dense<0.000000e+00> : vector<8x32x16xf32>
    %45 = tpu.matmul %44, %32, %cst_12 {dimension_numbers = #tpu.dot_dimension_numbers<[2], [1], [1], [2], [0, 0, 0, 1, 1, 2], [0], [0]>} : vector<8x32x32xbf16>, vector<8x32x16xbf16>, vector<8x32x16xf32> -> vector<8x32x16xf32>
    "tpu.trace_stop"() : () -> ()
    %46 = tpu.transpose %45, [1, 0, 2] : vector<8x32x16xf32> -> vector<32x8x16xf32>
    %47 = vector.shape_cast %46 : vector<32x8x16xf32> to vector<32x128xf32>
    %c0_13 = arith.constant 0 : index
    %c0_14 = arith.constant 0 : index
    %48 = vector.load %arg4[%c0_13, %c0_14] : memref<128x128xbf16, #tpu.memory_space<vmem>>, vector<128x128xbf16>
    %49 = arith.truncf %47 : vector<32x128xf32> to vector<32x128xbf16>
    %cst_15 = arith.constant dense<0.000000e+00> : vector<32x128xf32>
    %50 = tpu.matmul %49, %48, %cst_15 {dimension_numbers = #tpu.dot_dimension_numbers<[1], [0], [0], [1], [0, 0, 1, 1], [], []>} : vector<32x128xbf16>, vector<128x128xbf16>, vector<32x128xf32> -> vector<32x128xf32>
    %51 = arith.addf %2, %50 : vector<32x128xf32>
    %c0_16 = arith.constant 0 : index
    %c0_17 = arith.constant 0 : index
    %52 = vector.load %arg5[%c0_16, %c0_17] : memref<1x128xf32, #tpu.memory_space<vmem>>, vector<1x128xf32>
    %53 = vector.shape_cast %52 : vector<1x128xf32> to vector<128xf32>
    %54 = arith.mulf %51, %51 : vector<32x128xf32>
    %cst_18 = arith.constant dense<0.000000e+00> : vector<32xf32>
    %55 = vector.multi_reduction <add>, %54, %cst_18 [1] : vector<32x128xf32> to vector<32xf32>
    %56 = vector.shape_cast %55 : vector<32xf32> to vector<32x1xf32>
    %cst_19 = arith.constant 1.280000e+02 : f32
    %57 = vector.broadcast %cst_19 : f32 to vector<32x1xf32>
    %58 = arith.divf %56, %57 : vector<32x1xf32>
    %cst_20 = arith.constant 9.99999997E-7 : f32
    %59 = vector.broadcast %cst_20 : f32 to vector<32x1xf32>
    %60 = arith.addf %58, %59 : vector<32x1xf32>
    %61 = math.rsqrt %60 : vector<32x1xf32>
    %62 = vector.broadcast %61 : vector<32x1xf32> to vector<32x128xf32>
    %63 = arith.mulf %51, %62 : vector<32x128xf32>
    %64 = vector.shape_cast %53 : vector<128xf32> to vector<1x128xf32>
    %65 = vector.broadcast %64 : vector<1x128xf32> to vector<32x128xf32>
    %66 = arith.mulf %63, %65 : vector<32x128xf32>
    %c0_21 = arith.constant 0 : index
    %c0_22 = arith.constant 0 : index
    %67 = vector.load %arg6[%c0_21, %c0_22] : memref<128x256xbf16, #tpu.memory_space<vmem>>, vector<128x256xbf16>
    %68 = arith.truncf %66 : vector<32x128xf32> to vector<32x128xbf16>
    %cst_23 = arith.constant dense<0.000000e+00> : vector<32x256xf32>
    %69 = tpu.matmul %68, %67, %cst_23 {dimension_numbers = #tpu.dot_dimension_numbers<[1], [0], [0], [1], [0, 0, 1, 1], [], []>} : vector<32x128xbf16>, vector<128x256xbf16>, vector<32x256xf32> -> vector<32x256xf32>
    %cst_24 = arith.constant 0.000000e+00 : f32
    %70 = vector.broadcast %cst_24 : f32 to vector<32x256xf32>
    %71 = arith.maximumf %69, %70 : vector<32x256xf32>
    %c0_25 = arith.constant 0 : index
    %c0_26 = arith.constant 0 : index
    %72 = vector.load %arg7[%c0_25, %c0_26] : memref<256x128xbf16, #tpu.memory_space<vmem>>, vector<256x128xbf16>
    %73 = arith.truncf %71 : vector<32x256xf32> to vector<32x256xbf16>
    %cst_27 = arith.constant dense<0.000000e+00> : vector<32x128xf32>
    %74 = tpu.matmul %73, %72, %cst_27 {dimension_numbers = #tpu.dot_dimension_numbers<[1], [0], [0], [1], [0, 0, 1, 1], [], []>} : vector<32x256xbf16>, vector<256x128xbf16>, vector<32x128xf32> -> vector<32x128xf32>
    %75 = arith.addf %51, %74 : vector<32x128xf32>
    %76 = arith.truncf %75 : vector<32x128xf32> to vector<32x128xbf16>
    %c0_28 = arith.constant 0 : index
    %c0_29 = arith.constant 0 : index
    %c0_30 = arith.constant 0 : index
    %77 = vector.load %arg8[%c0_28, %c0_29, %c0_30] : memref<1x32x128xbf16, #tpu.memory_space<vmem>>, vector<1x32x128xbf16>
    %78 = vector.shape_cast %77 : vector<1x32x128xbf16> to vector<32x128xbf16>
    %79 = vector.shape_cast %76 : vector<32x128xbf16> to vector<1x32x128xbf16>
    tpu.vector_store %arg8[%c0_28, %c0_29, %c0_30], %79 {strides = array<i32>} : memref<1x32x128xbf16, #tpu.memory_space<vmem>>, vector<1x32x128xbf16>,
    return
  }
  func.func @transform_0(%arg0: i32) -> (i32, i32, i32) {
    %c0_i32 = arith.constant 0 : i32
    %c0_i32_0 = arith.constant 0 : i32
    %c0_i32_1 = arith.constant 0 : i32
    return %arg0, %c0_i32, %c0_i32_0 : i32, i32, i32
  }
  func.func @transform_1(%arg0: i32) -> (i32, i32) {
    %c0_i32 = arith.constant 0 : i32
    %c0_i32_0 = arith.constant 0 : i32
    %c0_i32_1 = arith.constant 0 : i32
    return %c0_i32, %c0_i32_0 : i32, i32
  }
  func.func @transform_2(%arg0: i32) -> (i32, i32) {
    %c0_i32 = arith.constant 0 : i32
    %c0_i32_0 = arith.constant 0 : i32
    %c0_i32_1 = arith.constant 0 : i32
    return %c0_i32, %c0_i32_0 : i32, i32
  }
  func.func @transform_3(%arg0: i32) -> (i32, i32) {
    %c0_i32 = arith.constant 0 : i32
    %c0_i32_0 = arith.constant 0 : i32
    %c0_i32_1 = arith.constant 0 : i32
    return %c0_i32, %c0_i32_0 : i32, i32
  }
  func.func @transform_4(%arg0: i32) -> (i32, i32) {
    %c0_i32 = arith.constant 0 : i32
    %c0_i32_0 = arith.constant 0 : i32
    %c0_i32_1 = arith.constant 0 : i32
    return %c0_i32, %c0_i32_0 : i32, i32
  }
  func.func @transform_5(%arg0: i32) -> (i32, i32) {
    %c0_i32 = arith.constant 0 : i32
    %c0_i32_0 = arith.constant 0 : i32
    %c0_i32_1 = arith.constant 0 : i32
    return %c0_i32, %c0_i32_0 : i32, i32
  }
  func.func @transform_6(%arg0: i32) -> (i32, i32) {
    %c0_i32 = arith.constant 0 : i32
    %c0_i32_0 = arith.constant 0 : i32
    %c0_i32_1 = arith.constant 0 : i32
    return %c0_i32, %c0_i32_0 : i32, i32
  }
  func.func @transform_7(%arg0: i32) -> (i32, i32, i32) {
    %c0_i32 = arith.constant 0 : i32
    %c0_i32_0 = arith.constant 0 : i32
    %c0_i32_1 = arith.constant 0 : i32
    return %arg0, %c0_i32, %c0_i32_0 : i32, i32, i32
  }
}

module attributes {stable_mosaic.version = 11 : i64} {
  func.func @_dec_layer_kernel(%arg0: i32, %arg1: memref<1x16x128xbf16, #tpu.memory_space<vmem>>, %arg2: memref<8x16x16xf32, #tpu.memory_space<vmem>>, %arg3: memref<1x1x16xf32, #tpu.memory_space<vmem>>, %arg4: memref<1x32x128xbf16, #tpu.memory_space<vmem>>, %arg5: memref<1x128xf32, #tpu.memory_space<vmem>>, %arg6: memref<128x384xbf16, #tpu.memory_space<vmem>>, %arg7: memref<128x128xbf16, #tpu.memory_space<vmem>>, %arg8: memref<1x128xf32, #tpu.memory_space<vmem>>, %arg9: memref<128x128xbf16, #tpu.memory_space<vmem>>, %arg10: memref<1x128xf32, #tpu.memory_space<vmem>>, %arg11: memref<128x256xbf16, #tpu.memory_space<vmem>>, %arg12: memref<128x128xbf16, #tpu.memory_space<vmem>>, %arg13: memref<1x128xf32, #tpu.memory_space<vmem>>, %arg14: memref<128x256xbf16, #tpu.memory_space<vmem>>, %arg15: memref<256x128xbf16, #tpu.memory_space<vmem>>, %arg16: memref<1x16x128xbf16, #tpu.memory_space<vmem>>) attributes {dimension_semantics = [#tpu.dimension_semantics<parallel>], iteration_bounds = array<i64: 2>, scalar_prefetch = 0 : i64, scratch_operands = 0 : i64, tpu.core_type = #tpu.core_type<tc>, window_params = [{transform_indices = @transform_0, window_bounds = array<i64: 1, 16, 128>}, {pipeline_mode = #tpu.pipeline_mode<synchronous>, transform_indices = @transform_1, window_bounds = array<i64: 8, 16, 16>}, {transform_indices = @transform_2, window_bounds = array<i64: 1, 1, 16>}, {transform_indices = @transform_3, window_bounds = array<i64: 1, 32, 128>}, {pipeline_mode = #tpu.pipeline_mode<synchronous>, transform_indices = @transform_4, window_bounds = array<i64: 1, 128>}, {pipeline_mode = #tpu.pipeline_mode<synchronous>, transform_indices = @transform_5, window_bounds = array<i64: 128, 384>}, {pipeline_mode = #tpu.pipeline_mode<synchronous>, transform_indices = @transform_6, window_bounds = array<i64: 128, 128>}, {pipeline_mode = #tpu.pipeline_mode<synchronous>, transform_indices = @transform_7, window_bounds = array<i64: 1, 128>}, {pipeline_mode = #tpu.pipeline_mode<synchronous>, transform_indices = @transform_8, window_bounds = array<i64: 128, 128>}, {pipeline_mode = #tpu.pipeline_mode<synchronous>, transform_indices = @transform_9, window_bounds = array<i64: 1, 128>}, {pipeline_mode = #tpu.pipeline_mode<synchronous>, transform_indices = @transform_10, window_bounds = array<i64: 128, 256>}, {pipeline_mode = #tpu.pipeline_mode<synchronous>, transform_indices = @transform_11, window_bounds = array<i64: 128, 128>}, {pipeline_mode = #tpu.pipeline_mode<synchronous>, transform_indices = @transform_12, window_bounds = array<i64: 1, 128>}, {pipeline_mode = #tpu.pipeline_mode<synchronous>, transform_indices = @transform_13, window_bounds = array<i64: 128, 256>}, {pipeline_mode = #tpu.pipeline_mode<synchronous>, transform_indices = @transform_14, window_bounds = array<i64: 256, 128>}, {transform_indices = @transform_15, window_bounds = array<i64: 1, 16, 128>}]} {
    %c0 = arith.constant 0 : index
    %c0_0 = arith.constant 0 : index
    %c0_1 = arith.constant 0 : index
    %0 = vector.load %arg1[%c0, %c0_0, %c0_1] : memref<1x16x128xbf16, #tpu.memory_space<vmem>>, vector<1x16x128xbf16>
    %1 = vector.shape_cast %0 : vector<1x16x128xbf16> to vector<16x128xbf16>
    %2 = arith.extf %1 : vector<16x128xbf16> to vector<16x128xf32>
    %c0_2 = arith.constant 0 : index
    %c0_3 = arith.constant 0 : index
    %3 = vector.load %arg5[%c0_2, %c0_3] : memref<1x128xf32, #tpu.memory_space<vmem>>, vector<1x128xf32>
    %4 = vector.shape_cast %3 : vector<1x128xf32> to vector<128xf32>
    %5 = arith.mulf %2, %2 : vector<16x128xf32>
    %cst = arith.constant dense<0.000000e+00> : vector<16xf32>
    %6 = vector.multi_reduction <add>, %5, %cst [1] : vector<16x128xf32> to vector<16xf32>
    %7 = vector.shape_cast %6 : vector<16xf32> to vector<16x1xf32>
    %cst_4 = arith.constant 1.280000e+02 : f32
    %8 = vector.broadcast %cst_4 : f32 to vector<16x1xf32>
    %9 = arith.divf %7, %8 : vector<16x1xf32>
    %cst_5 = arith.constant 9.99999997E-7 : f32
    %10 = vector.broadcast %cst_5 : f32 to vector<16x1xf32>
    %11 = arith.addf %9, %10 : vector<16x1xf32>
    %12 = math.rsqrt %11 : vector<16x1xf32>
    %13 = vector.broadcast %12 : vector<16x1xf32> to vector<16x128xf32>
    %14 = arith.mulf %2, %13 : vector<16x128xf32>
    %15 = vector.shape_cast %4 : vector<128xf32> to vector<1x128xf32>
    %16 = vector.broadcast %15 : vector<1x128xf32> to vector<16x128xf32>
    %17 = arith.mulf %14, %16 : vector<16x128xf32>
    %c0_6 = arith.constant 0 : index
    %c0_7 = arith.constant 0 : index
    %18 = vector.load %arg6[%c0_6, %c0_7] : memref<128x384xbf16, #tpu.memory_space<vmem>>, vector<128x384xbf16>
    %19 = arith.truncf %17 : vector<16x128xf32> to vector<16x128xbf16>
    %cst_8 = arith.constant dense<0.000000e+00> : vector<16x384xf32>
    %20 = tpu.matmul %19, %18, %cst_8 {dimension_numbers = #tpu.dot_dimension_numbers<[1], [0], [0], [1], [0, 0, 1, 1], [], []>} : vector<16x128xbf16>, vector<128x384xbf16>, vector<16x384xf32> -> vector<16x384xf32>
    %21 = tpu.iota {dimensions = array<i32: 0>} : vector<16x16xi32>
    %22 = tpu.iota {dimensions = array<i32: 1>} : vector<16x16xi32>
    %23 = arith.cmpi sle, %22, %21 : vector<16x16xi32>
    %24 = arith.extui %23 : vector<16x16xi1> to vector<16x16xi32>
    %25 = arith.sitofp %24 : vector<16x16xi32> to vector<16x16xf32>
    %c0_9 = arith.constant 0 : index
    %c0_10 = arith.constant 0 : index
    %c0_11 = arith.constant 0 : index
    %26 = vector.load %arg3[%c0_9, %c0_10, %c0_11] : memref<1x1x16xf32, #tpu.memory_space<vmem>>, vector<1x1x16xf32>
    %27 = vector.shape_cast %26 : vector<1x1x16xf32> to vector<1x16xf32>
    %c0_12 = arith.constant 0 : index
    %c0_13 = arith.constant 0 : index
    %c0_14 = arith.constant 0 : index
    %28 = vector.load %arg2[%c0_12, %c0_13, %c0_14] : memref<8x16x16xf32, #tpu.memory_space<vmem>>, vector<8x16x16xf32>
    %29 = vector.broadcast %27 : vector<1x16xf32> to vector<16x16xf32>
    %30 = arith.mulf %25, %29 : vector<16x16xf32>
    %cst_15 = arith.constant 1.000000e+00 : f32
    %31 = vector.broadcast %cst_15 : f32 to vector<16x16xf32>
    %32 = arith.subf %31, %30 : vector<16x16xf32>
    %cst_16 = arith.constant -1.000000e+09 : f32
    %33 = vector.broadcast %cst_16 : f32 to vector<16x16xf32>
    %34 = arith.mulf %32, %33 : vector<16x16xf32>
    %35 = vector.shape_cast %34 : vector<16x16xf32> to vector<1x16x16xf32>
    %36 = vector.broadcast %35 : vector<1x16x16xf32> to vector<8x16x16xf32>
    %37 = arith.addf %28, %36 : vector<8x16x16xf32>
    %38 = vector.extract_strided_slice %20 {offsets = [0, 0], sizes = [16, 128], strides = [1, 1]} : vector<16x384xf32> to vector<16x128xf32>
    %39 = vector.extract_strided_slice %20 {offsets = [0, 128], sizes = [16, 128], strides = [1, 1]} : vector<16x384xf32> to vector<16x128xf32>
    %40 = vector.extract_strided_slice %20 {offsets = [0, 256], sizes = [16, 128], strides = [1, 1]} : vector<16x384xf32> to vector<16x128xf32>
    %41 = vector.shape_cast %38 : vector<16x128xf32> to vector<16x8x16xf32>
    %42 = tpu.transpose %41, [1, 0, 2] : vector<16x8x16xf32> -> vector<8x16x16xf32>
    %43 = arith.truncf %42 : vector<8x16x16xf32> to vector<8x16x16xbf16>
    %44 = vector.shape_cast %39 : vector<16x128xf32> to vector<16x8x16xf32>
    %45 = tpu.transpose %44, [1, 0, 2] : vector<16x8x16xf32> -> vector<8x16x16xf32>
    %46 = arith.truncf %45 : vector<8x16x16xf32> to vector<8x16x16xbf16>
    %47 = vector.shape_cast %40 : vector<16x128xf32> to vector<16x8x16xf32>
    %48 = tpu.transpose %47, [1, 0, 2] : vector<16x8x16xf32> -> vector<8x16x16xf32>
    %49 = arith.truncf %48 : vector<8x16x16xf32> to vector<8x16x16xbf16>
    "tpu.trace_start"() <{level = 10 : i32, message = "hqd,hkd->hqk"}> : () -> ()
    %cst_17 = arith.constant dense<0.000000e+00> : vector<8x16x16xf32>
    %50 = tpu.matmul %43, %46, %cst_17 {dimension_numbers = #tpu.dot_dimension_numbers<[2], [2], [1], [1], [0, 0, 0, 1, 1, 1], [0], [0]>} : vector<8x16x16xbf16>, vector<8x16x16xbf16>, vector<8x16x16xf32> -> vector<8x16x16xf32>
    "tpu.trace_stop"() : () -> ()
    %51 = arith.addf %50, %37 : vector<8x16x16xf32>
    %cst_18 = arith.constant dense<0xFF800000> : vector<8x16xf32>
    %52 = vector.multi_reduction <maximumf>, %51, %cst_18 [2] : vector<8x16x16xf32> to vector<8x16xf32>
    %53 = vector.shape_cast %52 : vector<8x16xf32> to vector<8x16x1xf32>
    %54 = vector.broadcast %53 : vector<8x16x1xf32> to vector<8x16x16xf32>
    %55 = arith.subf %51, %54 : vector<8x16x16xf32>
    %56 = math.exp %55 : vector<8x16x16xf32>
    %cst_19 = arith.constant dense<0.000000e+00> : vector<8x16xf32>
    %57 = vector.multi_reduction <add>, %56, %cst_19 [2] : vector<8x16x16xf32> to vector<8x16xf32>
    %58 = vector.shape_cast %57 : vector<8x16xf32> to vector<8x16x1xf32>
    %59 = tpu.reciprocal %58 {approx = true} : vector<8x16x1xf32> -> vector<8x16x1xf32>
    %60 = vector.broadcast %59 : vector<8x16x1xf32> to vector<8x16x16xf32>
    %61 = arith.mulf %56, %60 : vector<8x16x16xf32>
    %62 = arith.truncf %61 : vector<8x16x16xf32> to vector<8x16x16xbf16>
    "tpu.trace_start"() <{level = 10 : i32, message = "hqk,hkd->hqd"}> : () -> ()
    %cst_20 = arith.constant dense<0.000000e+00> : vector<8x16x16xf32>
    %63 = tpu.matmul %62, %49, %cst_20 {dimension_numbers = #tpu.dot_dimension_numbers<[2], [1], [1], [2], [0, 0, 0, 1, 1, 2], [0], [0]>} : vector<8x16x16xbf16>, vector<8x16x16xbf16>, vector<8x16x16xf32> -> vector<8x16x16xf32>
    "tpu.trace_stop"() : () -> ()
    %64 = tpu.transpose %63, [1, 0, 2] : vector<8x16x16xf32> -> vector<16x8x16xf32>
    %65 = vector.shape_cast %64 : vector<16x8x16xf32> to vector<16x128xf32>
    %c0_21 = arith.constant 0 : index
    %c0_22 = arith.constant 0 : index
    %66 = vector.load %arg7[%c0_21, %c0_22] : memref<128x128xbf16, #tpu.memory_space<vmem>>, vector<128x128xbf16>
    %67 = arith.truncf %65 : vector<16x128xf32> to vector<16x128xbf16>
    %cst_23 = arith.constant dense<0.000000e+00> : vector<16x128xf32>
    %68 = tpu.matmul %67, %66, %cst_23 {dimension_numbers = #tpu.dot_dimension_numbers<[1], [0], [0], [1], [0, 0, 1, 1], [], []>} : vector<16x128xbf16>, vector<128x128xbf16>, vector<16x128xf32> -> vector<16x128xf32>
    %69 = arith.addf %2, %68 : vector<16x128xf32>
    %c0_24 = arith.constant 0 : index
    %c0_25 = arith.constant 0 : index
    %70 = vector.load %arg8[%c0_24, %c0_25] : memref<1x128xf32, #tpu.memory_space<vmem>>, vector<1x128xf32>
    %71 = vector.shape_cast %70 : vector<1x128xf32> to vector<128xf32>
    %72 = arith.mulf %69, %69 : vector<16x128xf32>
    %cst_26 = arith.constant dense<0.000000e+00> : vector<16xf32>
    %73 = vector.multi_reduction <add>, %72, %cst_26 [1] : vector<16x128xf32> to vector<16xf32>
    %74 = vector.shape_cast %73 : vector<16xf32> to vector<16x1xf32>
    %cst_27 = arith.constant 1.280000e+02 : f32
    %75 = vector.broadcast %cst_27 : f32 to vector<16x1xf32>
    %76 = arith.divf %74, %75 : vector<16x1xf32>
    %cst_28 = arith.constant 9.99999997E-7 : f32
    %77 = vector.broadcast %cst_28 : f32 to vector<16x1xf32>
    %78 = arith.addf %76, %77 : vector<16x1xf32>
    %79 = math.rsqrt %78 : vector<16x1xf32>
    %80 = vector.broadcast %79 : vector<16x1xf32> to vector<16x128xf32>
    %81 = arith.mulf %69, %80 : vector<16x128xf32>
    %82 = vector.shape_cast %71 : vector<128xf32> to vector<1x128xf32>
    %83 = vector.broadcast %82 : vector<1x128xf32> to vector<16x128xf32>
    %84 = arith.mulf %81, %83 : vector<16x128xf32>
    %c0_29 = arith.constant 0 : index
    %c0_30 = arith.constant 0 : index
    %85 = vector.load %arg9[%c0_29, %c0_30] : memref<128x128xbf16, #tpu.memory_space<vmem>>, vector<128x128xbf16>
    %86 = arith.truncf %84 : vector<16x128xf32> to vector<16x128xbf16>
    %cst_31 = arith.constant dense<0.000000e+00> : vector<16x128xf32>
    %87 = tpu.matmul %86, %85, %cst_31 {dimension_numbers = #tpu.dot_dimension_numbers<[1], [0], [0], [1], [0, 0, 1, 1], [], []>} : vector<16x128xbf16>, vector<128x128xbf16>, vector<16x128xf32> -> vector<16x128xf32>
    %c0_32 = arith.constant 0 : index
    %c0_33 = arith.constant 0 : index
    %c0_34 = arith.constant 0 : index
    %88 = vector.load %arg4[%c0_32, %c0_33, %c0_34] : memref<1x32x128xbf16, #tpu.memory_space<vmem>>, vector<1x32x128xbf16>
    %89 = vector.shape_cast %88 : vector<1x32x128xbf16> to vector<32x128xbf16>
    %90 = arith.extf %89 : vector<32x128xbf16> to vector<32x128xf32>
    %c0_35 = arith.constant 0 : index
    %c0_36 = arith.constant 0 : index
    %91 = vector.load %arg10[%c0_35, %c0_36] : memref<1x128xf32, #tpu.memory_space<vmem>>, vector<1x128xf32>
    %92 = vector.shape_cast %91 : vector<1x128xf32> to vector<128xf32>
    %93 = arith.mulf %90, %90 : vector<32x128xf32>
    %cst_37 = arith.constant dense<0.000000e+00> : vector<32xf32>
    %94 = vector.multi_reduction <add>, %93, %cst_37 [1] : vector<32x128xf32> to vector<32xf32>
    %95 = vector.shape_cast %94 : vector<32xf32> to vector<32x1xf32>
    %cst_38 = arith.constant 1.280000e+02 : f32
    %96 = vector.broadcast %cst_38 : f32 to vector<32x1xf32>
    %97 = arith.divf %95, %96 : vector<32x1xf32>
    %cst_39 = arith.constant 9.99999997E-7 : f32
    %98 = vector.broadcast %cst_39 : f32 to vector<32x1xf32>
    %99 = arith.addf %97, %98 : vector<32x1xf32>
    %100 = math.rsqrt %99 : vector<32x1xf32>
    %101 = vector.broadcast %100 : vector<32x1xf32> to vector<32x128xf32>
    %102 = arith.mulf %90, %101 : vector<32x128xf32>
    %103 = vector.shape_cast %92 : vector<128xf32> to vector<1x128xf32>
    %104 = vector.broadcast %103 : vector<1x128xf32> to vector<32x128xf32>
    %105 = arith.mulf %102, %104 : vector<32x128xf32>
    %c0_40 = arith.constant 0 : index
    %c0_41 = arith.constant 0 : index
    %106 = vector.load %arg11[%c0_40, %c0_41] : memref<128x256xbf16, #tpu.memory_space<vmem>>, vector<128x256xbf16>
    %107 = arith.truncf %105 : vector<32x128xf32> to vector<32x128xbf16>
    %cst_42 = arith.constant dense<0.000000e+00> : vector<32x256xf32>
    %108 = tpu.matmul %107, %106, %cst_42 {dimension_numbers = #tpu.dot_dimension_numbers<[1], [0], [0], [1], [0, 0, 1, 1], [], []>} : vector<32x128xbf16>, vector<128x256xbf16>, vector<32x256xf32> -> vector<32x256xf32>
    %109 = vector.extract_strided_slice %108 {offsets = [0, 0], sizes = [32, 128], strides = [1, 1]} : vector<32x256xf32> to vector<32x128xf32>
    %110 = vector.extract_strided_slice %108 {offsets = [0, 128], sizes = [32, 128], strides = [1, 1]} : vector<32x256xf32> to vector<32x128xf32>
    %111 = vector.shape_cast %87 : vector<16x128xf32> to vector<16x8x16xf32>
    %112 = tpu.transpose %111, [1, 0, 2] : vector<16x8x16xf32> -> vector<8x16x16xf32>
    %113 = arith.truncf %112 : vector<8x16x16xf32> to vector<8x16x16xbf16>
    %114 = vector.shape_cast %109 : vector<32x128xf32> to vector<32x8x16xf32>
    %115 = tpu.transpose %114, [1, 0, 2] : vector<32x8x16xf32> -> vector<8x32x16xf32>
    %116 = arith.truncf %115 : vector<8x32x16xf32> to vector<8x32x16xbf16>
    %117 = vector.shape_cast %110 : vector<32x128xf32> to vector<32x8x16xf32>
    %118 = tpu.transpose %117, [1, 0, 2] : vector<32x8x16xf32> -> vector<8x32x16xf32>
    %119 = arith.truncf %118 : vector<8x32x16xf32> to vector<8x32x16xbf16>
    "tpu.trace_start"() <{level = 10 : i32, message = "hqd,hkd->hqk"}> : () -> ()
    %cst_43 = arith.constant dense<0.000000e+00> : vector<8x16x32xf32>
    %120 = tpu.matmul %113, %116, %cst_43 {dimension_numbers = #tpu.dot_dimension_numbers<[2], [2], [1], [1], [0, 0, 0, 1, 1, 1], [0], [0]>} : vector<8x16x16xbf16>, vector<8x32x16xbf16>, vector<8x16x32xf32> -> vector<8x16x32xf32>
    "tpu.trace_stop"() : () -> ()
    %cst_44 = arith.constant dense<0xFF800000> : vector<8x16xf32>
    %121 = vector.multi_reduction <maximumf>, %120, %cst_44 [2] : vector<8x16x32xf32> to vector<8x16xf32>
    %122 = vector.shape_cast %121 : vector<8x16xf32> to vector<8x16x1xf32>
    %123 = vector.broadcast %122 : vector<8x16x1xf32> to vector<8x16x32xf32>
    %124 = arith.subf %120, %123 : vector<8x16x32xf32>
    %125 = math.exp %124 : vector<8x16x32xf32>
    %cst_45 = arith.constant dense<0.000000e+00> : vector<8x16xf32>
    %126 = vector.multi_reduction <add>, %125, %cst_45 [2] : vector<8x16x32xf32> to vector<8x16xf32>
    %127 = vector.shape_cast %126 : vector<8x16xf32> to vector<8x16x1xf32>
    %128 = tpu.reciprocal %127 {approx = true} : vector<8x16x1xf32> -> vector<8x16x1xf32>
    %129 = vector.broadcast %128 : vector<8x16x1xf32> to vector<8x16x32xf32>
    %130 = arith.mulf %125, %129 : vector<8x16x32xf32>
    %131 = arith.truncf %130 : vector<8x16x32xf32> to vector<8x16x32xbf16>
    "tpu.trace_start"() <{level = 10 : i32, message = "hqk,hkd->hqd"}> : () -> ()
    %cst_46 = arith.constant dense<0.000000e+00> : vector<8x16x16xf32>
    %132 = tpu.matmul %131, %119, %cst_46 {dimension_numbers = #tpu.dot_dimension_numbers<[2], [1], [1], [2], [0, 0, 0, 1, 1, 2], [0], [0]>} : vector<8x16x32xbf16>, vector<8x32x16xbf16>, vector<8x16x16xf32> -> vector<8x16x16xf32>
    "tpu.trace_stop"() : () -> ()
    %133 = tpu.transpose %132, [1, 0, 2] : vector<8x16x16xf32> -> vector<16x8x16xf32>
    %134 = vector.shape_cast %133 : vector<16x8x16xf32> to vector<16x128xf32>
    %c0_47 = arith.constant 0 : index
    %c0_48 = arith.constant 0 : index
    %135 = vector.load %arg12[%c0_47, %c0_48] : memref<128x128xbf16, #tpu.memory_space<vmem>>, vector<128x128xbf16>
    %136 = arith.truncf %134 : vector<16x128xf32> to vector<16x128xbf16>
    %cst_49 = arith.constant dense<0.000000e+00> : vector<16x128xf32>
    %137 = tpu.matmul %136, %135, %cst_49 {dimension_numbers = #tpu.dot_dimension_numbers<[1], [0], [0], [1], [0, 0, 1, 1], [], []>} : vector<16x128xbf16>, vector<128x128xbf16>, vector<16x128xf32> -> vector<16x128xf32>
    %138 = arith.addf %69, %137 : vector<16x128xf32>
    %c0_50 = arith.constant 0 : index
    %c0_51 = arith.constant 0 : index
    %139 = vector.load %arg13[%c0_50, %c0_51] : memref<1x128xf32, #tpu.memory_space<vmem>>, vector<1x128xf32>
    %140 = vector.shape_cast %139 : vector<1x128xf32> to vector<128xf32>
    %141 = arith.mulf %138, %138 : vector<16x128xf32>
    %cst_52 = arith.constant dense<0.000000e+00> : vector<16xf32>
    %142 = vector.multi_reduction <add>, %141, %cst_52 [1] : vector<16x128xf32> to vector<16xf32>
    %143 = vector.shape_cast %142 : vector<16xf32> to vector<16x1xf32>
    %cst_53 = arith.constant 1.280000e+02 : f32
    %144 = vector.broadcast %cst_53 : f32 to vector<16x1xf32>
    %145 = arith.divf %143, %144 : vector<16x1xf32>
    %cst_54 = arith.constant 9.99999997E-7 : f32
    %146 = vector.broadcast %cst_54 : f32 to vector<16x1xf32>
    %147 = arith.addf %145, %146 : vector<16x1xf32>
    %148 = math.rsqrt %147 : vector<16x1xf32>
    %149 = vector.broadcast %148 : vector<16x1xf32> to vector<16x128xf32>
    %150 = arith.mulf %138, %149 : vector<16x128xf32>
    %151 = vector.shape_cast %140 : vector<128xf32> to vector<1x128xf32>
    %152 = vector.broadcast %151 : vector<1x128xf32> to vector<16x128xf32>
    %153 = arith.mulf %150, %152 : vector<16x128xf32>
    %c0_55 = arith.constant 0 : index
    %c0_56 = arith.constant 0 : index
    %154 = vector.load %arg14[%c0_55, %c0_56] : memref<128x256xbf16, #tpu.memory_space<vmem>>, vector<128x256xbf16>
    %155 = arith.truncf %153 : vector<16x128xf32> to vector<16x128xbf16>
    %cst_57 = arith.constant dense<0.000000e+00> : vector<16x256xf32>
    %156 = tpu.matmul %155, %154, %cst_57 {dimension_numbers = #tpu.dot_dimension_numbers<[1], [0], [0], [1], [0, 0, 1, 1], [], []>} : vector<16x128xbf16>, vector<128x256xbf16>, vector<16x256xf32> -> vector<16x256xf32>
    %cst_58 = arith.constant 0.000000e+00 : f32
    %157 = vector.broadcast %cst_58 : f32 to vector<16x256xf32>
    %158 = arith.maximumf %156, %157 : vector<16x256xf32>
    %c0_59 = arith.constant 0 : index
    %c0_60 = arith.constant 0 : index
    %159 = vector.load %arg15[%c0_59, %c0_60] : memref<256x128xbf16, #tpu.memory_space<vmem>>, vector<256x128xbf16>
    %160 = arith.truncf %158 : vector<16x256xf32> to vector<16x256xbf16>
    %cst_61 = arith.constant dense<0.000000e+00> : vector<16x128xf32>
    %161 = tpu.matmul %160, %159, %cst_61 {dimension_numbers = #tpu.dot_dimension_numbers<[1], [0], [0], [1], [0, 0, 1, 1], [], []>} : vector<16x256xbf16>, vector<256x128xbf16>, vector<16x128xf32> -> vector<16x128xf32>
    %162 = arith.addf %138, %161 : vector<16x128xf32>
    %163 = arith.truncf %162 : vector<16x128xf32> to vector<16x128xbf16>
    %c0_62 = arith.constant 0 : index
    %c0_63 = arith.constant 0 : index
    %c0_64 = arith.constant 0 : index
    %164 = vector.load %arg16[%c0_62, %c0_63, %c0_64] : memref<1x16x128xbf16, #tpu.memory_space<vmem>>, vector<1x16x128xbf16>
    %165 = vector.shape_cast %164 : vector<1x16x128xbf16> to vector<16x128xbf16>
    %166 = vector.shape_cast %163 : vector<16x128xbf16> to vector<1x16x128xbf16>
    tpu.vector_store %arg16[%c0_62, %c0_63, %c0_64], %166 {strides = array<i32>} : memref<1x16x128xbf16, #tpu.memory_space<vmem>>, vector<1x16x128xbf16>,
    return
  }
  func.func @transform_0(%arg0: i32) -> (i32, i32, i32) {
    %c0_i32 = arith.constant 0 : i32
    %c0_i32_0 = arith.constant 0 : i32
    %c0_i32_1 = arith.constant 0 : i32
    return %arg0, %c0_i32, %c0_i32_0 : i32, i32, i32
  }
  func.func @transform_1(%arg0: i32) -> (i32, i32, i32) {
    %c0_i32 = arith.constant 0 : i32
    %c0_i32_0 = arith.constant 0 : i32
    %c0_i32_1 = arith.constant 0 : i32
    %c0_i32_2 = arith.constant 0 : i32
    return %c0_i32, %c0_i32_0, %c0_i32_1 : i32, i32, i32
  }
  func.func @transform_2(%arg0: i32) -> (i32, i32, i32) {
    %c0_i32 = arith.constant 0 : i32
    %c0_i32_0 = arith.constant 0 : i32
    %c0_i32_1 = arith.constant 0 : i32
    return %arg0, %c0_i32, %c0_i32_0 : i32, i32, i32
  }
  func.func @transform_3(%arg0: i32) -> (i32, i32, i32) {
    %c0_i32 = arith.constant 0 : i32
    %c0_i32_0 = arith.constant 0 : i32
    %c0_i32_1 = arith.constant 0 : i32
    return %arg0, %c0_i32, %c0_i32_0 : i32, i32, i32
  }
  func.func @transform_4(%arg0: i32) -> (i32, i32) {
    %c0_i32 = arith.constant 0 : i32
    %c0_i32_0 = arith.constant 0 : i32
    %c0_i32_1 = arith.constant 0 : i32
    return %c0_i32, %c0_i32_0 : i32, i32
  }
  func.func @transform_5(%arg0: i32) -> (i32, i32) {
    %c0_i32 = arith.constant 0 : i32
    %c0_i32_0 = arith.constant 0 : i32
    %c0_i32_1 = arith.constant 0 : i32
    return %c0_i32, %c0_i32_0 : i32, i32
  }
  func.func @transform_6(%arg0: i32) -> (i32, i32) {
    %c0_i32 = arith.constant 0 : i32
    %c0_i32_0 = arith.constant 0 : i32
    %c0_i32_1 = arith.constant 0 : i32
    return %c0_i32, %c0_i32_0 : i32, i32
  }
  func.func @transform_7(%arg0: i32) -> (i32, i32) {
    %c0_i32 = arith.constant 0 : i32
    %c0_i32_0 = arith.constant 0 : i32
    %c0_i32_1 = arith.constant 0 : i32
    return %c0_i32, %c0_i32_0 : i32, i32
  }
  func.func @transform_8(%arg0: i32) -> (i32, i32) {
    %c0_i32 = arith.constant 0 : i32
    %c0_i32_0 = arith.constant 0 : i32
    %c0_i32_1 = arith.constant 0 : i32
    return %c0_i32, %c0_i32_0 : i32, i32
  }
  func.func @transform_9(%arg0: i32) -> (i32, i32) {
    %c0_i32 = arith.constant 0 : i32
    %c0_i32_0 = arith.constant 0 : i32
    %c0_i32_1 = arith.constant 0 : i32
    return %c0_i32, %c0_i32_0 : i32, i32
  }
  func.func @transform_10(%arg0: i32) -> (i32, i32) {
    %c0_i32 = arith.constant 0 : i32
    %c0_i32_0 = arith.constant 0 : i32
    %c0_i32_1 = arith.constant 0 : i32
    return %c0_i32, %c0_i32_0 : i32, i32
  }
  func.func @transform_11(%arg0: i32) -> (i32, i32) {
    %c0_i32 = arith.constant 0 : i32
    %c0_i32_0 = arith.constant 0 : i32
    %c0_i32_1 = arith.constant 0 : i32
    return %c0_i32, %c0_i32_0 : i32, i32
  }
  func.func @transform_12(%arg0: i32) -> (i32, i32) {
    %c0_i32 = arith.constant 0 : i32
    %c0_i32_0 = arith.constant 0 : i32
    %c0_i32_1 = arith.constant 0 : i32
    return %c0_i32, %c0_i32_0 : i32, i32
  }
  func.func @transform_13(%arg0: i32) -> (i32, i32) {
    %c0_i32 = arith.constant 0 : i32
    %c0_i32_0 = arith.constant 0 : i32
    %c0_i32_1 = arith.constant 0 : i32
    return %c0_i32, %c0_i32_0 : i32, i32
  }
  func.func @transform_14(%arg0: i32) -> (i32, i32) {
    %c0_i32 = arith.constant 0 : i32
    %c0_i32_0 = arith.constant 0 : i32
    %c0_i32_1 = arith.constant 0 : i32
    return %c0_i32, %c0_i32_0 : i32, i32
  }
  func.func @transform_15(%arg0: i32) -> (i32, i32, i32) {
    %c0_i32 = arith.constant 0 : i32
    %c0_i32_0 = arith.constant 0 : i32
    %c0_i32_1 = arith.constant 0 : i32
    return %arg0, %c0_i32, %c0_i32_0 : i32, i32, i32
  }
}

module attributes {stable_mosaic.version = 11 : i64} {
  func.func @_lm_ce_kernel(%arg0: i32, %arg1: memref<32x128xbf16, #tpu.memory_space<vmem>>, %arg2: memref<1x128xf32, #tpu.memory_space<vmem>>, %arg3: memref<32x1xi32, #tpu.memory_space<vmem>>, %arg4: memref<128x256xbf16, #tpu.memory_space<vmem>>, %arg5: memref<1x1xf32, #tpu.memory_space<vmem>>, %arg6: memref<32x128xbf16, #tpu.memory_space<vmem>>, %arg7: memref<32x1xf32, #tpu.memory_space<vmem>>, %arg8: memref<32x1xf32, #tpu.memory_space<vmem>>, %arg9: memref<32x1xf32, #tpu.memory_space<vmem>>, %arg10: memref<32x1xf32, #tpu.memory_space<vmem>>) attributes {dimension_semantics = [#tpu.dimension_semantics<arbitrary>], iteration_bounds = array<i64: 2>, scalar_prefetch = 0 : i64, scratch_operands = 5 : i64, tpu.core_type = #tpu.core_type<tc>, window_params = [{pipeline_mode = #tpu.pipeline_mode<synchronous>, transform_indices = @transform_0, window_bounds = array<i64: 32, 128>}, {pipeline_mode = #tpu.pipeline_mode<synchronous>, transform_indices = @transform_1, window_bounds = array<i64: 1, 128>}, {pipeline_mode = #tpu.pipeline_mode<synchronous>, transform_indices = @transform_2, window_bounds = array<i64: 32, 1>}, {transform_indices = @transform_3, window_bounds = array<i64: 128, 256>}, {pipeline_mode = #tpu.pipeline_mode<synchronous>, transform_indices = @transform_4, window_bounds = array<i64: 1, 1>}]} {
    %c0_i32 = arith.constant 0 : i32
    %0 = arith.cmpi eq, %arg0, %c0_i32 : i32
    %1 = arith.extui %0 : i1 to i32
    %c0_i32_0 = arith.constant 0 : i32
    %2 = arith.cmpi ne, %1, %c0_i32_0 : i32
    scf.if %2 {
      %c0_30 = arith.constant 0 : index
      %c0_31 = arith.constant 0 : index
      %45 = vector.load %arg1[%c0_30, %c0_31] : memref<32x128xbf16, #tpu.memory_space<vmem>>, vector<32x128xbf16>
      %46 = arith.extf %45 : vector<32x128xbf16> to vector<32x128xf32>
      %47 = arith.mulf %46, %46 : vector<32x128xf32>
      %cst_32 = arith.constant dense<0.000000e+00> : vector<32xf32>
      %48 = vector.multi_reduction <add>, %47, %cst_32 [1] : vector<32x128xf32> to vector<32xf32>
      %49 = vector.shape_cast %48 : vector<32xf32> to vector<32x1xf32>
      %cst_33 = arith.constant 1.280000e+02 : f32
      %50 = vector.broadcast %cst_33 : f32 to vector<32x1xf32>
      %51 = arith.divf %49, %50 : vector<32x1xf32>
      %cst_34 = arith.constant 9.99999997E-7 : f32
      %52 = vector.broadcast %cst_34 : f32 to vector<32x1xf32>
      %53 = arith.addf %51, %52 : vector<32x1xf32>
      %54 = math.rsqrt %53 : vector<32x1xf32>
      %55 = vector.broadcast %54 : vector<32x1xf32> to vector<32x128xf32>
      %56 = arith.mulf %46, %55 : vector<32x128xf32>
      %c0_35 = arith.constant 0 : index
      %c0_36 = arith.constant 0 : index
      %57 = vector.load %arg2[%c0_35, %c0_36] : memref<1x128xf32, #tpu.memory_space<vmem>>, vector<1x128xf32>
      %58 = vector.broadcast %57 : vector<1x128xf32> to vector<32x128xf32>
      %59 = arith.mulf %56, %58 : vector<32x128xf32>
      %60 = arith.truncf %59 : vector<32x128xf32> to vector<32x128xbf16>
      %c0_37 = arith.constant 0 : index
      %c0_38 = arith.constant 0 : index
      %61 = vector.load %arg6[%c0_37, %c0_38] : memref<32x128xbf16, #tpu.memory_space<vmem>>, vector<32x128xbf16>
      tpu.vector_store %arg6[%c0_37, %c0_38], %60 {strides = array<i32>} : memref<32x128xbf16, #tpu.memory_space<vmem>>, vector<32x128xbf16>,
      %cst_39 = arith.constant 0xFF800000 : f32
      %62 = vector.broadcast %cst_39 : f32 to vector<32x1xf32>
      %c0_40 = arith.constant 0 : index
      %c0_41 = arith.constant 0 : index
      %63 = vector.load %arg7[%c0_40, %c0_41] : memref<32x1xf32, #tpu.memory_space<vmem>>, vector<32x1xf32>
      tpu.vector_store %arg7[%c0_40, %c0_41], %62 {strides = array<i32>} : memref<32x1xf32, #tpu.memory_space<vmem>>, vector<32x1xf32>,
      %cst_42 = arith.constant 0.000000e+00 : f32
      %64 = vector.broadcast %cst_42 : f32 to vector<32x1xf32>
      %c0_43 = arith.constant 0 : index
      %c0_44 = arith.constant 0 : index
      %65 = vector.load %arg8[%c0_43, %c0_44] : memref<32x1xf32, #tpu.memory_space<vmem>>, vector<32x1xf32>
      tpu.vector_store %arg8[%c0_43, %c0_44], %64 {strides = array<i32>} : memref<32x1xf32, #tpu.memory_space<vmem>>, vector<32x1xf32>,
      %cst_45 = arith.constant 0.000000e+00 : f32
      %66 = vector.broadcast %cst_45 : f32 to vector<32x1xf32>
      %c0_46 = arith.constant 0 : index
      %c0_47 = arith.constant 0 : index
      %67 = vector.load %arg9[%c0_46, %c0_47] : memref<32x1xf32, #tpu.memory_space<vmem>>, vector<32x1xf32>
      tpu.vector_store %arg9[%c0_46, %c0_47], %66 {strides = array<i32>} : memref<32x1xf32, #tpu.memory_space<vmem>>, vector<32x1xf32>,
      %cst_48 = arith.constant 0.000000e+00 : f32
      %68 = vector.broadcast %cst_48 : f32 to vector<32x1xf32>
      %c0_49 = arith.constant 0 : index
      %c0_50 = arith.constant 0 : index
      %69 = vector.load %arg10[%c0_49, %c0_50] : memref<32x1xf32, #tpu.memory_space<vmem>>, vector<32x1xf32>
      tpu.vector_store %arg10[%c0_49, %c0_50], %68 {strides = array<i32>} : memref<32x1xf32, #tpu.memory_space<vmem>>, vector<32x1xf32>,
    } else {
    }
    %c0 = arith.constant 0 : index
    %c0_1 = arith.constant 0 : index
    %3 = vector.load %arg6[%c0, %c0_1] : memref<32x128xbf16, #tpu.memory_space<vmem>>, vector<32x128xbf16>
    %c0_2 = arith.constant 0 : index
    %c0_3 = arith.constant 0 : index
    %4 = vector.load %arg4[%c0_2, %c0_3] : memref<128x256xbf16, #tpu.memory_space<vmem>>, vector<128x256xbf16>
    %cst = arith.constant dense<0.000000e+00> : vector<32x256xf32>
    %5 = tpu.matmul %3, %4, %cst {dimension_numbers = #tpu.dot_dimension_numbers<[1], [0], [0], [1], [0, 0, 1, 1], [], []>} : vector<32x128xbf16>, vector<128x256xbf16>, vector<32x256xf32> -> vector<32x256xf32>
    %c0_4 = arith.constant 0 : index
    %c0_5 = arith.constant 0 : index
    %6 = vector.load %arg3[%c0_4, %c0_5] : memref<32x1xi32, #tpu.memory_space<vmem>>, vector<32x1xi32>
    %c0_6 = arith.constant 0 : index
    %c0_7 = arith.constant 0 : index
    %7 = vector.load %arg7[%c0_6, %c0_7] : memref<32x1xf32, #tpu.memory_space<vmem>>, vector<32x1xf32>
    %cst_8 = arith.constant dense<0xFF800000> : vector<32xf32>
    %8 = vector.multi_reduction <maximumf>, %5, %cst_8 [1] : vector<32x256xf32> to vector<32xf32>
    %9 = vector.shape_cast %8 : vector<32xf32> to vector<32x1xf32>
    %10 = arith.maximumf %7, %9 : vector<32x1xf32>
    %c0_9 = arith.constant 0 : index
    %c0_10 = arith.constant 0 : index
    %11 = vector.load %arg8[%c0_9, %c0_10] : memref<32x1xf32, #tpu.memory_space<vmem>>, vector<32x1xf32>
    %c0_11 = arith.constant 0 : index
    %c0_12 = arith.constant 0 : index
    %12 = vector.load %arg7[%c0_11, %c0_12] : memref<32x1xf32, #tpu.memory_space<vmem>>, vector<32x1xf32>
    %13 = arith.subf %12, %10 : vector<32x1xf32>
    %14 = math.exp %13 : vector<32x1xf32>
    %15 = arith.mulf %11, %14 : vector<32x1xf32>
    %16 = vector.broadcast %10 : vector<32x1xf32> to vector<32x256xf32>
    %17 = arith.subf %5, %16 : vector<32x256xf32>
    %18 = math.exp %17 : vector<32x256xf32>
    %cst_13 = arith.constant dense<0.000000e+00> : vector<32xf32>
    %19 = vector.multi_reduction <add>, %18, %cst_13 [1] : vector<32x256xf32> to vector<32xf32>
    %20 = vector.shape_cast %19 : vector<32xf32> to vector<32x1xf32>
    %21 = arith.addf %15, %20 : vector<32x1xf32>
    %c0_14 = arith.constant 0 : index
    %c0_15 = arith.constant 0 : index
    %22 = vector.load %arg8[%c0_14, %c0_15] : memref<32x1xf32, #tpu.memory_space<vmem>>, vector<32x1xf32>
    tpu.vector_store %arg8[%c0_14, %c0_15], %21 {strides = array<i32>} : memref<32x1xf32, #tpu.memory_space<vmem>>, vector<32x1xf32>,
    %c0_16 = arith.constant 0 : index
    %c0_17 = arith.constant 0 : index
    %23 = vector.load %arg7[%c0_16, %c0_17] : memref<32x1xf32, #tpu.memory_space<vmem>>, vector<32x1xf32>
    tpu.vector_store %arg7[%c0_16, %c0_17], %10 {strides = array<i32>} : memref<32x1xf32, #tpu.memory_space<vmem>>, vector<32x1xf32>,
    %c0_18 = arith.constant 0 : index
    %c0_19 = arith.constant 0 : index
    %24 = vector.load %arg9[%c0_18, %c0_19] : memref<32x1xf32, #tpu.memory_space<vmem>>, vector<32x1xf32>
    %cst_20 = arith.constant dense<0.000000e+00> : vector<32xf32>
    %25 = vector.multi_reduction <add>, %5, %cst_20 [1] : vector<32x256xf32> to vector<32xf32>
    %26 = vector.shape_cast %25 : vector<32xf32> to vector<32x1xf32>
    %27 = arith.addf %24, %26 : vector<32x1xf32>
    %c0_21 = arith.constant 0 : index
    %c0_22 = arith.constant 0 : index
    %28 = vector.load %arg9[%c0_21, %c0_22] : memref<32x1xf32, #tpu.memory_space<vmem>>, vector<32x1xf32>
    tpu.vector_store %arg9[%c0_21, %c0_22], %27 {strides = array<i32>} : memref<32x1xf32, #tpu.memory_space<vmem>>, vector<32x1xf32>,
    %c256_i32 = arith.constant 256 : i32
    %29 = arith.muli %arg0, %c256_i32 : i32
    %30 = tpu.iota {dimensions = array<i32: 1>} : vector<32x256xi32>
    %31 = vector.broadcast %29 : i32 to vector<32x256xi32>
    %32 = arith.addi %31, %30 : vector<32x256xi32>
    %c0_23 = arith.constant 0 : index
    %c0_24 = arith.constant 0 : index
    %33 = vector.load %arg10[%c0_23, %c0_24] : memref<32x1xf32, #tpu.memory_space<vmem>>, vector<32x1xf32>
    %34 = vector.broadcast %6 : vector<32x1xi32> to vector<32x256xi32>
    %35 = arith.cmpi eq, %32, %34 : vector<32x256xi32>
    %cst_25 = arith.constant 0.000000e+00 : f32
    %36 = vector.broadcast %cst_25 : f32 to vector<32x256xf32>
    %37 = arith.select %35, %5, %36 : vector<32x256xi1>, vector<32x256xf32>
    %cst_26 = arith.constant dense<0.000000e+00> : vector<32xf32>
    %38 = vector.multi_reduction <add>, %37, %cst_26 [1] : vector<32x256xf32> to vector<32xf32>
    %39 = vector.shape_cast %38 : vector<32xf32> to vector<32x1xf32>
    %40 = arith.addf %33, %39 : vector<32x1xf32>
    %c0_27 = arith.constant 0 : index
    %c0_28 = arith.constant 0 : index
    %41 = vector.load %arg10[%c0_27, %c0_28] : memref<32x1xf32, #tpu.memory_space<vmem>>, vector<32x1xf32>
    tpu.vector_store %arg10[%c0_27, %c0_28], %40 {strides = array<i32>} : memref<32x1xf32, #tpu.memory_space<vmem>>, vector<32x1xf32>,
    %c1_i32 = arith.constant 1 : i32
    %42 = arith.cmpi eq, %arg0, %c1_i32 : i32
    %43 = arith.extui %42 : i1 to i32
    %c0_i32_29 = arith.constant 0 : i32
    %44 = arith.cmpi ne, %43, %c0_i32_29 : i32
    scf.if %44 {
      %c0_30 = arith.constant 0 : index
      %c0_31 = arith.constant 0 : index
      %45 = vector.load %arg7[%c0_30, %c0_31] : memref<32x1xf32, #tpu.memory_space<vmem>>, vector<32x1xf32>
      %c0_32 = arith.constant 0 : index
      %c0_33 = arith.constant 0 : index
      %46 = vector.load %arg8[%c0_32, %c0_33] : memref<32x1xf32, #tpu.memory_space<vmem>>, vector<32x1xf32>
      %47 = math.log %46 : vector<32x1xf32>
      %48 = arith.addf %45, %47 : vector<32x1xf32>
      %c0_34 = arith.constant 0 : index
      %c0_35 = arith.constant 0 : index
      %49 = vector.load %arg10[%c0_34, %c0_35] : memref<32x1xf32, #tpu.memory_space<vmem>>, vector<32x1xf32>
      %50 = arith.subf %48, %49 : vector<32x1xf32>
      %c0_36 = arith.constant 0 : index
      %c0_37 = arith.constant 0 : index
      %51 = vector.load %arg9[%c0_36, %c0_37] : memref<32x1xf32, #tpu.memory_space<vmem>>, vector<32x1xf32>
      %cst_38 = arith.constant 5.120000e+02 : f32
      %52 = vector.broadcast %cst_38 : f32 to vector<32x1xf32>
      %53 = arith.divf %51, %52 : vector<32x1xf32>
      %54 = arith.subf %48, %53 : vector<32x1xf32>
      %cst_39 = arith.constant 0.899999976 : f32
      %55 = vector.broadcast %cst_39 : f32 to vector<32x1xf32>
      %56 = arith.mulf %55, %50 : vector<32x1xf32>
      %cst_40 = arith.constant 1.000000e-01 : f32
      %57 = vector.broadcast %cst_40 : f32 to vector<32x1xf32>
      %58 = arith.mulf %57, %54 : vector<32x1xf32>
      %59 = arith.addf %56, %58 : vector<32x1xf32>
      %c-100_i32 = arith.constant -100 : i32
      %60 = vector.broadcast %c-100_i32 : i32 to vector<32x1xi32>
      %61 = arith.cmpi ne, %6, %60 : vector<32x1xi32>
      %62 = arith.extui %61 : vector<32x1xi1> to vector<32x1xi32>
      %63 = arith.sitofp %62 : vector<32x1xi32> to vector<32x1xf32>
      %64 = arith.mulf %59, %63 : vector<32x1xf32>
      %65 = vector.shape_cast %64 : vector<32x1xf32> to vector<1x32x1xf32>
      %cst_41 = arith.constant dense<0.000000e+00> : vector<1xf32>
      %66 = vector.multi_reduction <add>, %65, %cst_41 [1, 2] : vector<1x32x1xf32> to vector<1xf32>
      %67 = vector.shape_cast %66 : vector<1xf32> to vector<1x1x1xf32>
      %68 = vector.extract %67[0, 0, 0] : f32 from vector<1x1x1xf32>
      %69 = vector.shape_cast %63 : vector<32x1xf32> to vector<1x32x1xf32>
      %cst_42 = arith.constant dense<0.000000e+00> : vector<1xf32>
      %70 = vector.multi_reduction <add>, %69, %cst_42 [1, 2] : vector<1x32x1xf32> to vector<1xf32>
      %71 = vector.shape_cast %70 : vector<1xf32> to vector<1x1x1xf32>
      %72 = vector.extract %71[0, 0, 0] : f32 from vector<1x1x1xf32>
      %cst_43 = arith.constant 1.000000e+00 : f32
      %73 = arith.maximumf %72, %cst_43 : f32
      %74 = arith.divf %68, %73 : f32
      %75 = vector.broadcast %74 : f32 to vector<1x1xf32>
      %c0_44 = arith.constant 0 : index
      %c0_45 = arith.constant 0 : index
      %76 = vector.load %arg5[%c0_44, %c0_45] : memref<1x1xf32, #tpu.memory_space<vmem>>, vector<1x1xf32>
      tpu.vector_store %arg5[%c0_44, %c0_45], %75 {strides = array<i32>} : memref<1x1xf32, #tpu.memory_space<vmem>>, vector<1x1xf32>,
    } else {
    }
    return
  }
  func.func @transform_0(%arg0: i32) -> (i32, i32) {
    %c0_i32 = arith.constant 0 : i32
    %c0_i32_0 = arith.constant 0 : i32
    %c0_i32_1 = arith.constant 0 : i32
    return %c0_i32, %c0_i32_0 : i32, i32
  }
  func.func @transform_1(%arg0: i32) -> (i32, i32) {
    %c0_i32 = arith.constant 0 : i32
    %c0_i32_0 = arith.constant 0 : i32
    %c0_i32_1 = arith.constant 0 : i32
    return %c0_i32, %c0_i32_0 : i32, i32
  }
  func.func @transform_2(%arg0: i32) -> (i32, i32) {
    %c0_i32 = arith.constant 0 : i32
    %c0_i32_0 = arith.constant 0 : i32
    %c0_i32_1 = arith.constant 0 : i32
    return %c0_i32, %c0_i32_0 : i32, i32
  }
  func.func @transform_3(%arg0: i32) -> (i32, i32) {
    %c0_i32 = arith.constant 0 : i32
    %c0_i32_0 = arith.constant 0 : i32
    return %c0_i32, %arg0 : i32, i32
  }
  func.func @transform_4(%arg0: i32) -> (i32, i32) {
    %c0_i32 = arith.constant 0 : i32
    %c0_i32_0 = arith.constant 0 : i32
    %c0_i32_1 = arith.constant 0 : i32
    return %c0_i32, %c0_i32_0 : i32, i32
  }
}

</mosaic_0001>

<bundles_post_ra>
// kernel: t5_caption_forward.5
= control target key start
LH: loop header
LB: loop body
LE: loop exit
PB: predicated region body
PF: predicated region fallthrough
CT: control target
= control target key end

     0   :  { %vm56_vm0 = vcmask 523264   ;;  %s328_s1 = inlined_call_operand.vmem [shape: bf16[64,128], index: 1, kind: input, shape index: {}]   ;;  %s329_s0 = inlined_call_operand.vmem [shape: f32[64,64], index: 0, kind: input, shape index: {}]   ;;  %s330_s2 = inlined_call_operand.vmem [shape: bf16[64,128], index: 2, kind: output, shape index: {}]  }
   0x1   :  { %v257_v0 = vld [vmem:[%s328_s1 + $0x18] sm:$0xff]   ;;  %v258_v1 = vld [vmem:[%s328_s1 + $0x10] sm:$0xff]   ;;  %v259_v2 = vld [vmem:[%s328_s1 + $0x8] sm:$0xff]  }
   0x2   :  { %233 = vmatprep.subr.bf16.mxu0 %v257_v0  ;;  %249 = vmatprep.subr.bf16.mxu1 %v257_v0  ;;  %v12_v3 = vld [vmem:[%s329_s0] sm:$0xff]  ;;  %v13_v4 = vld [vmem:[%s329_s0 + $0x8] sm:$0xff]  ;;  %v14_v10 = vld [vmem:[%s329_s0 + $0x10] sm:$0xff] }
   0x3   :  { %234 = vmatpush3.bf16.msra.mxu0 %v257_v0  ;;  %253 = vmatpush3.bf16.msra.mxu1 %v257_v0  ;;  %v16_v5 = vld [vmem:[%s329_s0 + $0x20] sm:$0xff]  ;;  %v20_v6 = vpack.c.bf16 %v13_v4, %v12_v3  ;;  %v17_v7 = vld [vmem:[%s329_s0 + $0x28] sm:$0xff]  ;;  %v15_v11 = vld [vmem:[%s329_s0 + $0x18] sm:$0xff] }
   0x4   :  { %235 = vmatprep.subr.bf16.mxu0 %v258_v1  ;;  %250 = vmatprep.subr.bf16.mxu1 %v258_v1  ;;  %v22_v8 = vpack.c.bf16 %v17_v7, %v16_v5  ;;  %v260_v9 = vld [vmem:[%s328_s1] sm:$0xff]   ;;  %v18_v12 = vld [vmem:[%s329_s0 + $0x30] sm:$0xff]  ;;  %v19_v13 = vld [vmem:[%s329_s0 + $0x38] sm:$0xff]  ;;  %v21_v14 = vpack.c.bf16 %v15_v11, %v14_v10 }
   0x5   :  { %241 = vmatprep.mubr.msk.bf16.mxu0 %vm56_vm0, %v20_v6  ;;  %v23_v15 = vpack.c.bf16 %v19_v13, %v18_v12 }
   0x6   :  { %245 = vmatprep.mubr.msk.bf16.mxu1 %vm56_vm0, %v22_v8 }
   0x7   :  { %236 = vmatpush3.bf16.msra.mxu0 %v258_v1  ;;  %254 = vmatpush3.bf16.msra.mxu1 %v258_v1 }
   0x8   :  { %237 = vmatprep.subr.bf16.mxu0 %v259_v2  ;;  %251 = vmatprep.subr.bf16.mxu1 %v259_v2 }
   0xb   :  { %238 = vmatpush3.bf16.msra.mxu0 %v259_v2  ;;  %255 = vmatpush3.bf16.msra.mxu1 %v259_v2 }
   0xc   :  { %239 = vmatprep.subr.bf16.mxu0 %v260_v9  ;;  %252 = vmatprep.subr.bf16.mxu1 %v260_v9 }
   0xf   :  { %240 = vmatpush3.bf16.msra.mxu0 %v260_v9  ;;  %256 = vmatpush3.bf16.msra.mxu1 %v260_v9 }
  0x12   :  { %242 = vmatmul.mubr.msk.bf16.vlgmr.msra.gmra.mxu0 %vm56_vm0, %v21_v14  ;;  %246 = vmatmul.mubr.msk.bf16.vlgmr.msra.gmra.mxu1 %vm56_vm0, %v23_v15 }
  0xd2   :  { %v243_v16 = vpop.f32.mrf.mxu0  ;;  %v247_v17 = vpop.f32.mrf.mxu1 }
  0xd4   :  { %v103_v18 = vpop.f32.mrf.mxu0  ;;  %v119_v19 = vpop.f32.mrf.mxu1 }
  0xd6   :  { %v244_v20 = vpop.f32.mrf.mxu0  ;;  %v248_v21 = vpop.f32.mrf.mxu1 }
  0xd7   :  { %v210_v22 = vpack.c.bf16 %v244_v20, %v243_v16  ;;  %v220_v23 = vpack.c.bf16 %v248_v21, %v247_v17 }
  0xd8   :  { %v106_v24 = vpop.f32.mrf.mxu0  ;;  %v122_v25 = vpop.f32.mrf.mxu1 }
  0xd9   :  { %222 = vst [vmem:[%s330_s2 + $0x8] sm:$0xff] %v210_v22   ;;  %224 = vst [vmem:[%s330_s2 + $0x18] sm:$0xff] %v220_v23   ;;  %v205_v26 = vpack.c.bf16 %v106_v24, %v103_v18  ;;  %v215_v27 = vpack.c.bf16 %v122_v25, %v119_v19 }
  0xdb   :  { %206 = vst [vmem:[%s330_s2] sm:$0xff] %v205_v26   ;;  %223 = vst [vmem:[%s330_s2 + $0x10] sm:$0xff] %v215_v27  }

// kernel: t5_caption_forward.9
= control target key start
LH: loop header
LB: loop body
LE: loop exit
PB: predicated region body
PF: predicated region fallthrough
CT: control target
= control target key end

     0   :  { %9 = vsyncpa [#allocation9], 0  ;;  %s1175_s15 = smov 0   ;;  %s1177_s16 = smov 0   ;;  %s1456_s0 = inlined_call_operand.vmem [shape: bf16[32,128], index: 0, kind: input, shape index: {}]   ;;  %s1457_s1 = inlined_call_operand.vmem [shape: f32[1,128], index: 1, kind: input, shape index: {}]   ;;  %s1458_s2 = inlined_call_operand.vmem [shape: s32[32,1], index: 2, kind: input, shape index: {}]   ;;  %s1459_s3 = inlined_call_operand.vmem [shape: bf16[128,512], index: 3, kind: input, shape index: {}]   ;;  %s1460_s4 = inlined_call_operand.hbm [shape: f32[1,1], index: 4, kind: output, shape index: {}]  }
   0x1   :  { %s1179_s17 = smov 0  }
   0x2 LB: > { %s1191_s18 = sadd.s32 4294967295, %s1142_s17   ;;  %s1194_s19 = sadd.s32 1, %s1142_s17   ;;  %s1142_s17 = sphi %s1179_s17, %s1463_s17   ;;  %s1138_s16 = sphi %s1177_s16, %s1462_s16   ;;  %s1134_s15 = sphi %s1175_s15, %s1461_s15  }
   0x3   : > { %s82_s20 = ssub.s32 %s1142_s17, %s1194_s19  ;;  %s85_s21 = sadd.s32 1, %s1138_s16 }
   0x4   : > { %p83_p0 = scmp.eq.s32.totalorder %s82_s20, 0  ;;  %p92_p1 = scmp.ne.s32.totalorder %s1138_s16, %s1134_s15 }
   0x5   : > { %p93_p2 = scmp.eq.s32.totalorder %s1142_s17, 0  ;;  %p899_p4 = scmp.ge.s32.totalorder %s1142_s17, 2 }
   0x6   : > { %s1203_s22 = scalar_select %p83_p0, %s1138_s16, %s85_s21  }
   0x7   : > { %p94_p3 = por %p93_p2, %p92_p1  ;;  %148 = sbr.rel (%p899_p4) target bundleno = 24 (0x18), region = 28 }
   0xc   : > { %151 = sbr.rel (!%p94_p3) target bundleno = 24 (0x18), region = 32  ;;  %s153_s23 = sand.u32 (%p94_p3), 1, %s1138_s16  }
   0xd   : > { %s939_s24 = sshll.u32 (%p94_p3), %s1142_s17, 3  ;;  %s900_s25 = sshll.u32 (%p94_p3), %s153_s23, 7 }
   0xe   : > { %s1211_s28 = scalar_lea.vmem (%p94_p3), %s1459_s3, %s939_s24  ;;  %s155_s29 = scalar_lea.vmem (%p94_p3), [#allocation7], %s900_s25 }
   0xf   : > { %v217_v0 = vld [vmem:[%s1211_s28] sm:$0xff] (%p94_p3)  ;;  %v219_v1 = vld [vmem:[%s1211_s28 + $0x10] sm:$0xff] (%p94_p3) }
  0x10   : > { %v221_v2 = vld [vmem:[%s1211_s28 + $0x20] sm:$0xff] (%p94_p3)  ;;  %218 = vst [vmem:[%s155_s29] sm:$0xff] (%p94_p3), %v217_v0  ;;  %220 = vst [vmem:[%s155_s29 + $0x8] sm:$0xff] (%p94_p3), %v219_v1  ;;  %v223_v3 = vld [vmem:[%s1211_s28 + $0x30] sm:$0xff] (%p94_p3) }
  0x11   : > { %222 = vst [vmem:[%s155_s29 + $0x10] sm:$0xff] %v221_v2  ;;  %v225_v4 = vld [vmem:[%s1211_s28 + $0x40] sm:$0xff]  ;;  %v227_v5 = vld [vmem:[%s1211_s28 + $0x50] sm:$0xff]  ;;  %224 = vst [vmem:[%s155_s29 + $0x18] sm:$0xff] %v223_v3 }
  0x12   : > { %226 = vst [vmem:[%s155_s29 + $0x20] sm:$0xff] %v225_v4  ;;  %228 = vst [vmem:[%s155_s29 + $0x28] sm:$0xff] %v227_v5  ;;  %v229_v6 = vld [vmem:[%s1211_s28 + $0x60] sm:$0xff]  ;;  %v231_v7 = vld [vmem:[%s1211_s28 + $0x70] sm:$0xff] }
  0x13   : > { %v233_v8 = vld [vmem:[%s1211_s28 + $0x80] sm:$0xff]  ;;  %230 = vst [vmem:[%s155_s29 + $0x30] sm:$0xff] %v229_v6  ;;  %232 = vst [vmem:[%s155_s29 + $0x38] sm:$0xff] %v231_v7  ;;  %v235_v9 = vld [vmem:[%s1211_s28 + $0x90] sm:$0xff] }
  0x14   : > { %234 = vst [vmem:[%s155_s29 + $0x40] sm:$0xff] %v233_v8  ;;  %v237_v10 = vld [vmem:[%s1211_s28 + $0xa0] sm:$0xff]  ;;  %v239_v11 = vld [vmem:[%s1211_s28 + $0xb0] sm:$0xff]  ;;  %236 = vst [vmem:[%s155_s29 + $0x48] sm:$0xff] %v235_v9 }
  0x15   : > { %238 = vst [vmem:[%s155_s29 + $0x50] sm:$0xff] %v237_v10  ;;  %240 = vst [vmem:[%s155_s29 + $0x58] sm:$0xff] %v239_v11  ;;  %v241_v12 = vld [vmem:[%s1211_s28 + $0xc0] sm:$0xff]  ;;  %v243_v13 = vld [vmem:[%s1211_s28 + $0xd0] sm:$0xff] }
  0x16   : > { %v245_v14 = vld [vmem:[%s1211_s28 + $0xe0] sm:$0xff]  ;;  %242 = vst [vmem:[%s155_s29 + $0x60] sm:$0xff] %v241_v12  ;;  %244 = vst [vmem:[%s155_s29 + $0x68] sm:$0xff] %v243_v13  ;;  %v247_v15 = vld [vmem:[%s1211_s28 + $0xf0] sm:$0xff] }
  0x17   : > { %246 = vst [vmem:[%s155_s29 + $0x70] sm:$0xff] %v245_v14  ;;  %248 = vst [vmem:[%s155_s29 + $0x78] sm:$0xff] %v247_v15 }
  0x18 PF: > { %p903_p5 = scmp.ge.s32.totalorder %s1142_s17, 1  ;;  %p253_p6 = scmp.lt.s32.totalorder %s1142_s17, 3 }
  0x1a   : > { %p254_p7 = pnand %p903_p5, %p253_p6 }
  0x1b   : > { %s260_s30 = sand.u32 (!%p254_p7), 1, %s1134_s15   ;;  %p905_p8 = scmp.ne.s32.totalorder (!%p254_p7), %s1191_s18, 0 }
  0x1c   : > { %257 = sbr.rel (%p254_p7) target bundleno = 1204 (0x4b4), region = 70  ;;  %s904_s5 = sshll.u32 (!%p254_p7), %s260_s30, 7 }
  0x1d   : > { %s1232_s6 = scalar_lea.vmem (!%p254_p7), [#allocation7], %s904_s5 }
  0x21   : > { %285 = sbr.rel (%p905_p8) target bundleno = 211 (0xd3), region = 78 }
  0x26   : > { %v962_v16 = vld [vmem:[%s1456_s0 + $0x8] sm:$0xff]   ;;  %v945_v17 = vld [vmem:[%s1456_s0] sm:$0xff]   ;;  %vm354_vm0 = vcmask 7168   ;;  %v1144_v26 = vmov -inf   ;;  %v1145_v27 = vmov 0.0  }
  0x27   : > { %v950_v18 = vunpack.c.l.bf16 %v962_v16  ;;  %v946_v19 = vunpack.c.l.bf16 %v945_v17  ;;  %v951_v20 = vunpack.c.h.bf16 %v962_v16  ;;  %v947_v21 = vunpack.c.h.bf16 %v945_v17  ;;  %355 = vst.msk [vmem:[#allocation3] sm:$0xff] %vm354_vm0, %v1144_v26  ;;  %356 = vst.msk [vmem:[#allocation3 + $0x8] sm:$0xff] %vm354_vm0, %v1144_v26  ;;  %v906_v44 = vld [vmem:[%s1457_s1] ss:$0 sm:$0xff] }
  0x28   : > { %357 = vst.msk [vmem:[#allocation3 + $0x10] sm:$0xff] %vm354_vm0, %v1144_v26  ;;  %358 = vst.msk [vmem:[#allocation3 + $0x18] sm:$0xff] %vm354_vm0, %v1144_v26 }
  0x29   : > { %v296_v22 = vmul.f32 %v950_v18, %v950_v18  ;;  %v294_v23 = vmul.f32 %v946_v19, %v946_v19  ;;  %v297_v24 = vmul.f32 %v951_v20, %v951_v20  ;;  %v295_v25 = vmul.f32 %v947_v21, %v947_v21  ;;  %359 = vst.msk [vmem:[#allocation4] sm:$0xff] %vm354_vm0, %v1145_v27 }
  0x2a   : > { %360 = vst.msk [vmem:[#allocation4 + $0x8] sm:$0xff] %vm354_vm0, %v1145_v27  ;;  %361 = vst.msk [vmem:[#allocation4 + $0x10] sm:$0xff] %vm354_vm0, %v1145_v27 }
  0x2b   : > { %302 = vadd.xlane.f32.xlu1 %v296_v22  ;;  %298 = vadd.xlane.f32.xlu0 %v294_v23  ;;  %362 = vst.msk [vmem:[#allocation4 + $0x18] sm:$0xff] %vm354_vm0, %v1145_v27  ;;  %363 = vst.msk [vmem:[#allocation5] sm:$0xff] %vm354_vm0, %v1145_v27 }
  0x2c   : > { %364 = vst.msk [vmem:[#allocation5 + $0x8] sm:$0xff] %vm354_vm0, %v1145_v27  ;;  %365 = vst.msk [vmem:[#allocation5 + $0x10] sm:$0xff] %vm354_vm0, %v1145_v27 }
  0x2d   : > { %366 = vst.msk [vmem:[#allocation5 + $0x18] sm:$0xff] %vm354_vm0, %v1145_v27  ;;  %367 = vst.msk [vmem:[#allocation6] sm:$0xff] %vm354_vm0, %v1145_v27 }
  0x2e   : > { %368 = vst.msk [vmem:[#allocation6 + $0x8] sm:$0xff] %vm354_vm0, %v1145_v27  ;;  %369 = vst.msk [vmem:[#allocation6 + $0x10] sm:$0xff] %vm354_vm0, %v1145_v27 }
  0x2f   : > { %304 = vadd.xlane.f32.xlu1 %v297_v24  ;;  %300 = vadd.xlane.f32.xlu0 %v295_v25  ;;  %370 = vst.msk [vmem:[#allocation6 + $0x18] sm:$0xff] %vm354_vm0, %v1145_v27 }
  0xb4   : > { %v303_v28 = vpop.xlane.xlu1 %302  ;;  %v299_v29 = vpop.xlane.xlu0 %298 }
  0xb5   : > { %v309_v30 = vmul.f32 0.0078125, %v303_v28  ;;  %v307_v31 = vmul.f32 0.0078125, %v299_v29 }
  0xb7   : > { %v313_v32 = vadd.f32 1e-06, %v309_v30  ;;  %v311_v33 = vadd.f32 1e-06, %v307_v31 }
  0xb8   : > { %v305_v34 = vpop.xlane.xlu1 %304  ;;  %v301_v35 = vpop.xlane.xlu0 %300 }
  0xb9   : > { %1022 = vrsqrt.f32 %v313_v32  ;;  %v310_v36 = vmul.f32 0.0078125, %v305_v34  ;;  %v308_v37 = vmul.f32 0.0078125, %v301_v35 }
  0xba   : > { %1024 = vrsqrt.f32 %v311_v33 }
  0xbb   : > { %v314_v38 = vadd.f32 1e-06, %v310_v36  ;;  %v312_v39 = vadd.f32 1e-06, %v308_v37 }
  0xbd   : > { %1026 = vrsqrt.f32 %v314_v38 }
  0xbe   : > { %1028 = vrsqrt.f32 %v312_v39 }
  0xc6   : > { %v1023_v40 = vpop.eup %1022 }
  0xc7   : > { %v1025_v41 = vpop.eup %1024  ;;  %v321_v42 = vmul.f32 %v1023_v40, %v950_v18 }
  0xc8   : > { %v319_v45 = vmul.f32 %v1025_v41, %v946_v19 }
  0xc9   : > { %v332_v49 = vmul.f32 %v906_v44, %v321_v42 }
  0xca   : > { %v1027_v43 = vpop.eup %1026  ;;  %v330_v51 = vmul.f32 %v906_v44, %v319_v45 }
  0xcb   : > { %v1029_v46 = vpop.eup %1028  ;;  %v322_v47 = vmul.f32 %v1027_v43, %v951_v20 }
  0xcc   : > { %v320_v48 = vmul.f32 %v1029_v46, %v947_v21 }
  0xcd   : > { %v333_v50 = vmul.f32 %v906_v44, %v322_v47 }
  0xce   : > { %v331_v52 = vmul.f32 %v906_v44, %v320_v48 }
  0xcf   : > { %v960_v53 = vpack.c.bf16 %v333_v50, %v332_v49 }
  0xd0   : > { %v955_v54 = vpack.c.bf16 %v331_v52, %v330_v51 }
  0xd1   : > { %963 = vst [vmem:[#allocation2 + $0x8] sm:$0xff] %v960_v53  }
  0xd2   : > { %956 = vst [vmem:[#allocation2] sm:$0xff] %v955_v54  }
  0xd3 PF: > { %v1032_v55 = vld [vmem:[%s1232_s6 + $0x74] ss:$8 sps:$4 sm:$0xff]   ;;  %v1034_v56 = vld [vmem:[%s1232_s6 + $0x70] ss:$8 sps:$4 sm:$0xff]   ;;  %v1146_v57 = vmov 0   ;;  %v1302_v23 = vld [vmem:[#allocation3] sm:$0xff]  ;;  %v674_v46 = vlaneseq }
  0xd4   : > { %515 = vmatprep.mubr.bf16.mxu0 %v1146_v57  ;;  %525 = vmatprep.mubr.bf16.mxu1 %v1146_v57  ;;  %v1035_v58 = vld [vmem:[%s1232_s6 + $0x64] ss:$8 sps:$4 sm:$0xff]   ;;  %v1037_v59 = vld [vmem:[%s1232_s6 + $0x60] ss:$8 sps:$4 sm:$0xff]   ;;  %v1038_v60 = vld [vmem:[%s1232_s6 + $0x54] ss:$8 sps:$4 sm:$0xff]  }
  0xd5   : > { %483 = vmatprep.subr.bf16.mxu0 %v1032_v55  ;;  %964 = vmatprep.subr.bf16.mxu1 %v1032_v55  ;;  %v1040_v61 = vld [vmem:[%s1232_s6 + $0x50] ss:$8 sps:$4 sm:$0xff]   ;;  %v1041_v62 = vld [vmem:[%s1232_s6 + $0x44] ss:$8 sps:$4 sm:$0xff]   ;;  %v1043_v63 = vld [vmem:[%s1232_s6 + $0x40] ss:$8 sps:$4 sm:$0xff]  }
  0xd6   : > { %484 = vmatpush1.bf16.msra.mxu0 %v1034_v56  ;;  %972 = vmatpush1.bf16.msra.mxu1 %v1034_v56  ;;  %v1044_v0 = vld [vmem:[%s1232_s6 + $0x34] ss:$8 sps:$4 sm:$0xff]   ;;  %v1046_v1 = vld [vmem:[%s1232_s6 + $0x30] ss:$8 sps:$4 sm:$0xff]   ;;  %v1047_v2 = vld [vmem:[%s1232_s6 + $0x24] ss:$8 sps:$4 sm:$0xff]  }
  0xd7   : > { %485 = vmatprep.subr.bf16.mxu0 %v1035_v58  ;;  %965 = vmatprep.subr.bf16.mxu1 %v1035_v58  ;;  %v1049_v3 = vld [vmem:[%s1232_s6 + $0x20] ss:$8 sps:$4 sm:$0xff]   ;;  %v1050_v4 = vld [vmem:[%s1232_s6 + $0x14] ss:$8 sps:$4 sm:$0xff]   ;;  %v1052_v5 = vld [vmem:[%s1232_s6 + $0x10] ss:$8 sps:$4 sm:$0xff]  }
  0xd8   : > { %1031 = vset.pattern.permute.xlu1 %v1146_v57  ;;  %1030 = vset.pattern.permute.xlu0 %v1146_v57  ;;  %v1053_v6 = vld [vmem:[%s1232_s6 + $0x4] ss:$8 sps:$4 sm:$0xff]   ;;  %v1055_v7 = vld [vmem:[%s1232_s6] ss:$8 sps:$4 sm:$0xff]   ;;  %v1057_v9 = vld [vmem:[#allocation2 + $0x8] sm:$0xff]   ;;  %vm640_vm1 = vcmask 7168  }
  0xd9   : > { %v1056_v8 = vld [vmem:[#allocation2] sm:$0xff]   ;;  %v1310_v28 = vld [vmem:[#allocation3 + $0x18] sm:$0xff]  ;;  %v1312_v29 = vld [vmem:[#allocation3 + $0x8] sm:$0xff]  ;;  %v675_v49 = vand.u32 127, %v674_v46  ;;  %s929_s25 = sshll.u32 %s1191_s18, 8  ;;  %p930_p9 = scmp.ne.s32.totalorder %s1191_s18, 1 }
  0xda   : > { %486 = vmatpush1.bf16.msra.mxu0 %v1037_v59  ;;  %973 = vmatpush1.bf16.msra.mxu1 %v1037_v59  ;;  %v1300_v22 = vld [vmem:[#allocation3 + $0x10] sm:$0xff]  ;;  %v1349_v39 = vld [vmem:[%s1458_s2 + $0x8] sm:$0xff]  ;;  %v1355_v40 = vld [vmem:[%s1458_s2 + $0x10] sm:$0xff]  ;;  %s1148_s28 = smov (!%p930_p9), 1.0  }
  0xdb   : > { %487 = vmatprep.subr.bf16.mxu0 %v1038_v60  ;;  %966 = vmatprep.subr.bf16.mxu1 %v1038_v60  ;;  %v1343_v38 = vld [vmem:[%s1458_s2] sm:$0xff]  ;;  %v1361_v41 = vld [vmem:[%s1458_s2 + $0x18] sm:$0xff]  ;;  %v676_v59 = vadd.s32 128, %v675_v49 }
  0xde   : > { %488 = vmatpush1.bf16.msra.mxu0 %v1040_v61  ;;  %974 = vmatpush1.bf16.msra.mxu1 %v1040_v61 }
  0xdf   : > { %489 = vmatprep.subr.bf16.mxu0 %v1041_v62  ;;  %967 = vmatprep.subr.bf16.mxu1 %v1041_v62  ;;  %v677_v62 = vstv %s929_s25 }
  0xe2   : > { %490 = vmatpush1.bf16.msra.mxu0 %v1043_v63  ;;  %975 = vmatpush1.bf16.msra.mxu1 %v1043_v63 }
  0xe3   : > { %491 = vmatprep.subr.bf16.mxu0 %v1044_v0  ;;  %968 = vmatprep.subr.bf16.mxu1 %v1044_v0 }
  0xe6   : > { %492 = vmatpush1.bf16.msra.mxu0 %v1046_v1  ;;  %976 = vmatpush1.bf16.msra.mxu1 %v1046_v1 }
  0xe7   : > { %493 = vmatprep.subr.bf16.mxu0 %v1047_v2  ;;  %969 = vmatprep.subr.bf16.mxu1 %v1047_v2  ;;  %v678_v2 = vadd.s32 %v677_v62, %v675_v49 }
  0xea   : > { %494 = vmatpush1.bf16.msra.mxu0 %v1049_v3  ;;  %977 = vmatpush1.bf16.msra.mxu1 %v1049_v3 }
  0xeb   : > { %495 = vmatprep.subr.bf16.mxu0 %v1050_v4  ;;  %970 = vmatprep.subr.bf16.mxu1 %v1050_v4 }
  0xee   : > { %496 = vmatpush1.bf16.msra.mxu0 %v1052_v5  ;;  %978 = vmatpush1.bf16.msra.mxu1 %v1052_v5  ;;  %v679_v5 = vadd.s32 %v677_v62, %v676_v59 }
  0xef   : > { %497 = vmatprep.subr.bf16.mxu0 %v1053_v6  ;;  %971 = vmatprep.subr.bf16.mxu1 %v1053_v6 }
  0xf2   : > { %498 = vmatpush1.bf16.msra.mxu0 %v1055_v7  ;;  %979 = vmatpush1.bf16.msra.mxu1 %v1055_v7 }
  0xf5   : > { %516 = vmatmul.mubr.bf16.vlgmr.msra.gmra.mxu0 %v1056_v8  ;;  %526 = vmatmul.mubr.bf16.vlgmr.msra.gmra.mxu1 %v1057_v9 }
 0x1b5   : > { %v1276_v10 = vpop.f32.mrf.mxu0  ;;  %v1278_v11 = vpop.f32.mrf.mxu1 }
 0x1b7   : > { %v1280_v12 = vpop.f32.mrf.mxu0  ;;  %v1282_v13 = vpop.f32.mrf.mxu1 }
 0x1b8   : > { %v550_v14 = vmax.f32 %v1278_v11, %v1282_v13  ;;  %v544_v15 = vmax.f32 %v1276_v10, %v1280_v12  ;;  %v653_v42 = vadd.f32 %v1280_v12, %v1276_v10  ;;  %v659_v43 = vadd.f32 %v1282_v13, %v1278_v11 }
 0x1b9   : > { %v1288_v16 = vpop.f32.mrf.mxu0  ;;  %v1290_v17 = vpop.f32.mrf.mxu1 }
 0x1ba   : > { %551 = vmax.xlane.f32.xlu1 %v550_v14  ;;  %545 = vmax.xlane.f32.xlu0 %v544_v15 }
 0x1bb   : > { %v1292_v18 = vpop.f32.mrf.mxu0  ;;  %v1294_v19 = vpop.f32.mrf.mxu1 }
 0x1bc   : > { %v553_v20 = vmax.f32 %v1290_v17, %v1294_v19  ;;  %v547_v21 = vmax.f32 %v1288_v16, %v1292_v18  ;;  %v656_v44 = vadd.f32 %v1292_v18, %v1288_v16  ;;  %v662_v45 = vadd.f32 %v1294_v19, %v1290_v17 }
 0x1be   : > { %554 = vmax.xlane.f32.xlu1 %v553_v20  ;;  %548 = vmax.xlane.f32.xlu0 %v547_v21 }
 0x243   : > { %v552_v24 = vpop.xlane.xlu1 %551  ;;  %v546_v25 = vpop.xlane.xlu0 %545 }
 0x244   : > { %v1305_v26 = vmax.f32 %v1300_v22, %v552_v24  ;;  %v1308_v27 = vmax.f32 %v1302_v23, %v546_v25 }
 0x246   : > { %v566_v30 = vsub.f32 %v1300_v22, %v1305_v26  ;;  %647 = vst.msk [vmem:[#allocation3 + $0x10] sm:$0xff] %vm640_vm1, %v1305_v26  ;;  %v564_v31 = vsub.f32 %v1302_v23, %v1308_v27  ;;  %645 = vst.msk [vmem:[#allocation3] sm:$0xff] %vm640_vm1, %v1308_v27  ;;  %592 = vperm.xlu1 %1031, %v1305_v26   ;;  %582 = vperm.xlu0 %1030, %v1308_v27  }
 0x247   : > { %v555_v32 = vpop.xlane.xlu1 %554  ;;  %v549_v33 = vpop.xlane.xlu0 %548 }
 0x248   : > { %v1325_v34 = vmax.f32 %v1310_v28, %v555_v32  ;;  %v1328_v35 = vmax.f32 %v1312_v29, %v549_v33 }
 0x24a   : > { %v567_v36 = vsub.f32 %v1310_v28, %v1325_v34  ;;  %648 = vst.msk [vmem:[#allocation3 + $0x18] sm:$0xff] %vm640_vm1, %v1325_v34  ;;  %v565_v37 = vsub.f32 %v1312_v29, %v1328_v35  ;;  %646 = vst.msk [vmem:[#allocation3 + $0x8] sm:$0xff] %vm640_vm1, %v1328_v35  ;;  %587 = vperm.xlu1 %1031, %v1328_v35   ;;  %v560_v29 = vld [vmem:[#allocation4] sm:$0xff] }
 0x24e   : > { %597 = vperm.xlu1 %1031, %v1325_v34  }
 0x252   : > { %685 = vperm.xlu1 %1031, %v1343_v38  }
 0x256   : > { %688 = vperm.xlu1 %1031, %v1349_v39  }
 0x25a   : > { %691 = vperm.xlu1 %1031, %v1355_v40  }
 0x25e   : > { %694 = vperm.xlu1 %1031, %v1361_v41  }
 0x265   : > { %654 = vadd.xlane.f32.xlu0 %v653_v42 }
 0x269   : > { %660 = vadd.xlane.f32.xlu0 %v659_v43 }
 0x282   : > { %657 = vadd.xlane.f32.xlu1 %v656_v44 }
 0x286   : > { %663 = vadd.xlane.f32.xlu1 %v662_v45 }
 0x2c1   : > { %v593_v47 = vpop.permute.xlu1 %592  ;;  %v583_v48 = vpop.permute.xlu0 %582 }
 0x2c2   : > { %v604_v50 = vsub.f32 %v1278_v11, %v593_v47  ;;  %v605_v51 = vsub.f32 %v1282_v13, %v593_v47  ;;  %v600_v52 = vsub.f32 %v1276_v10, %v583_v48  ;;  %v601_v53 = vsub.f32 %v1280_v12, %v583_v48 }
 0x2c4   : > { %v616_v54 = vmul.f32 1.442695, %v604_v50  ;;  %v618_v55 = vmul.f32 1.442695, %v605_v51  ;;  %v608_v56 = vmul.f32 1.442695, %v600_v52 }
 0x2c5   : > { %v610_v57 = vmul.f32 1.442695, %v601_v53  ;;  %v588_v58 = vpop.permute.xlu1 %587 }
 0x2c6   : > { %1058 = vpow2.f32 %v616_v54  ;;  %v602_v60 = vsub.f32 %v1288_v16, %v588_v58  ;;  %v603_v61 = vsub.f32 %v1292_v18, %v588_v58  ;;  %v651_v58 = vld [vmem:[#allocation5 + $0x10] sm:$0xff] }
 0x2c7   : > { %1060 = vpow2.f32 %v618_v55 }
 0x2c8   : > { %1062 = vpow2.f32 %v608_v56  ;;  %v612_v63 = vmul.f32 1.442695, %v602_v60  ;;  %v614_v0 = vmul.f32 1.442695, %v603_v61  ;;  %v649_v56 = vld [vmem:[#allocation5] sm:$0xff]  ;;  %v650_v60 = vld [vmem:[#allocation5 + $0x8] sm:$0xff] }
 0x2c9   : > { %1064 = vpow2.f32 %v610_v57  ;;  %v598_v1 = vpop.permute.xlu1 %597 }
 0x2ca   : > { %1066 = vpow2.f32 %v612_v63  ;;  %v606_v3 = vsub.f32 %v1290_v17, %v598_v1  ;;  %v607_v4 = vsub.f32 %v1294_v19, %v598_v1  ;;  %v568_v1 = vmul.f32 1.442695, %v564_v31 }
 0x2cb   : > { %1068 = vpow2.f32 %v614_v0  ;;  %v572_v0 = vmul.f32 1.442695, %v566_v30  ;;  %v562_v30 = vld [vmem:[#allocation4 + $0x10] sm:$0xff] }
 0x2cc   : > { %v620_v6 = vmul.f32 1.442695, %v606_v3  ;;  %v622_v7 = vmul.f32 1.442695, %v607_v4  ;;  %v574_v3 = vmul.f32 1.442695, %v567_v36 }
 0x2cd   : > { %v686_v8 = vpop.permute.xlu1 %685  ;;  %v680_v4 = vld [vmem:[#allocation6] sm:$0xff] }
 0x2ce   : > { %1070 = vpow2.f32 %v620_v6  ;;  %vm696_vm2 = vcmp.eq.s32.totalorder %v678_v2, %v686_v8  ;;  %vm697_vm3 = vcmp.eq.s32.totalorder %v679_v5, %v686_v8  ;;  %v681_v6 = vld [vmem:[#allocation6 + $0x8] sm:$0xff] }
 0x2cf   : > { %1072 = vpow2.f32 %v622_v7  ;;  %v704_v9 = vsel %vm696_vm2, %v1276_v10, 0.0  ;;  %v705_v14 = vsel %vm697_vm3, %v1280_v12, 0.0  ;;  %v561_v8 = vld [vmem:[#allocation4 + $0x8] sm:$0xff] }
 0x2d0   : > { %v712_v15 = vadd.f32 %v705_v14, %v704_v9  ;;  %1074 = vpow2.f32 %v572_v0 }
 0x2d1   : > { %v689_v20 = vpop.permute.xlu1 %688  ;;  %1076 = vpow2.f32 %v568_v1 }
 0x2d2   : > { %vm698_vm4 = vcmp.eq.s32.totalorder %v678_v2, %v689_v20  ;;  %vm699_vm5 = vcmp.eq.s32.totalorder %v679_v5, %v689_v20  ;;  %713 = vadd.xlane.f32.xlu0 %v712_v15 }
 0x2d3   : > { %v1059_v21 = vpop.eup %1058  ;;  %v706_v24 = vsel %vm698_vm4, %v1288_v16, 0.0  ;;  %v707_v25 = vsel %vm699_vm5, %v1292_v18, 0.0 }
 0x2d4   : > { %v1061_v32 = vpop.eup %1060  ;;  %v715_v33 = vadd.f32 %v707_v25, %v706_v24  ;;  %v682_v25 = vld [vmem:[#allocation6 + $0x10] sm:$0xff] }
 0x2d5   : > { %v1063_v42 = vpop.eup %1062  ;;  %v692_v43 = vpop.permute.xlu1 %691  ;;  %v630_v44 = vadd.f32 %v1061_v32, %v1059_v21  ;;  %v563_v21 = vld [vmem:[#allocation4 + $0x18] sm:$0xff] }
 0x2d6   : > { %v1065_v45 = vpop.eup %1064  ;;  %716 = vadd.xlane.f32.xlu1 %v715_v33  ;;  %vm700_vm6 = vcmp.eq.s32.totalorder %v678_v2, %v692_v43  ;;  %vm701_vm7 = vcmp.eq.s32.totalorder %v679_v5, %v692_v43 }
 0x2d7   : > { %v1067_v10 = vpop.eup %1066  ;;  %631 = vadd.xlane.f32.xlu0 %v630_v44  ;;  %v624_v46 = vadd.f32 %v1065_v45, %v1063_v42  ;;  %v708_v16 = vsel %vm700_vm6, %v1278_v11, 0.0  ;;  %v709_v18 = vsel %vm701_vm7, %v1282_v13, 0.0  ;;  %v683_v45 = vld [vmem:[#allocation6 + $0x18] sm:$0xff] }
 0x2d8   : > { %v1069_v12 = vpop.eup %1068  ;;  %v718_v51 = vadd.f32 %v709_v18, %v708_v16 }
 0x2d9   : > { %v695_v47 = vpop.permute.xlu1 %694  ;;  %v627_v48 = vadd.f32 %v1069_v12, %v1067_v10 }
 0x2da   : > { %625 = vadd.xlane.f32.xlu1 %v624_v46  ;;  %vm702_vm8 = vcmp.eq.s32.totalorder %v678_v2, %v695_v47  ;;  %vm703_vm9 = vcmp.eq.s32.totalorder %v679_v5, %v695_v47  ;;  %v570_v2 = vmul.f32 1.442695, %v565_v37 }
 0x2db   : > { %v1071_v49 = vpop.eup %1070  ;;  %628 = vadd.xlane.f32.xlu0 %v627_v48  ;;  %v710_v53 = vsel %vm702_vm8, %v1290_v17, 0.0  ;;  %v711_v54 = vsel %vm703_vm9, %v1294_v19, 0.0  ;;  %v652_v17 = vld [vmem:[#allocation5 + $0x18] sm:$0xff] }
 0x2dc   : > { %v1073_v50 = vpop.eup %1072  ;;  %v721_v55 = vadd.f32 %v711_v54, %v710_v53  ;;  %1078 = vpow2.f32 %v570_v2 }
 0x2dd   : > { %v633_v52 = vadd.f32 %v1073_v50, %v1071_v49  ;;  %1080 = vpow2.f32 %v574_v3  ;;  %v1075_v22 = vpop.eup %1074 }
 0x2de   : > { %v1077_v23 = vpop.eup %1076  ;;  %v578_v31 = vmul.f32 %v1075_v22, %v562_v30 }
 0x2df   : > { %719 = vadd.xlane.f32.xlu0 %v718_v51  ;;  %634 = vadd.xlane.f32.xlu1 %v633_v52  ;;  %v576_v34 = vmul.f32 %v1077_v23, %v560_v29 }
 0x2e3   : > { %722 = vadd.xlane.f32.xlu1 %v721_v55 }
 0x2e9   : > { %v1079_v35 = vpop.eup %1078 }
 0x2ea   : > { %v577_v9 = vmul.f32 %v1079_v35, %v561_v8  ;;  %v1081_v14 = vpop.eup %1080 }
 0x2eb   : > { %v579_v32 = vmul.f32 %v1081_v14, %v563_v21 }
 0x2ee   : > { %v655_v57 = vpop.xlane.xlu0 %654 }
 0x2ef   : > { %v665_v11 = vadd.f32 %v655_v57, %v649_v56 }
 0x2f1   : > { %669 = vst.msk [vmem:[#allocation5] sm:$0xff] %vm640_vm1, %v665_v11 }
 0x2f2   : > { %v661_v13 = vpop.xlane.xlu0 %660 }
 0x2f3   : > { %v667_v59 = vadd.f32 %v661_v13, %v651_v58 }
 0x2f5   : > { %671 = vst.msk [vmem:[#allocation5 + $0x10] sm:$0xff] %vm640_vm1, %v667_v59 }
 0x30b   : > { %v658_v61 = vpop.xlane.xlu1 %657 }
 0x30c   : > { %v666_v62 = vadd.f32 %v658_v61, %v650_v60 }
 0x30e   : > { %670 = vst.msk [vmem:[#allocation5 + $0x8] sm:$0xff] %vm640_vm1, %v666_v62 }
 0x30f   : > { %v664_v19 = vpop.xlane.xlu1 %663 }
 0x310   : > { %v668_v63 = vadd.f32 %v664_v19, %v652_v17 }
 0x312   : > { %672 = vst.msk [vmem:[#allocation5 + $0x18] sm:$0xff] %vm640_vm1, %v668_v63 }
 0x35b   : > { %v714_v5 = vpop.xlane.xlu0 %713 }
 0x35c   : > { %v724_v26 = vadd.f32 %v714_v5, %v680_v4 }
 0x35e   : > { %728 = vst.msk [vmem:[#allocation6] sm:$0xff] %vm640_vm1, %v724_v26 }
 0x35f   : > { %v717_v27 = vpop.xlane.xlu1 %716 }
 0x360   : > { %v725_v37 = vadd.f32 %v717_v27, %v681_v6  ;;  %v632_v7 = vpop.xlane.xlu0 %631 }
 0x361   : > { %v638_v28 = vadd.f32 %v632_v7, %v578_v31 }
 0x362   : > { %729 = vst.msk [vmem:[#allocation6 + $0x8] sm:$0xff] %vm640_vm1, %v725_v37 }
 0x363   : > { %643 = vst.msk [vmem:[#allocation4 + $0x10] sm:$0xff] %vm640_vm1, %v638_v28  ;;  %v626_v36 = vpop.xlane.xlu1 %625 }
 0x364   : > { %v636_v15 = vadd.f32 %v626_v36, %v576_v34  ;;  %v629_v20 = vpop.xlane.xlu0 %628 }
 0x365   : > { %v637_v24 = vadd.f32 %v629_v20, %v577_v9 }
 0x366   : > { %641 = vst.msk [vmem:[#allocation4] sm:$0xff] %vm640_vm1, %v636_v15 }
 0x367   : > { %642 = vst.msk [vmem:[#allocation4 + $0x8] sm:$0xff] %vm640_vm1, %v637_v24 }
 0x368   : > { %v635_v33 = vpop.xlane.xlu1 %634  ;;  %v720_v42 = vpop.xlane.xlu0 %719 }
 0x369   : > { %v639_v43 = vadd.f32 %v635_v33, %v579_v32  ;;  %v726_v44 = vadd.f32 %v720_v42, %v682_v25 }
 0x36b   : > { %644 = vst.msk [vmem:[#allocation4 + $0x18] sm:$0xff] %vm640_vm1, %v639_v43  ;;  %730 = vst.msk [vmem:[#allocation6 + $0x10] sm:$0xff] %vm640_vm1, %v726_v44  ;;  %735 = sbr.rel (%p930_p9) target bundleno = 1189 (0x4a5), region = 82 }
 0x36c   : > { %v723_v10 = vpop.xlane.xlu1 %722 }
 0x36d   : > { %v727_v12 = vadd.f32 %v723_v10, %v683_v45 }
 0x36f   : > { %731 = vst.msk [vmem:[#allocation6 + $0x18] sm:$0xff] %vm640_vm1, %v727_v12 }
 0x370   : > { %v740_v46 = vld [vmem:[#allocation4] sm:$0xff]  ;;  %v741_v47 = vld [vmem:[#allocation4 + $0x8] sm:$0xff]  ;;  %v742_v48 = vld [vmem:[#allocation4 + $0x10] sm:$0xff]  ;;  %vm789_vm10 = vcmp.ne.s32.totalorder %v1343_v38, 4294967196  ;;  %vm790_vm11 = vcmp.ne.s32.totalorder %v1349_v39, 4294967196  ;;  %vm791_vm12 = vcmp.ne.s32.totalorder %v1355_v40, 4294967196 }
 0x371   : > { %1082 = vlog2.f32 %v740_v46  ;;  %v764_v18 = vld [vmem:[#allocation5] sm:$0xff]  ;;  %v765_v50 = vld [vmem:[#allocation5 + $0x8] sm:$0xff]  ;;  %v738_v53 = vld [vmem:[#allocation3 + $0x10] sm:$0xff]  ;;  %vm792_vm13 = vcmp.ne.s32.totalorder %v1361_v41, 4294967196  ;;  %v1147_v5 = vmov 0.0   ;;  %vm843_vm14 = vcmask 0  }
 0x372   : > { %v743_v16 = vld [vmem:[#allocation4 + $0x18] sm:$0xff]  ;;  %1084 = vlog2.f32 %v741_v47  ;;  %v736_v49 = vld [vmem:[#allocation3] sm:$0xff]  ;;  %v737_v52 = vld [vmem:[#allocation3 + $0x8] sm:$0xff]  ;;  %v769_v11 = vmul.f32 0.001953125, %v764_v18  ;;  %v770_v60 = vmul.f32 0.001953125, %v765_v50  ;;  %v931_v22 = vsel %vm789_vm10, 1.0, %v1147_v5 }
 0x373   : > { %1086 = vlog2.f32 %v742_v48  ;;  %v766_v54 = vld [vmem:[#allocation5 + $0x10] sm:$0xff]  ;;  %v767_v57 = vld [vmem:[#allocation5 + $0x18] sm:$0xff]  ;;  %v756_v59 = vld [vmem:[#allocation6] sm:$0xff]  ;;  %v932_v27 = vsel %vm790_vm11, 1.0, %v1147_v5  ;;  %v933_v37 = vsel %vm791_vm12, 1.0, %v1147_v5  ;;  %v821_v39 = vsel %vm640_vm1, %v931_v22, 0.0 }
 0x374   : > { %1088 = vlog2.f32 %v743_v16  ;;  %v739_v62 = vld [vmem:[#allocation3 + $0x18] sm:$0xff]  ;;  %v757_v63 = vld [vmem:[#allocation6 + $0x8] sm:$0xff]  ;;  %v771_v0 = vmul.f32 0.001953125, %v766_v54  ;;  %v758_v3 = vld [vmem:[#allocation6 + $0x10] sm:$0xff]  ;;  %v772_v4 = vmul.f32 0.001953125, %v767_v57  ;;  %v822_v33 = vsel %vm640_vm1, %v932_v27, 0.0 }
 0x375   : > { %v934_v42 = vsel %vm792_vm13, 1.0, %v1147_v5  ;;  %v823_v46 = vadd.f32 %v822_v33, %v821_v39  ;;  %v824_v16 = vsel %vm640_vm1, %v933_v37, 0.0 }
 0x376   : > { %v759_v30 = vld [vmem:[#allocation6 + $0x18] sm:$0xff] }
 0x377   : > { %v825_v41 = vadd.f32 %v824_v16, %v823_v46 }
 0x37e   : > { %v1083_v51 = vpop.eup %1082 }
 0x37f   : > { %v1085_v55 = vpop.eup %1084  ;;  %v745_v56 = vmul.f32 0.6931472, %v1083_v51 }
 0x380   : > { %v1087_v58 = vpop.eup %1086  ;;  %v747_v13 = vmul.f32 0.6931472, %v1085_v55 }
 0x381   : > { %v1089_v61 = vpop.eup %1088  ;;  %v749_v17 = vmul.f32 0.6931472, %v1087_v58  ;;  %v752_v19 = vadd.f32 %v745_v56, %v736_v49 }
 0x382   : > { %v751_v1 = vmul.f32 0.6931472, %v1089_v61  ;;  %v753_v2 = vadd.f32 %v747_v13, %v737_v52  ;;  %v826_v52 = vsel %vm640_vm1, %v934_v42, 0.0 }
 0x383   : > { %v754_v26 = vadd.f32 %v749_v17, %v738_v53  ;;  %v760_v6 = vsub.f32 %v752_v19, %v756_v59  ;;  %v773_v23 = vsub.f32 %v752_v19, %v769_v11  ;;  %v827_v54 = vadd.f32 %v826_v52, %v825_v41 }
 0x384   : > { %v755_v31 = vadd.f32 %v751_v1, %v739_v62  ;;  %v761_v29 = vsub.f32 %v753_v2, %v757_v63  ;;  %v774_v35 = vsub.f32 %v753_v2, %v770_v60 }
 0x385   : > { %v762_v7 = vsub.f32 %v754_v26, %v758_v3  ;;  %v775_v8 = vsub.f32 %v754_v26, %v771_v0  ;;  %v777_v28 = vmul.f32 0.9, %v760_v6  ;;  %v781_v34 = vmul.f32 0.1, %v773_v23 }
 0x386   : > { %v763_v36 = vsub.f32 %v755_v31, %v759_v30  ;;  %v776_v38 = vsub.f32 %v755_v31, %v772_v4  ;;  %v778_v9 = vmul.f32 0.9, %v761_v29  ;;  %v782_v14 = vmul.f32 0.1, %v774_v35 }
 0x387   : > { %v779_v15 = vmul.f32 0.9, %v762_v7  ;;  %v783_v20 = vmul.f32 0.1, %v775_v8  ;;  %v785_v21 = vadd.f32 %v781_v34, %v777_v28 }
 0x388   : > { %v780_v24 = vmul.f32 0.9, %v763_v36  ;;  %v784_v25 = vmul.f32 0.1, %v776_v38  ;;  %v786_v32 = vadd.f32 %v782_v14, %v778_v9 }
 0x389   : > { %v787_v40 = vadd.f32 %v783_v20, %v779_v15  ;;  %v801_v43 = vmul.f32 %v931_v22, %v785_v21 }
 0x38a   : > { %v788_v44 = vadd.f32 %v784_v25, %v780_v24  ;;  %v802_v45 = vmul.f32 %v932_v27, %v786_v32 }
 0x38b   : > { %v803_v10 = vmul.f32 %v933_v37, %v787_v40  ;;  %v805_v12 = vsel %vm640_vm1, %v801_v43, 0.0 }
 0x38c   : > { %v804_v47 = vmul.f32 %v934_v42, %v788_v44  ;;  %v806_v48 = vsel %vm640_vm1, %v802_v45, 0.0 }
 0x38d   : > { %v807_v18 = vadd.f32 %v806_v48, %v805_v12  ;;  %v808_v49 = vsel %vm640_vm1, %v803_v10, 0.0 }
 0x38e   : > { %v810_v50 = vsel %vm640_vm1, %v804_v47, 0.0 }
 0x38f   : > { %v809_v51 = vadd.f32 %v808_v49, %v807_v18 }
 0x391   : > { %v811_v53 = vadd.f32 %v810_v50, %v809_v51 }
 0x393   : > { %812 = vadd.xlane.f32.xlu0 %v811_v53 }
 0x397   : > { %828 = vadd.xlane.f32.xlu0 %v827_v54 }
 0x41c   : > { %v813_v55 = vpop.xlane.xlu0 %812 }
 0x41d   : > { %v814_v56 = vrot.slane %v813_v55, 4 }
 0x41f   : > { %v815_v57 = vadd.f32 %v814_v56, %v813_v55 }
 0x420   : > { %v829_v11 = vpop.xlane.xlu0 %828 }
 0x421   : > { %v816_v58 = vrot.slane %v815_v57, 2  ;;  %v830_v13 = vrot.slane %v829_v11, 4 }
 0x423   : > { %v831_v59 = vadd.f32 %v830_v13, %v829_v11  ;;  %v817_v60 = vadd.f32 %v816_v58, %v815_v57 }
 0x425   : > { %v832_v61 = vrot.slane %v831_v59, 2  ;;  %v818_v62 = vrot.slane %v817_v60, 1 }
 0x427   : > { %v833_v17 = vadd.f32 %v832_v61, %v831_v59  ;;  %v819_v19 = vadd.f32 %v818_v62, %v817_v60 }
 0x429   : > { %980 = vpush %v819_v19  ;;  %v834_v63 = vrot.slane %v833_v17, 1 }
 0x42b   : > { %v835_v0 = vadd.f32 %v834_v63, %v833_v17 }
 0x42d   : > { %982 = vpush %v835_v0 }
 0x45a   : > { %s981_s26 = spop %980 }
 0x45e   : > { %s983_s27 = spop %982 }
 0x45f   : > { %s837_s29 = smax.f32 %s1148_s28, %s983_s27 }
 0x460   : > { %v838_v1 = vstv %s837_s29 }
 0x461   : > { %1090 = vrcp.f32 %v838_v1 }
 0x46e   : > { %v1091_v2 = vpop.eup %1090 }
 0x46f   : > { %984 = vpush %v1091_v2 }
 0x4a0   : > { %s985_s30 = spop %984 }
 0x4a1   : > { %s841_s5 = smul.f32 %s985_s30, %s981_s26 }
 0x4a3   : > { %v842_v3 = vstv %s841_s5 }
 0x4a4   : > { %844 = vst.msk [vmem:[#allocation8] sm:$0x1] %vm843_vm14, %v842_v3 }
 0x4a5 PF: > { %p990_p10 = scmp.eq.s32.totalorder %s1191_s18, 1  ;;  %s1149_s6 = smov [#allocation8]  }
 0x4a6   : > { %s852_s7 = sshll.u32 %s1149_s6, 4  ;;  %s853_s7 = int_to_ptr.vmem [resolvable:$true] %s852_s7 }
 0x4a7   : > { %s1092_s8 = scalar_lea.vmem %s853_s7, 16  ;;  %s1098_s9 = scalar_lea.vmem %s853_s7, 32 }
 0x4a8   : > { %p1093_p11 = scmp.ne.s32.totalorder %s853_s7, %s1092_s8  ;;  %p1099_p0 = scmp.lt.s32.totalorder %s853_s7, %s853_s7 }
 0x4a9   : > { %p1100_p1 = scmp.lt.s32.totalorder %s1098_s9, %s1092_s8 }
 0x4aa   : > { %p1094_p12 = pnand %p1093_p11, %p990_p10 }
 0x4ab   : > { %p1101_p2 = por %p1100_p1, %p1099_p0 }
 0x4ac   : > { %p1095_p13 = pneg %p1094_p12 }
 0x4ae   : > { %p1102_p3 = pnand %p1101_p2, %p1095_p13 }
 0x4b0   : > { %1105 = shalt.err (!%p1102_p3)
}
 0x4b1   : > { %987 = dma.vmem_to_hbm [thread:$0]  (%p990_p10), %s853_s7, 16, %s1460_s4, [#allocation9]  }
 0x4b2   : > { %1129 = dma.done.wait (%p990_p10), [#allocation9], 16  }
 0x4b3   : > { %1131 = vsyncadd (%p990_p10), [#allocation9], 4294967280 }
 0x4b4 PF: > { %p12_p4 = scmp.ge.s32.totalorder %s1194_s19, 4   ;;  %s1461_s15 = smov %s1138_s16 }
 0x4b5   : > { %s1462_s16 = smov %s1203_s22  ;;  %s1463_s17 = smov %s1194_s19 }
 0x4b6   :  { %14 = sbr.rel (!%p12_p4) target bundleno = 2 (0x2), region = 114 }
 0x4bb   :  { %865 = vsyncpa [#allocation9], 1 }
 0x4bc   :  { %867 = vsyncpa [#allocation9 + $0x1], 1 }

// kernel: t5_caption_forward.6
= control target key start
LH: loop header
LB: loop body
LE: loop exit
PB: predicated region body
PF: predicated region fallthrough
CT: control target
= control target key end

     0   :  { %s8209_s24 = smov 0   ;;  %s10759_s0 = inlined_call_operand.vmem [shape: bf16[2,32,128], index: 0, kind: input, shape index: {}]   ;;  %s10760_s1 = inlined_call_operand.vmem [shape: f32[1,128], index: 1, kind: input, shape index: {}]   ;;  %s10761_s2 = inlined_call_operand.vmem [shape: bf16[128,384], index: 2, kind: input, shape index: {}]   ;;  %s10762_s3 = inlined_call_operand.vmem [shape: bf16[128,128], index: 3, kind: input, shape index: {}]   ;;  %s10763_s4 = inlined_call_operand.vmem [shape: f32[1,128], index: 4, kind: input, shape index: {}]   ;;  %s10764_s5 = inlined_call_operand.vmem [shape: bf16[128,256], index: 5, kind: input, shape index: {}]   ;;  %s10765_s6 = inlined_call_operand.vmem [shape: bf16[256,128], index: 6, kind: input, shape index: {}]   ;;  %s10766_s7 = inlined_call_operand.vmem [shape: bf16[2,32,128], index: 7, kind: output, shape index: {}]  }
   0x1 LB: > { %s7276_s25 = sadd.s32 4294967295, %s8157_s24   ;;  %p7280_p0 = scmp.ge.s32.totalorder %s8157_s24, 1  ;;  %s8157_s24 = sphi %s8209_s24, %s17_s24  }
   0x2   : > { %p237_p1 = scmp.lt.s32.totalorder %s8157_s24, 3 }
   0x4   : > { %p238_p2 = pnand %p7280_p0, %p237_p1 }
   0x6   : > { %241 = sbr.rel (%p238_p2) target bundleno = 2385 (0x951), region = 48 }
   0xb   : > { %p269_p3 = scmp.lt.s32.totalorder %s7276_s25, 1  ;;  %v7927_v0 = vld [vmem:[%s10761_s2 + $0xac] ss:$12 sps:$4 sm:$0xff]   ;;  %v7929_v1 = vld [vmem:[%s10761_s2 + $0xa8] ss:$12 sps:$4 sm:$0xff]   ;;  %v10767_v26 = vmov 0  }
   0xc   : > { %490 = vmatprep.subr.bf16.mxu0 %v7927_v0  ;;  %v7930_v12 = vld [vmem:[%s10761_s2 + $0x94] ss:$12 sps:$4 sm:$0xff]   ;;  %v7932_v13 = vld [vmem:[%s10761_s2 + $0x90] ss:$12 sps:$4 sm:$0xff]   ;;  %v7935_v15 = vld [vmem:[%s10761_s2 + $0x78] ss:$12 sps:$4 sm:$0xff]   ;;  %522 = vmatprep.mubr.bf16.mxu0 %v10767_v26 }
   0xd   : > { %s10849_s25 = smov (!%p269_p3, %s7276_s25), 1  ;;  %491 = vmatpush1.bf16.msra.mxu0 %v7929_v1  ;;  %v7933_v14 = vld [vmem:[%s10761_s2 + $0x7c] ss:$12 sps:$4 sm:$0xff]   ;;  %v7936_v16 = vld [vmem:[%s10761_s2 + $0x64] ss:$12 sps:$4 sm:$0xff]   ;;  %s8160_s17 = smov 112  }
   0xe   : > { %s7517_s30 = sshll.u32 %s10849_s25, 4  ;;  %492 = vmatprep.subr.bf16.mxu0 %v7930_v12  ;;  %v7938_v17 = vld [vmem:[%s10761_s2 + $0x60] ss:$12 sps:$4 sm:$0xff]   ;;  %v7941_v19 = vld [vmem:[%s10761_s2 + $0xb0] ss:$12 sps:$4 sm:$0xff]   ;;  %s8161_s18 = smov 96  }
   0xf   : > { %s273_s10 = scalar_lea.vmem %s10759_s0, %s7517_s30  ;;  %v7939_v18 = vld [vmem:[%s10761_s2 + $0x4c] ss:$12 sps:$4 sm:$0xff]   ;;  %v7942_v20 = vld [vmem:[%s10761_s2 + $0x48] ss:$12 sps:$4 sm:$0xff]   ;;  %7655 = vmatprep.subr.bf16.mxu1 %v7941_v19  ;;  %v7946_v23 = vld [vmem:[%s10761_s2 + $0x30] ss:$12 sps:$4 sm:$0xff]   ;;  %s278_s8 = scalar_lea.vmem %s10766_s7, %s7517_s30 }
  0x10   : > { %v7524_v2 = vld [vmem:[%s273_s10] sm:$0xff]   ;;  %v7541_v3 = vld [vmem:[%s273_s10 + $0x8] sm:$0xff]   ;;  %7656 = vmatpush3.bf16.msra.mxu1 %v7941_v19  ;;  %v7955_v31 = vld [vmem:[%s10761_s2 + $0x50] ss:$12 sps:$4 sm:$0xff]   ;;  %s8162_s19 = smov 80   ;;  %s8163_s20 = smov 64  }
  0x11   : > { %v8231_v4 = vunpack.c.l.bf16 %v7524_v2  ;;  %v8233_v5 = vunpack.c.h.bf16 %v7524_v2  ;;  %v8235_v6 = vunpack.c.l.bf16 %v7541_v3  ;;  %v8237_v7 = vunpack.c.h.bf16 %v7541_v3  ;;  %493 = vmatpush1.bf16.msra.mxu0 %v7932_v13  ;;  %v7945_v21 = vld [vmem:[%s10761_s2 + $0x98] ss:$12 sps:$4 sm:$0xff]   ;;  %v7943_v22 = vld [vmem:[%s10761_s2 + $0x34] ss:$12 sps:$4 sm:$0xff]   ;;  %v7947_v24 = vld [vmem:[%s10761_s2 + $0x1c] ss:$12 sps:$4 sm:$0xff]  }
  0x12   : > { %494 = vmatprep.subr.bf16.mxu0 %v7933_v14  ;;  %7657 = vmatprep.subr.bf16.mxu1 %v7945_v21  ;;  %v7949_v25 = vld [vmem:[%s10761_s2 + $0x80] ss:$12 sps:$4 sm:$0xff]   ;;  %v7953_v27 = vld [vmem:[%s10761_s2 + $0x68] ss:$12 sps:$4 sm:$0xff]   ;;  %v7950_v28 = vld [vmem:[%s10761_s2 + $0x18] ss:$12 sps:$4 sm:$0xff]   ;;  %v685_v13 = vlaneseq }
  0x13   : > { %10793 = vst [vmem:[#allocation2_spill] sm:$0xff] %v8231_v4  ;;  %10794 = vst [vmem:[#allocation3_spill] sm:$0xff] %v8233_v5  ;;  %v289_v8 = vmul.f32 %v8231_v4, %v8231_v4  ;;  %v291_v9 = vmul.f32 %v8235_v6, %v8235_v6  ;;  %v290_v10 = vmul.f32 %v8233_v5, %v8233_v5  ;;  %v7951_v29 = vld [vmem:[%s10761_s2 + $0x4] ss:$12 sps:$4 sm:$0xff]   ;;  %v7954_v30 = vld [vmem:[%s10761_s2] ss:$12 sps:$4 sm:$0xff]  }
  0x14   : > { %10795 = vst [vmem:[#allocation4_spill] sm:$0xff] %v8235_v6  ;;  %10796 = vst [vmem:[#allocation5_spill] sm:$0xff] %v8237_v7  ;;  %v292_v11 = vmul.f32 %v8237_v7, %v8237_v7  ;;  %7658 = vmatpush3.bf16.msra.mxu1 %v7945_v21  ;;  %v7956_v32 = vld [vmem:[%s10761_s2 + $0x38] ss:$12 sps:$4 sm:$0xff]   ;;  %v7957_v33 = vld [vmem:[%s10761_s2 + $0x20] ss:$12 sps:$4 sm:$0xff]  }
  0x15   : > { %293 = vadd.xlane.f32.xlu0 %v289_v8  ;;  %297 = vadd.xlane.f32.xlu1 %v291_v9  ;;  %v7958_v34 = vld [vmem:[%s10761_s2 + $0x8] ss:$12 sps:$4 sm:$0xff]   ;;  %v7285_v52 = vld [vmem:[%s10760_s1] ss:$0 sm:$0xff]  ;;  %s8164_s21 = smov 48   ;;  %s8165_s22 = smov 32  }
  0x16   : > { %495 = vmatpush1.bf16.msra.mxu0 %v7935_v15  ;;  %7659 = vmatprep.subr.bf16.mxu1 %v7949_v25  ;;  %s8166_s23 = smov 16   ;;  %v686_v19 = vshrl.u32 %v685_v13, 7  ;;  %vm4168_vm0 = vcmask 130048   ;;  %vm4657_vm1 = vcmask 261120   ;;  %vm6674_vm2 = vcmask 392192  }
  0x17   : > { %496 = vmatprep.subr.bf16.mxu0 %v7936_v16  ;;  %v8168_v16 = vmov 1934713408   ;;  %vm6679_vm3 = vcmask 523264   ;;  %vm6684_vm4 = vcmask 654336   ;;  %vm6689_vm5 = vcmask 785408  }
  0x18   : > { %7660 = vmatpush3.bf16.msra.mxu1 %v7949_v25  ;;  %vm6694_vm6 = vcmask 916480  }
  0x19   : > { %295 = vadd.xlane.f32.xlu0 %v290_v10  ;;  %299 = vadd.xlane.f32.xlu1 %v292_v11  ;;  %v8167_v11 = vmov 1983009808  }
  0x1a   : > { %497 = vmatpush1.bf16.msra.mxu0 %v7938_v17  ;;  %7661 = vmatprep.subr.bf16.mxu1 %v7953_v27  ;;  %v683_v12 = vunpack.c.l.s4 %v8167_v11  ;;  %v747_v17 = vunpack.c.l.s4 %v8168_v16 }
  0x1b   : > { %498 = vmatprep.subr.bf16.mxu0 %v7939_v18 }
  0x1c   : > { %7662 = vmatpush3.bf16.msra.mxu1 %v7953_v27  ;;  %v684_v18 = vunpack.c.0.s8 %v683_v12 }
  0x1d   : > { %7663 = vmatprep.subr.bf16.mxu1 %v7955_v31 }
  0x1e   : > { %499 = vmatpush1.bf16.msra.mxu0 %v7942_v20 }
  0x1f   : > { %500 = vmatprep.subr.bf16.mxu0 %v7943_v22 }
  0x20   : > { %7664 = vmatpush3.bf16.msra.mxu1 %v7955_v31 }
  0x21   : > { %7665 = vmatprep.subr.bf16.mxu1 %v7956_v32 }
  0x22   : > { %501 = vmatpush1.bf16.msra.mxu0 %v7946_v23  ;;  %v748_v23 = vunpack.c.0.s8 %v747_v17 }
  0x23   : > { %502 = vmatprep.subr.bf16.mxu0 %v7947_v24  ;;  %v8466_v24 = vsub.s32 %v684_v18, %v686_v19 }
  0x24   : > { %7666 = vmatpush3.bf16.msra.mxu1 %v7956_v32  ;;  %v8470_v32 = vsub.s32 %v748_v23, %v686_v19 }
  0x25   : > { %7667 = vmatprep.subr.bf16.mxu1 %v7957_v33 }
  0x26   : > { %503 = vmatpush1.bf16.msra.mxu0 %v7950_v28 }
  0x27   : > { %504 = vmatprep.subr.bf16.mxu0 %v7951_v29 }
  0x28   : > { %7668 = vmatpush3.bf16.msra.mxu1 %v7957_v33 }
  0x29   : > { %7669 = vmatprep.subr.bf16.mxu1 %v7958_v34 }
  0x2a   : > { %505 = vmatpush1.bf16.msra.mxu0 %v7954_v30 }
  0x2c   : > { %7670 = vmatpush3.bf16.msra.mxu1 %v7958_v34 }
  0x9e   : > { %v294_v35 = vpop.xlane.xlu0 %293  ;;  %v298_v36 = vpop.xlane.xlu1 %297 }
  0x9f   : > { %v302_v37 = vmul.f32 0.0078125, %v294_v35  ;;  %v304_v38 = vmul.f32 0.0078125, %v298_v36 }
  0xa1   : > { %v306_v39 = vadd.f32 1e-06, %v302_v37  ;;  %v308_v40 = vadd.f32 1e-06, %v304_v38 }
  0xa2   : > { %v296_v41 = vpop.xlane.xlu0 %295  ;;  %v300_v42 = vpop.xlane.xlu1 %299 }
  0xa3   : > { %8007 = vrsqrt.f32 %v306_v39  ;;  %v303_v43 = vmul.f32 0.0078125, %v296_v41  ;;  %v305_v44 = vmul.f32 0.0078125, %v300_v42 }
  0xa4   : > { %8009 = vrsqrt.f32 %v308_v40 }
  0xa5   : > { %v307_v45 = vadd.f32 1e-06, %v303_v43  ;;  %v309_v46 = vadd.f32 1e-06, %v305_v44 }
  0xa7   : > { %8011 = vrsqrt.f32 %v307_v45 }
  0xa8   : > { %8013 = vrsqrt.f32 %v309_v46 }
  0xb0   : > { %v8008_v47 = vpop.eup %8007 }
  0xb1   : > { %v8010_v48 = vpop.eup %8009  ;;  %v314_v50 = vmul.f32 %v8008_v47, %v8231_v4 }
  0xb2   : > { %v316_v49 = vmul.f32 %v8010_v48, %v8235_v6 }
  0xb3   : > { %v324_v57 = vmul.f32 %v7285_v52, %v314_v50 }
  0xb4   : > { %v8012_v51 = vpop.eup %8011  ;;  %v326_v56 = vmul.f32 %v7285_v52, %v316_v49 }
  0xb5   : > { %v8014_v53 = vpop.eup %8013  ;;  %v315_v54 = vmul.f32 %v8012_v51, %v8233_v5 }
  0xb6   : > { %v317_v55 = vmul.f32 %v8014_v53, %v8237_v7 }
  0xb7   : > { %v325_v58 = vmul.f32 %v7285_v52, %v315_v54 }
  0xb8   : > { %v327_v59 = vmul.f32 %v7285_v52, %v317_v55 }
  0xb9   : > { %v360_v60 = vpack.c.bf16 %v325_v58, %v324_v57 }
  0xba   : > { %v361_v61 = vpack.c.bf16 %v327_v59, %v326_v56 }
  0xbb   : > { %523 = vmatmul.mubr.bf16.vlgmr.msra.gmra.mxu0 %v360_v60  ;;  %7671 = vmatprep.mubr.bf16.mxu1 %v360_v60 }
  0xbc   : > { %532 = vmatprep.mubr.bf16.mxu0 %v10767_v26  ;;  %7672 = vmatmul.mubr.bf16.vlgmr.msra.gmra.mxu1 %v361_v61 }
  0xc3   : > { %533 = vmatmul.mubr.bf16.gmra.mxu0 %v361_v61 }
 0x17b   : > { %v8322_v62 = vpop.f32.mrf.mxu0 }
 0x17c   : > { %596 = vrot.lane.b32.xlu0 %v8322_v62, %s8160_s17  ;;  %v8444_v10 = vpop.f32.mrf.mxu1 }
 0x17d   : > { %v8326_v63 = vpop.f32.mrf.mxu0  ;;  %10797 = vst [vmem:[#allocation6_spill] sm:$0xff] %v8444_v10 }
 0x17e   : > { %v8454_v15 = vpop.f32.mrf.mxu1 }
 0x17f   : > { %v8328_v0 = vpop.f32.mrf.mxu0  ;;  %10798 = vst [vmem:[#allocation7_spill] sm:$0xff] %v8454_v15 }
 0x180   : > { %608 = vrot.lane.b32.xlu0 %v8322_v62, %s8161_s18  ;;  %598 = vrot.lane.b32.xlu1 %v8328_v0, %s8160_s17  ;;  %v8460_v22 = vpop.f32.mrf.mxu1 }
 0x181   : > { %v8342_v1 = vpop.f32.mrf.mxu0  ;;  %10799 = vst [vmem:[#allocation8_spill] sm:$0xff] %v8460_v22 }
 0x182   : > { %v8514_v23 = vpop.f32.mrf.mxu1 }
 0x183   : > { %v8352_v2 = vpop.f32.mrf.mxu0  ;;  %10800 = vst [vmem:[#allocation9_spill] sm:$0xff] %v8514_v23 }
 0x184   : > { %620 = vrot.lane.b32.xlu0 %v8322_v62, %s8162_s19  ;;  %610 = vrot.lane.b32.xlu1 %v8328_v0, %s8161_s18 }
 0x185   : > { %v8358_v3 = vpop.f32.mrf.mxu0 }
 0x187   : > { %v8364_v8 = vpop.f32.mrf.mxu0 }
 0x188   : > { %1788 = vrot.lane.b32.xlu0 %v8326_v63, %s8160_s17  ;;  %622 = vrot.lane.b32.xlu1 %v8328_v0, %s8162_s19 }
 0x189   : > { %v8374_v9 = vpop.f32.mrf.mxu0 }
 0x18c   : > { %1800 = vrot.lane.b32.xlu0 %v8326_v63, %s8161_s18  ;;  %1790 = vrot.lane.b32.xlu1 %v8342_v1, %s8160_s17 }
 0x190   : > { %1812 = vrot.lane.b32.xlu0 %v8326_v63, %s8162_s19  ;;  %1802 = vrot.lane.b32.xlu1 %v8342_v1, %s8161_s18 }
 0x194   : > { %1814 = vrot.lane.b32.xlu1 %v8342_v1, %s8162_s19  ;;  %600 = vrot.lane.b32.xlu0 %v8352_v2, %s8160_s17 }
 0x198   : > { %612 = vrot.lane.b32.xlu0 %v8352_v2, %s8161_s18  ;;  %1804 = vrot.lane.b32.xlu1 %v8358_v3, %s8161_s18 }
 0x19c   : > { %1792 = vrot.lane.b32.xlu0 %v8358_v3, %s8160_s17  ;;  %602 = vrot.lane.b32.xlu1 %v8364_v8, %s8160_s17 }
 0x1a0   : > { %1816 = vrot.lane.b32.xlu0 %v8358_v3, %s8162_s19  ;;  %614 = vrot.lane.b32.xlu1 %v8364_v8, %s8161_s18 }
 0x1a4   : > { %624 = vrot.lane.b32.xlu0 %v8352_v2, %s8162_s19  ;;  %1794 = vrot.lane.b32.xlu1 %v8374_v9, %s8160_s17 }
 0x1a8   : > { %1828 = vrot.lane.b32.xlu0 %v8358_v3, %s8163_s20  ;;  %1806 = vrot.lane.b32.xlu1 %v8374_v9, %s8161_s18 }
 0x1ac   : > { %1840 = vrot.lane.b32.xlu0 %v8358_v3, %s8164_s21  ;;  %1818 = vrot.lane.b32.xlu1 %v8374_v9, %s8162_s19 }
 0x1b0   : > { %1852 = vrot.lane.b32.xlu0 %v8358_v3, %s8165_s22  ;;  %626 = vrot.lane.b32.xlu1 %v8364_v8, %s8162_s19 }
 0x1b4   : > { %1864 = vrot.lane.b32.xlu0 %v8358_v3, %s8166_s23  ;;  %1826 = vrot.lane.b32.xlu1 %v8342_v1, %s8163_s20 }
 0x1b8   : > { %1824 = vrot.lane.b32.xlu0 %v8326_v63, %s8163_s20  ;;  %1838 = vrot.lane.b32.xlu1 %v8342_v1, %s8164_s21 }
 0x1bc   : > { %1836 = vrot.lane.b32.xlu0 %v8326_v63, %s8164_s21  ;;  %1850 = vrot.lane.b32.xlu1 %v8342_v1, %s8165_s22 }
 0x1c0   : > { %1848 = vrot.lane.b32.xlu0 %v8326_v63, %s8165_s22  ;;  %1862 = vrot.lane.b32.xlu1 %v8342_v1, %s8166_s23 }
 0x1c4   : > { %1860 = vrot.lane.b32.xlu0 %v8326_v63, %s8166_s23  ;;  %634 = vrot.lane.b32.xlu1 %v8328_v0, %s8163_s20 }
 0x1c8   : > { %632 = vrot.lane.b32.xlu0 %v8322_v62, %s8163_s20  ;;  %646 = vrot.lane.b32.xlu1 %v8328_v0, %s8164_s21 }
 0x1cc   : > { %644 = vrot.lane.b32.xlu0 %v8322_v62, %s8164_s21  ;;  %658 = vrot.lane.b32.xlu1 %v8328_v0, %s8165_s22 }
 0x1d0   : > { %656 = vrot.lane.b32.xlu0 %v8322_v62, %s8165_s22  ;;  %1830 = vrot.lane.b32.xlu1 %v8374_v9, %s8163_s20 }
 0x1d4   : > { %668 = vrot.lane.b32.xlu0 %v8322_v62, %s8166_s23  ;;  %1842 = vrot.lane.b32.xlu1 %v8374_v9, %s8164_s21 }
 0x1d8   : > { %636 = vrot.lane.b32.xlu0 %v8352_v2, %s8163_s20  ;;  %1854 = vrot.lane.b32.xlu1 %v8374_v9, %s8165_s22 }
 0x1dc   : > { %648 = vrot.lane.b32.xlu0 %v8352_v2, %s8164_s21  ;;  %1866 = vrot.lane.b32.xlu1 %v8374_v9, %s8166_s23 }
 0x1e0   : > { %660 = vrot.lane.b32.xlu0 %v8352_v2, %s8165_s22  ;;  %670 = vrot.lane.b32.xlu1 %v8328_v0, %s8166_s23 }
 0x1e4   : > { %672 = vrot.lane.b32.xlu0 %v8352_v2, %s8166_s23  ;;  %638 = vrot.lane.b32.xlu1 %v8364_v8, %s8163_s20 }
 0x1e8   : > { %2984 = vrot.lane.b32.xlu0 %v8444_v10, %s8160_s17  ;;  %650 = vrot.lane.b32.xlu1 %v8364_v8, %s8164_s21 }
 0x1ec   : > { %3008 = vrot.lane.b32.xlu0 %v8444_v10, %s8162_s19  ;;  %662 = vrot.lane.b32.xlu1 %v8364_v8, %s8165_s22 }
 0x1ee   : > { %v597_v14 = vpop.permute.xlu0 %596 }
 0x1f0   : > { %2980 = vrot.lane.b32.xlu0 %v8454_v15, %s8160_s17  ;;  %674 = vrot.lane.b32.xlu1 %v8364_v8, %s8166_s23 }
 0x1f2   : > { %v609_v20 = vpop.permute.xlu0 %608  ;;  %v599_v21 = vpop.permute.xlu1 %598 }
 0x1f3   : > { %v680_v25 = vcombine.low %v8322_v62, %v609_v20  ;;  %v681_v27 = vcombine.high %v8322_v62, %v609_v20 }
 0x1f4   : > { %2992 = vrot.lane.b32.xlu0 %v8454_v15, %s8161_s18  ;;  %2986 = vrot.lane.b32.xlu1 %v8460_v22, %s8160_s17 }
 0x1f5   : > { %v688_v33 = vrot.slane %v680_v25, %v8466_v24  ;;  %v695_v34 = vrot.slane %v681_v27, %v8466_v24 }
 0x1f6   : > { %v621_v28 = vpop.permute.xlu0 %620  ;;  %v611_v29 = vpop.permute.xlu1 %610 }
 0x1f7   : > { %v696_v30 = vcombine.low %v597_v14, %v621_v28  ;;  %v697_v31 = vcombine.high %v597_v14, %v621_v28  ;;  %v816_v37 = vcombine.low %v8328_v0, %v611_v29  ;;  %v817_v38 = vcombine.high %v8328_v0, %v611_v29 }
 0x1f8   : > { %3004 = vrot.lane.b32.xlu0 %v8454_v15, %s8162_s19  ;;  %2996 = vrot.lane.b32.xlu1 %v8444_v10, %s8161_s18 }
 0x1f9   : > { %v704_v35 = vrot.slane %v696_v30, %v8466_v24  ;;  %v711_v36 = vrot.slane %v697_v31, %v8466_v24  ;;  %v824_v51 = vrot.slane %v816_v37, %v8466_v24  ;;  %v831_v52 = vrot.slane %v817_v38, %v8466_v24 }
 0x1fa   : > { %v1789_v39 = vpop.permute.xlu0 %1788  ;;  %v623_v40 = vpop.permute.xlu1 %622 }
 0x1fb   : > { %v744_v41 = vcombine.low %v688_v33, %v704_v35  ;;  %v745_v42 = vcombine.high %v688_v33, %v704_v35  ;;  %v760_v43 = vcombine.low %v695_v34, %v711_v36  ;;  %v761_v44 = vcombine.high %v695_v34, %v711_v36 }
 0x1fc   : > { %v832_v45 = vcombine.low %v599_v21, %v623_v40  ;;  %v833_v46 = vcombine.high %v599_v21, %v623_v40  ;;  %3020 = vrot.lane.b32.xlu0 %v8444_v10, %s8163_s20  ;;  %2998 = vrot.lane.b32.xlu1 %v8460_v22, %s8161_s18 }
 0x1fd   : > { %v752_v47 = vrot.slane %v744_v41, %v8470_v32  ;;  %v759_v48 = vrot.slane %v745_v42, %v8470_v32  ;;  %v8489_v49 = vrot.slane %v760_v43, %v8470_v32  ;;  %v8492_v50 = vrot.slane %v761_v44, %v8470_v32 }
 0x1fe   : > { %v840_v53 = vrot.slane %v832_v45, %v8466_v24  ;;  %v847_v54 = vrot.slane %v833_v46, %v8466_v24  ;;  %v1801_v55 = vpop.permute.xlu0 %1800  ;;  %v1791_v56 = vpop.permute.xlu1 %1790 }
 0x1ff   : > { %v7310_v57 = vcombine.low %v752_v47, %v759_v48  ;;  %v7312_v58 = vcombine.high %v752_v47, %v759_v48  ;;  %v7314_v59 = vcombine.low %v8489_v49, %v8492_v50  ;;  %v1872_v18 = vcombine.low %v8326_v63, %v1801_v55 }
 0x200   : > { %v880_v60 = vcombine.low %v824_v51, %v840_v53  ;;  %v881_v61 = vcombine.high %v824_v51, %v840_v53  ;;  %v896_v62 = vcombine.low %v831_v52, %v847_v54  ;;  %v897_v0 = vcombine.high %v831_v52, %v847_v54  ;;  %3044 = vrot.lane.b32.xlu0 %v8444_v10, %s8165_s22 }
 0x201   : > { %3010 = vrot.lane.b32.xlu1 %v8460_v22, %s8162_s19  ;;  %v1873_v19 = vcombine.high %v8326_v63, %v1801_v55  ;;  %v8517_v25 = vrot.slane %v7310_v57, %v8466_v24  ;;  %v8520_v27 = vrot.slane %v7312_v58, %v8466_v24  ;;  %v8523_v28 = vrot.slane %v7314_v59, %v8466_v24 }
 0x202   : > { %v888_v11 = vrot.slane %v880_v60, %v8470_v32  ;;  %v895_v12 = vrot.slane %v881_v61, %v8470_v32  ;;  %v8507_v13 = vrot.slane %v896_v62, %v8470_v32  ;;  %v8510_v14 = vrot.slane %v897_v0, %v8470_v32  ;;  %v1813_v16 = vpop.permute.xlu0 %1812  ;;  %v1803_v17 = vpop.permute.xlu1 %1802 }
 0x203   : > { %v1888_v20 = vcombine.low %v1789_v39, %v1813_v16  ;;  %v1889_v21 = vcombine.high %v1789_v39, %v1813_v16  ;;  %v7316_v29 = vcombine.high %v8489_v49, %v8492_v50  ;;  %v1880_v63 = vrot.slane %v1872_v18, %v8466_v24 }
 0x204   : > { %3056 = vrot.lane.b32.xlu0 %v8444_v10, %s8166_s23  ;;  %v1887_v30 = vrot.slane %v1873_v19, %v8466_v24  ;;  %v7318_v34 = vcombine.low %v888_v11, %v895_v12  ;;  %v7320_v35 = vcombine.high %v888_v11, %v895_v12  ;;  %v7322_v36 = vcombine.low %v8507_v13, %v8510_v14 }
 0x205   : > { %v1896_v31 = vrot.slane %v1888_v20, %v8466_v24  ;;  %v1903_v33 = vrot.slane %v1889_v21, %v8466_v24  ;;  %2982 = vrot.lane.b32.xlu1 %v8514_v23, %s8160_s17  ;;  %v7324_v37 = vcombine.high %v8507_v13, %v8510_v14  ;;  %v2008_v44 = vcombine.low %v8342_v1, %v1803_v17 }
 0x206   : > { %v1815_v38 = vpop.permute.xlu1 %1814  ;;  %v8539_v39 = vpop.permute.xlu0 %600  ;;  %v2009_v45 = vcombine.high %v8342_v1, %v1803_v17  ;;  %v1280_v12 = vrot.slane %v7316_v29, %v8466_v24  ;;  %v1368_v13 = vrot.slane %v7318_v34, %v8466_v24  ;;  %v1384_v14 = vrot.slane %v7320_v35, %v8466_v24 }
 0x207   : > { %v1936_v40 = vcombine.low %v1880_v63, %v1896_v31  ;;  %v1937_v41 = vcombine.high %v1880_v63, %v1896_v31  ;;  %v1952_v42 = vcombine.low %v1887_v30, %v1903_v33  ;;  %v1953_v43 = vcombine.high %v1887_v30, %v1903_v33 }
 0x208   : > { %v2024_v46 = vcombine.low %v1791_v56, %v1815_v38  ;;  %v2025_v47 = vcombine.high %v1791_v56, %v1815_v38  ;;  %3016 = vrot.lane.b32.xlu0 %v8454_v15, %s8163_s20  ;;  %v2016_v52 = vrot.slane %v2008_v44, %v8466_v24  ;;  %v2023_v1 = vrot.slane %v2009_v45, %v8466_v24 }
 0x209   : > { %v1944_v48 = vrot.slane %v1936_v40, %v8470_v32  ;;  %v1951_v49 = vrot.slane %v1937_v41, %v8470_v32  ;;  %v1960_v50 = vrot.slane %v1952_v42, %v8470_v32  ;;  %v1967_v51 = vrot.slane %v1953_v43, %v8470_v32  ;;  %2994 = vrot.lane.b32.xlu1 %v8514_v23, %s8161_s18 }
 0x20a   : > { %v2032_v53 = vrot.slane %v2024_v46, %v8466_v24  ;;  %v2039_v54 = vrot.slane %v2025_v47, %v8466_v24  ;;  %v613_v55 = vpop.permute.xlu0 %612  ;;  %v8555_v56 = vpop.permute.xlu1 %1804  ;;  %v1400_v16 = vrot.slane %v7322_v36, %v8466_v24  ;;  %v1416_v63 = vrot.slane %v7324_v37, %v8466_v24 }
 0x20b   : > { %v7342_v57 = vcombine.low %v1944_v48, %v1951_v49  ;;  %v7344_v58 = vcombine.high %v1944_v48, %v1951_v49  ;;  %v7346_v59 = vcombine.low %v1960_v50, %v1967_v51  ;;  %v7348_v60 = vcombine.high %v1960_v50, %v1967_v51 }
 0x20c   : > { %v2072_v61 = vcombine.low %v2016_v52, %v2032_v53  ;;  %v2073_v62 = vcombine.high %v2016_v52, %v2032_v53  ;;  %v2088_v0 = vcombine.low %v2023_v1, %v2039_v54  ;;  %v2089_v11 = vcombine.high %v2023_v1, %v2039_v54  ;;  %3028 = vrot.lane.b32.xlu0 %v8454_v15, %s8164_s21 }
 0x20d   : > { %3006 = vrot.lane.b32.xlu1 %v8514_v23, %s8162_s19  ;;  %v952_v30 = vcombine.low %v8352_v2, %v613_v55  ;;  %v953_v31 = vcombine.high %v8352_v2, %v613_v55  ;;  %v2144_v33 = vcombine.low %v8358_v3, %v8555_v56  ;;  %v8585_v34 = vrot.slane %v7342_v57, %v8466_v24 }
 0x20e   : > { %v8566_v17 = vrot.slane %v2072_v61, %v8470_v32  ;;  %v8569_v18 = vrot.slane %v2073_v62, %v8470_v32  ;;  %v8572_v19 = vrot.slane %v2088_v0, %v8470_v32  ;;  %v8575_v20 = vrot.slane %v2089_v11, %v8470_v32  ;;  %v1793_v21 = vpop.permute.xlu0 %1792  ;;  %v8577_v29 = vpop.permute.xlu1 %602 }
 0x20f   : > { %v8588_v35 = vrot.slane %v7344_v58, %v8466_v24  ;;  %v8591_v36 = vrot.slane %v7346_v59, %v8466_v24  ;;  %v8594_v38 = vrot.slane %v7348_v60, %v8466_v24  ;;  %v2145_v41 = vcombine.high %v8358_v3, %v8555_v56 }
 0x210   : > { %3040 = vrot.lane.b32.xlu0 %v8454_v15, %s8165_s22  ;;  %v7350_v2 = vcombine.low %v8566_v17, %v8569_v18  ;;  %v7352_v37 = vcombine.high %v8566_v17, %v8569_v18  ;;  %v7354_v40 = vcombine.low %v8572_v19, %v8575_v20  ;;  %v7356_v42 = vcombine.high %v8572_v19, %v8575_v20 }
 0x211   : > { %3022 = vrot.lane.b32.xlu1 %v8460_v22, %s8163_s20  ;;  %v8611_v43 = vrot.slane %v952_v30, %v8466_v24  ;;  %v8614_v44 = vrot.slane %v953_v31, %v8466_v24  ;;  %v2152_v45 = vrot.slane %v2144_v33, %v8466_v24  ;;  %v1288_v3 = vcombine.low %v8517_v25, %v8520_v27 }
 0x212   : > { %v1817_v46 = vpop.permute.xlu0 %1816  ;;  %v8617_v47 = vpop.permute.xlu1 %614  ;;  %v1320_v48 = vcombine.low %v8523_v28, %v1280_v12  ;;  %v1424_v49 = vcombine.low %v1368_v13, %v1384_v14  ;;  %v1456_v50 = vcombine.low %v1400_v16, %v1416_v63  ;;  %v1289_v51 = vcombine.high %v8517_v25, %v8520_v27 }
 0x213   : > { %v1321_v52 = vcombine.high %v8523_v28, %v1280_v12  ;;  %v1425_v1 = vcombine.high %v1368_v13, %v1384_v14  ;;  %v1457_v53 = vcombine.high %v1400_v16, %v1416_v63  ;;  %v8626_v54 = vrot.slane %v1288_v3, %v8470_v32 }
 0x214   : > { %v8629_v55 = vrot.slane %v1320_v48, %v8470_v32  ;;  %v8632_v56 = vrot.slane %v1424_v49, %v8470_v32  ;;  %v8635_v57 = vrot.slane %v1456_v50, %v8470_v32  ;;  %v8640_v25 = vrot.slane %v1289_v51, %v8470_v32 }
 0x215   : > { %3032 = vrot.lane.b32.xlu1 %v8444_v10, %s8164_s21  ;;  %v8643_v27 = vrot.slane %v1321_v52, %v8470_v32  ;;  %v8646_v28 = vrot.slane %v1425_v1, %v8470_v32  ;;  %v8649_v58 = vrot.slane %v1457_v53, %v8470_v32  ;;  %v2160_v0 = vcombine.low %v1793_v21, %v1817_v46 }
 0x216   : > { %10801 = vst [vmem:[#allocation10_spill] sm:$0xff] %v8640_v25  ;;  %v625_v59 = vpop.permute.xlu0 %624  ;;  %v8651_v60 = vpop.permute.xlu1 %1794  ;;  %v1352_v61 = vcombine.low %v8626_v54, %v8629_v55  ;;  %v1488_v62 = vcombine.low %v8632_v56, %v8635_v57  ;;  %v2161_v11 = vcombine.high %v1793_v21, %v1817_v46  ;;  %v8658_v12 = vrot.slane %v7350_v2, %v8466_v24 }
 0x217   : > { %10802 = vst [vmem:[#allocation11_spill] sm:$0xff] %v8646_v28  ;;  %10803 = vst [vmem:[#allocation12_spill] sm:$0xff] %v8649_v58  ;;  %v2159_v13 = vrot.slane %v2145_v41, %v8466_v24  ;;  %v1354_v14 = vcombine.low %v8640_v25, %v8643_v27  ;;  %v1490_v16 = vcombine.low %v8646_v28, %v8649_v58 }
 0x218   : > { %v1768_v17 = vpack.c.bf16 %v1488_v62, %v1352_v61  ;;  %v2168_v18 = vrot.slane %v2160_v0, %v8466_v24  ;;  %v2175_v63 = vrot.slane %v2161_v11, %v8466_v24  ;;  %v968_v30 = vcombine.low %v8539_v39, %v625_v59 }
 0x219   : > { %3034 = vrot.lane.b32.xlu1 %v8460_v22, %s8164_s21  ;;  %v1772_v21 = vpack.c.bf16 %v1490_v16, %v1354_v14  ;;  %v1088_v31 = vcombine.low %v8364_v8, %v8617_v47  ;;  %v1089_v33 = vcombine.high %v8364_v8, %v8617_v47  ;;  %v969_v2 = vcombine.high %v8539_v39, %v625_v59 }
 0x21a   : > { %v8675_v41 = vpop.permute.xlu0 %1828  ;;  %v1807_v46 = vpop.permute.xlu1 %1806  ;;  %7679 = vmatprep.mubr.msk.bf16.mxu1 %vm4168_vm0, %v1768_v17  ;;  %v2208_v3 = vcombine.low %v2152_v45, %v2168_v18  ;;  %v2209_v48 = vcombine.high %v2152_v45, %v2168_v18  ;;  %v2224_v49 = vcombine.low %v2159_v13, %v2175_v63  ;;  %v2225_v50 = vcombine.high %v2159_v13, %v2175_v63 }
 0x21b   : > { %v8679_v51 = vrot.slane %v7352_v37, %v8466_v24  ;;  %v8682_v52 = vrot.slane %v7354_v40, %v8466_v24  ;;  %7695 = vmatprep.mubr.msk.bf16.mxu0 %vm4168_vm0, %v1772_v21  ;;  %v976_v8 = vrot.slane %v968_v30, %v8466_v24  ;;  %v983_v39 = vrot.slane %v969_v2, %v8466_v24 }
 0x21c   : > { %v2216_v47 = vrot.slane %v2208_v3, %v8470_v32  ;;  %v2223_v1 = vrot.slane %v2209_v48, %v8470_v32  ;;  %v2232_v45 = vrot.slane %v2224_v49, %v8470_v32  ;;  %v2239_v53 = vrot.slane %v2225_v50, %v8470_v32 }
 0x21d   : > { %3046 = vrot.lane.b32.xlu1 %v8460_v22, %s8165_s22  ;;  %v1016_v37 = vcombine.low %v8611_v43, %v976_v8  ;;  %v1017_v40 = vcombine.high %v8611_v43, %v976_v8  ;;  %v1032_v59 = vcombine.low %v8614_v44, %v983_v39  ;;  %v1033_v61 = vcombine.high %v8614_v44, %v983_v39 }
 0x21e   : > { %v8697_v62 = vpop.permute.xlu0 %1840  ;;  %v1819_v0 = vpop.permute.xlu1 %1818  ;;  %v8703_v11 = vrot.slane %v7356_v42, %v8466_v24  ;;  %v7358_v13 = vcombine.low %v2216_v47, %v2223_v1  ;;  %v8706_v14 = vrot.slane %v1088_v31, %v8466_v24  ;;  %v8709_v16 = vrot.slane %v1089_v33, %v8466_v24 }
 0x21f   : > { %v1024_v43 = vrot.slane %v1016_v37, %v8470_v32  ;;  %v1031_v44 = vrot.slane %v1017_v40, %v8470_v32  ;;  %v1040_v17 = vrot.slane %v1032_v59, %v8470_v32  ;;  %v1047_v18 = vrot.slane %v1033_v61, %v8470_v32 }
 0x220   : > { %v7360_v63 = vcombine.high %v2216_v47, %v2223_v1  ;;  %v7362_v30 = vcombine.low %v2232_v45, %v2239_v53  ;;  %v2280_v19 = vcombine.low %v8374_v9, %v1807_v46  ;;  %v2281_v20 = vcombine.high %v8374_v9, %v1807_v46 }
 0x221   : > { %3058 = vrot.lane.b32.xlu1 %v8460_v22, %s8166_s23  ;;  %v7326_v42 = vcombine.low %v1024_v43, %v1031_v44  ;;  %v7328_v21 = vcombine.high %v1024_v43, %v1031_v44  ;;  %v7330_v31 = vcombine.low %v1040_v17, %v1047_v18  ;;  %v7332_v33 = vcombine.high %v1040_v17, %v1047_v18 }
 0x222   : > { %v1853_v2 = vpop.permute.xlu0 %1852  ;;  %v627_v3 = vpop.permute.xlu1 %626  ;;  %v8720_v48 = vrot.slane %v7358_v13, %v8466_v24  ;;  %v7364_v49 = vcombine.high %v2232_v45, %v2239_v53  ;;  %v2296_v50 = vcombine.low %v8651_v60, %v1819_v0  ;;  %v2297_v8 = vcombine.high %v8651_v60, %v1819_v0 }
 0x223   : > { %v8725_v39 = vrot.slane %v7326_v42, %v8466_v24  ;;  %v8728_v9 = vrot.slane %v7328_v21, %v8466_v24  ;;  %v8731_v46 = vrot.slane %v7330_v31, %v8466_v24  ;;  %v8734_v47 = vrot.slane %v7332_v33, %v8466_v24 }
 0x224   : > { %v2288_v1 = vrot.slane %v2280_v19, %v8466_v24  ;;  %v2295_v45 = vrot.slane %v2281_v20, %v8466_v24  ;;  %v2304_v53 = vrot.slane %v2296_v50, %v8466_v24  ;;  %v2311_v60 = vrot.slane %v2297_v8, %v8466_v24 }
 0x225   : > { %3018 = vrot.lane.b32.xlu1 %v8514_v23, %s8163_s20  ;;  %v8743_v37 = vrot.slane %v7360_v63, %v8466_v24  ;;  %v1561_v40 = vcombine.high %v8725_v39, %v8728_v9  ;;  %v2176_v59 = vcombine.low %v8675_v41, %v1853_v2  ;;  %v2177_v61 = vcombine.high %v8675_v41, %v1853_v2 }
 0x226   : > { %v1865_v0 = vpop.permute.xlu0 %1864  ;;  %v8749_v13 = vpop.permute.xlu1 %1826  ;;  %v2344_v43 = vcombine.low %v2288_v1, %v2304_v53  ;;  %v2345_v44 = vcombine.high %v2288_v1, %v2304_v53  ;;  %v2360_v17 = vcombine.low %v2295_v45, %v2311_v60  ;;  %v2361_v18 = vcombine.high %v2295_v45, %v2311_v60 }
 0x227   : > { %v8752_v19 = vrot.slane %v7362_v30, %v8466_v24  ;;  %v8755_v63 = vrot.slane %v7364_v49, %v8466_v24  ;;  %v1104_v30 = vcombine.low %v8577_v29, %v627_v3  ;;  %v1105_v2 = vcombine.high %v8577_v29, %v627_v3 }
 0x228   : > { %v2352_v41 = vrot.slane %v2344_v43, %v8470_v32  ;;  %v2359_v21 = vrot.slane %v2345_v44, %v8470_v32  ;;  %v2368_v31 = vrot.slane %v2360_v17, %v8470_v32  ;;  %v2375_v33 = vrot.slane %v2361_v18, %v8470_v32 }
 0x229   : > { %3030 = vrot.lane.b32.xlu1 %v8514_v23, %s8164_s21  ;;  %v2192_v49 = vcombine.low %v8697_v62, %v1865_v0  ;;  %v2193_v50 = vcombine.high %v8697_v62, %v1865_v0  ;;  %v8776_v45 = vrot.slane %v1561_v40, %v8470_v32  ;;  %v1593_v53 = vcombine.high %v8731_v46, %v8734_v47 }
 0x22a   : > { %v8771_v8 = vpop.permute.xlu0 %1824  ;;  %v8773_v1 = vpop.permute.xlu1 %1838  ;;  %v2184_v60 = vrot.slane %v2176_v59, %v8466_v24  ;;  %v2191_v43 = vrot.slane %v2177_v61, %v8466_v24  ;;  %v1112_v29 = vrot.slane %v1104_v30, %v8466_v24  ;;  %v1119_v3 = vrot.slane %v1105_v2, %v8466_v24 }
 0x22b   : > { %v2200_v62 = vrot.slane %v2192_v49, %v8466_v24  ;;  %v2207_v0 = vrot.slane %v2193_v50, %v8466_v24  ;;  %v7366_v44 = vcombine.low %v2352_v41, %v2359_v21  ;;  %v7368_v17 = vcombine.high %v2352_v41, %v2359_v21 }
 0x22c   : > { %v7370_v18 = vcombine.low %v2368_v31, %v2375_v33  ;;  %v7372_v40 = vcombine.high %v2368_v31, %v2375_v33  ;;  %v1152_v26 = vcombine.low %v8706_v14, %v1112_v29  ;;  %v1153_v59 = vcombine.high %v8706_v14, %v1112_v29 }
 0x22d   : > { %3042 = vrot.lane.b32.xlu1 %v8514_v23, %s8165_s22  ;;  %v1168_v61 = vcombine.low %v8709_v16, %v1119_v3  ;;  %v1169_v30 = vcombine.high %v8709_v16, %v1119_v3  ;;  %v2240_v42 = vcombine.low %v2184_v60, %v2200_v62  ;;  %v2241_v50 = vcombine.high %v2184_v60, %v2200_v62 }
 0x22e   : > { %v8792_v2 = vpop.permute.xlu0 %1836  ;;  %v1851_v49 = vpop.permute.xlu1 %1850  ;;  %v2256_v20 = vcombine.low %v2191_v43, %v2207_v0  ;;  %v2257_v41 = vcombine.high %v2191_v43, %v2207_v0  ;;  %v1160_v21 = vrot.slane %v1152_v26, %v8470_v32  ;;  %v1167_v31 = vrot.slane %v1153_v59, %v8470_v32 }
 0x22f   : > { %v1176_v33 = vrot.slane %v1168_v61, %v8470_v32  ;;  %v1183_v7 = vrot.slane %v1169_v30, %v8470_v32  ;;  %v2248_v14 = vrot.slane %v2240_v42, %v8470_v32  ;;  %v2255_v29 = vrot.slane %v2241_v50, %v8470_v32 }
 0x230   : > { %v2264_v16 = vrot.slane %v2256_v20, %v8470_v32  ;;  %v2271_v3 = vrot.slane %v2257_v41, %v8470_v32  ;;  %v7334_v5 = vcombine.low %v1160_v21, %v1167_v31  ;;  %v7336_v60 = vcombine.high %v1160_v21, %v1167_v31 }
 0x231   : > { %v7338_v62 = vcombine.low %v1176_v33, %v1183_v7  ;;  %v7340_v43 = vcombine.high %v1176_v33, %v1183_v7  ;;  %v7359_v59 = vcombine.low %v2248_v14, %v2255_v29  ;;  %v7361_v6 = vcombine.high %v2248_v14, %v2255_v29 }
 0x232   : > { %v8802_v0 = vpop.permute.xlu0 %1848  ;;  %v1863_v26 = vpop.permute.xlu1 %1862  ;;  %v7363_v61 = vcombine.low %v2264_v16, %v2271_v3  ;;  %v7365_v4 = vcombine.high %v2264_v16, %v2271_v3  ;;  %v8805_v30 = vrot.slane %v7334_v5, %v8466_v24  ;;  %v8808_v42 = vrot.slane %v7336_v60, %v8466_v24 }
 0x233   : > { %v8811_v20 = vrot.slane %v7338_v62, %v8466_v24  ;;  %v8814_v50 = vrot.slane %v7340_v43, %v8466_v24  ;;  %v8817_v7 = vrot.slane %v1593_v53, %v8470_v32  ;;  %v8820_v41 = vrot.slane %v7366_v44, %v8466_v24 }
 0x234   : > { %v8823_v21 = vrot.slane %v7368_v17, %v8466_v24  ;;  %v8826_v5 = vrot.slane %v7370_v18, %v8466_v24  ;;  %v8829_v31 = vrot.slane %v7372_v40, %v8466_v24  ;;  %v8832_v33 = vrot.slane %v7359_v59, %v8466_v24 }
 0x235   : > { %v8835_v14 = vrot.slane %v7361_v6, %v8466_v24  ;;  %v8838_v53 = vrot.slane %v7363_v61, %v8466_v24  ;;  %v8847_v18 = vrot.slane %v7365_v4, %v8466_v24  ;;  %v2040_v40 = vcombine.low %v8749_v13, %v1851_v49 }
 0x236   : > { %10804 = vst [vmem:[#allocation13_spill] sm:$0xff] %v8832_v33  ;;  %v8840_v44 = vpop.permute.xlu0 %1860  ;;  %v8842_v29 = vpop.permute.xlu1 %634  ;;  %v2041_v16 = vcombine.high %v8749_v13, %v1851_v49  ;;  %v1697_v6 = vcombine.high %v8805_v30, %v8808_v42  ;;  %v1729_v3 = vcombine.high %v8811_v20, %v8814_v50  ;;  %v2056_v60 = vcombine.low %v8773_v1, %v1863_v26 }
 0x237   : > { %10805 = vst [vmem:[#allocation14_spill] sm:$0xff] %v8835_v14  ;;  %10806 = vst [vmem:[#allocation15_spill] sm:$0xff] %v8838_v53  ;;  %v2057_v62 = vcombine.high %v8773_v1, %v1863_v26  ;;  %v2048_v43 = vrot.slane %v2040_v40, %v8466_v24  ;;  %v1904_v4 = vcombine.low %v8771_v8, %v8802_v0 }
 0x238   : > { %10807 = vst [vmem:[#allocation16_spill] sm:$0xff] %v8847_v18  ;;  %v2055_v59 = vrot.slane %v2041_v16, %v8466_v24  ;;  %v1905_v13 = vcombine.high %v8771_v8, %v8802_v0  ;;  %v2064_v49 = vrot.slane %v2056_v60, %v8466_v24  ;;  %v2752_v17 = vcombine.low %v8720_v48, %v8743_v37 }
 0x239   : > { %v2071_v61 = vrot.slane %v2057_v62, %v8466_v24  ;;  %v2784_v1 = vcombine.low %v8752_v19, %v8755_v63  ;;  %v2888_v16 = vcombine.low %v8820_v41, %v8823_v21  ;;  %v2920_v8 = vcombine.low %v8826_v5, %v8829_v31 }
 0x23a   : > { %v8869_v26 = vpop.permute.xlu0 %632  ;;  %v8871_v40 = vpop.permute.xlu1 %646  ;;  %v2753_v0 = vcombine.high %v8720_v48, %v8743_v37  ;;  %v2785_v60 = vcombine.high %v8752_v19, %v8755_v63  ;;  %v2104_v62 = vcombine.low %v2048_v43, %v2064_v49  ;;  %v2105_v23 = vcombine.high %v2048_v43, %v2064_v49 }
 0x23b   : > { %v2120_v22 = vcombine.low %v2055_v59, %v2071_v61  ;;  %v2121_v10 = vcombine.high %v2055_v59, %v2071_v61  ;;  %v8882_v15 = vrot.slane %v2752_v17, %v8470_v32  ;;  %v8885_v53 = vrot.slane %v2784_v1, %v8470_v32 }
 0x23c   : > { %v8888_v18 = vrot.slane %v2888_v16, %v8470_v32  ;;  %v8891_v33 = vrot.slane %v2920_v8, %v8470_v32  ;;  %v8894_v48 = vrot.slane %v2104_v62, %v8470_v32  ;;  %v8897_v37 = vrot.slane %v2105_v23, %v8470_v32 }
 0x23d   : > { %v8900_v19 = vrot.slane %v2120_v22, %v8470_v32  ;;  %v8903_v63 = vrot.slane %v2121_v10, %v8470_v32  ;;  %v2816_v59 = vcombine.low %v8882_v15, %v8885_v53  ;;  %v8914_v61 = vrot.slane %v2753_v0, %v8470_v32 }
 0x23e   : > { %v8905_v17 = vpop.permute.xlu0 %644  ;;  %v8907_v43 = vpop.permute.xlu1 %658  ;;  %v2952_v49 = vcombine.low %v8888_v18, %v8891_v33  ;;  %v8917_v23 = vrot.slane %v2785_v60, %v8470_v32  ;;  %v8920_v22 = vrot.slane %v1697_v6, %v8470_v32  ;;  %v8925_v1 = vrot.slane %v1729_v3, %v8470_v32 }
 0x23f   : > { %v8928_v16 = vrot.slane %v1904_v4, %v8466_v24  ;;  %v8931_v8 = vrot.slane %v1905_v13, %v8466_v24  ;;  %v2889_v60 = vcombine.high %v8820_v41, %v8823_v21  ;;  %v2921_v6 = vcombine.high %v8826_v5, %v8829_v31 }
 0x240   : > { %v2961_v0 = vpack.c.bf16 %v2952_v49, %v2816_v59  ;;  %v2818_v13 = vcombine.low %v8914_v61, %v8917_v23  ;;  %v2480_v31 = vcombine.low %v8585_v34, %v8588_v35  ;;  %v2512_v49 = vcombine.low %v8591_v36, %v8594_v38 }
 0x241   : > { %v8951_v41 = vrot.slane %v2889_v60, %v8470_v32  ;;  %v8954_v21 = vrot.slane %v2921_v6, %v8470_v32  ;;  %v2616_v4 = vcombine.low %v8658_v12, %v8679_v51  ;;  %v2648_v3 = vcombine.low %v8682_v52, %v8703_v11 }
 0x242   : > { %v8945_v10 = vpop.permute.xlu0 %656  ;;  %v8947_v59 = vpop.permute.xlu1 %1830  ;;  %7823 = vmatprep.subr.msk.bf16.mxu1 %vm4168_vm0, %v2961_v0  ;;  %v4179_v5 = vsel %vm4168_vm0, %v2961_v0, 0  ;;  %v2481_v60 = vcombine.high %v8585_v34, %v8588_v35  ;;  %v8970_v0 = vrot.slane %v2480_v31, %v8470_v32  ;;  %v2617_v62 = vcombine.high %v8658_v12, %v8679_v51 }
 0x243   : > { %7676 = vmatpush3.bf16.xpose.msra.mxu1 %v4179_v5  ;;  %v2954_v6 = vcombine.low %v8951_v41, %v8954_v21  ;;  %v2513_v5 = vcombine.high %v8591_v36, %v8594_v38  ;;  %v8977_v14 = vrot.slane %v2512_v49, %v8470_v32  ;;  %v8980_v28 = vrot.slane %v2616_v4, %v8470_v32 }
 0x244   : > { %v8983_v34 = vrot.slane %v2648_v3, %v8470_v32  ;;  %v8986_v35 = vrot.slane %v2481_v60, %v8470_v32  ;;  %v8996_v12 = vrot.slane %v2617_v62, %v8470_v32  ;;  %v2649_v51 = vcombine.high %v8682_v52, %v8703_v11 }
 0x245   : > { %v2965_v36 = vpack.c.bf16 %v2954_v6, %v2818_v13  ;;  %v8993_v38 = vrot.slane %v2513_v5, %v8470_v32  ;;  %v2544_v3 = vcombine.low %v8970_v0, %v8977_v14  ;;  %v1920_v49 = vcombine.low %v8792_v2, %v8840_v44 }
 0x246   : > { %10808 = vst [vmem:[#allocation17_spill] sm:$0xff] %v8986_v35  ;;  %v8988_v31 = vpop.permute.xlu0 %668  ;;  %v8990_v58 = vpop.permute.xlu1 %1842  ;;  %10809 = vst [vmem:[#allocation18_spill] sm:$0xff] %v8996_v12  ;;  %v2680_v4 = vcombine.low %v8980_v28, %v8983_v34  ;;  %v1921_v13 = vcombine.high %v8792_v2, %v8840_v44  ;;  %v7357_v60 = vcombine.high %v8900_v19, %v8903_v63 }
 0x247   : > { %7827 = vmatprep.subr.msk.bf16.mxu0 %vm4168_vm0, %v2965_v36  ;;  %v4301_v62 = vsel %vm4168_vm0, %v2965_v36, 0  ;;  %v2546_v52 = vcombine.low %v8986_v35, %v8993_v38  ;;  %v9015_v11 = vrot.slane %v2649_v51, %v8470_v32  ;;  %v1928_v5 = vrot.slane %v1920_v49, %v8466_v24 }
 0x248   : > { %7692 = vmatpush3.bf16.xpose.msra.mxu0 %v4301_v62  ;;  %v2960_v6 = vpack.c.bf16 %v2680_v4, %v2544_v3  ;;  %v1935_v25 = vrot.slane %v1921_v13, %v8466_v24  ;;  %v2953_v2 = vcombine.high %v8888_v18, %v8891_v33  ;;  %v2817_v35 = vcombine.high %v8882_v15, %v8885_v53 }
 0x249   : > { %10810 = vst [vmem:[#allocation19_spill] sm:$0xff] %v9015_v11  ;;  %v2682_v36 = vcombine.low %v8996_v12, %v9015_v11  ;;  %v848_v51 = vcombine.low %v8842_v29, %v8907_v43  ;;  %v849_v3 = vcombine.high %v8842_v29, %v8907_v43  ;;  %v1968_v4 = vcombine.low %v8928_v16, %v1928_v5 }
 0x24a   : > { %v9021_v44 = vpop.permute.xlu1 %1854  ;;  %7824 = vmatprep.subr.msk.bf16.mxu1 %vm4168_vm0, %v2960_v6  ;;  %v1969_v33 = vcombine.high %v8928_v16, %v1928_v5  ;;  %v1984_v18 = vcombine.low %v8931_v8, %v1935_v25  ;;  %v1985_v49 = vcombine.high %v8931_v8, %v1935_v25  ;;  %v9036_v13 = vpop.permute.xlu0 %636  ;;  %v4176_v15 = vsel %vm4168_vm0, %v2960_v6, 0 }
 0x24b   : > { %v2964_v62 = vpack.c.bf16 %v2682_v36, %v2546_v52  ;;  %v2963_v53 = vpack.c.bf16 %v2953_v2, %v2817_v35  ;;  %v712_v12 = vcombine.low %v8869_v26, %v8945_v10  ;;  %v1976_v29 = vrot.slane %v1968_v4, %v8470_v32  ;;  %7678 = vmatpush3.bf16.xpose.msra.mxu1 %v4176_v15 }
 0x24c   : > { %v1983_v43 = vrot.slane %v1969_v33, %v8470_v32  ;;  %v9044_v11 = vrot.slane %v1984_v18, %v8470_v32  ;;  %v9047_v16 = vrot.slane %v1985_v49, %v8470_v32  ;;  %v10811_v8 = vcombine.low %v8894_v48, %v8897_v37 }
 0x24d   : > { %v10812_v52 = vcombine.high %v8894_v48, %v8897_v37  ;;  %7828 = vmatprep.subr.msk.bf16.mxu0 %vm4168_vm0, %v2964_v62  ;;  %7825 = vmatprep.subr.msk.bf16.mxu1 %vm4168_vm0, %v2963_v53  ;;  %v713_v5 = vcombine.high %v8869_v26, %v8945_v10  ;;  %v10813_v2 = vcombine.low %v8900_v19, %v8903_v63  ;;  %v4298_v37 = vsel %vm4168_vm0, %v2964_v62, 0 }
 0x24e   : > { %v9049_v25 = vpop.permute.xlu1 %1866  ;;  %v9055_v35 = vrot.slane %v10811_v8, %v8466_v24  ;;  %v9074_v4 = vrot.slane %v7357_v60, %v8466_v24  ;;  %v7343_v33 = vcombine.low %v1976_v29, %v1983_v43  ;;  %v9077_v48 = vrot.slane %v848_v51, %v8466_v24  ;;  %v9104_v62 = vpop.permute.xlu0 %648 }
 0x24f   : > { %v9061_v6 = vrot.slane %v10812_v52, %v8466_v24  ;;  %v9071_v36 = vrot.slane %v10813_v2, %v8466_v24  ;;  %v10814_v18 = vcombine.low %v8725_v39, %v8728_v9  ;;  %v10815_v19 = vcombine.low %v8731_v46, %v8734_v47 }
 0x250   : > { %v10816_v10 = vcombine.low %v8805_v30, %v8808_v42  ;;  %v7345_v51 = vcombine.high %v1976_v29, %v1983_v43  ;;  %v7347_v49 = vcombine.low %v9044_v11, %v9047_v16  ;;  %7694 = vmatpush3.bf16.xpose.msra.mxu0 %v4298_v37  ;;  %v9101_v39 = vrot.slane %v849_v3, %v8466_v24 }
 0x251   : > { %v9084_v26 = vrot.slane %v10814_v18, %v8470_v32  ;;  %v9090_v63 = vrot.slane %v10815_v19, %v8470_v32  ;;  %v720_v9 = vrot.slane %v712_v12, %v8466_v24  ;;  %v7349_v46 = vcombine.high %v9044_v11, %v9047_v16 }
 0x252   : > { %v9096_v60 = vrot.slane %v10816_v10, %v8470_v32  ;;  %v727_v47 = vrot.slane %v713_v5, %v8466_v24  ;;  %v10817_v30 = vcombine.low %v8811_v20, %v8814_v50  ;;  %v1762_v15 = vcombine.low %v8920_v22, %v8925_v1  ;;  %v9126_v43 = vpop.permute.xlu1 %670 }
 0x253   : > { %v9118_v3 = vrot.slane %v7343_v33, %v8466_v24  ;;  %v1624_v12 = vcombine.low %v9084_v26, %v9090_v63  ;;  %v1353_v11 = vcombine.high %v8626_v54, %v8629_v55  ;;  %v1489_v29 = vcombine.high %v8632_v56, %v8635_v57 }
 0x254   : > { %v9113_v42 = vrot.slane %v10817_v30, %v8470_v32  ;;  %v1626_v50 = vcombine.low %v8776_v45, %v8817_v7  ;;  %v2681_v16 = vcombine.high %v8980_v28, %v8983_v34  ;;  %v728_v8 = vcombine.low %v8905_v17, %v8988_v31 }
 0x255   : > { %v1770_v52 = vpack.c.bf16 %v1489_v29, %v1353_v11  ;;  %v2545_v54 = vcombine.high %v8970_v0, %v8977_v14  ;;  %v729_v55 = vcombine.high %v8905_v17, %v8988_v31  ;;  %v2312_v56 = vcombine.low %v8947_v59, %v9021_v44  ;;  %v9150_v0 = vpop.permute.xlu0 %660 }
 0x256   : > { %v1760_v20 = vcombine.low %v9096_v60, %v9113_v42  ;;  %v9143_v57 = vrot.slane %v7345_v51, %v8466_v24  ;;  %v1773_v2 = vpack.c.bf16 %v1762_v15, %v1626_v50  ;;  %v736_v28 = vrot.slane %v728_v8, %v8466_v24  ;;  %v9160_v51 = vpop.permute.xlu1 %638 }
 0x257   : > { %v2962_v34 = vpack.c.bf16 %v2681_v16, %v2545_v54  ;;  %v743_v33 = vrot.slane %v729_v55, %v8466_v24  ;;  %v2313_v37 = vcombine.high %v8947_v59, %v9021_v44  ;;  %v2320_v14 = vrot.slane %v2312_v56, %v8466_v24 }
 0x258   : > { %v1769_v5 = vpack.c.bf16 %v1760_v20, %v1624_v12  ;;  %7696 = vmatmul.mubr.msk.bf16.vlgmr.msra.gmra.mxu0 %vm4168_vm0, %v1773_v2  ;;  %v4240_v17 = vsel %vm4168_vm0, %v2963_v53, 0  ;;  %v776_v31 = vcombine.low %v720_v9, %v736_v28  ;;  %v777_v18 = vcombine.high %v720_v9, %v736_v28 }
 0x259   : > { %v2328_v19 = vcombine.low %v8990_v58, %v9049_v25  ;;  %v792_v10 = vcombine.low %v727_v47, %v743_v33  ;;  %v793_v59 = vcombine.high %v727_v47, %v743_v33  ;;  %v2955_v44 = vcombine.high %v8951_v41, %v8954_v21  ;;  %v9182_v8 = vpop.permute.xlu0 %672 }
 0x25a   : > { %7680 = vmatmul.mubr.msk.bf16.vlgmr.msra.gmra.mxu1 %vm4168_vm0, %v1769_v5  ;;  %v784_v30 = vrot.slane %v776_v31, %v8470_v32  ;;  %v791_v53 = vrot.slane %v777_v18, %v8470_v32  ;;  %v2329_v9 = vcombine.high %v8990_v58, %v9049_v25  ;;  %v9169_v12 = vrot.slane %v7347_v49, %v8466_v24  ;;  %v9187_v28 = vpop.permute.xlu1 %650 }
 0x25b   : > { %7684 = vmatpush3.bf16.xpose.msra.mxu1 %v4240_v17  ;;  %7687 = vmatprep.mubr.msk.bf16.mxu1 %vm4168_vm0, %v1770_v52  ;;  %v2336_v15 = vrot.slane %v2328_v19, %v8466_v24  ;;  %v800_v47 = vrot.slane %v792_v10, %v8470_v32  ;;  %v807_v41 = vrot.slane %v793_v59, %v8470_v32  ;;  %v4237_v54 = vsel %vm4168_vm0, %v2962_v34, 0 }
 0x25c   : > { %7826 = vmatprep.subr.msk.bf16.mxu1 %vm4168_vm0, %v2962_v34  ;;  %v2819_v21 = vcombine.high %v8914_v61, %v8917_v23  ;;  %v2327_v11 = vrot.slane %v2313_v37, %v8466_v24  ;;  %v2343_v29 = vrot.slane %v2329_v9, %v8466_v24  ;;  %v984_v58 = vcombine.low %v9036_v13, %v9150_v0 }
 0x25d   : > { %v2376_v20 = vcombine.low %v2320_v14, %v2336_v15  ;;  %v9180_v25 = vrot.slane %v7349_v46, %v8466_v24  ;;  %v7311_v49 = vcombine.low %v784_v30, %v791_v53  ;;  %v7313_v50 = vcombine.high %v784_v30, %v791_v53  ;;  %v9217_v30 = vpop.permute.xlu0 %2984 }
 0x25e   : > { %v2377_v16 = vcombine.high %v2320_v14, %v2336_v15  ;;  %v7315_v52 = vcombine.low %v800_v47, %v807_v41  ;;  %v2967_v61 = vpack.c.bf16 %v2955_v44, %v2819_v21  ;;  %v2392_v23 = vcombine.low %v2327_v11, %v2343_v29  ;;  %v10818_v21 = vld [vmem:[#allocation10_spill] sm:$0xff] }
 0x25f   : > { %v7317_v55 = vcombine.high %v800_v47, %v807_v41  ;;  %v2384_v56 = vrot.slane %v2376_v20, %v8470_v32  ;;  %v2393_v2 = vcombine.high %v2327_v11, %v2343_v29  ;;  %v985_v46 = vcombine.high %v9036_v13, %v9150_v0  ;;  %v663_v29 = vpop.permute.xlu1 %662 }
 0x260   : > { %v2391_v5 = vrot.slane %v2377_v16, %v8470_v32  ;;  %v992_v33 = vrot.slane %v984_v58, %v8466_v24  ;;  %v864_v37 = vcombine.low %v8871_v40, %v9126_v43  ;;  %v865_v34 = vcombine.high %v8871_v40, %v9126_v43  ;;  %v10819_v58 = vld [vmem:[#allocation12_spill] sm:$0xff] }
 0x261   : > { %v9197_v14 = vrot.slane %v7311_v49, %v8466_v24  ;;  %v9200_v17 = vrot.slane %v7313_v50, %v8466_v24  ;;  %v2400_v31 = vrot.slane %v2392_v23, %v8470_v32  ;;  %v2407_v18 = vrot.slane %v2393_v2, %v8470_v32  ;;  %v10820_v49 = vld [vmem:[#allocation11_spill] sm:$0xff] }
 0x262   : > { %v9205_v13 = vrot.slane %v7315_v52, %v8466_v24  ;;  %v872_v0 = vrot.slane %v864_v37, %v8466_v24  ;;  %v879_v40 = vrot.slane %v865_v34, %v8466_v24  ;;  %v1761_v43 = vcombine.high %v9096_v60, %v9113_v42  ;;  %v10822_v52 = vld [vmem:[#allocation19_spill] sm:$0xff] }
 0x263   : > { %7686 = vmatpush3.bf16.xpose.msra.mxu1 %v4237_v54  ;;  %v9213_v19 = vrot.slane %v7317_v55, %v8466_v24  ;;  %v7367_v10 = vcombine.low %v2384_v56, %v2391_v5  ;;  %v7369_v59 = vcombine.high %v2384_v56, %v2391_v5  ;;  %v1625_v44 = vcombine.high %v9084_v26, %v9090_v63  ;;  %v10823_v54 = vld [vmem:[#allocation18_spill] sm:$0xff] }
 0x264   : > { %7829 = vmatprep.subr.msk.bf16.mxu1 %vm4168_vm0, %v2967_v61  ;;  %v912_v53 = vcombine.low %v9077_v48, %v872_v0  ;;  %v913_v9 = vcombine.high %v9077_v48, %v872_v0  ;;  %v928_v15 = vcombine.low %v9101_v39, %v879_v40  ;;  %v929_v47 = vcombine.high %v9101_v39, %v879_v40  ;;  %v10821_v39 = vld [vmem:[#allocation17_spill] sm:$0xff]  ;;  %v9249_v0 = vpop.permute.xlu0 %3008 }
 0x265   : > { %v7371_v41 = vcombine.low %v2400_v31, %v2407_v18  ;;  %v999_v60 = vrot.slane %v985_v46, %v8466_v24  ;;  %v1771_v42 = vpack.c.bf16 %v1761_v43, %v1625_v44  ;;  %v1355_v11 = vcombine.high %v10818_v21, %v8643_v27  ;;  %v675_v44 = vpop.permute.xlu1 %674 }
 0x266   : > { %v920_v26 = vrot.slane %v912_v53, %v8470_v32  ;;  %v927_v63 = vrot.slane %v913_v9, %v8470_v32  ;;  %v936_v20 = vrot.slane %v928_v15, %v8470_v32  ;;  %v943_v48 = vrot.slane %v929_v47, %v8470_v32 }
 0x267   : > { %v1491_v50 = vcombine.high %v10820_v49, %v10819_v58  ;;  %v2547_v16 = vcombine.high %v10821_v39, %v8993_v38  ;;  %v2683_v23 = vcombine.high %v10823_v54, %v10822_v52  ;;  %v1000_v27 = vcombine.low %v9104_v62, %v9182_v8 }
 0x268   : > { %v9239_v55 = vrot.slane %v7367_v10, %v8466_v24  ;;  %v9242_v56 = vrot.slane %v7369_v59, %v8466_v24  ;;  %v7373_v5 = vcombine.high %v2400_v31, %v2407_v18  ;;  %v4362_v2 = vsel %vm4168_vm0, %v2967_v61, 0 }
 0x269   : > { %v1774_v46 = vpack.c.bf16 %v1491_v50, %v1355_v11  ;;  %v2966_v38 = vpack.c.bf16 %v2683_v23, %v2547_v16  ;;  %v1001_v37 = vcombine.high %v9104_v62, %v9182_v8  ;;  %v1008_v34 = vrot.slane %v1000_v27, %v8466_v24  ;;  %v9291_v54 = vpop.permute.xlu1 %2986 }
 0x26a   : > { %7688 = vmatmul.mubr.msk.bf16.vlgmr.msra.gmra.mxu1 %vm4168_vm0, %v1771_v42  ;;  %v9252_v40 = vrot.slane %v7371_v41, %v8466_v24  ;;  %v7319_v43 = vcombine.low %v920_v26, %v927_v63  ;;  %v7321_v10 = vcombine.high %v920_v26, %v927_v63  ;;  %v7323_v31 = vcombine.low %v936_v20, %v943_v48 }
 0x26b   : > { %7700 = vmatpush3.bf16.xpose.msra.mxu1 %v4362_v2  ;;  %7703 = vmatprep.mubr.msk.bf16.mxu1 %vm4168_vm0, %v1774_v46  ;;  %v1015_v61 = vrot.slane %v1001_v37, %v8466_v24  ;;  %v1048_v18 = vcombine.low %v992_v33, %v1008_v34  ;;  %v1049_v59 = vcombine.high %v992_v33, %v1008_v34  ;;  %v10826_v2 = vld [vmem:[#allocation13_spill] sm:$0xff]  ;;  %v9304_v34 = vpop.permute.xlu0 %2980 }
 0x26c   : > { %7830 = vmatprep.subr.msk.bf16.mxu1 %vm4168_vm0, %v2966_v38  ;;  %v9258_v62 = vrot.slane %v7373_v5, %v8466_v24  ;;  %v7325_v8 = vcombine.high %v936_v20, %v943_v48  ;;  %v3352_v53 = vcombine.low %v9217_v30, %v9249_v0  ;;  %v1120_v9 = vcombine.low %v9160_v51, %v663_v29  ;;  %v10825_v5 = vld [vmem:[#allocation14_spill] sm:$0xff] }
 0x26d   : > { %v1056_v15 = vrot.slane %v1048_v18, %v8470_v32  ;;  %v1063_v47 = vrot.slane %v1049_v59, %v8470_v32  ;;  %v1064_v41 = vcombine.low %v999_v60, %v1015_v61  ;;  %v1065_v42 = vcombine.high %v999_v60, %v1015_v61  ;;  %v10827_v59 = vld [vmem:[#allocation16_spill] sm:$0xff] }
 0x26e   : > { %v9266_v21 = vrot.slane %v7319_v43, %v8466_v24  ;;  %v9269_v33 = vrot.slane %v7321_v10, %v8466_v24  ;;  %v9272_v11 = vrot.slane %v7323_v31, %v8466_v24  ;;  %v1121_v26 = vcombine.high %v9160_v51, %v663_v29 }
 0x26f   : > { %v1072_v63 = vrot.slane %v1064_v41, %v8470_v32  ;;  %v1079_v20 = vrot.slane %v1065_v42, %v8470_v32  ;;  %v7327_v48 = vcombine.low %v1056_v15, %v1063_v47  ;;  %v7329_v58 = vcombine.high %v1056_v15, %v1063_v47 }
 0x270   : > { %10824 = vst [vmem:[#allocation10_spill] sm:$0xff] %v9272_v11  ;;  %v9278_v49 = vrot.slane %v7325_v8, %v8466_v24  ;;  %v4359_v60 = vsel %vm4168_vm0, %v2966_v38, 0  ;;  %v1136_v50 = vcombine.low %v9187_v28, %v675_v44  ;;  %v1137_v39 = vcombine.high %v9187_v28, %v675_v44  ;;  %v10828_v44 = vld [vmem:[#allocation15_spill] sm:$0xff] }
 0x271   : > { %v3353_v16 = vcombine.high %v9217_v30, %v9249_v0  ;;  %v9286_v51 = vrot.slane %v3352_v53, %v8466_v24  ;;  %v1128_v29 = vrot.slane %v1120_v9, %v8466_v24  ;;  %v1763_v52 = vcombine.high %v8920_v22, %v8925_v1 }
 0x272   : > { %v1135_v23 = vrot.slane %v1121_v26, %v8466_v24  ;;  %v1144_v27 = vrot.slane %v1136_v50, %v8466_v24  ;;  %v1151_v28 = vrot.slane %v1137_v39, %v8466_v24  ;;  %v2768_v46 = vcombine.low %v10826_v2, %v10825_v5  ;;  %v9322_v26 = vpop.permute.xlu1 %2996 }
 0x273   : > { %7702 = vmatpush3.bf16.xpose.msra.mxu1 %v4359_v60  ;;  %v9299_v30 = vrot.slane %v7327_v48, %v8466_v24  ;;  %v9302_v38 = vrot.slane %v7329_v58, %v8466_v24  ;;  %v7331_v37 = vcombine.low %v1072_v63, %v1079_v20  ;;  %v1627_v22 = vcombine.high %v8776_v45, %v8817_v7 }
 0x274   : > { %v1184_v1 = vcombine.low %v1128_v29, %v1144_v27  ;;  %v1185_v0 = vcombine.high %v1128_v29, %v1144_v27  ;;  %v1200_v43 = vcombine.low %v1135_v23, %v1151_v28  ;;  %v1201_v10 = vcombine.high %v1135_v23, %v1151_v28 }
 0x275   : > { %v7333_v31 = vcombine.high %v1072_v63, %v1079_v20  ;;  %v1775_v61 = vpack.c.bf16 %v1763_v52, %v1627_v22  ;;  %v2776_v18 = vrot.slane %v2768_v46, %v8470_v32  ;;  %v2800_v8 = vcombine.low %v10828_v44, %v10827_v59  ;;  %v2993_v52 = vpop.permute.xlu0 %2992 }
 0x276   : > { %v1192_v53 = vrot.slane %v1184_v1, %v8470_v32  ;;  %v1199_v9 = vrot.slane %v1185_v0, %v8470_v32  ;;  %v1208_v15 = vrot.slane %v1200_v43, %v8470_v32  ;;  %v1215_v47 = vrot.slane %v1201_v10, %v8470_v32 }
 0x277   : > { %v2808_v45 = vrot.slane %v2800_v8, %v8470_v32  ;;  %v2904_v7 = vcombine.low %v9239_v55, %v9242_v56  ;;  %v2936_v41 = vcombine.low %v9252_v40, %v9258_v62  ;;  %v2496_v42 = vcombine.low %v9118_v3, %v9143_v57 }
 0x278   : > { %v7335_v63 = vcombine.low %v1192_v53, %v1199_v9  ;;  %v7337_v20 = vcombine.high %v1192_v53, %v1199_v9  ;;  %v7339_v48 = vcombine.low %v1208_v15, %v1215_v47  ;;  %v7341_v58 = vcombine.high %v1208_v15, %v1215_v47  ;;  %v9356_v9 = vpop.permute.xlu1 %2998  ;;  %v10829_v47 = vld [vmem:[#allocation7_spill] sm:$0xff] }
 0x279   : > { %v9326_v60 = vrot.slane %v7331_v37, %v8466_v24  ;;  %v9329_v50 = vrot.slane %v3353_v16, %v8466_v24  ;;  %v2912_v39 = vrot.slane %v2904_v7, %v8470_v32  ;;  %v2944_v29 = vrot.slane %v2936_v41, %v8470_v32 }
 0x27a   : > { %7704 = vmatmul.mubr.msk.bf16.vlgmr.msra.gmra.mxu1 %vm4168_vm0, %v1775_v61  ;;  %v9334_v23 = vrot.slane %v7333_v31, %v8466_v24  ;;  %v2820_v28 = vcombine.low %v2776_v18, %v2808_v45  ;;  %v2821_v46 = vcombine.high %v2776_v18, %v2808_v45  ;;  %v2504_v37 = vrot.slane %v2496_v42, %v8470_v32 }
 0x27b   : > { %v2956_v22 = vcombine.low %v2912_v39, %v2944_v29  ;;  %v2957_v1 = vcombine.high %v2912_v39, %v2944_v29  ;;  %v2528_v16 = vcombine.low %v9169_v12, %v9180_v25  ;;  %v9342_v0 = vrot.slane %v7335_v63, %v8466_v24 }
 0x27c   : > { %v9345_v43 = vrot.slane %v7337_v20, %v8466_v24  ;;  %v9348_v10 = vrot.slane %v7339_v48, %v8466_v24  ;;  %v9351_v31 = vrot.slane %v7341_v58, %v8466_v24  ;;  %v2632_v53 = vcombine.low %v9055_v35, %v9061_v6  ;;  %v3005_v58 = vpop.permute.xlu0 %3004 }
 0x27d   : > { %v2969_v61 = vpack.c.bf16 %v2956_v22, %v2820_v28  ;;  %v2971_v18 = vpack.c.bf16 %v2957_v1, %v2821_v46  ;;  %v2536_v8 = vrot.slane %v2528_v16, %v8470_v32  ;;  %v2664_v15 = vcombine.low %v9071_v36, %v9074_v4 }
 0x27e   : > { %v3064_v45 = vcombine.low %v10829_v47, %v2993_v52  ;;  %v3065_v7 = vcombine.high %v10829_v47, %v2993_v52  ;;  %v1304_v41 = vcombine.low %v9197_v14, %v9200_v17  ;;  %v2640_v48 = vrot.slane %v2632_v53, %v8470_v32 }
 0x27f   : > { %7831 = vmatprep.subr.msk.bf16.mxu0 %vm4168_vm0, %v2969_v61  ;;  %7833 = vmatprep.subr.msk.bf16.mxu1 %vm4168_vm0, %v2971_v18  ;;  %v4423_v42 = vsel %vm4168_vm0, %v2969_v61, 0  ;;  %v4484_v63 = vsel %vm4168_vm0, %v2971_v18, 0  ;;  %v2548_v20 = vcombine.low %v2504_v37, %v2536_v8  ;;  %v2672_v39 = vrot.slane %v2664_v15, %v8470_v32 }
 0x280   : > { %7708 = vmatpush3.bf16.xpose.msra.mxu0 %v4423_v42  ;;  %7716 = vmatpush3.bf16.xpose.msra.mxu1 %v4484_v63  ;;  %v2549_v29 = vcombine.high %v2504_v37, %v2536_v8  ;;  %v3072_v52 = vrot.slane %v3064_v45, %v8466_v24  ;;  %v3079_v28 = vrot.slane %v3065_v7, %v8466_v24  ;;  %v10830_v45 = vld [vmem:[#allocation6_spill] sm:$0xff] }
 0x281   : > { %v1312_v46 = vrot.slane %v1304_v41, %v8470_v32  ;;  %v1336_v22 = vcombine.low %v9205_v13, %v9213_v19  ;;  %v1440_v1 = vcombine.low %v9266_v21, %v9269_v33  ;;  %v2684_v16 = vcombine.low %v2640_v48, %v2672_v39  ;;  %v9385_v41 = vpop.permute.xlu1 %3010 }
 0x282   : > { %v2685_v61 = vcombine.high %v2640_v48, %v2672_v39  ;;  %v1472_v18 = vcombine.low %v9272_v11, %v9278_v49  ;;  %v3080_v53 = vcombine.low %v9304_v34, %v3005_v58  ;;  %v3081_v15 = vcombine.high %v9304_v34, %v3005_v58 }
 0x283   : > { %v1344_v37 = vrot.slane %v1336_v22, %v8470_v32  ;;  %v1448_v8 = vrot.slane %v1440_v1, %v8470_v32  ;;  %v3336_v7 = vcombine.low %v10830_v45, %v9322_v26  ;;  %v2968_v42 = vpack.c.bf16 %v2684_v16, %v2548_v20 }
 0x284   : > { %v2970_v63 = vpack.c.bf16 %v2685_v61, %v2549_v29  ;;  %v1480_v48 = vrot.slane %v1472_v18, %v8470_v32  ;;  %v3088_v39 = vrot.slane %v3080_v53, %v8466_v24  ;;  %v3095_v11 = vrot.slane %v3081_v15, %v8466_v24 }
 0x285   : > { %v1356_v27 = vcombine.low %v1312_v46, %v1344_v37  ;;  %v1357_v47 = vcombine.high %v1312_v46, %v1344_v37  ;;  %v3337_v22 = vcombine.high %v10830_v45, %v9322_v26  ;;  %7832 = vmatprep.subr.msk.bf16.mxu0 %vm4168_vm0, %v2968_v42  ;;  %v4420_v20 = vsel %vm4168_vm0, %v2968_v42, 0 }
 0x286   : > { %7834 = vmatprep.subr.msk.bf16.mxu1 %vm4168_vm0, %v2970_v63  ;;  %v1492_v34 = vcombine.low %v1448_v8, %v1480_v48  ;;  %v1493_v58 = vcombine.high %v1448_v8, %v1480_v48  ;;  %v3128_v1 = vcombine.low %v3072_v52, %v3088_v39  ;;  %v3129_v29 = vcombine.high %v3072_v52, %v3088_v39 }
 0x287   : > { %v3144_v16 = vcombine.low %v3079_v28, %v3095_v11  ;;  %v3145_v61 = vcombine.high %v3079_v28, %v3095_v11  ;;  %v3344_v18 = vrot.slane %v3336_v7, %v8466_v24  ;;  %v3351_v26 = vrot.slane %v3337_v22, %v8466_v24 }
 0x288   : > { %v1776_v46 = vpack.c.bf16 %v1492_v34, %v1356_v27  ;;  %v1778_v53 = vpack.c.bf16 %v1493_v58, %v1357_v47  ;;  %v9397_v37 = vrot.slane %v3128_v1, %v8470_v32  ;;  %7710 = vmatpush3.bf16.xpose.msra.mxu0 %v4420_v20  ;;  %v1577_v15 = vcombine.high %v9299_v30, %v9302_v38  ;;  %v9410_v27 = vpop.permute.xlu0 %3020  ;;  %v9412_v47 = vpop.permute.xlu1 %2982 }
 0x289   : > { %v1608_v8 = vcombine.low %v9326_v60, %v9334_v23  ;;  %v9405_v52 = vrot.slane %v3129_v29, %v8470_v32  ;;  %v9408_v11 = vrot.slane %v3144_v16, %v8470_v32  ;;  %v9417_v28 = vrot.slane %v3145_v61, %v8470_v32 }
 0x28a   : > { %7711 = vmatprep.mubr.msk.bf16.mxu0 %vm4168_vm0, %v1776_v46  ;;  %7719 = vmatprep.mubr.msk.bf16.mxu1 %vm4168_vm0, %v1778_v53  ;;  %v3400_v45 = vcombine.low %v3344_v18, %v9286_v51  ;;  %v3401_v7 = vcombine.high %v3344_v18, %v9286_v51  ;;  %v4481_v42 = vsel %vm4168_vm0, %v2970_v63, 0  ;;  %v1609_v48 = vcombine.high %v9326_v60, %v9334_v23 }
 0x28b   : > { %v1712_v39 = vcombine.low %v9342_v0, %v9345_v43  ;;  %v1713_v22 = vcombine.high %v9342_v0, %v9345_v43  ;;  %v1744_v34 = vcombine.low %v9348_v10, %v9351_v31  ;;  %7718 = vmatpush3.bf16.xpose.msra.mxu1 %v4481_v42  ;;  %v3416_v63 = vcombine.low %v3351_v26, %v9329_v50 }
 0x28c   : > { %v3417_v1 = vcombine.high %v3351_v26, %v9329_v50  ;;  %v2769_v20 = vcombine.high %v10826_v2, %v10825_v5  ;;  %v2801_v29 = vcombine.high %v10828_v44, %v10827_v59  ;;  %v2905_v16 = vcombine.high %v9239_v55, %v9242_v56 }
 0x28d   : > { %v2937_v61 = vcombine.high %v9252_v40, %v9258_v62  ;;  %v9449_v50 = vrot.slane %v3400_v45, %v8470_v32  ;;  %v9452_v5 = vrot.slane %v3401_v7, %v8470_v32  ;;  %v3045_v40 = vpop.permute.xlu0 %3044  ;;  %v9458_v62 = vpop.permute.xlu1 %2994  ;;  %v9463_v53 = vrot.slane %v3416_v63, %v8470_v32  ;;  %v10831_v45 = vld [vmem:[#allocation8_spill] sm:$0xff] }
 0x28e   : > { %v2783_v2 = vrot.slane %v2769_v20, %v8470_v32  ;;  %v2815_v59 = vrot.slane %v2801_v29, %v8470_v32  ;;  %v2919_v55 = vrot.slane %v2905_v16, %v8470_v32  ;;  %v9466_v26 = vrot.slane %v3417_v1, %v8470_v32 }
 0x28f   : > { %v2951_v56 = vrot.slane %v2937_v61, %v8470_v32  ;;  %v3472_v7 = vcombine.low %v10831_v45, %v9356_v9  ;;  %v3473_v63 = vcombine.high %v10831_v45, %v9356_v9  ;;  %v3368_v44 = vcombine.low %v9410_v27, %v3045_v40 }
 0x290   : > { %v2822_v42 = vcombine.low %v2783_v2, %v2815_v59  ;;  %v2823_v29 = vcombine.high %v2783_v2, %v2815_v59  ;;  %v3488_v51 = vcombine.low %v9291_v54, %v9385_v41  ;;  %v3489_v2 = vcombine.high %v9291_v54, %v9385_v41 }
 0x291   : > { %v2958_v20 = vcombine.low %v2919_v55, %v2951_v56  ;;  %v2959_v16 = vcombine.high %v2919_v55, %v2951_v56  ;;  %v10832_v59 = vcombine.low %v9299_v30, %v9302_v38  ;;  %v1616_v56 = vrot.slane %v1608_v8, %v8470_v32  ;;  %v9493_v41 = vpop.permute.xlu1 %3006 }
 0x292   : > { %v1720_v46 = vrot.slane %v1712_v39, %v8470_v32  ;;  %v1752_v9 = vrot.slane %v1744_v34, %v8470_v32  ;;  %v3480_v45 = vrot.slane %v3472_v7, %v8466_v24  ;;  %v3496_v54 = vrot.slane %v3488_v51, %v8466_v24 }
 0x293   : > { %v2973_v1 = vpack.c.bf16 %v2958_v20, %v2822_v42  ;;  %v2975_v18 = vpack.c.bf16 %v2959_v16, %v2823_v29  ;;  %v1584_v55 = vrot.slane %v10832_v59, %v8470_v32  ;;  %v3369_v42 = vcombine.high %v9410_v27, %v3045_v40 }
 0x294   : > { %v1764_v29 = vcombine.low %v1720_v46, %v1752_v9  ;;  %v1765_v8 = vcombine.high %v1720_v46, %v1752_v9  ;;  %v7394_v39 = vcombine.low %v9463_v53, %v9466_v26  ;;  %v7396_v34 = vcombine.high %v9463_v53, %v9466_v26 }
 0x295   : > { %7835 = vmatprep.subr.msk.bf16.mxu0 %vm4168_vm0, %v2973_v1  ;;  %7837 = vmatprep.subr.msk.bf16.mxu1 %vm4168_vm0, %v2975_v18  ;;  %v1628_v20 = vcombine.low %v1584_v55, %v1616_v56  ;;  %v1629_v16 = vcombine.high %v1584_v55, %v1616_v56  ;;  %v3503_v59 = vrot.slane %v3489_v2, %v8466_v24  ;;  %v4545_v56 = vsel %vm4168_vm0, %v2973_v1, 0  ;;  %v9522_v1 = vpop.permute.xlu1 %3022 }
 0x296   : > { %v3536_v61 = vcombine.low %v3480_v45, %v3496_v54  ;;  %v2497_v27 = vcombine.high %v9118_v3, %v9143_v57  ;;  %v2529_v51 = vcombine.high %v9169_v12, %v9180_v25  ;;  %v3487_v40 = vrot.slane %v3473_v63, %v8466_v24 }
 0x297   : > { %v1777_v7 = vpack.c.bf16 %v1764_v29, %v1628_v20  ;;  %v1779_v58 = vpack.c.bf16 %v1765_v8, %v1629_v16  ;;  %v9506_v46 = vrot.slane %v3368_v44, %v8466_v24  ;;  %v9509_v55 = vrot.slane %v3369_v42, %v8466_v24  ;;  %v10834_v8 = vld [vmem:[#allocation9_spill] sm:$0xff] }
 0x298   : > { %v4606_v2 = vsel %vm4168_vm0, %v2975_v18, 0  ;;  %v2511_v3 = vrot.slane %v2497_v27, %v8470_v32  ;;  %v2543_v57 = vrot.slane %v2529_v51, %v8470_v32  ;;  %v2633_v12 = vcombine.high %v9055_v35, %v9061_v6 }
 0x299   : > { %7712 = vmatmul.mubr.msk.bf16.vlgmr.msra.gmra.mxu0 %vm4168_vm0, %v1777_v7  ;;  %7720 = vmatmul.mubr.msk.bf16.vlgmr.msra.gmra.mxu1 %vm4168_vm0, %v1779_v58  ;;  %v3537_v25 = vcombine.high %v3480_v45, %v3496_v54  ;;  %v9520_v44 = vrot.slane %v3536_v61, %v8470_v32  ;;  %v3552_v63 = vcombine.low %v3487_v40, %v3503_v59  ;;  %v10833_v61 = vld [vmem:[#allocation10_spill] sm:$0xff] }
 0x29a   : > { %v3553_v9 = vcombine.high %v3487_v40, %v3503_v59  ;;  %7724 = vmatpush3.bf16.xpose.msra.mxu0 %v4545_v56  ;;  %7732 = vmatpush3.bf16.xpose.msra.mxu1 %v4606_v2  ;;  %v2550_v58 = vcombine.low %v2511_v3, %v2543_v57  ;;  %v2647_v18 = vrot.slane %v2633_v12, %v8470_v32  ;;  %v3033_v40 = vpop.permute.xlu1 %3032 }
 0x29b   : > { %v2665_v42 = vcombine.high %v9071_v36, %v9074_v4  ;;  %v1305_v20 = vcombine.high %v9197_v14, %v9200_v17  ;;  %v1337_v35 = vcombine.high %v9205_v13, %v9213_v19  ;;  %v1441_v6 = vcombine.high %v9266_v21, %v9269_v33 }
 0x29c   : > { %v1473_v45 = vcombine.high %v10833_v61, %v9278_v49  ;;  %v2551_v54 = vcombine.high %v2511_v3, %v2543_v57  ;;  %v3200_v36 = vcombine.low %v10834_v8, %v9458_v62  ;;  %v3201_v4 = vcombine.high %v10834_v8, %v9458_v62  ;;  %v3057_v61 = vpop.permute.xlu0 %3056 }
 0x29d   : > { %v2679_v29 = vrot.slane %v2665_v42, %v8470_v32  ;;  %v1319_v16 = vrot.slane %v1305_v20, %v8470_v32  ;;  %v1351_v14 = vrot.slane %v1337_v35, %v8470_v32  ;;  %v1455_v17 = vrot.slane %v1441_v6, %v8470_v32 }
 0x29e   : > { %v1487_v13 = vrot.slane %v1473_v45, %v8470_v32  ;;  %v3216_v19 = vcombine.low %v9412_v47, %v9493_v41  ;;  %v9547_v21 = vrot.slane %v3537_v25, %v8470_v32  ;;  %v3208_v59 = vrot.slane %v3200_v36, %v8466_v24 }
 0x29f   : > { %v2686_v33 = vcombine.low %v2647_v18, %v2679_v29  ;;  %v2687_v49 = vcombine.high %v2647_v18, %v2679_v29  ;;  %v1358_v7 = vcombine.low %v1319_v16, %v1351_v14  ;;  %v1359_v51 = vcombine.high %v1319_v16, %v1351_v14 }
 0x2a0   : > { %v1494_v27 = vcombine.low %v1455_v17, %v1487_v13  ;;  %v1495_v62 = vcombine.high %v1455_v17, %v1487_v13  ;;  %v3217_v3 = vcombine.high %v9412_v47, %v9493_v41  ;;  %v3224_v57 = vrot.slane %v3216_v19, %v8466_v24 }
 0x2a1   : > { %v2972_v56 = vpack.c.bf16 %v2686_v33, %v2550_v58  ;;  %v2974_v2 = vpack.c.bf16 %v2687_v49, %v2551_v54  ;;  %v9554_v12 = vrot.slane %v3552_v63, %v8470_v32  ;;  %v3215_v18 = vrot.slane %v3201_v4, %v8466_v24  ;;  %v9583_v4 = vpop.permute.xlu1 %3034 }
 0x2a2   : > { %v1780_v25 = vpack.c.bf16 %v1494_v27, %v1358_v7  ;;  %v1782_v42 = vpack.c.bf16 %v1495_v62, %v1359_v51  ;;  %v3231_v20 = vrot.slane %v3217_v3, %v8466_v24  ;;  %v3264_v58 = vcombine.low %v3208_v59, %v3224_v57 }
 0x2a3   : > { %7836 = vmatprep.subr.msk.bf16.mxu0 %vm4168_vm0, %v2972_v56  ;;  %7838 = vmatprep.subr.msk.bf16.mxu1 %vm4168_vm0, %v2974_v2  ;;  %v3265_v35 = vcombine.high %v3208_v59, %v3224_v57  ;;  %v3567_v6 = vrot.slane %v3553_v9, %v8470_v32  ;;  %v4542_v47 = vsel %vm4168_vm0, %v2972_v56, 0  ;;  %v4603_v41 = vsel %vm4168_vm0, %v2974_v2, 0 }
 0x2a4   : > { %7727 = vmatprep.mubr.msk.bf16.mxu0 %vm4168_vm0, %v1780_v25  ;;  %7735 = vmatprep.mubr.msk.bf16.mxu1 %vm4168_vm0, %v1782_v42  ;;  %v1591_v63 = vrot.slane %v1577_v15, %v8470_v32  ;;  %v3272_v45 = vrot.slane %v3264_v58, %v8470_v32  ;;  %v3280_v29 = vcombine.low %v3215_v18, %v3231_v20 }
 0x2a5   : > { %v3279_v54 = vrot.slane %v3265_v35, %v8470_v32  ;;  %v3281_v9 = vcombine.high %v3215_v18, %v3231_v20  ;;  %7726 = vmatpush3.bf16.xpose.msra.mxu0 %v4542_v47  ;;  %7734 = vmatpush3.bf16.xpose.msra.mxu1 %v4603_v41  ;;  %v1623_v16 = vrot.slane %v1609_v48, %v8470_v32 }
 0x2a6   : > { %v1727_v30 = vrot.slane %v1713_v22, %v8470_v32  ;;  %v10835_v38 = vcombine.high %v9348_v10, %v9351_v31  ;;  %v3384_v36 = vcombine.low %v3033_v40, %v3057_v61  ;;  %v7398_v14 = vcombine.low %v9520_v44, %v9547_v21 }
 0x2a7   : > { %v7400_v60 = vcombine.high %v9520_v44, %v9547_v21  ;;  %v3288_v23 = vrot.slane %v3280_v29, %v8470_v32  ;;  %v3295_v48 = vrot.slane %v3281_v9, %v8470_v32  ;;  %v7402_v0 = vcombine.low %v9554_v12, %v3567_v6 }
 0x2a8   : > { %v1759_v15 = vrot.slane %v10835_v38, %v8470_v32  ;;  %v1630_v43 = vcombine.low %v1591_v63, %v1623_v16  ;;  %v7404_v10 = vcombine.high %v9554_v12, %v3567_v6  ;;  %v7382_v31 = vcombine.low %v3272_v45, %v3279_v54  ;;  %v3047_v12 = vpop.permute.xlu1 %3046 }
 0x2a9   : > { %v7384_v13 = vcombine.high %v3272_v45, %v3279_v54  ;;  %v1631_v19 = vcombine.high %v1591_v63, %v1623_v16  ;;  %v7386_v33 = vcombine.low %v3288_v23, %v3295_v48  ;;  %v3385_v59 = vcombine.high %v3033_v40, %v3057_v61 }
 0x2aa   : > { %v1766_v22 = vcombine.low %v1727_v30, %v1759_v15  ;;  %v1767_v17 = vcombine.high %v1727_v30, %v1759_v15  ;;  %v3392_v7 = vrot.slane %v3384_v36, %v8466_v24  ;;  %v7388_v44 = vcombine.high %v3288_v23, %v3295_v48 }
 0x2ab   : > { %v10836_v27 = vcombine.low %v9449_v50, %v9452_v5  ;;  %v10837_v62 = vcombine.high %v9449_v50, %v9452_v5  ;;  %v3399_v40 = vrot.slane %v3385_v59, %v8466_v24  ;;  %v9614_v57 = vrot.slane %v7394_v39, %v8466_v24 }
 0x2ac   : > { %v1781_v49 = vpack.c.bf16 %v1766_v22, %v1630_v43  ;;  %v1783_v21 = vpack.c.bf16 %v1767_v17, %v1631_v19  ;;  %v3432_v2 = vcombine.low %v9506_v46, %v3392_v7  ;;  %v3433_v3 = vcombine.high %v9506_v46, %v3392_v7  ;;  %v3059_v30 = vpop.permute.xlu1 %3058 }
 0x2ad   : > { %v9598_v51 = vrot.slane %v10836_v27, %v8466_v24  ;;  %v9604_v56 = vrot.slane %v10837_v62, %v8466_v24  ;;  %v9621_v50 = vrot.slane %v7396_v34, %v8466_v24  ;;  %v9626_v46 = vrot.slane %v7398_v14, %v8466_v24 }
 0x2ae   : > { %7728 = vmatmul.mubr.msk.bf16.vlgmr.msra.gmra.mxu0 %vm4168_vm0, %v1781_v49  ;;  %7736 = vmatmul.mubr.msk.bf16.vlgmr.msra.gmra.mxu1 %vm4168_vm0, %v1783_v21  ;;  %v9629_v25 = vrot.slane %v7400_v60, %v8466_v24  ;;  %v9632_v39 = vrot.slane %v3432_v2, %v8470_v32  ;;  %v9635_v42 = vrot.slane %v3433_v3, %v8470_v32 }
 0x2af   : > { %v3944_v5 = vcombine.low %v9598_v51, %v9604_v56  ;;  %v3448_v18 = vcombine.low %v9509_v55, %v3399_v40  ;;  %v3449_v53 = vcombine.high %v9509_v55, %v3399_v40  ;;  %v9640_v26 = vrot.slane %v7382_v31, %v8466_v24 }
 0x2b0   : > { %v3976_v34 = vcombine.low %v9614_v57, %v9621_v50  ;;  %v9645_v20 = vrot.slane %v7402_v0, %v8466_v24  ;;  %v9648_v58 = vrot.slane %v7404_v10, %v8466_v24  ;;  %v9651_v35 = vrot.slane %v7384_v13, %v8466_v24 }
 0x2b1   : > { %v9654_v6 = vrot.slane %v3448_v18, %v8470_v32  ;;  %v9657_v55 = vrot.slane %v3449_v53, %v8470_v32  ;;  %v3952_v47 = vrot.slane %v3944_v5, %v8470_v32  ;;  %v4080_v63 = vcombine.low %v9626_v46, %v9629_v25 }
 0x2b2   : > { %v3984_v41 = vrot.slane %v3976_v34, %v8470_v32  ;;  %v4112_v61 = vcombine.low %v9645_v20, %v9648_v58  ;;  %v3504_v45 = vcombine.low %v9522_v1, %v3047_v12  ;;  %v9667_v54 = vrot.slane %v7386_v33, %v8466_v24 }
 0x2b3   : > { %v9670_v29 = vrot.slane %v7388_v44, %v8466_v24  ;;  %v7391_v9 = vcombine.low %v9632_v39, %v9635_v42  ;;  %v7393_v16 = vcombine.high %v9632_v39, %v9635_v42  ;;  %v7395_v38 = vcombine.low %v9654_v6, %v9657_v55 }
 0x2b4   : > { %v7397_v15 = vcombine.high %v9654_v6, %v9657_v55  ;;  %v4088_v36 = vrot.slane %v4080_v63, %v8470_v32  ;;  %v4120_v14 = vrot.slane %v4112_v61, %v8470_v32  ;;  %v4008_v60 = vcombine.low %v3952_v47, %v3984_v41 }
 0x2b5   : > { %v4009_v23 = vcombine.high %v3952_v47, %v3984_v41  ;;  %v3505_v48 = vcombine.high %v9522_v1, %v3047_v12  ;;  %v3512_v0 = vrot.slane %v3504_v45, %v8466_v24  ;;  %v3520_v17 = vcombine.low %v9583_v4, %v3059_v30 }
 0x2b6   : > { %v4144_v43 = vcombine.low %v4088_v36, %v4120_v14  ;;  %v4145_v22 = vcombine.high %v4088_v36, %v4120_v14  ;;  %v3521_v10 = vcombine.high %v9583_v4, %v3059_v30  ;;  %v10838_v13 = vcombine.low %v9397_v37, %v9405_v52 }
 0x2b7   : > { %v3519_v31 = vrot.slane %v3505_v48, %v8466_v24  ;;  %v10839_v1 = vcombine.high %v9397_v37, %v9405_v52  ;;  %v10840_v49 = vcombine.low %v9408_v11, %v9417_v28  ;;  %v3528_v44 = vrot.slane %v3520_v17, %v8466_v24 }
 0x2b8   : > { %v9691_v19 = vrot.slane %v10838_v13, %v8466_v24  ;;  %v4153_v7 = vpack.c.bf16 %v4144_v43, %v4008_v60  ;;  %v4155_v4 = vpack.c.bf16 %v4145_v22, %v4009_v23  ;;  %v3535_v21 = vrot.slane %v3521_v10, %v8466_v24 }
 0x2b9   : > { %v3632_v33 = vrot.slane %v10839_v1, %v8466_v24  ;;  %v3648_v59 = vrot.slane %v10840_v49, %v8466_v24  ;;  %v10841_v27 = vcombine.high %v9408_v11, %v9417_v28  ;;  %v3808_v37 = vcombine.low %v9640_v26, %v9651_v35 }
 0x2ba   : > { %v3840_v52 = vcombine.low %v9667_v54, %v9670_v29  ;;  %7739 = vmatprep.subr.bf16.mxu0 %v4153_v7  ;;  %7747 = vmatprep.subr.bf16.mxu1 %v4155_v4  ;;  %v3568_v2 = vcombine.low %v3512_v0, %v3528_v44  ;;  %v3569_v3 = vcombine.high %v3512_v0, %v3528_v44 }
 0x2bb   : > { %v3664_v62 = vrot.slane %v10841_v27, %v8466_v24  ;;  %v3672_v40 = vcombine.low %v9691_v19, %v3632_v33  ;;  %v3584_v12 = vcombine.low %v3519_v31, %v3535_v21  ;;  %7740 = vmatpush3.bf16.msra.mxu0 %v4153_v7  ;;  %7748 = vmatpush3.bf16.msra.mxu1 %v4155_v4 }
 0x2bc   : > { %v3585_v5 = vcombine.high %v3519_v31, %v3535_v21  ;;  %v3576_v28 = vrot.slane %v3568_v2, %v8470_v32  ;;  %v3583_v42 = vrot.slane %v3569_v3, %v8470_v32  ;;  %v3816_v53 = vrot.slane %v3808_v37, %v8470_v32 }
 0x2bd   : > { %v3680_v39 = vrot.slane %v3672_v40, %v8470_v32  ;;  %v3704_v11 = vcombine.low %v3648_v59, %v3664_v62  ;;  %v3592_v18 = vrot.slane %v3584_v12, %v8470_v32  ;;  %v3848_v55 = vrot.slane %v3840_v52, %v8470_v32 }
 0x2be   : > { %v3599_v34 = vrot.slane %v3585_v5, %v8470_v32  ;;  %v3945_v47 = vcombine.high %v9598_v51, %v9604_v56  ;;  %v7399_v41 = vcombine.low %v3576_v28, %v3583_v42  ;;  %v7401_v63 = vcombine.high %v3576_v28, %v3583_v42 }
 0x2bf   : > { %v3712_v6 = vrot.slane %v3704_v11, %v8470_v32  ;;  %v3977_v61 = vcombine.high %v9614_v57, %v9621_v50  ;;  %v4081_v45 = vcombine.high %v9626_v46, %v9629_v25  ;;  %v3872_v60 = vcombine.low %v3816_v53, %v3848_v55 }
 0x2c0   : > { %v7403_v30 = vcombine.low %v3592_v18, %v3599_v34  ;;  %v7405_v36 = vcombine.high %v3592_v18, %v3599_v34  ;;  %v3895_v23 = vrot.slane %v7391_v9, %v8466_v24  ;;  %v3911_v48 = vrot.slane %v7393_v16, %v8466_v24 }
 0x2c1   : > { %v3736_v14 = vcombine.low %v3680_v39, %v3712_v6  ;;  %v3737_v0 = vcombine.high %v3680_v39, %v3712_v6  ;;  %v3873_v43 = vcombine.high %v3816_v53, %v3848_v55  ;;  %v3927_v51 = vrot.slane %v7395_v38, %v8466_v24 }
 0x2c2   : > { %v3943_v56 = vrot.slane %v7397_v15, %v8466_v24  ;;  %v3959_v57 = vrot.slane %v3945_v47, %v8470_v32  ;;  %v3991_v46 = vrot.slane %v3977_v61, %v8470_v32  ;;  %v4095_v25 = vrot.slane %v4081_v45, %v8470_v32 }
 0x2c3   : > { %v4152_v22 = vpack.c.bf16 %v3872_v60, %v3736_v14  ;;  %v4154_v50 = vpack.c.bf16 %v3873_v43, %v3737_v0  ;;  %v4113_v17 = vcombine.high %v9645_v20, %v9648_v58  ;;  %v4031_v9 = vrot.slane %v7399_v41, %v8466_v24 }
 0x2c4   : > { %v4047_v16 = vrot.slane %v7401_v63, %v8466_v24  ;;  %v3673_v38 = vcombine.high %v9691_v19, %v3632_v33  ;;  %v3705_v10 = vcombine.high %v3648_v59, %v3664_v62  ;;  %v4063_v15 = vrot.slane %v7403_v30, %v8466_v24 }
 0x2c5   : > { %7741 = vmatprep.subr.bf16.mxu0 %v4152_v22  ;;  %v4079_v31 = vrot.slane %v7405_v36, %v8466_v24  ;;  %7749 = vmatprep.subr.bf16.mxu1 %v4154_v50  ;;  %v4127_v13 = vrot.slane %v4113_v17, %v8470_v32  ;;  %v4010_v1 = vcombine.low %v3959_v57, %v3991_v46 }
 0x2c6   : > { %7742 = vmatpush3.bf16.msra.mxu0 %v4152_v22  ;;  %7750 = vmatpush3.bf16.msra.mxu1 %v4154_v50  ;;  %v4011_v49 = vcombine.high %v3959_v57, %v3991_v46  ;;  %v3687_v20 = vrot.slane %v3673_v38, %v8470_v32  ;;  %v3719_v58 = vrot.slane %v3705_v10, %v8470_v32 }
 0x2c7   : > { %v4146_v7 = vcombine.low %v4095_v25, %v4127_v13  ;;  %v4147_v4 = vcombine.high %v4095_v25, %v4127_v13  ;;  %v3809_v19 = vcombine.high %v9640_v26, %v9651_v35  ;;  %v3841_v33 = vcombine.high %v9667_v54, %v9670_v29 }
 0x2c8   : > { %v3738_v59 = vcombine.low %v3687_v20, %v3719_v58  ;;  %v3960_v44 = vcombine.low %v3895_v23, %v3911_v48  ;;  %v3992_v21 = vcombine.low %v3927_v51, %v3943_v56  ;;  %v4096_v27 = vcombine.low %v4031_v9, %v4047_v16 }
 0x2c9   : > { %v9747_v62 = vpack.c.bf16 %v4146_v7, %v4010_v1  ;;  %v9749_v40 = vpack.c.bf16 %v4147_v4, %v4011_v49  ;;  %v3823_v37 = vrot.slane %v3809_v19, %v8470_v32  ;;  %v3855_v52 = vrot.slane %v3841_v33, %v8470_v32 }
 0x2ca   : > { %v3968_v2 = vrot.slane %v3960_v44, %v8470_v32  ;;  %v4000_v3 = vrot.slane %v3992_v21, %v8470_v32  ;;  %v4104_v26 = vrot.slane %v4096_v27, %v8470_v32  ;;  %v4128_v35 = vcombine.low %v4063_v15, %v4079_v31 }
 0x2cb   : > { %7755 = vmatprep.subr.bf16.mxu0 %v9747_v62  ;;  %7763 = vmatprep.subr.bf16.mxu1 %v9749_v40  ;;  %v3874_v54 = vcombine.low %v3823_v37, %v3855_v52  ;;  %v3961_v29 = vcombine.high %v3895_v23, %v3911_v48  ;;  %v3993_v12 = vcombine.high %v3927_v51, %v3943_v56 }
 0x2cc   : > { %v4012_v5 = vcombine.low %v3968_v2, %v4000_v3  ;;  %v4136_v39 = vrot.slane %v4128_v35, %v8470_v32  ;;  %v4097_v11 = vcombine.high %v4031_v9, %v4047_v16  ;;  %v4129_v28 = vcombine.high %v4063_v15, %v4079_v31 }
 0x2cd   : > { %v9759_v42 = vpack.c.bf16 %v3874_v54, %v3738_v59  ;;  %v3975_v18 = vrot.slane %v3961_v29, %v8470_v32  ;;  %v4007_v53 = vrot.slane %v3993_v12, %v8470_v32  ;;  %v3739_v34 = vcombine.high %v3687_v20, %v3719_v58 }
 0x2ce   : > { %v4148_v6 = vcombine.low %v4104_v26, %v4136_v39  ;;  %v4111_v55 = vrot.slane %v4097_v11, %v8470_v32  ;;  %v4143_v47 = vrot.slane %v4129_v28, %v8470_v32  ;;  %v3875_v41 = vcombine.high %v3823_v37, %v3855_v52 }
 0x2cf   : > { %v4014_v63 = vcombine.low %v3975_v18, %v4007_v53  ;;  %v4013_v61 = vcombine.high %v3968_v2, %v4000_v3  ;;  %v4149_v45 = vcombine.high %v4104_v26, %v4136_v39  ;;  %v4015_v30 = vcombine.high %v3975_v18, %v4007_v53 }
 0x2d0   : > { %v9765_v36 = vpack.c.bf16 %v4148_v6, %v4012_v5  ;;  %v4150_v14 = vcombine.low %v4111_v55, %v4143_v47  ;;  %v9767_v60 = vpack.c.bf16 %v3875_v41, %v3739_v34  ;;  %v4151_v23 = vcombine.high %v4111_v55, %v4143_v47 }
 0x2d1   : > { %v9769_v48 = vpack.c.bf16 %v4149_v45, %v4013_v61 }
 0x2d2   : > { %v9771_v0 = vpack.c.bf16 %v4150_v14, %v4014_v63  ;;  %v9773_v43 = vpack.c.bf16 %v4151_v23, %v4015_v30 }
 0x318   : > { %v9777_v56 = vpop.f32.mrf.mxu0 }
 0x319   : > { %v4688_v25 = vsel %vm4657_vm1, %v9777_v56, -inf }
 0x31a   : > { %v9775_v51 = vpop.f32.mrf.mxu1  ;;  %v9781_v57 = vpop.f32.mrf.mxu0 }
 0x31b   : > { %v4664_v22 = vsel %vm4657_vm1, %v9775_v51, -inf  ;;  %v4682_v15 = vsel %vm4657_vm1, %v9781_v57, -inf }
 0x31c   : > { %4665 = vmax.xlane.f32.xlu0 %v4664_v22  ;;  %v9783_v50 = vpop.f32.mrf.mxu1  ;;  %v9791_v9 = vpop.f32.mrf.mxu0 }
 0x31d   : > { %v4658_v16 = vsel %vm4657_vm1, %v9783_v50, -inf  ;;  %v4691_v38 = vsel %vm4657_vm1, %v9791_v9, -inf }
 0x31e   : > { %v9785_v46 = vpop.f32.mrf.mxu1  ;;  %v9803_v13 = vpop.f32.mrf.mxu0 }
 0x31f   : > { %v4667_v17 = vsel %vm4657_vm1, %v9785_v46, -inf  ;;  %v4685_v49 = vsel %vm4657_vm1, %v9803_v13, -inf }
 0x320   : > { %4689 = vmax.xlane.f32.xlu0 %v4688_v25  ;;  %4668 = vmax.xlane.f32.xlu1 %v4667_v17  ;;  %v9797_v10 = vpop.f32.mrf.mxu1 }
 0x321   : > { %v4661_v31 = vsel %vm4657_vm1, %v9797_v10, -inf }
 0x324   : > { %4659 = vmax.xlane.f32.xlu0 %v4658_v16  ;;  %4692 = vmax.xlane.f32.xlu1 %v4691_v38 }
 0x328   : > { %4683 = vmax.xlane.f32.xlu0 %v4682_v15  ;;  %4662 = vmax.xlane.f32.xlu1 %v4661_v31 }
 0x32a   : > { %v9805_v1 = vpop.f32.mrf.mxu1 }
 0x32b   : > { %v4676_v20 = vsel %vm4657_vm1, %v9805_v1, -inf }
 0x32c   : > { %4686 = vmax.xlane.f32.xlu1 %v4685_v49  ;;  %4677 = vmax.xlane.f32.xlu0 %v4676_v20  ;;  %v9811_v58 = vpop.f32.mrf.mxu1 }
 0x32d   : > { %v4670_v37 = vsel %vm4657_vm1, %v9811_v58, -inf }
 0x32e   : > { %v9813_v7 = vpop.f32.mrf.mxu1 }
 0x32f   : > { %v4679_v4 = vsel %vm4657_vm1, %v9813_v7, -inf }
 0x330   : > { %4680 = vmax.xlane.f32.xlu1 %v4679_v4  ;;  %v9817_v19 = vpop.f32.mrf.mxu1 }
 0x331   : > { %v4673_v29 = vsel %vm4657_vm1, %v9817_v19, -inf }
 0x33a   : > { %v9823_v44 = vpop.f32.mrf.mxu1 }
 0x33b   : > { %v4700_v39 = vsel %vm4657_vm1, %v9823_v44, -inf }
 0x33c   : > { %v9833_v2 = vpop.f32.mrf.mxu1 }
 0x33d   : > { %v4694_v47 = vsel %vm4657_vm1, %v9833_v2, -inf }
 0x33e   : > { %v9841_v54 = vpop.f32.mrf.mxu1 }
 0x33f   : > { %v4703_v12 = vsel %vm4657_vm1, %v9841_v54, -inf }
 0x340   : > { %v9847_v5 = vpop.f32.mrf.mxu1 }
 0x341   : > { %v4697_v63 = vsel %vm4657_vm1, %v9847_v5, -inf }
 0x359   : > { %v9819_v33 = vpop.f32.mrf.mxu0  ;;  %v9851_v11 = vpop.f32.mrf.mxu1 }
 0x35a   : > { %v4712_v59 = vsel %vm4657_vm1, %v9819_v33, -inf  ;;  %v4724_v22 = vsel %vm4657_vm1, %v9851_v11, -inf }
 0x35b   : > { %4713 = vmax.xlane.f32.xlu0 %v4712_v59  ;;  %v9825_v21 = vpop.f32.mrf.mxu0  ;;  %v9859_v34 = vpop.f32.mrf.mxu1 }
 0x35c   : > { %v4706_v26 = vsel %vm4657_vm1, %v9825_v21, -inf  ;;  %v4718_v16 = vsel %vm4657_vm1, %v9859_v34, -inf }
 0x35d   : > { %v9827_v27 = vpop.f32.mrf.mxu0  ;;  %v9867_v41 = vpop.f32.mrf.mxu1 }
 0x35e   : > { %v4715_v52 = vsel %vm4657_vm1, %v9827_v27, -inf  ;;  %v4727_v25 = vsel %vm4657_vm1, %v9867_v41, -inf }
 0x35f   : > { %4671 = vmax.xlane.f32.xlu0 %v4670_v37  ;;  %4716 = vmax.xlane.f32.xlu1 %v4715_v52  ;;  %v9835_v3 = vpop.f32.mrf.mxu0  ;;  %v9875_v30 = vpop.f32.mrf.mxu1 }
 0x360   : > { %v4709_v35 = vsel %vm4657_vm1, %v9835_v3, -inf  ;;  %v4721_v38 = vsel %vm4657_vm1, %v9875_v30, -inf  ;;  %v9903_v37 = vpop.permute.xlu0 %3016  ;;  %v9905_v52 = vpop.permute.xlu1 %3018 }
 0x363   : > { %4707 = vmax.xlane.f32.xlu0 %v4706_v26  ;;  %4710 = vmax.xlane.f32.xlu1 %v4709_v35 }
 0x364   : > { %v9907_v26 = vpop.permute.xlu0 %3028  ;;  %v9911_v35 = vpop.permute.xlu1 %3030 }
 0x367   : > { %4674 = vmax.xlane.f32.xlu0 %v4673_v29  ;;  %4704 = vmax.xlane.f32.xlu1 %v4703_v12  ;;  %v10842_v29 = vld [vmem:[#allocation7_spill] sm:$0xff] }
 0x368   : > { %v9915_v12 = vpop.permute.xlu0 %3040 }
 0x36b   : > { %4701 = vmax.xlane.f32.xlu0 %v4700_v39  ;;  %v9917_v39 = vpop.permute.xlu1 %3042 }
 0x36e   : > { %v9853_v28 = vpop.f32.mrf.mxu0  ;;  %v9879_v23 = vpop.f32.mrf.mxu1 }
 0x36f   : > { %v4736_v53 = vsel %vm4657_vm1, %v9853_v28, -inf  ;;  %v4748_v31 = vsel %vm4657_vm1, %v9879_v23, -inf }
 0x370   : > { %v9855_v18 = vpop.f32.mrf.mxu0  ;;  %4737 = vmax.xlane.f32.xlu0 %v4736_v53  ;;  %v9885_v17 = vpop.f32.mrf.mxu1 }
 0x371   : > { %v4730_v45 = vsel %vm4657_vm1, %v9855_v18, -inf  ;;  %v4742_v4 = vsel %vm4657_vm1, %v9885_v17, -inf }
 0x372   : > { %v9861_v6 = vpop.f32.mrf.mxu0  ;;  %v9891_v15 = vpop.f32.mrf.mxu1 }
 0x373   : > { %v4739_v55 = vsel %vm4657_vm1, %v9861_v6, -inf  ;;  %v4751_v49 = vsel %vm4657_vm1, %v9891_v15, -inf }
 0x374   : > { %4740 = vmax.xlane.f32.xlu1 %v4739_v55  ;;  %4695 = vmax.xlane.f32.xlu0 %v4694_v47  ;;  %v9871_v61 = vpop.f32.mrf.mxu0  ;;  %v9897_v20 = vpop.f32.mrf.mxu1 }
 0x375   : > { %v4733_v14 = vsel %vm4657_vm1, %v9871_v61, -inf  ;;  %v4745_v59 = vsel %vm4657_vm1, %v9897_v20, -inf }
 0x378   : > { %4698 = vmax.xlane.f32.xlu1 %v4697_v63  ;;  %4731 = vmax.xlane.f32.xlu0 %v4730_v45 }
 0x37c   : > { %4734 = vmax.xlane.f32.xlu1 %v4733_v14  ;;  %4725 = vmax.xlane.f32.xlu0 %v4724_v22 }
 0x380   : > { %4728 = vmax.xlane.f32.xlu1 %v4727_v25  ;;  %4719 = vmax.xlane.f32.xlu0 %v4718_v16 }
 0x384   : > { %4722 = vmax.xlane.f32.xlu1 %v4721_v38  ;;  %4749 = vmax.xlane.f32.xlu0 %v4748_v31 }
 0x388   : > { %4752 = vmax.xlane.f32.xlu1 %v4751_v49  ;;  %4743 = vmax.xlane.f32.xlu0 %v4742_v4 }
 0x38c   : > { %4746 = vmax.xlane.f32.xlu1 %v4745_v59 }
 0x39d   : > { %3054 = vrot.lane.b32.xlu1 %v10834_v8, %s8166_s23 }
 0x39e   : > { %3052 = vrot.lane.b32.xlu0 %v10842_v29, %s8166_s23 }
 0x3a5   : > { %v4666_v53 = vpop.xlane.xlu0 %4665 }
 0x3a6   : > { %v4756_v55 = vsub.f32 %v9775_v51, %v4666_v53 }
 0x3a8   : > { %v4790_v47 = vmul.f32 1.442695, %v4756_v55 }
 0x3a9   : > { %v4690_v63 = vpop.xlane.xlu0 %4689  ;;  %v4669_v45 = vpop.xlane.xlu1 %4668 }
 0x3aa   : > { %v4764_v14 = vsub.f32 %v9777_v56, %v4690_v63  ;;  %v4757_v22 = vsub.f32 %v9785_v46, %v4669_v45  ;;  %8015 = vpow2.f32 %v4790_v47 }
 0x3ac   : > { %v4806_v8 = vmul.f32 1.442695, %v4764_v14  ;;  %v4792_v25 = vmul.f32 1.442695, %v4757_v22 }
 0x3ad   : > { %v4660_v16 = vpop.xlane.xlu0 %4659  ;;  %v4693_v38 = vpop.xlane.xlu1 %4692 }
 0x3ae   : > { %v4754_v31 = vsub.f32 %v9783_v50, %v4660_v16  ;;  %v4765_v49 = vsub.f32 %v9791_v9, %v4693_v38  ;;  %8017 = vpow2.f32 %v4792_v25 }
 0x3af   : > { %8019 = vpow2.f32 %v4806_v8 }
 0x3b0   : > { %v4786_v4 = vmul.f32 1.442695, %v4754_v31  ;;  %v4808_v51 = vmul.f32 1.442695, %v4765_v49 }
 0x3b1   : > { %v4684_v59 = vpop.xlane.xlu0 %4683  ;;  %v4663_v29 = vpop.xlane.xlu1 %4662 }
 0x3b2   : > { %v4762_v53 = vsub.f32 %v9781_v57, %v4684_v59  ;;  %v4755_v56 = vsub.f32 %v9797_v10, %v4663_v29  ;;  %8021 = vpow2.f32 %v4808_v51 }
 0x3b3   : > { %8023 = vpow2.f32 %v4786_v4 }
 0x3b4   : > { %v4802_v46 = vmul.f32 1.442695, %v4762_v53  ;;  %v4788_v55 = vmul.f32 1.442695, %v4755_v56 }
 0x3b5   : > { %v4678_v47 = vpop.xlane.xlu0 %4677  ;;  %v4687_v63 = vpop.xlane.xlu1 %4686 }
 0x3b6   : > { %v4760_v50 = vsub.f32 %v9805_v1, %v4678_v47  ;;  %v4763_v9 = vsub.f32 %v9803_v13, %v4687_v63  ;;  %8025 = vpow2.f32 %v4788_v55 }
 0x3b7   : > { %8027 = vpow2.f32 %v4802_v46  ;;  %v9928_v22 = vpop.eup %8015 }
 0x3b8   : > { %v4798_v45 = vmul.f32 1.442695, %v4760_v50  ;;  %v4804_v14 = vmul.f32 1.442695, %v4763_v9  ;;  %v4856_v25 = vsel %vm4657_vm1, %v9928_v22, 0.0 }
 0x3b9   : > { %v4681_v8 = vpop.xlane.xlu1 %4680 }
 0x3ba   : > { %v4761_v57 = vsub.f32 %v9813_v7, %v4681_v8  ;;  %8029 = vpow2.f32 %v4804_v14 }
 0x3bb   : > { %v9931_v10 = vpop.eup %8017  ;;  %8031 = vpow2.f32 %v4798_v45 }
 0x3bc   : > { %v4800_v16 = vmul.f32 1.442695, %v4761_v57  ;;  %v9935_v1 = vpop.eup %8019  ;;  %v4859_v13 = vsel %vm4657_vm1, %v9931_v10, 0.0 }
 0x3bd   : > { %4857 = vadd.xlane.f32.xlu0 %v4856_v25  ;;  %v4880_v7 = vsel %vm4657_vm1, %v9935_v1, 0.0 }
 0x3be   : > { %8033 = vpow2.f32 %v4800_v16 }
 0x3bf   : > { %v9939_v38 = vpop.eup %8021 }
 0x3c0   : > { %v9943_v31 = vpop.eup %8023  ;;  %v4883_v49 = vsel %vm4657_vm1, %v9939_v38, 0.0 }
 0x3c1   : > { %4860 = vadd.xlane.f32.xlu1 %v4859_v13  ;;  %4881 = vadd.xlane.f32.xlu0 %v4880_v7  ;;  %v4850_v51 = vsel %vm4657_vm1, %v9943_v31, 0.0 }
 0x3c3   : > { %v9947_v4 = vpop.eup %8025 }
 0x3c4   : > { %v9951_v59 = vpop.eup %8027  ;;  %v4853_v29 = vsel %vm4657_vm1, %v9947_v4, 0.0 }
 0x3c5   : > { %4884 = vadd.xlane.f32.xlu1 %v4883_v49  ;;  %4851 = vadd.xlane.f32.xlu0 %v4850_v51  ;;  %v4874_v56 = vsel %vm4657_vm1, %v9951_v59, 0.0 }
 0x3c7   : > { %v9955_v53 = vpop.eup %8029 }
 0x3c8   : > { %v9959_v46 = vpop.eup %8031  ;;  %v4877_v55 = vsel %vm4657_vm1, %v9955_v53, 0.0 }
 0x3c9   : > { %4854 = vadd.xlane.f32.xlu1 %v4853_v29  ;;  %4875 = vadd.xlane.f32.xlu0 %v4874_v56  ;;  %v4868_v63 = vsel %vm4657_vm1, %v9959_v46, 0.0 }
 0x3cb   : > { %v9963_v47 = vpop.eup %8033 }
 0x3cc   : > { %v4871_v50 = vsel %vm4657_vm1, %v9963_v47, 0.0 }
 0x3cd   : > { %4878 = vadd.xlane.f32.xlu1 %v4877_v55  ;;  %4869 = vadd.xlane.f32.xlu0 %v4868_v63 }
 0x3d1   : > { %4872 = vadd.xlane.f32.xlu1 %v4871_v50 }
 0x3e4   : > { %v4714_v9 = vpop.xlane.xlu0 %4713 }
 0x3e5   : > { %v4772_v45 = vsub.f32 %v9819_v33, %v4714_v9 }
 0x3e7   : > { %v4822_v14 = vmul.f32 1.442695, %v4772_v45 }
 0x3e8   : > { %v4672_v8 = vpop.xlane.xlu0 %4671  ;;  %v4717_v57 = vpop.xlane.xlu1 %4716 }
 0x3e9   : > { %8035 = vpow2.f32 %v4822_v14  ;;  %v4758_v25 = vsub.f32 %v9811_v58, %v4672_v8  ;;  %v4773_v16 = vsub.f32 %v9827_v27, %v4717_v57 }
 0x3eb   : > { %v4794_v13 = vmul.f32 1.442695, %v4758_v25  ;;  %v4824_v7 = vmul.f32 1.442695, %v4773_v16 }
 0x3ec   : > { %v4708_v49 = vpop.xlane.xlu0 %4707  ;;  %v4711_v51 = vpop.xlane.xlu1 %4710 }
 0x3ed   : > { %8037 = vpow2.f32 %v4794_v13  ;;  %v4770_v29 = vsub.f32 %v9825_v21, %v4708_v49  ;;  %v4771_v55 = vsub.f32 %v9835_v3, %v4711_v51 }
 0x3ee   : > { %8039 = vpow2.f32 %v4824_v7 }
 0x3ef   : > { %v4818_v56 = vmul.f32 1.442695, %v4770_v29  ;;  %v4820_v9 = vmul.f32 1.442695, %v4771_v55 }
 0x3f0   : > { %v4675_v33 = vpop.xlane.xlu0 %4674  ;;  %v4705_v63 = vpop.xlane.xlu1 %4704 }
 0x3f1   : > { %8041 = vpow2.f32 %v4818_v56  ;;  %v4759_v50 = vsub.f32 %v9817_v19, %v4675_v33  ;;  %v4769_v27 = vsub.f32 %v9841_v54, %v4705_v63 }
 0x3f3   : > { %v4796_v58 = vmul.f32 1.442695, %v4759_v50  ;;  %v4816_v21 = vmul.f32 1.442695, %v4769_v27 }
 0x3f4   : > { %v4702_v45 = vpop.xlane.xlu0 %4701 }
 0x3f5   : > { %8043 = vpow2.f32 %v4796_v58  ;;  %v4768_v14 = vsub.f32 %v9823_v44, %v4702_v45 }
 0x3f6   : > { %v9977_v8 = vpop.eup %8035  ;;  %8045 = vpow2.f32 %v4820_v9 }
 0x3f7   : > { %v4814_v57 = vmul.f32 1.442695, %v4768_v14  ;;  %v4904_v3 = vsel %vm4657_vm1, %v9977_v8, 0.0 }
 0x3f8   : > { %4905 = vadd.xlane.f32.xlu0 %v4904_v3 }
 0x3f9   : > { %v4738_v25 = vpop.xlane.xlu0 %4737  ;;  %8047 = vpow2.f32 %v4814_v57 }
 0x3fa   : > { %v9981_v19 = vpop.eup %8037  ;;  %8049 = vpow2.f32 %v4816_v21 }
 0x3fb   : > { %v9983_v16 = vpop.eup %8039  ;;  %v4862_v44 = vsel %vm4657_vm1, %v9981_v19, 0.0 }
 0x3fc   : > { %4863 = vadd.xlane.f32.xlu0 %v4862_v44  ;;  %v4907_v7 = vsel %vm4657_vm1, %v9983_v16, 0.0 }
 0x3fd   : > { %v9985_v54 = vpop.xlane.xlu1 %4740  ;;  %v4696_v13 = vpop.xlane.xlu0 %4695  ;;  %4908 = vadd.xlane.f32.xlu1 %v4907_v7 }
 0x3fe   : > { %v4766_v49 = vsub.f32 %v9833_v2, %v4696_v13  ;;  %v9992_v51 = vpop.eup %8041 }
 0x3ff   : > { %v4898_v55 = vsel %vm4657_vm1, %v9992_v51, 0.0 }
 0x400   : > { %v4810_v56 = vmul.f32 1.442695, %v4766_v49  ;;  %4899 = vadd.xlane.f32.xlu0 %v4898_v55 }
 0x401   : > { %v4699_v29 = vpop.xlane.xlu1 %4698  ;;  %v4732_v63 = vpop.xlane.xlu0 %4731 }
 0x402   : > { %v4767_v33 = vsub.f32 %v9847_v5, %v4699_v29  ;;  %8051 = vpow2.f32 %v4810_v56  ;;  %v4778_v50 = vsub.f32 %v9855_v18, %v4732_v63  ;;  %v9998_v9 = vpop.eup %8043  ;;  %v4780_v63 = vsub.f32 %v9853_v28, %v4738_v25 }
 0x403   : > { %v4865_v45 = vsel %vm4657_vm1, %v9998_v9, 0.0  ;;  %v10002_v14 = vpop.eup %8045 }
 0x404   : > { %v4812_v58 = vmul.f32 1.442695, %v4767_v33  ;;  %v4834_v2 = vmul.f32 1.442695, %v4778_v50  ;;  %4866 = vadd.xlane.f32.xlu1 %v4865_v45  ;;  %v4901_v13 = vsel %vm4657_vm1, %v10002_v14, 0.0 }
 0x405   : > { %v4735_v27 = vpop.xlane.xlu1 %4734  ;;  %v4726_v21 = vpop.xlane.xlu0 %4725  ;;  %v4838_v25 = vmul.f32 1.442695, %v4780_v63 }
 0x406   : > { %8053 = vpow2.f32 %v4834_v2  ;;  %v4776_v5 = vsub.f32 %v9851_v11, %v4726_v21  ;;  %v10005_v57 = vpop.eup %8047 }
 0x407   : > { %8055 = vpow2.f32 %v4812_v58  ;;  %v4892_v44 = vsel %vm4657_vm1, %v10005_v57, 0.0  ;;  %v10011_v7 = vpop.eup %8049 }
 0x408   : > { %v4830_v18 = vmul.f32 1.442695, %v4776_v5  ;;  %4893 = vadd.xlane.f32.xlu0 %v4892_v44  ;;  %4902 = vadd.xlane.f32.xlu1 %v4901_v13  ;;  %v4895_v33 = vsel %vm4657_vm1, %v10011_v7, 0.0  ;;  %v3096_v5 = vcombine.low %v9903_v37, %v9915_v12  ;;  %v3233_v13 = vcombine.high %v9905_v52, %v9917_v39 }
 0x409   : > { %v4729_v3 = vpop.xlane.xlu1 %4728  ;;  %v4720_v29 = vpop.xlane.xlu0 %4719 }
 0x40a   : > { %v4777_v49 = vsub.f32 %v9867_v41, %v4729_v3  ;;  %8057 = vpow2.f32 %v4830_v18  ;;  %v4774_v11 = vsub.f32 %v9859_v34, %v4720_v29  ;;  %v4779_v41 = vsub.f32 %v9871_v61, %v4735_v27 }
 0x40b   : > { %v4781_v34 = vsub.f32 %v9861_v6, %v9985_v54  ;;  %v3232_v6 = vcombine.low %v9905_v52, %v9917_v39 }
 0x40c   : > { %v4832_v56 = vmul.f32 1.442695, %v4777_v49  ;;  %v4826_v58 = vmul.f32 1.442695, %v4774_v11  ;;  %4896 = vadd.xlane.f32.xlu1 %v4895_v33  ;;  %v4836_v54 = vmul.f32 1.442695, %v4779_v41 }
 0x40d   : > { %v4723_v55 = vpop.xlane.xlu1 %4722  ;;  %v4750_v2 = vpop.xlane.xlu0 %4749  ;;  %v4840_v49 = vmul.f32 1.442695, %v4781_v34  ;;  %v3240_v39 = vrot.slane %v3232_v6, %v8466_v24 }
 0x40e   : > { %8059 = vpow2.f32 %v4832_v56  ;;  %v4775_v50 = vsub.f32 %v9875_v30, %v4723_v55  ;;  %v3097_v30 = vcombine.high %v9903_v37, %v9915_v12  ;;  %v4784_v37 = vsub.f32 %v9879_v23, %v4750_v2 }
 0x40f   : > { %v10020_v45 = vpop.eup %8051  ;;  %8061 = vpow2.f32 %v4826_v58  ;;  %v3104_v12 = vrot.slane %v3096_v5, %v8466_v24  ;;  %v3247_v58 = vrot.slane %v3233_v13, %v8466_v24 }
 0x410   : > { %v4828_v21 = vmul.f32 1.442695, %v4775_v50  ;;  %v4886_v28 = vsel %vm4657_vm1, %v10020_v45, 0.0  ;;  %v3111_v55 = vrot.slane %v3097_v30, %v8466_v24  ;;  %v4846_v2 = vmul.f32 1.442695, %v4784_v37 }
 0x411   : > { %v4753_v3 = vpop.xlane.xlu1 %4752  ;;  %4887 = vadd.xlane.f32.xlu0 %v4886_v28  ;;  %v4744_v27 = vpop.xlane.xlu0 %4743 }
 0x412   : > { %v4785_v61 = vsub.f32 %v9891_v15, %v4753_v3  ;;  %8063 = vpow2.f32 %v4828_v21  ;;  %v4782_v18 = vsub.f32 %v9885_v17, %v4744_v27 }
 0x413   : > { %v10034_v44 = vpop.eup %8053  ;;  %8065 = vpow2.f32 %v4838_v25 }
 0x414   : > { %v4848_v15 = vmul.f32 1.442695, %v4785_v61  ;;  %v4922_v11 = vsel %vm4657_vm1, %v10034_v44, 0.0  ;;  %v10042_v56 = vpop.eup %8055  ;;  %v4842_v33 = vmul.f32 1.442695, %v4782_v18  ;;  %8067 = vpow2.f32 %v4836_v54 }
 0x415   : > { %v4747_v29 = vpop.xlane.xlu1 %4746  ;;  %4923 = vadd.xlane.f32.xlu0 %v4922_v11  ;;  %v3053_v52 = vpop.permute.xlu0 %3052  ;;  %8069 = vpow2.f32 %v4840_v49  ;;  %v4889_v5 = vsel %vm4657_vm1, %v10042_v56, 0.0 }
 0x416   : > { %v4783_v17 = vsub.f32 %v9897_v20, %v4747_v29  ;;  %v3112_v23 = vcombine.low %v9907_v26, %v3053_v52  ;;  %v3113_v63 = vcombine.high %v9907_v26, %v3053_v52  ;;  %8071 = vpow2.f32 %v4848_v15 }
 0x417   : > { %v10049_v50 = vpop.eup %8057  ;;  %8073 = vpow2.f32 %v4842_v33 }
 0x418   : > { %v4844_v41 = vmul.f32 1.442695, %v4783_v17  ;;  %v3120_v20 = vrot.slane %v3112_v23, %v8466_v24  ;;  %v3127_v21 = vrot.slane %v3113_v63, %v8466_v24  ;;  %v4916_v28 = vsel %vm4657_vm1, %v10049_v50, 0.0 }
 0x419   : > { %v3055_v34 = vpop.permute.xlu1 %3054  ;;  %4890 = vadd.xlane.f32.xlu0 %v4889_v5 }
 0x41a   : > { %v3248_v3 = vcombine.low %v9911_v35, %v3055_v34  ;;  %v3249_v26 = vcombine.high %v9911_v35, %v3055_v34  ;;  %v3160_v25 = vcombine.low %v3104_v12, %v3120_v20  ;;  %v3161_v61 = vcombine.high %v3104_v12, %v3120_v20 }
 0x41b   : > { %v10060_v30 = vpop.eup %8059  ;;  %v3176_v27 = vcombine.low %v3111_v55, %v3127_v21  ;;  %v3177_v6 = vcombine.high %v3111_v55, %v3127_v21  ;;  %8075 = vpow2.f32 %v4844_v41 }
 0x41c   : > { %v3256_v54 = vrot.slane %v3248_v3, %v8466_v24  ;;  %v3263_v18 = vrot.slane %v3249_v26, %v8466_v24  ;;  %v4919_v13 = vsel %vm4657_vm1, %v10060_v30, 0.0  ;;  %v3168_v35 = vrot.slane %v3160_v25, %v8470_v32  ;;  %v10070_v17 = vpop.eup %8061 }
 0x41d   : > { %v3175_v49 = vrot.slane %v3161_v61, %v8470_v32  ;;  %v3184_v37 = vrot.slane %v3176_v27, %v8470_v32  ;;  %v3191_v15 = vrot.slane %v3177_v6, %v8470_v32  ;;  %4920 = vadd.xlane.f32.xlu1 %v4919_v13  ;;  %4917 = vadd.xlane.f32.xlu0 %v4916_v28  ;;  %8077 = vpow2.f32 %v4846_v2 }
 0x41e   : > { %v3296_v12 = vcombine.low %v3240_v39, %v3256_v54  ;;  %v3297_v29 = vcombine.high %v3240_v39, %v3256_v54  ;;  %v3312_v11 = vcombine.low %v3247_v58, %v3263_v18  ;;  %v3313_v55 = vcombine.high %v3247_v58, %v3263_v18 }
 0x41f   : > { %v7375_v33 = vcombine.low %v3168_v35, %v3175_v49  ;;  %v7377_v52 = vcombine.high %v3168_v35, %v3175_v49  ;;  %v7379_v23 = vcombine.low %v3184_v37, %v3191_v15  ;;  %v7381_v63 = vcombine.high %v3184_v37, %v3191_v15  ;;  %v10072_v41 = vpop.eup %8063 }
 0x420   : > { %v3304_v34 = vrot.slane %v3296_v12, %v8470_v32  ;;  %v3311_v20 = vrot.slane %v3297_v29, %v8470_v32  ;;  %v3320_v21 = vrot.slane %v3312_v11, %v8470_v32  ;;  %v3327_v5 = vrot.slane %v3313_v55, %v8470_v32  ;;  %v10082_v6 = vpop.eup %8065 }
 0x421   : > { %v3623_v39 = vrot.slane %v7375_v33, %v8466_v24  ;;  %v3639_v58 = vrot.slane %v7377_v52, %v8466_v24  ;;  %v3655_v3 = vrot.slane %v7379_v23, %v8466_v24  ;;  %v3671_v26 = vrot.slane %v7381_v63, %v8466_v24  ;;  %v10088_v35 = vpop.eup %8067 }
 0x422   : > { %v7383_v28 = vcombine.low %v3304_v34, %v3311_v20  ;;  %v7385_v25 = vcombine.high %v3304_v34, %v3311_v20  ;;  %v7387_v61 = vcombine.low %v3320_v21, %v3327_v5  ;;  %v7389_v27 = vcombine.high %v3320_v21, %v3327_v5  ;;  %v10094_v29 = vpop.eup %8069 }
 0x423   : > { %v4913_v54 = vsel %vm4657_vm1, %v10072_v41, 0.0  ;;  %v4910_v18 = vsel %vm4657_vm1, %v10070_v17, 0.0  ;;  %v3688_v13 = vcombine.low %v3623_v39, %v3639_v58  ;;  %v3720_v11 = vcombine.low %v3655_v3, %v3671_v26  ;;  %v10097_v55 = vpop.eup %8071 }
 0x424   : > { %v3759_v49 = vrot.slane %v7383_v28, %v8466_v24  ;;  %v3775_v37 = vrot.slane %v7385_v25, %v8466_v24  ;;  %v3791_v15 = vrot.slane %v7387_v61, %v8466_v24  ;;  %v3807_v12 = vrot.slane %v7389_v27, %v8466_v24  ;;  %4914 = vadd.xlane.f32.xlu1 %v4913_v54  ;;  %v10099_v34 = vpop.eup %8073 }
 0x425   : > { %4911 = vadd.xlane.f32.xlu0 %v4910_v18  ;;  %v3696_v2 = vrot.slane %v3688_v13, %v8470_v32  ;;  %v3689_v23 = vcombine.high %v3623_v39, %v3639_v58  ;;  %v3721_v63 = vcombine.high %v3655_v3, %v3671_v26  ;;  %v4925_v20 = vsel %vm4657_vm1, %v10088_v35, 0.0 }
 0x426   : > { %v3824_v33 = vcombine.low %v3759_v49, %v3775_v37  ;;  %v3856_v52 = vcombine.low %v3791_v15, %v3807_v12  ;;  %v3728_v21 = vrot.slane %v3720_v11, %v8470_v32  ;;  %v3825_v5 = vcombine.high %v3759_v49, %v3775_v37 }
 0x427   : > { %v3857_v28 = vcombine.high %v3791_v15, %v3807_v12  ;;  %v4928_v25 = vsel %vm4657_vm1, %v10082_v6, 0.0  ;;  %v3703_v39 = vrot.slane %v3689_v23, %v8470_v32  ;;  %v3735_v26 = vrot.slane %v3721_v63, %v8470_v32 }
 0x428   : > { %4926 = vadd.xlane.f32.xlu1 %v4925_v20  ;;  %v3832_v61 = vrot.slane %v3824_v33, %v8470_v32  ;;  %v3864_v27 = vrot.slane %v3856_v52, %v8470_v32  ;;  %v10109_v58 = vpop.eup %8075  ;;  %v3740_v3 = vcombine.low %v3696_v2, %v3728_v21  ;;  %v3839_v54 = vrot.slane %v3825_v5, %v8470_v32 }
 0x429   : > { %4929 = vadd.xlane.f32.xlu0 %v4928_v25  ;;  %v3871_v18 = vrot.slane %v3857_v28, %v8470_v32  ;;  %v4931_v13 = vsel %vm4657_vm1, %v10094_v29, 0.0  ;;  %v3741_v37 = vcombine.high %v3696_v2, %v3728_v21  ;;  %v3742_v12 = vcombine.low %v3703_v39, %v3735_v26 }
 0x42a   : > { %v3876_v49 = vcombine.low %v3832_v61, %v3864_v27  ;;  %v3877_v15 = vcombine.high %v3832_v61, %v3864_v27  ;;  %v3743_v33 = vcombine.high %v3703_v39, %v3735_v26  ;;  %v4934_v23 = vsel %vm4657_vm1, %v10099_v34, 0.0  ;;  %v10126_v21 = vpop.eup %8077 }
 0x42b   : > { %v3878_v11 = vcombine.low %v3839_v54, %v3871_v18  ;;  %v3879_v52 = vcombine.high %v3839_v54, %v3871_v18  ;;  %v4943_v2 = vsel %vm4657_vm1, %v10097_v55, 0.0  ;;  %v4937_v25 = vsel %vm4657_vm1, %v10109_v58, 0.0 }
 0x42c   : > { %4932 = vadd.xlane.f32.xlu1 %v4931_v13  ;;  %v4160_v20 = vpack.c.bf16 %v3876_v49, %v3740_v3  ;;  %v10118_v63 = vpack.c.bf16 %v3877_v15, %v3741_v37  ;;  %v4940_v61 = vsel %vm4657_vm1, %v10126_v21, 0.0 }
 0x42d   : > { %4935 = vadd.xlane.f32.xlu0 %v4934_v23  ;;  %v10120_v5 = vpack.c.bf16 %v3878_v11, %v3742_v12  ;;  %v10122_v28 = vpack.c.bf16 %v3879_v52, %v3743_v33 }
 0x430   : > { %4944 = vadd.xlane.f32.xlu1 %v4943_v2 }
 0x431   : > { %4938 = vadd.xlane.f32.xlu0 %v4937_v25 }
 0x435   : > { %4941 = vadd.xlane.f32.xlu0 %v4940_v61 }
 0x446   : > { %v4858_v27 = vpop.xlane.xlu0 %4857 }
 0x44a   : > { %v4861_v39 = vpop.xlane.xlu1 %4860  ;;  %v4882_v3 = vpop.xlane.xlu0 %4881 }
 0x44b   : > { %8079 = vrcp.f32 %v4861_v39 }
 0x44e   : > { %v4885_v26 = vpop.xlane.xlu1 %4884  ;;  %v4852_v54 = vpop.xlane.xlu0 %4851 }
 0x44f   : > { %8081 = vrcp.f32 %v4852_v54 }
 0x450   : > { %8083 = vrcp.f32 %v4858_v27 }
 0x452   : > { %v4855_v18 = vpop.xlane.xlu1 %4854  ;;  %v4876_v13 = vpop.xlane.xlu0 %4875 }
 0x453   : > { %8085 = vrcp.f32 %v4855_v18 }
 0x454   : > { %8087 = vrcp.f32 %v4876_v13 }
 0x456   : > { %v4879_v49 = vpop.xlane.xlu1 %4878 }
 0x457   : > { %8089 = vrcp.f32 %v4879_v49 }
 0x458   : > { %8091 = vrcp.f32 %v4885_v26  ;;  %v8080_v37 = vpop.eup %8079 }
 0x459   : > { %8093 = vrcp.f32 %v4882_v3  ;;  %v4981_v33 = vmul.f32 %v8080_v37, %v9931_v10 }
 0x45c   : > { %v8082_v15 = vpop.eup %8081 }
 0x45d   : > { %v8084_v12 = vpop.eup %8083  ;;  %v4978_v52 = vmul.f32 %v8082_v15, %v9943_v31 }
 0x45e   : > { %v4980_v25 = vmul.f32 %v8084_v12, %v9928_v22 }
 0x460   : > { %v8086_v11 = vpop.eup %8085  ;;  %v5011_v39 = vpack.c.bf16 %v4981_v33, %v4980_v25 }
 0x461   : > { %v4979_v23 = vmul.f32 %v8086_v11, %v9947_v4  ;;  %v8088_v2 = vpop.eup %8087 }
 0x462   : > { %v4986_v3 = vmul.f32 %v8088_v2, %v9951_v59 }
 0x463   : > { %v5010_v61 = vpack.c.bf16 %v4979_v23, %v4978_v52 }
 0x464   : > { %v8090_v27 = vpop.eup %8089 }
 0x465   : > { %v8092_v54 = vpop.eup %8091  ;;  %7743 = vmatprep.mubr.msk.bf16.mxu0 %vm4657_vm1, %v5010_v61  ;;  %v4987_v26 = vmul.f32 %v8090_v27, %v9955_v53 }
 0x466   : > { %7744 = vmatmul.mubr.msk.bf16.vlgmr.msra.gmra.mxu0 %vm4657_vm1, %v5011_v39  ;;  %v8094_v10 = vpop.eup %8093  ;;  %v4989_v22 = vmul.f32 %v8092_v54, %v9939_v38  ;;  %v4873_v38 = vpop.xlane.xlu1 %4872 }
 0x467   : > { %7756 = vmatpush3.bf16.msra.mxu0 %v9747_v62  ;;  %v5014_v31 = vpack.c.bf16 %v4987_v26, %v4986_v3  ;;  %v4988_v4 = vmul.f32 %v8094_v10, %v9935_v1  ;;  %v4870_v62 = vpop.xlane.xlu0 %4869  ;;  %8095 = vrcp.f32 %v4873_v38 }
 0x468   : > { %7757 = vmatprep.subr.bf16.mxu0 %v9759_v42 }
 0x469   : > { %7759 = vmatprep.mubr.msk.bf16.mxu0 %vm4657_vm1, %v5014_v31  ;;  %v5015_v59 = vpack.c.bf16 %v4989_v22, %v4988_v4 }
 0x46b   : > { %7758 = vmatpush3.bf16.msra.mxu0 %v9759_v42 }
 0x46c   : > { %7771 = vmatprep.subr.bf16.mxu0 %v9765_v36 }
 0x46e   : > { %7760 = vmatmul.mubr.msk.bf16.vlgmr.msra.gmra.mxu0 %vm4657_vm1, %v5015_v59 }
 0x46f   : > { %7772 = vmatpush3.bf16.msra.mxu0 %v9765_v36 }
 0x470   : > { %7773 = vmatprep.subr.bf16.mxu0 %v4160_v20 }
 0x473   : > { %7774 = vmatpush3.bf16.msra.mxu0 %v4160_v20 }
 0x474   : > { %7787 = vmatprep.subr.bf16.mxu0 %v9771_v0  ;;  %v8096_v20 = vpop.eup %8095 }
 0x475   : > { %v4985_v33 = vmul.f32 %v8096_v20, %v9963_v47 }
 0x481   : > { %v4906_v53 = vpop.xlane.xlu0 %4905 }
 0x485   : > { %v4864_v18 = vpop.xlane.xlu0 %4863 }
 0x486   : > { %v4909_v13 = vpop.xlane.xlu1 %4908  ;;  %8097 = vrcp.f32 %v4864_v18 }
 0x487   : > { %8099 = vrcp.f32 %v4870_v62 }
 0x489   : > { %v4900_v1 = vpop.xlane.xlu0 %4899 }
 0x48d   : > { %v4867_v42 = vpop.xlane.xlu1 %4866 }
 0x48e   : > { %8101 = vrcp.f32 %v4867_v42 }
 0x48f   : > { %8103 = vrcp.f32 %v4909_v13 }
 0x490   : > { %8105 = vrcp.f32 %v4900_v1 }
 0x491   : > { %v4903_v49 = vpop.xlane.xlu1 %4902  ;;  %8107 = vrcp.f32 %v4906_v53  ;;  %v4894_v36 = vpop.xlane.xlu0 %4893 }
 0x492   : > { %8109 = vrcp.f32 %v4903_v49 }
 0x493   : > { %v8098_v37 = vpop.eup %8097 }
 0x494   : > { %v8100_v12 = vpop.eup %8099  ;;  %v4982_v23 = vmul.f32 %v8098_v37, %v9981_v19 }
 0x495   : > { %v4897_v52 = vpop.xlane.xlu1 %4896  ;;  %v4984_v27 = vmul.f32 %v8100_v12, %v9959_v46 }
 0x496   : > { %8111 = vrcp.f32 %v4897_v52 }
 0x497   : > { %v5013_v26 = vpack.c.bf16 %v4985_v33, %v4984_v27 }
 0x49a   : > { %v4888_v15 = vpop.xlane.xlu0 %4887 }
 0x49b   : > { %v8102_v11 = vpop.eup %8101  ;;  %8113 = vrcp.f32 %v4888_v15 }
 0x49c   : > { %v4983_v2 = vmul.f32 %v8102_v11, %v9998_v9  ;;  %v8104_v25 = vpop.eup %8103  ;;  %8115 = vrcp.f32 %v4894_v36 }
 0x49d   : > { %v8106_v39 = vpop.eup %8105  ;;  %v4997_v47 = vmul.f32 %v8104_v25, %v9983_v16 }
 0x49e   : > { %v4924_v61 = vpop.xlane.xlu0 %4923  ;;  %v5012_v54 = vpack.c.bf16 %v4983_v2, %v4982_v23  ;;  %v8108_v3 = vpop.eup %8107  ;;  %v4994_v19 = vmul.f32 %v8106_v39, %v9992_v51 }
 0x49f   : > { %v8110_v10 = vpop.eup %8109  ;;  %v4996_v46 = vmul.f32 %v8108_v3, %v9977_v8 }
 0x4a0   : > { %7751 = vmatprep.mubr.msk.bf16.mxu1 %vm4657_vm1, %v5012_v54  ;;  %v4995_v9 = vmul.f32 %v8110_v10, %v10002_v14 }
 0x4a1   : > { %7752 = vmatmul.mubr.msk.bf16.vlgmr.msra.gmra.mxu1 %vm4657_vm1, %v5013_v26  ;;  %v5019_v4 = vpack.c.bf16 %v4997_v47, %v4996_v46 }
 0x4a2   : > { %v4891_v31 = vpop.xlane.xlu0 %4890  ;;  %7764 = vmatpush3.bf16.msra.mxu1 %v9749_v40  ;;  %v5018_v22 = vpack.c.bf16 %v4995_v9, %v4994_v19 }
 0x4a3   : > { %8117 = vrcp.f32 %v4891_v31  ;;  %7765 = vmatprep.subr.bf16.mxu1 %v9767_v60  ;;  %v8112_v8 = vpop.eup %8111 }
 0x4a4   : > { %7775 = vmatprep.mubr.msk.bf16.mxu0 %vm4657_vm1, %v5018_v22 }
 0x4a5   : > { %7776 = vmatmul.mubr.msk.bf16.vlgmr.msra.gmra.mxu0 %vm4657_vm1, %v5019_v4 }
 0x4a6   : > { %v4921_v59 = vpop.xlane.xlu1 %4920  ;;  %v4918_v16 = vpop.xlane.xlu0 %4917  ;;  %7766 = vmatpush3.bf16.msra.mxu1 %v9767_v60  ;;  %7788 = vmatpush3.bf16.msra.mxu0 %v9771_v0  ;;  %v4993_v0 = vmul.f32 %v8112_v8, %v10011_v7 }
 0x4a7   : > { %7779 = vmatprep.subr.bf16.mxu1 %v9769_v48  ;;  %7789 = vmatprep.subr.bf16.mxu0 %v10120_v5  ;;  %8119 = vrcp.f32 %v4918_v16 }
 0x4a8   : > { %8121 = vrcp.f32 %v4921_v59  ;;  %v8114_v14 = vpop.eup %8113 }
 0x4a9   : > { %v8116_v62 = vpop.eup %8115  ;;  %v4990_v18 = vmul.f32 %v8114_v14, %v10020_v45 }
 0x4aa   : > { %7790 = vmatpush3.bf16.msra.mxu0 %v10120_v5  ;;  %v4992_v5 = vmul.f32 %v8116_v62, %v10005_v57 }
 0x4ac   : > { %v5017_v49 = vpack.c.bf16 %v4993_v0, %v4992_v5 }
 0x4ad   : > { %v4915_v40 = vpop.xlane.xlu1 %4914 }
 0x4ae   : > { %8123 = vrcp.f32 %v4915_v40  ;;  %v4912_v51 = vpop.xlane.xlu0 %4911 }
 0x4af   : > { %8125 = vrcp.f32 %v4912_v51 }
 0x4b0   : > { %8127 = vrcp.f32 %v4924_v61  ;;  %v8118_v60 = vpop.eup %8117 }
 0x4b1   : > { %v4927_v53 = vpop.xlane.xlu1 %4926  ;;  %v4991_v13 = vmul.f32 %v8118_v60, %v10042_v56 }
 0x4b2   : > { %8129 = vrcp.f32 %v4927_v53  ;;  %v4930_v38 = vpop.xlane.xlu0 %4929 }
 0x4b3   : > { %8131 = vrcp.f32 %v4930_v38  ;;  %v5016_v42 = vpack.c.bf16 %v4991_v13, %v4990_v18 }
 0x4b4   : > { %v8120_v7 = vpop.eup %8119 }
 0x4b5   : > { %v4933_v1 = vpop.xlane.xlu1 %4932  ;;  %7767 = vmatprep.mubr.msk.bf16.mxu1 %vm4657_vm1, %v5016_v42  ;;  %v8122_v45 = vpop.eup %8121  ;;  %v5000_v15 = vmul.f32 %v8120_v7, %v10049_v50 }
 0x4b6   : > { %8133 = vrcp.f32 %v4933_v1  ;;  %v4936_v36 = vpop.xlane.xlu0 %4935  ;;  %7768 = vmatmul.mubr.msk.bf16.vlgmr.msra.gmra.mxu1 %vm4657_vm1, %v5017_v49  ;;  %v5001_v52 = vmul.f32 %v8122_v45, %v10060_v30 }
 0x4b7   : > { %7780 = vmatpush3.bf16.msra.mxu1 %v9769_v48  ;;  %8135 = vrcp.f32 %v4936_v36 }
 0x4b8   : > { %7781 = vmatprep.subr.bf16.mxu1 %v10118_v63  ;;  %v5021_v50 = vpack.c.bf16 %v5001_v52, %v5000_v15 }
 0x4b9   : > { %v4945_v56 = vpop.xlane.xlu1 %4944 }
 0x4ba   : > { %v4939_v20 = vpop.xlane.xlu0 %4938 }
 0x4bb   : > { %v8124_v37 = vpop.eup %8123  ;;  %8137 = vrcp.f32 %v4939_v20  ;;  %7782 = vmatpush3.bf16.msra.mxu1 %v10118_v63 }
 0x4bc   : > { %v8126_v57 = vpop.eup %8125  ;;  %8139 = vrcp.f32 %v4945_v56  ;;  %7795 = vmatprep.subr.bf16.mxu1 %v9773_v43  ;;  %v4999_v11 = vmul.f32 %v8124_v37, %v10072_v41 }
 0x4bd   : > { %v8128_v12 = vpop.eup %8127  ;;  %v4998_v48 = vmul.f32 %v8126_v57, %v10070_v17 }
 0x4be   : > { %v4942_v33 = vpop.xlane.xlu0 %4941  ;;  %v5002_v61 = vmul.f32 %v8128_v12, %v10034_v44 }
 0x4bf   : > { %v8130_v23 = vpop.eup %8129  ;;  %8141 = vrcp.f32 %v4942_v33  ;;  %v5020_v2 = vpack.c.bf16 %v4999_v11, %v4998_v48 }
 0x4c0   : > { %v8132_v25 = vpop.eup %8131  ;;  %v5003_v63 = vmul.f32 %v8130_v23, %v10088_v35 }
 0x4c1   : > { %7783 = vmatprep.mubr.msk.bf16.mxu1 %vm4657_vm1, %v5020_v2  ;;  %v5004_v17 = vmul.f32 %v8132_v25, %v10082_v6 }
 0x4c2   : > { %v5022_v27 = vpack.c.bf16 %v5003_v63, %v5002_v61  ;;  %7784 = vmatmul.mubr.msk.bf16.vlgmr.msra.gmra.mxu1 %vm4657_vm1, %v5021_v50 }
 0x4c3   : > { %v8134_v41 = vpop.eup %8133  ;;  %7796 = vmatpush3.bf16.msra.mxu1 %v9773_v43 }
 0x4c4   : > { %7791 = vmatprep.mubr.msk.bf16.mxu0 %vm4657_vm1, %v5022_v27  ;;  %7797 = vmatprep.subr.bf16.mxu1 %v10122_v28  ;;  %v5005_v30 = vmul.f32 %v8134_v41, %v10094_v29  ;;  %v8136_v44 = vpop.eup %8135 }
 0x4c5   : > { %v5006_v54 = vmul.f32 %v8136_v44, %v10099_v34 }
 0x4c6   : > { %v5023_v39 = vpack.c.bf16 %v5005_v30, %v5004_v17 }
 0x4c7   : > { %7798 = vmatpush3.bf16.msra.mxu1 %v10122_v28  ;;  %v10843_v28 = vmov 0  }
 0x4c8   : > { %v8138_v35 = vpop.eup %8137  ;;  %7792 = vmatmul.mubr.msk.bf16.vlgmr.msra.gmra.mxu0 %vm4657_vm1, %v5023_v39 }
 0x4c9   : > { %v5007_v6 = vmul.f32 %v8138_v35, %v10109_v58  ;;  %v8140_v3 = vpop.eup %8139 }
 0x4ca   : > { %v5009_v29 = vmul.f32 %v8140_v3, %v10097_v55 }
 0x4cb   : > { %v5024_v26 = vpack.c.bf16 %v5007_v6, %v5006_v54 }
 0x4cc   : > { %v8142_v43 = vpop.eup %8141 }
 0x4cd   : > { %7799 = vmatprep.mubr.msk.bf16.mxu1 %vm4657_vm1, %v5024_v26  ;;  %v5008_v10 = vmul.f32 %v8142_v43, %v10126_v21 }
 0x4cf   : > { %v5025_v47 = vpack.c.bf16 %v5009_v29, %v5008_v10 }
 0x4d1   : > { %7800 = vmatmul.mubr.msk.bf16.vlgmr.msra.gmra.mxu1 %vm4657_vm1, %v5025_v47 }
 0x4d2   : > { %6987 = vmatprep.mubr.bf16.mxu1 %v10843_v28 }
 0x526   : > { %v7745_v31 = vpop.f32.mrf.mxu0 }
 0x528   : > { %v5066_v19 = vpop.f32.mrf.mxu0 }
 0x52a   : > { %v7746_v9 = vpop.f32.mrf.mxu0 }
 0x52c   : > { %v5069_v34 = vpop.f32.mrf.mxu0 }
 0x52e   : > { %v7761_v46 = vpop.f32.mrf.mxu0 }
 0x52f   : > { %v5738_v21 = vcombine.low %v7745_v31, %v7761_v46  ;;  %v5739_v8 = vcombine.high %v7745_v31, %v7761_v46 }
 0x530   : > { %v5176_v22 = vpop.f32.mrf.mxu0 }
 0x531   : > { %v5466_v55 = vcombine.low %v5066_v19, %v5176_v22  ;;  %v5467_v51 = vcombine.high %v5066_v19, %v5176_v22  ;;  %v5746_v13 = vrot.slane %v5738_v21, %v8466_v24  ;;  %v5753_v5 = vrot.slane %v5739_v8, %v8466_v24 }
 0x532   : > { %v7762_v59 = vpop.f32.mrf.mxu0 }
 0x533   : > { %v5874_v62 = vcombine.low %v7746_v9, %v7762_v59  ;;  %v5875_v60 = vcombine.high %v7746_v9, %v7762_v59  ;;  %v5474_v42 = vrot.slane %v5466_v55, %v8466_v24  ;;  %v5481_v1 = vrot.slane %v5467_v51, %v8466_v24 }
 0x534   : > { %v5179_v40 = vpop.f32.mrf.mxu0 }
 0x535   : > { %v5602_v53 = vcombine.low %v5069_v34, %v5179_v40  ;;  %v5882_v37 = vrot.slane %v5874_v62, %v8466_v24  ;;  %v5889_v57 = vrot.slane %v5875_v60, %v8466_v24  ;;  %v5603_v15 = vcombine.high %v5069_v34, %v5179_v40 }
 0x537   : > { %v10216_v12 = vrot.slane %v5602_v53, %v8466_v24  ;;  %v5617_v9 = vrot.slane %v5603_v15, %v8466_v24 }
 0x561   : > { %v7753_v58 = vpop.f32.mrf.mxu1 }
 0x563   : > { %v5121_v4 = vpop.f32.mrf.mxu1 }
 0x565   : > { %v10201_v16 = vpop.f32.mrf.mxu1  ;;  %v10209_v36 = vpop.f32.mrf.mxu0 }
 0x567   : > { %v10203_v14 = vpop.f32.mrf.mxu1  ;;  %v10222_v50 = vpop.f32.mrf.mxu0 }
 0x569   : > { %v10233_v34 = vpop.f32.mrf.mxu0 }
 0x576   : > { %v7769_v0 = vpop.f32.mrf.mxu1 }
 0x577   : > { %v5754_v38 = vcombine.low %v7753_v58, %v7769_v0  ;;  %v5755_v18 = vcombine.high %v7753_v58, %v7769_v0 }
 0x578   : > { %v5231_v49 = vpop.f32.mrf.mxu1 }
 0x579   : > { %v5762_v7 = vrot.slane %v5754_v38, %v8466_v24  ;;  %v5769_v45 = vrot.slane %v5755_v18, %v8466_v24  ;;  %v5482_v56 = vcombine.low %v5121_v4, %v5231_v49  ;;  %v5483_v20 = vcombine.high %v5121_v4, %v5231_v49  ;;  %v10262_v18 = vpop.f32.mrf.mxu0 }
 0x57a   : > { %v7770_v48 = vpop.f32.mrf.mxu1 }
 0x57b   : > { %v5802_v11 = vcombine.low %v5746_v13, %v5762_v7  ;;  %v5803_v33 = vcombine.high %v5746_v13, %v5762_v7  ;;  %v5818_v52 = vcombine.low %v5753_v5, %v5769_v45  ;;  %v5819_v23 = vcombine.high %v5753_v5, %v5769_v45 }
 0x57c   : > { %v5490_v2 = vrot.slane %v5482_v56, %v8466_v24  ;;  %v5497_v25 = vrot.slane %v5483_v20, %v8466_v24  ;;  %v5890_v61 = vcombine.low %v10201_v16, %v7770_v48  ;;  %v5891_v63 = vcombine.high %v10201_v16, %v7770_v48  ;;  %v5234_v6 = vpop.f32.mrf.mxu1 }
 0x57d   : > { %v5810_v27 = vrot.slane %v5802_v11, %v8470_v32  ;;  %v5817_v17 = vrot.slane %v5803_v33, %v8470_v32  ;;  %v5826_v41 = vrot.slane %v5818_v52, %v8470_v32  ;;  %v5833_v30 = vrot.slane %v5819_v23, %v8470_v32 }
 0x57e   : > { %v5530_v44 = vcombine.low %v5474_v42, %v5490_v2  ;;  %v5531_v39 = vcombine.high %v5474_v42, %v5490_v2  ;;  %v5546_v35 = vcombine.low %v5481_v1, %v5497_v25  ;;  %v5547_v54 = vcombine.high %v5481_v1, %v5497_v25 }
 0x57f   : > { %v7454_v3 = vcombine.low %v5810_v27, %v5817_v17  ;;  %v7456_v26 = vcombine.high %v5810_v27, %v5817_v17  ;;  %v7458_v43 = vcombine.low %v5826_v41, %v5833_v30  ;;  %v7460_v10 = vcombine.high %v5826_v41, %v5833_v30 }
 0x580   : > { %v5538_v29 = vrot.slane %v5530_v44, %v8470_v32  ;;  %v5545_v47 = vrot.slane %v5531_v39, %v8470_v32  ;;  %v5554_v31 = vrot.slane %v5546_v35, %v8470_v32  ;;  %v5561_v19 = vrot.slane %v5547_v54, %v8470_v32 }
 0x581   : > { %v10236_v46 = vrot.slane %v7454_v3, %v8466_v24  ;;  %v10239_v58 = vrot.slane %v7456_v26, %v8466_v24  ;;  %v10242_v22 = vrot.slane %v7458_v43, %v8466_v24  ;;  %v5898_v8 = vrot.slane %v5890_v61, %v8466_v24 }
 0x582   : > { %v7438_v4 = vcombine.low %v5538_v29, %v5545_v47  ;;  %v7440_v59 = vcombine.high %v5538_v29, %v5545_v47  ;;  %v7442_v16 = vcombine.low %v5554_v31, %v5561_v19  ;;  %v7444_v40 = vcombine.high %v5554_v31, %v5561_v19  ;;  %v10244_v21 = vpop.f32.mrf.mxu1 }
 0x583   : > { %v5905_v55 = vrot.slane %v5891_v63, %v8466_v24  ;;  %v5618_v51 = vcombine.low %v10203_v14, %v5234_v6  ;;  %v5619_v62 = vcombine.high %v10203_v14, %v5234_v6  ;;  %v10251_v60 = vrot.slane %v7460_v10, %v8466_v24 }
 0x584   : > { %v10254_v53 = vrot.slane %v7438_v4, %v8466_v24  ;;  %v10257_v0 = vrot.slane %v7440_v59, %v8466_v24  ;;  %v10260_v38 = vrot.slane %v7442_v16, %v8466_v24  ;;  %v5938_v13 = vcombine.low %v5882_v37, %v5898_v8  ;;  %v10269_v45 = vpop.f32.mrf.mxu1 }
 0x585   : > { %v5939_v5 = vcombine.high %v5882_v37, %v5898_v8  ;;  %v5954_v42 = vcombine.low %v5889_v57, %v5905_v55  ;;  %v5955_v1 = vcombine.high %v5889_v57, %v5905_v55  ;;  %v10265_v14 = vrot.slane %v7444_v40, %v8466_v24 }
 0x586   : > { %v5626_v49 = vrot.slane %v5618_v51, %v8466_v24  ;;  %v5633_v7 = vrot.slane %v5619_v62, %v8466_v24  ;;  %v6346_v56 = vcombine.low %v10236_v46, %v10239_v58  ;;  %v5946_v20 = vrot.slane %v5938_v13, %v8470_v32  ;;  %v10283_v39 = vpop.f32.mrf.mxu1 }
 0x587   : > { %v5953_v15 = vrot.slane %v5939_v5, %v8470_v32  ;;  %v5962_v37 = vrot.slane %v5954_v42, %v8470_v32  ;;  %v5969_v57 = vrot.slane %v5955_v1, %v8470_v32  ;;  %v6378_v3 = vcombine.low %v10242_v22, %v10251_v60 }
 0x588   : > { %v7793_v48 = vpop.f32.mrf.mxu0  ;;  %v5666_v11 = vcombine.low %v10216_v12, %v5626_v49  ;;  %v5667_v33 = vcombine.high %v10216_v12, %v5626_v49  ;;  %v5682_v52 = vcombine.low %v5617_v9, %v5633_v7  ;;  %v5683_v23 = vcombine.high %v5617_v9, %v5633_v7  ;;  %v10312_v55 = vpop.f32.mrf.mxu1 }
 0x589   : > { %v7462_v2 = vcombine.low %v5946_v20, %v5953_v15  ;;  %v7464_v25 = vcombine.high %v5946_v20, %v5953_v15  ;;  %v7466_v61 = vcombine.low %v5962_v37, %v5969_v57  ;;  %v7468_v63 = vcombine.high %v5962_v37, %v5969_v57 }
 0x58a   : > { %v5396_v27 = vpop.f32.mrf.mxu0  ;;  %v5674_v17 = vrot.slane %v5666_v11, %v8470_v32  ;;  %v5681_v41 = vrot.slane %v5667_v33, %v8470_v32  ;;  %v5690_v30 = vrot.slane %v5682_v52, %v8470_v32  ;;  %v5697_v44 = vrot.slane %v5683_v23, %v8470_v32 }
 0x58b   : > { %v10286_v35 = vrot.slane %v7462_v2, %v8466_v24  ;;  %v10289_v12 = vrot.slane %v7464_v25, %v8466_v24  ;;  %v10292_v54 = vrot.slane %v7466_v61, %v8466_v24  ;;  %v5770_v47 = vcombine.low %v10209_v36, %v7793_v48 }
 0x58c   : > { %v7794_v6 = vpop.f32.mrf.mxu0  ;;  %v7446_v26 = vcombine.low %v5674_v17, %v5681_v41  ;;  %v7448_v43 = vcombine.high %v5674_v17, %v5681_v41  ;;  %v7450_v10 = vcombine.low %v5690_v30, %v5697_v44  ;;  %v7452_v29 = vcombine.high %v5690_v30, %v5697_v44 }
 0x58d   : > { %v5771_v31 = vcombine.high %v10209_v36, %v7793_v48  ;;  %v5498_v19 = vcombine.low %v10222_v50, %v5396_v27  ;;  %v5499_v9 = vcombine.high %v10222_v50, %v5396_v27  ;;  %v10301_v59 = vrot.slane %v7468_v63, %v8466_v24 }
 0x58e   : > { %v5399_v4 = vpop.f32.mrf.mxu0  ;;  %v10304_v16 = vrot.slane %v7446_v26, %v8466_v24  ;;  %v10307_v40 = vrot.slane %v7448_v43, %v8466_v24  ;;  %v10310_v8 = vrot.slane %v7450_v10, %v8466_v24  ;;  %v10315_v36 = vrot.slane %v7452_v29, %v8466_v24 }
 0x58f   : > { %v5778_v50 = vrot.slane %v5770_v47, %v8466_v24  ;;  %v5785_v51 = vrot.slane %v5771_v31, %v8466_v24  ;;  %v5506_v62 = vrot.slane %v5498_v19, %v8466_v24  ;;  %v5513_v13 = vrot.slane %v5499_v9, %v8466_v24 }
 0x590   : > { %v5906_v5 = vcombine.low %v10233_v34, %v7794_v6  ;;  %v5907_v42 = vcombine.high %v10233_v34, %v7794_v6  ;;  %v5634_v1 = vcombine.low %v10262_v18, %v5399_v4  ;;  %v10327_v15 = vrot.slane %v6346_v56, %v8470_v32 }
 0x591   : > { %v7801_v49 = vpop.f32.mrf.mxu1  ;;  %v10330_v37 = vrot.slane %v6378_v3, %v8470_v32  ;;  %v5635_v34 = vcombine.high %v10262_v18, %v5399_v4  ;;  %v6482_v23 = vcombine.low %v10286_v35, %v10289_v12  ;;  %v6514_v2 = vcombine.low %v10292_v54, %v10301_v59 }
 0x592   : > { %v5786_v7 = vcombine.low %v10244_v21, %v7801_v49  ;;  %v5787_v20 = vcombine.high %v10244_v21, %v7801_v49  ;;  %v10333_v57 = vrot.slane %v5906_v5, %v8466_v24  ;;  %v10336_v48 = vrot.slane %v5907_v42, %v8466_v24 }
 0x593   : > { %v10340_v11 = vrot.slane %v5634_v1, %v8466_v24  ;;  %v5451_v33 = vpop.f32.mrf.mxu1  ;;  %v6411_v52 = vcombine.high %v10327_v15, %v10330_v37  ;;  %v6074_v61 = vcombine.low %v10254_v53, %v10257_v0  ;;  %v10355_v30 = vrot.slane %v6482_v23, %v8470_v32 }
 0x594   : > { %v5794_v21 = vrot.slane %v5786_v7, %v8466_v24  ;;  %v5801_v56 = vrot.slane %v5787_v20, %v8466_v24  ;;  %v5514_v25 = vcombine.low %v10269_v45, %v5451_v33  ;;  %v5515_v18 = vcombine.high %v10269_v45, %v5451_v33 }
 0x595   : > { %v10358_v44 = vrot.slane %v6514_v2, %v8470_v32  ;;  %v10371_v7 = vrot.slane %v5635_v34, %v8466_v24  ;;  %v7802_v23 = vpop.f32.mrf.mxu1  ;;  %v10386_v34 = vrot.slane %v6074_v61, %v8470_v32  ;;  %v6106_v2 = vcombine.low %v10260_v38, %v10265_v14 }
 0x596   : > { %v5834_v63 = vcombine.low %v5778_v50, %v5794_v21  ;;  %v5835_v27 = vcombine.high %v5778_v50, %v5794_v21  ;;  %v5850_v17 = vcombine.low %v5785_v51, %v5801_v56  ;;  %v5851_v41 = vcombine.high %v5785_v51, %v5801_v56 }
 0x597   : > { %v5522_v6 = vrot.slane %v5514_v25, %v8466_v24  ;;  %v5529_v3 = vrot.slane %v5515_v18, %v8466_v24  ;;  %v6547_v29 = vcombine.high %v10355_v30, %v10358_v44  ;;  %v6210_v25 = vcombine.low %v10304_v16, %v10307_v40 }
 0x598   : > { %v5842_v26 = vrot.slane %v5834_v63, %v8470_v32  ;;  %v5849_v45 = vrot.slane %v5835_v27, %v8470_v32  ;;  %v5858_v43 = vrot.slane %v5850_v17, %v8470_v32  ;;  %v5865_v10 = vrot.slane %v5851_v41, %v8470_v32 }
 0x599   : > { %v5562_v47 = vcombine.low %v5506_v62, %v5522_v6  ;;  %v5563_v31 = vcombine.high %v5506_v62, %v5522_v6  ;;  %v5578_v19 = vcombine.low %v5513_v13, %v5529_v3  ;;  %v7857_v5 = vpack.i.bf16 %v6547_v29, %v6411_v52 }
 0x59a   : > { %v7455_v9 = vcombine.low %v5842_v26, %v5849_v45  ;;  %v7457_v4 = vcombine.high %v5842_v26, %v5849_v45  ;;  %v7459_v50 = vcombine.low %v5858_v43, %v5865_v10  ;;  %v7461_v51 = vcombine.high %v5858_v43, %v5865_v10 }
 0x59b   : > { %v5570_v42 = vrot.slane %v5562_v47, %v8470_v32  ;;  %v5577_v1 = vrot.slane %v5563_v31, %v8470_v32  ;;  %v5579_v49 = vcombine.high %v5513_v13, %v5529_v3  ;;  %7858 = vrot.lane.b32.xlu1 %v7857_v5, %s8166_s23  ;;  %v5586_v21 = vrot.slane %v5578_v19, %v8470_v32 }
 0x59c   : > { %v10374_v20 = vrot.slane %v7455_v9, %v8466_v24  ;;  %v10377_v33 = vrot.slane %v7457_v4, %v8466_v24  ;;  %v10380_v62 = vrot.slane %v7459_v50, %v8466_v24  ;;  %v6242_v18 = vcombine.low %v10310_v8, %v10315_v36 }
 0x59d   : > { %v5593_v56 = vrot.slane %v5579_v49, %v8470_v32  ;;  %v7439_v52 = vcombine.low %v5570_v42, %v5577_v1  ;;  %v7441_v13 = vcombine.high %v5570_v42, %v5577_v1  ;;  %v10395_v63 = vrot.slane %v7461_v51, %v8466_v24 }
 0x59e   : > { %v10404_v41 = vrot.slane %v6106_v2, %v8470_v32  ;;  %v10407_v6 = vrot.slane %v6210_v25, %v8470_v32  ;;  %v10410_v3 = vrot.slane %v6242_v18, %v8470_v32  ;;  %v5922_v26 = vcombine.low %v10283_v39, %v7802_v23 }
 0x59f   : > { %v10398_v27 = vrot.slane %v7439_v52, %v8466_v24  ;;  %v10401_v17 = vrot.slane %v7441_v13, %v8466_v24  ;;  %v7443_v61 = vcombine.low %v5586_v21, %v5593_v56  ;;  %v7445_v43 = vcombine.high %v5586_v21, %v5593_v56 }
 0x5a0   : > { %v5923_v10 = vcombine.high %v10283_v39, %v7802_v23  ;;  %v6347_v29 = vcombine.high %v10236_v46, %v10239_v58  ;;  %v6139_v47 = vcombine.high %v10386_v34, %v10404_v41  ;;  %v6275_v31 = vcombine.high %v10407_v6, %v10410_v3  ;;  %v5454_v58 = vpop.f32.mrf.mxu1 }
 0x5a1   : > { %v10414_v45 = vrot.slane %v7443_v61, %v8466_v24  ;;  %v5930_v19 = vrot.slane %v5922_v26, %v8466_v24  ;;  %v6379_v9 = vcombine.high %v10242_v22, %v10251_v60  ;;  %v6483_v39 = vcombine.high %v10286_v35, %v10289_v12 }
 0x5a2   : > { %v5937_v4 = vrot.slane %v5923_v10, %v8466_v24  ;;  %v10428_v50 = vrot.slane %v6347_v29, %v8470_v32  ;;  %v6515_v46 = vcombine.high %v10292_v54, %v10301_v59  ;;  %v7872_v51 = vpack.i.bf16 %v6275_v31, %v6139_v47  ;;  %v7959_v29 = vld [vmem:[%s10762_s3 + $0x38] sm:$0xff]  }
 0x5a3   : > { %v5970_v5 = vcombine.low %v10333_v57, %v5930_v19  ;;  %v5971_v42 = vcombine.high %v10333_v57, %v5930_v19  ;;  %v10437_v1 = vrot.slane %v6379_v9, %v8470_v32  ;;  %v6497_v49 = vrot.slane %v6483_v39, %v8470_v32  ;;  %7803 = vmatprep.subr.bf16.mxu0 %v7959_v29 }
 0x5a4   : > { %v5986_v22 = vcombine.low %v10336_v48, %v5937_v4  ;;  %v5987_v60 = vcombine.high %v10336_v48, %v5937_v4  ;;  %v6529_v35 = vrot.slane %v6515_v46, %v8470_v32  ;;  %7873 = vrot.lane.b32.xlu0 %v7872_v51, %s8166_s23  ;;  %v5650_v57 = vcombine.low %v10312_v55, %v5454_v58 }
 0x5a5   : > { %v5978_v12 = vrot.slane %v5970_v5, %v8470_v32  ;;  %v5985_v54 = vrot.slane %v5971_v42, %v8470_v32  ;;  %v6412_v59 = vcombine.low %v10428_v50, %v10437_v1  ;;  %v5651_v52 = vcombine.high %v10312_v55, %v5454_v58  ;;  %7804 = vmatpush3.bf16.msra.mxu0 %v7959_v29  ;;  %v7960_v42 = vld [vmem:[%s10762_s3 + $0x30] sm:$0xff]  }
 0x5a6   : > { %v5994_v21 = vrot.slane %v5986_v22, %v8470_v32  ;;  %v6001_v56 = vrot.slane %v5987_v60, %v8470_v32  ;;  %v6548_v48 = vcombine.low %v6497_v49, %v6529_v35  ;;  %v5658_v2 = vrot.slane %v5650_v57, %v8466_v24  ;;  %7805 = vmatprep.subr.bf16.mxu0 %v7960_v42 }
 0x5a7   : > { %v7463_v13 = vcombine.low %v5978_v12, %v5985_v54  ;;  %v7465_v23 = vcombine.high %v5978_v12, %v5985_v54  ;;  %v6075_v25 = vcombine.high %v10254_v53, %v10257_v0  ;;  %v10456_v18 = vrot.slane %v7445_v43, %v8466_v24  ;;  %v7961_v12 = vld [vmem:[%s10762_s3 + $0x28] sm:$0xff]  }
 0x5a8   : > { %v7467_v61 = vcombine.low %v5994_v21, %v6001_v56  ;;  %v7862_v26 = vpack.i.bf16 %v6548_v48, %v6412_v59  ;;  %v5665_v10 = vrot.slane %v5651_v52, %v8466_v24  ;;  %v7469_v47 = vcombine.high %v5994_v21, %v6001_v56 }
 0x5a9   : > { %v10463_v55 = vrot.slane %v7463_v13, %v8466_v24  ;;  %v5698_v31 = vcombine.low %v10340_v11, %v5658_v2  ;;  %v5699_v19 = vcombine.high %v10340_v11, %v5658_v2  ;;  %v10468_v53 = vrot.slane %v7465_v23, %v8466_v24  ;;  %7806 = vmatpush3.bf16.msra.mxu0 %v7960_v42 }
 0x5aa   : > { %v10471_v0 = vrot.slane %v7467_v61, %v8466_v24  ;;  %7863 = vrot.lane.b32.xlu1 %v7862_v26, %s8165_s22  ;;  %v5714_v43 = vcombine.low %v10371_v7, %v5665_v10  ;;  %v5715_v9 = vcombine.high %v10371_v7, %v5665_v10  ;;  %v6089_v46 = vrot.slane %v6075_v25, %v8470_v32 }
 0x5ab   : > { %v5706_v4 = vrot.slane %v5698_v31, %v8470_v32  ;;  %v5713_v39 = vrot.slane %v5699_v19, %v8470_v32  ;;  %v6107_v11 = vcombine.high %v10260_v38, %v10265_v14  ;;  %v6211_v5 = vcombine.high %v10304_v16, %v10307_v40  ;;  %7807 = vmatprep.subr.bf16.mxu0 %v7961_v12 }
 0x5ac   : > { %v5722_v58 = vrot.slane %v5714_v43, %v8470_v32  ;;  %v5729_v51 = vrot.slane %v5715_v9, %v8470_v32  ;;  %v6243_v7 = vcombine.high %v10310_v8, %v10315_v36  ;;  %v10491_v22 = vrot.slane %v7469_v47, %v8466_v24 }
 0x5ad   : > { %v7447_v38 = vcombine.low %v5706_v4, %v5713_v39  ;;  %v7449_v14 = vcombine.high %v5706_v4, %v5713_v39  ;;  %v6121_v60 = vrot.slane %v6107_v11, %v8470_v32  ;;  %v6225_v8 = vrot.slane %v6211_v5, %v8470_v32  ;;  %7808 = vmatpush3.bf16.msra.mxu0 %v7961_v12 }
 0x5ae   : > { %v7451_v16 = vcombine.low %v5722_v58, %v5729_v51  ;;  %v7453_v40 = vcombine.high %v5722_v58, %v5729_v51  ;;  %v6257_v36 = vrot.slane %v6243_v7, %v8470_v32  ;;  %v6413_v57 = vcombine.high %v10428_v50, %v10437_v1  ;;  %v7963_v7 = vld [vmem:[%s10762_s3 + $0x18] sm:$0xff]  }
 0x5af   : > { %v10500_v54 = vrot.slane %v7447_v38, %v8466_v24  ;;  %v10503_v59 = vrot.slane %v7449_v14, %v8466_v24  ;;  %v6549_v21 = vcombine.high %v6497_v49, %v6529_v35  ;;  %v6141_v52 = vcombine.high %v6089_v46, %v6121_v60  ;;  %v7962_v35 = vld [vmem:[%s10762_s3 + $0x20] sm:$0xff]  }
 0x5b0   : > { %v10508_v56 = vrot.slane %v7451_v16, %v8466_v24  ;;  %v10511_v48 = vrot.slane %v7453_v40, %v8466_v24  ;;  %v6277_v13 = vcombine.high %v6225_v8, %v6257_v36  ;;  %v6276_v2 = vcombine.low %v6225_v8, %v6257_v36  ;;  %7809 = vmatprep.subr.bf16.mxu0 %v7962_v35 }
 0x5b1   : > { %v7867_v23 = vpack.i.bf16 %v6549_v21, %v6413_v57  ;;  %v6362_v25 = vcombine.low %v10374_v20, %v10377_v33  ;;  %v6394_v61 = vcombine.low %v10380_v62, %v10395_v63  ;;  %v6498_v1 = vcombine.low %v10463_v55, %v10468_v53  ;;  %7810 = vmatpush3.bf16.msra.mxu0 %v7962_v35 }
 0x5b2   : > { %v7882_v50 = vpack.i.bf16 %v6277_v13, %v6141_v52  ;;  %v6530_v24 = vcombine.low %v10471_v0, %v10491_v22  ;;  %v6090_v49 = vcombine.low %v10398_v27, %v10401_v17  ;;  %v6140_v26 = vcombine.low %v6089_v46, %v6121_v60  ;;  %7811 = vmatprep.subr.bf16.mxu0 %v7963_v7 }
 0x5b3   : > { %7868 = vrot.lane.b32.xlu1 %v7867_v23, %s8164_s21  ;;  %v6370_v10 = vrot.slane %v6362_v25, %v8470_v32  ;;  %v6402_v29 = vrot.slane %v6394_v61, %v8470_v32  ;;  %v6122_v47 = vcombine.low %v10414_v45, %v10456_v18  ;;  %v6506_v31 = vrot.slane %v6498_v1, %v8470_v32 }
 0x5b4   : > { %7883 = vrot.lane.b32.xlu0 %v7882_v50, %s8164_s21  ;;  %v6538_v19 = vrot.slane %v6530_v24, %v8470_v32  ;;  %v6226_v43 = vcombine.low %v10500_v54, %v10503_v59  ;;  %v7877_v9 = vpack.i.bf16 %v6276_v2, %v6140_v26  ;;  %v6098_v4 = vrot.slane %v6090_v49, %v8470_v32 }
 0x5b5   : > { %v6130_v39 = vrot.slane %v6122_v47, %v8470_v32  ;;  %v6258_v46 = vcombine.low %v10508_v56, %v10511_v48  ;;  %v6414_v11 = vcombine.low %v6370_v10, %v6402_v29  ;;  %v6363_v5 = vcombine.high %v10374_v20, %v10377_v33  ;;  %7812 = vmatpush3.bf16.msra.mxu0 %v7963_v7 }
 0x5b6   : > { %v6550_v58 = vcombine.low %v6506_v31, %v6538_v19  ;;  %v6234_v51 = vrot.slane %v6226_v43, %v8470_v32  ;;  %v6395_v38 = vcombine.high %v10380_v62, %v10395_v63  ;;  %v6415_v60 = vcombine.high %v6370_v10, %v6402_v29 }
 0x5b7   : > { %7878 = vrot.lane.b32.xlu1 %v7877_v9, %s8165_s22  ;;  %v6266_v42 = vrot.slane %v6258_v46, %v8470_v32  ;;  %v6551_v12 = vcombine.high %v6506_v31, %v6538_v19  ;;  %v6499_v16 = vcombine.high %v10463_v55, %v10468_v53  ;;  %v6142_v40 = vcombine.low %v6098_v4, %v6130_v39 }
 0x5b8   : > { %v7887_v14 = vpack.i.bf16 %v6550_v58, %v6414_v11  ;;  %v6377_v33 = vrot.slane %v6363_v5, %v8470_v32  ;;  %v6531_v8 = vcombine.high %v10471_v0, %v10491_v22  ;;  %v6091_v57 = vcombine.high %v10398_v27, %v10401_v17  ;;  %v7964_v17 = vld [vmem:[%s10762_s3 + $0x10] sm:$0xff]  }
 0x5b9   : > { %v6278_v20 = vcombine.low %v6234_v51, %v6266_v42  ;;  %v6513_v36 = vrot.slane %v6499_v16, %v8470_v32  ;;  %v6123_v62 = vcombine.high %v10414_v45, %v10456_v18  ;;  %v6227_v63 = vcombine.high %v10500_v54, %v10503_v59  ;;  %7813 = vmatprep.subr.bf16.mxu0 %v7964_v17 }
 0x5ba   : > { %v6279_v53 = vcombine.high %v6234_v51, %v6266_v42  ;;  %v6409_v21 = vrot.slane %v6395_v38, %v8470_v32  ;;  %v6545_v0 = vrot.slane %v6531_v8, %v8470_v32  ;;  %v7892_v22 = vpack.i.bf16 %v6551_v12, %v6415_v60  ;;  %7814 = vmatpush3.bf16.msra.mxu0 %v7964_v17 }
 0x5bb   : > { %7888 = vrot.lane.b32.xlu1 %v7887_v14, %s8163_s20  ;;  %v7902_v55 = vpack.i.bf16 %v6278_v20, %v6142_v40  ;;  %v6143_v52 = vcombine.high %v6098_v4, %v6130_v39  ;;  %v6241_v13 = vrot.slane %v6227_v63, %v8470_v32  ;;  %v6259_v27 = vcombine.high %v10508_v56, %v10511_v48 }
 0x5bc   : > { %v6552_v45 = vcombine.low %v6513_v36, %v6545_v0  ;;  %v6105_v18 = vrot.slane %v6091_v57, %v8470_v32  ;;  %v6137_v54 = vrot.slane %v6123_v62, %v8470_v32  ;;  %v6410_v59 = vcombine.low %v10327_v15, %v10330_v37  ;;  %v7965_v15 = vld [vmem:[%s10762_s3 + $0x8] sm:$0xff]  }
 0x5bd   : > { %7903 = vrot.lane.b32.xlu0 %v7902_v55, %s8163_s20  ;;  %v6273_v23 = vrot.slane %v6259_v27, %v8470_v32  ;;  %v6546_v2 = vcombine.low %v10355_v30, %v10358_v44  ;;  %v7907_v56 = vpack.i.bf16 %v6279_v53, %v6143_v52  ;;  %v6416_v48 = vcombine.low %v6377_v33, %v6409_v21 }
 0x5be   : > { %v6138_v25 = vcombine.low %v10386_v34, %v10404_v41  ;;  %v6274_v61 = vcombine.low %v10407_v6, %v10410_v3  ;;  %v6144_v30 = vcombine.low %v6105_v18, %v6137_v54  ;;  %v6553_v44 = vcombine.high %v6513_v36, %v6545_v0  ;;  %7815 = vmatprep.subr.bf16.mxu0 %v7965_v15  ;;  %v7966_v41 = vld [vmem:[%s10762_s3] sm:$0xff]  }
 0x5bf   : > { %7893 = vrot.lane.b32.xlu1 %v7892_v22, %s8162_s19  ;;  %v6280_v37 = vcombine.low %v6241_v13, %v6273_v23  ;;  %v7897_v32 = vpack.i.bf16 %v6552_v45, %v6416_v48  ;;  %v6417_v1 = vcombine.high %v6377_v33, %v6409_v21  ;;  %v6281_v34 = vcombine.high %v6241_v13, %v6273_v23 }
 0x5c0   : > { %v6145_v3 = vcombine.high %v6105_v18, %v6137_v54  ;;  %7816 = vmatpush3.bf16.msra.mxu0 %v7965_v15 }
 0x5c1   : > { %7908 = vrot.lane.b32.xlu0 %v7907_v56, %s8162_s19  ;;  %v7912_v50 = vpack.i.bf16 %v6280_v37, %v6144_v30  ;;  %v7922_v6 = vpack.i.bf16 %v6553_v44, %v6417_v1  ;;  %7817 = vmatprep.subr.bf16.mxu0 %v7966_v41 }
 0x5c2   : > { %v7917_v24 = vpack.i.bf16 %v6281_v34, %v6145_v3 }
 0x5c3   : > { %7898 = vrot.lane.b32.xlu1 %v7897_v32, %s8161_s18 }
 0x5c4   : > { %7818 = vmatpush3.bf16.msra.mxu0 %v7966_v41 }
 0x5c5   : > { %7913 = vrot.lane.b32.xlu0 %v7912_v50, %s8161_s18 }
 0x5c7   : > { %7923 = vrot.lane.b32.xlu1 %v7922_v6, %s8160_s17 }
 0x5c9   : > { %7918 = vrot.lane.b32.xlu0 %v7917_v24, %s8160_s17 }
 0x60d   : > { %v7859_v49 = vpop.permute.xlu1 %7858 }
 0x60e   : > { %v7861_v19 = vunpack.i.h.bf16 %v7859_v49  ;;  %v7860_v43 = vunpack.i.l.bf16 %v7859_v49 }
 0x610   : > { %v6669_v7 = vsel %vm4168_vm0, %v6546_v2, %v7861_v19  ;;  %v6668_v42 = vsel %vm4168_vm0, %v6410_v59, %v7860_v43 }
 0x616   : > { %v7874_v26 = vpop.permute.xlu0 %7873 }
 0x617   : > { %v7876_v9 = vunpack.i.h.bf16 %v7874_v26  ;;  %v7875_v4 = vunpack.i.l.bf16 %v7874_v26 }
 0x619   : > { %v6666_v60 = vsel %vm4168_vm0, %v6138_v25, %v7875_v4  ;;  %v6667_v12 = vsel %vm4168_vm0, %v6274_v61, %v7876_v9  ;;  %v7967_v9 = vld [vmem:[%s10764_s5 + $0x70] ss:$8 sps:$4 sm:$0xff]   ;;  %v7969_v4 = vld [vmem:[%s10764_s5 + $0x74] ss:$8 sps:$4 sm:$0xff]  }
 0x61a   : > { %6955 = vmatprep.subr.bf16.mxu1 %v7969_v4 }
 0x61b   : > { %6956 = vmatpush1.bf16.msra.mxu1 %v7967_v9 }
 0x61c   : > { %v7864_v35 = vpop.permute.xlu1 %7863 }
 0x61d   : > { %v7866_v39 = vunpack.i.h.bf16 %v7864_v35  ;;  %v7865_v46 = vunpack.i.l.bf16 %v7864_v35 }
 0x61f   : > { %v6672_v16 = vsel %vm4657_vm1, %v6668_v42, %v7865_v46  ;;  %v6673_v40 = vsel %vm4657_vm1, %v6669_v7, %v7866_v39 }
 0x625   : > { %v7869_v10 = vpop.permute.xlu1 %7868 }
 0x626   : > { %v7884_v47 = vpop.permute.xlu0 %7883  ;;  %v7871_v38 = vunpack.i.h.bf16 %v7869_v10  ;;  %v7870_v14 = vunpack.i.l.bf16 %v7869_v10 }
 0x627   : > { %v7886_v33 = vunpack.i.h.bf16 %v7884_v47  ;;  %v7885_v8 = vunpack.i.l.bf16 %v7884_v47 }
 0x628   : > { %v6677_v0 = vsel %vm6674_vm2, %v6672_v16, %v7870_v14  ;;  %v6678_v22 = vsel %vm6674_vm2, %v6673_v40, %v7871_v38  ;;  %v10846_v14 = vld [vmem:[#allocation3_spill] sm:$0xff] }
 0x629   : > { %v7879_v29 = vpop.permute.xlu1 %7878 }
 0x62a   : > { %v7881_v58 = vunpack.i.h.bf16 %v7879_v29  ;;  %v7880_v51 = vunpack.i.l.bf16 %v7879_v29 }
 0x62c   : > { %v6671_v62 = vsel %vm4657_vm1, %v6667_v12, %v7881_v58  ;;  %v6670_v63 = vsel %vm4657_vm1, %v6666_v60, %v7880_v51  ;;  %v10847_v12 = vld [vmem:[#allocation5_spill] sm:$0xff] }
 0x62d   : > { %v7889_v31 = vpop.permute.xlu1 %7888  ;;  %v6675_v2 = vsel %vm6674_vm2, %v6670_v63, %v7885_v8  ;;  %v6676_v56 = vsel %vm6674_vm2, %v6671_v62, %v7886_v33  ;;  %v7970_v8 = vld [vmem:[%s10764_s5 + $0x60] ss:$8 sps:$4 sm:$0xff]   ;;  %v7975_v62 = vld [vmem:[%s10764_s5 + $0x54] ss:$8 sps:$4 sm:$0xff]  }
 0x62e   : > { %v7891_v36 = vunpack.i.h.bf16 %v7889_v31  ;;  %v7890_v57 = vunpack.i.l.bf16 %v7889_v31  ;;  %v7976_v63 = vld [vmem:[%s10764_s5 + $0x40] ss:$8 sps:$4 sm:$0xff]  }
 0x62f   : > { %v7904_v11 = vpop.permute.xlu0 %7903 }
 0x630   : > { %v7906_v55 = vunpack.i.h.bf16 %v7904_v11  ;;  %v7905_v53 = vunpack.i.l.bf16 %v7904_v11  ;;  %v6682_v59 = vsel %vm6679_vm3, %v6677_v0, %v7890_v57  ;;  %v6683_v23 = vsel %vm6679_vm3, %v6678_v22, %v7891_v36  ;;  %v10844_v11 = vld [vmem:[#allocation2_spill] sm:$0xff]  ;;  %v7973_v57 = vld [vmem:[%s10764_s5 + $0x50] ss:$8 sps:$4 sm:$0xff]  }
 0x631   : > { %v7894_v5 = vpop.permute.xlu1 %7893  ;;  %v7972_v36 = vld [vmem:[%s10764_s5 + $0x64] ss:$8 sps:$4 sm:$0xff]   ;;  %v7982_v22 = vld [vmem:[%s10764_s5 + $0x20] ss:$8 sps:$4 sm:$0xff]  }
 0x632   : > { %v7896_v52 = vunpack.i.h.bf16 %v7894_v5  ;;  %v7895_v13 = vunpack.i.l.bf16 %v7894_v5  ;;  %v6680_v48 = vsel %vm6679_vm3, %v6675_v2, %v7905_v53  ;;  %v6681_v25 = vsel %vm6679_vm3, %v6676_v56, %v7906_v55  ;;  %v10845_v5 = vld [vmem:[#allocation4_spill] sm:$0xff]  ;;  %6957 = vmatprep.subr.bf16.mxu1 %v7972_v36  ;;  %v7978_v55 = vld [vmem:[%s10764_s5 + $0x44] ss:$8 sps:$4 sm:$0xff]  }
 0x633   : > { %v7909_v20 = vpop.permute.xlu0 %7908  ;;  %6958 = vmatpush1.bf16.msra.mxu1 %v7970_v8  ;;  %v7981_v53 = vld [vmem:[%s10764_s5 + $0x34] ss:$8 sps:$4 sm:$0xff]   ;;  %v7984_v0 = vld [vmem:[%s10764_s5 + $0x24] ss:$8 sps:$4 sm:$0xff]  }
 0x634   : > { %v7911_v27 = vunpack.i.h.bf16 %v7909_v20  ;;  %v7910_v17 = vunpack.i.l.bf16 %v7909_v20  ;;  %v6687_v32 = vsel %vm6684_vm4, %v6682_v59, %v7895_v13  ;;  %v6688_v30 = vsel %vm6684_vm4, %v6683_v23, %v7896_v52  ;;  %6959 = vmatprep.subr.bf16.mxu1 %v7975_v62  ;;  %v7987_v52 = vld [vmem:[%s10764_s5 + $0x14] ss:$8 sps:$4 sm:$0xff]   ;;  %v7985_v13 = vld [vmem:[%s10764_s5 + $0x10] ss:$8 sps:$4 sm:$0xff]   ;;  %v7995_v23 = vld [vmem:[%s10765_s6 + $0x68] sm:$0xff]  }
 0x635   : > { %v7899_v21 = vpop.permute.xlu1 %7898  ;;  %v7994_v59 = vld [vmem:[%s10765_s6 + $0x30] sm:$0xff]   ;;  %v7996_v2 = vld [vmem:[%s10765_s6 + $0x28] sm:$0xff]   ;;  %v7997_v56 = vld [vmem:[%s10765_s6 + $0x60] sm:$0xff]  }
 0x636   : > { %v7901_v45 = vunpack.i.h.bf16 %v7899_v21  ;;  %v7900_v18 = vunpack.i.l.bf16 %v7899_v21  ;;  %v6685_v1 = vsel %vm6684_vm4, %v6680_v48, %v7910_v17  ;;  %v6686_v34 = vsel %vm6684_vm4, %v6681_v25, %v7911_v27  ;;  %v7979_v21 = vld [vmem:[%s10764_s5 + $0x30] ss:$8 sps:$4 sm:$0xff]   ;;  %v7990_v27 = vld [vmem:[%s10764_s5 + $0x4] ss:$8 sps:$4 sm:$0xff]   ;;  %v7988_v17 = vld [vmem:[%s10764_s5] ss:$8 sps:$4 sm:$0xff]  }
 0x637   : > { %v7914_v54 = vpop.permute.xlu0 %7913  ;;  %6960 = vmatpush1.bf16.msra.mxu1 %v7973_v57  ;;  %v7998_v48 = vld [vmem:[%s10765_s6 + $0x20] sm:$0xff]   ;;  %v7999_v25 = vld [vmem:[%s10765_s6 + $0x58] sm:$0xff]  }
 0x638   : > { %v7916_v61 = vunpack.i.h.bf16 %v7914_v54  ;;  %v7915_v15 = vunpack.i.l.bf16 %v7914_v54  ;;  %v6692_v41 = vsel %vm6689_vm5, %v6687_v32, %v7900_v18  ;;  %v6693_v6 = vsel %vm6689_vm5, %v6688_v30, %v7901_v45  ;;  %6961 = vmatprep.subr.bf16.mxu1 %v7978_v55  ;;  %v7991_v45 = vld [vmem:[%s10765_s6 + $0x78] sm:$0xff]   ;;  %v7993_v54 = vld [vmem:[%s10765_s6 + $0x70] sm:$0xff]  }
 0x639   : > { %v7924_v37 = vpop.permute.xlu1 %7923  ;;  %v7992_v18 = vld [vmem:[%s10765_s6 + $0x38] sm:$0xff]   ;;  %7627 = vmatprep.subr.bf16.mxu0 %v7991_v45 }
 0x63a   : > { %v7926_v44 = vunpack.i.h.bf16 %v7924_v37  ;;  %v7925_v50 = vunpack.i.l.bf16 %v7924_v37  ;;  %v6690_v10 = vsel %vm6689_vm5, %v6685_v1, %v7915_v15  ;;  %v6691_v29 = vsel %vm6689_vm5, %v6686_v34, %v7916_v61  ;;  %v8000_v61 = vld [vmem:[%s10765_s6 + $0x18] sm:$0xff]  }
 0x63b   : > { %v7919_v3 = vpop.permute.xlu0 %7918  ;;  %6962 = vmatpush1.bf16.msra.mxu1 %v7976_v63 }
 0x63c   : > { %v6697_v24 = vsel %vm6694_vm6, %v6692_v41, %v7925_v50  ;;  %v6698_v49 = vsel %vm6694_vm6, %v6693_v6, %v7926_v44  ;;  %v7921_v35 = vunpack.i.h.bf16 %v7919_v3  ;;  %v7920_v26 = vunpack.i.l.bf16 %v7919_v3  ;;  %6963 = vmatprep.subr.bf16.mxu1 %v7981_v53 }
 0x63d   : > { %v6716_v47 = vpack.c.bf16 %v6698_v49, %v6697_v24 }
 0x63e   : > { %v6695_v31 = vsel %vm6694_vm6, %v6690_v10, %v7920_v26  ;;  %v6696_v19 = vsel %vm6694_vm6, %v6691_v29, %v7921_v35  ;;  %v7478_v10 = vld [vmem:[%s10763_s4] ss:$0 sm:$0xff] }
 0x63f   : > { %v6715_v43 = vpack.c.bf16 %v6696_v19, %v6695_v31  ;;  %6964 = vmatpush1.bf16.msra.mxu1 %v7979_v21 }
 0x640   : > { %6965 = vmatprep.subr.bf16.mxu1 %v7984_v0 }
 0x641   : > { %7819 = vmatprep.mubr.bf16.mxu0 %v6715_v43 }
 0x642   : > { %7820 = vmatmul.mubr.bf16.vlgmr.msra.gmra.mxu0 %v6716_v47 }
 0x643   : > { %6966 = vmatpush1.bf16.msra.mxu1 %v7982_v22  ;;  %7628 = vmatpush3.bf16.msra.mxu0 %v7992_v18 }
 0x644   : > { %6967 = vmatprep.subr.bf16.mxu1 %v7987_v52  ;;  %7629 = vmatprep.subr.bf16.mxu0 %v7993_v54 }
 0x647   : > { %6968 = vmatpush1.bf16.msra.mxu1 %v7985_v13  ;;  %7630 = vmatpush3.bf16.msra.mxu0 %v7994_v59 }
 0x648   : > { %6969 = vmatprep.subr.bf16.mxu1 %v7990_v27  ;;  %7631 = vmatprep.subr.bf16.mxu0 %v7995_v23 }
 0x64b   : > { %6970 = vmatpush1.bf16.msra.mxu1 %v7988_v17  ;;  %7632 = vmatpush3.bf16.msra.mxu0 %v7996_v2 }
 0x64c   : > { %7633 = vmatprep.subr.bf16.mxu0 %v7997_v56 }
 0x64f   : > { %7634 = vmatpush3.bf16.msra.mxu0 %v7998_v48 }
 0x650   : > { %7635 = vmatprep.subr.bf16.mxu0 %v7999_v25 }
 0x653   : > { %7636 = vmatpush3.bf16.msra.mxu0 %v8000_v61 }
 0x702   : > { %v7821_v39 = vpop.f32.mrf.mxu0 }
 0x703   : > { %v10633_v7 = vadd.f32 %v7821_v39, %v10845_v5  ;;  %v8001_v5 = vld [vmem:[%s10765_s6 + $0x50] sm:$0xff]  }
 0x704   : > { %v6799_v46 = vpop.f32.mrf.mxu0  ;;  %7637 = vmatprep.subr.bf16.mxu0 %v8001_v5 }
 0x705   : > { %v10630_v58 = vadd.f32 %v10844_v11, %v6799_v46  ;;  %v6821_v40 = vmul.f32 %v10633_v7, %v10633_v7 }
 0x706   : > { %v7822_v51 = vpop.f32.mrf.mxu0 }
 0x707   : > { %v6819_v42 = vmul.f32 %v10630_v58, %v10630_v58  ;;  %v10641_v16 = vadd.f32 %v7822_v51, %v10847_v12  ;;  %v8006_v12 = vld [vmem:[%s10765_s6] sm:$0xff]  }
 0x708   : > { %v6802_v38 = vpop.f32.mrf.mxu0 }
 0x709   : > { %v10638_v60 = vadd.f32 %v10846_v14, %v6802_v38  ;;  %6823 = vadd.xlane.f32.xlu0 %v6819_v42  ;;  %v6822_v33 = vmul.f32 %v10641_v16, %v10641_v16  ;;  %v8002_v42 = vld [vmem:[%s10765_s6 + $0x10] sm:$0xff]   ;;  %v8003_v38 = vld [vmem:[%s10765_s6 + $0x48] sm:$0xff]   ;;  %v8005_v14 = vld [vmem:[%s10765_s6 + $0x40] sm:$0xff]  }
 0x70a   : > { %7638 = vmatpush3.bf16.msra.mxu0 %v8002_v42 }
 0x70b   : > { %v6820_v20 = vmul.f32 %v10638_v60, %v10638_v60  ;;  %7639 = vmatprep.subr.bf16.mxu0 %v8003_v38 }
 0x70d   : > { %6827 = vadd.xlane.f32.xlu0 %v6821_v40  ;;  %6825 = vadd.xlane.f32.xlu1 %v6820_v20 }
 0x711   : > { %6829 = vadd.xlane.f32.xlu0 %v6822_v33 }
 0x792   : > { %v6824_v15 = vpop.xlane.xlu0 %6823 }
 0x793   : > { %v6831_v37 = vmul.f32 0.0078125, %v6824_v15 }
 0x795   : > { %v6835_v32 = vadd.f32 1e-06, %v6831_v37 }
 0x796   : > { %v6828_v30 = vpop.xlane.xlu0 %6827  ;;  %v6826_v44 = vpop.xlane.xlu1 %6825 }
 0x797   : > { %v6832_v50 = vmul.f32 0.0078125, %v6826_v44  ;;  %8143 = vrsqrt.f32 %v6835_v32  ;;  %v6833_v1 = vmul.f32 0.0078125, %v6828_v30 }
 0x799   : > { %v6836_v34 = vadd.f32 1e-06, %v6832_v50  ;;  %v6837_v3 = vadd.f32 1e-06, %v6833_v1 }
 0x79a   : > { %v6830_v41 = vpop.xlane.xlu0 %6829 }
 0x79b   : > { %v6834_v6 = vmul.f32 0.0078125, %v6830_v41  ;;  %8145 = vrsqrt.f32 %v6836_v34 }
 0x79d   : > { %v6838_v24 = vadd.f32 1e-06, %v6834_v6 }
 0x79f   : > { %8147 = vrsqrt.f32 %v6838_v24 }
 0x7a0   : > { %8149 = vrsqrt.f32 %v6837_v3 }
 0x7a4   : > { %v8144_v49 = vpop.eup %8143 }
 0x7a5   : > { %v6843_v35 = vmul.f32 %v8144_v49, %v10630_v58 }
 0x7a7   : > { %v6853_v31 = vmul.f32 %v7478_v10, %v6843_v35 }
 0x7a8   : > { %v8146_v26 = vpop.eup %8145 }
 0x7a9   : > { %v6844_v29 = vmul.f32 %v8146_v26, %v10638_v60 }
 0x7ab   : > { %v6854_v19 = vmul.f32 %v7478_v10, %v6844_v29 }
 0x7ac   : > { %v8148_v47 = vpop.eup %8147 }
 0x7ad   : > { %v8150_v43 = vpop.eup %8149  ;;  %v6873_v9 = vpack.c.bf16 %v6854_v19, %v6853_v31  ;;  %v6846_v4 = vmul.f32 %v8148_v47, %v10641_v16 }
 0x7ae   : > { %v6845_v39 = vmul.f32 %v8150_v43, %v10633_v7 }
 0x7af   : > { %6988 = vmatmul.mubr.bf16.vlgmr.msra.gmra.mxu1 %v6873_v9  ;;  %v6856_v46 = vmul.f32 %v7478_v10, %v6846_v4 }
 0x7b0   : > { %6997 = vmatprep.mubr.bf16.mxu1 %v10843_v28  ;;  %v6855_v11 = vmul.f32 %v7478_v10, %v6845_v39  ;;  %v8004_v28 = vld [vmem:[%s10765_s6 + $0x8] sm:$0xff]  }
 0x7b1   : > { %7640 = vmatpush3.bf16.msra.mxu0 %v8004_v28 }
 0x7b2   : > { %v6874_v51 = vpack.c.bf16 %v6856_v46, %v6855_v11  ;;  %7641 = vmatprep.subr.bf16.mxu0 %v8005_v14 }
 0x7b5   : > { %7642 = vmatpush3.bf16.msra.mxu0 %v8006_v12 }
 0x7b7   : > { %6998 = vmatmul.mubr.bf16.gmra.mxu1 %v6874_v51 }
 0x86f   : > { %v6989_v40 = vpop.f32.mrf.mxu1 }
 0x870   : > { %v7008_v63 = vmax.f32 %v6989_v40, 0.0 }
 0x871   : > { %v6991_v20 = vpop.f32.mrf.mxu1 }
 0x872   : > { %v7009_v57 = vmax.f32 %v6991_v20, 0.0 }
 0x873   : > { %v6993_v33 = vpop.f32.mrf.mxu1 }
 0x874   : > { %v7010_v8 = vmax.f32 %v6993_v33, 0.0 }
 0x875   : > { %v6995_v36 = vpop.f32.mrf.mxu1 }
 0x876   : > { %v7011_v62 = vmax.f32 %v6995_v36, 0.0  ;;  %v7048_v21 = vpack.c.bf16 %v7010_v8, %v7008_v63 }
 0x877   : > { %v6999_v55 = vpop.f32.mrf.mxu1 }
 0x878   : > { %v7049_v53 = vpack.c.bf16 %v7011_v62, %v7009_v57  ;;  %v7012_v45 = vmax.f32 %v6999_v55, 0.0 }
 0x879   : > { %v7001_v0 = vpop.f32.mrf.mxu1 }
 0x87a   : > { %7180 = vmatprep.mubr.bf16.mxu0 %v7049_v53  ;;  %v7013_v27 = vmax.f32 %v7001_v0, 0.0 }
 0x87b   : > { %v7003_v22 = vpop.f32.mrf.mxu1  ;;  %7181 = vmatmul.mubr.bf16.vlgmr.msra.gmra.mxu0 %v7048_v21 }
 0x87c   : > { %v7014_v52 = vmax.f32 %v7003_v22, 0.0 }
 0x87d   : > { %v7005_v13 = vpop.f32.mrf.mxu1 }
 0x87e   : > { %v7015_v17 = vmax.f32 %v7005_v13, 0.0  ;;  %v7050_v54 = vpack.c.bf16 %v7014_v52, %v7012_v45 }
 0x880   : > { %v7051_v18 = vpack.c.bf16 %v7015_v17, %v7013_v27 }
 0x882   : > { %7188 = vmatprep.mubr.bf16.mxu0 %v7051_v18 }
 0x883   : > { %7189 = vmatmul.mubr.bf16.gmra.mxu0 %v7050_v54 }
 0x93b   : > { %v7643_v59 = vpop.f32.mrf.mxu0 }
 0x93d   : > { %v7644_v23 = vpop.f32.mrf.mxu0 }
 0x93e   : > { %v7645_v56 = vadd.f32 %v7644_v23, %v7643_v59 }
 0x93f   : > { %v7646_v2 = vpop.f32.mrf.mxu0 }
 0x940   : > { %v7197_v15 = vadd.f32 %v7645_v56, %v10630_v58 }
 0x941   : > { %v7647_v48 = vpop.f32.mrf.mxu0 }
 0x942   : > { %v7648_v25 = vadd.f32 %v7647_v48, %v7646_v2 }
 0x943   : > { %v7649_v61 = vpop.f32.mrf.mxu0 }
 0x944   : > { %v7198_v37 = vadd.f32 %v7648_v25, %v10638_v60 }
 0x945   : > { %v7650_v32 = vpop.f32.mrf.mxu0 }
 0x946   : > { %v7534_v30 = vpack.c.bf16 %v7198_v37, %v7197_v15  ;;  %v7651_v50 = vadd.f32 %v7650_v32, %v7649_v61 }
 0x947   : > { %v7652_v44 = vpop.f32.mrf.mxu0 }
 0x948   : > { %7535 = vst [vmem:[%s278_s8] sm:$0xff] %v7534_v30   ;;  %v7199_v41 = vadd.f32 %v7651_v50, %v10633_v7 }
 0x949   : > { %v7653_v1 = vpop.f32.mrf.mxu0 }
 0x94a   : > { %v7654_v34 = vadd.f32 %v7653_v1, %v7652_v44 }
 0x94c   : > { %v7200_v6 = vadd.f32 %v7654_v34, %v10641_v16 }
 0x94e   : > { %v7539_v3 = vpack.c.bf16 %v7200_v6, %v7199_v41 }
 0x950   : > { %7542 = vst [vmem:[%s278_s8 + $0x8] sm:$0xff] %v7539_v3  }
 0x951 PF: > { %s17_s24 = sadd.s32 1, %s8157_s24  }
 0x952   : > { %p14_p4 = scmp.ge.s32.totalorder %s17_s24, 4  }
 0x954   :  { %16 = sbr.rel (!%p14_p4) target bundleno = 1 (0x1), region = 78 }

// kernel: t5_caption_forward.7
= control target key start
LH: loop header
LB: loop body
LE: loop exit
PB: predicated region body
PF: predicated region fallthrough
CT: control target
= control target key end

     0   :  { %s10912_s18 = smov 0   ;;  %s13720_s0 = inlined_call_operand.vmem [shape: bf16[2,16,128], index: 0, kind: input, shape index: {}]   ;;  %s13721_s1 = inlined_call_operand.vmem [shape: f32[8,16,16], index: 1, kind: input, shape index: {}]   ;;  %s13722_s2 = inlined_call_operand.vmem [shape: f32[2,1,16], index: 2, kind: input, shape index: {}]   ;;  %s13723_s3 = inlined_call_operand.vmem [shape: bf16[2,32,128], index: 3, kind: input, shape index: {}]   ;;  %s13724_s4 = inlined_call_operand.vmem [shape: f32[1,128], index: 4, kind: input, shape index: {}]   ;;  %s13725_s5 = inlined_call_operand.vmem [shape: bf16[128,384], index: 5, kind: input, shape index: {}]   ;;  %s13726_s6 = inlined_call_operand.vmem [shape: bf16[128,128], index: 6, kind: input, shape index: {}]   ;;  %s13727_s7 = inlined_call_operand.vmem [shape: f32[1,128], index: 7, kind: input, shape index: {}]   ;;  %s13728_s8 = inlined_call_operand.vmem [shape: bf16[128,128], index: 8, kind: input, shape index: {}]   ;;  %s13729_s9 = inlined_call_operand.vmem [shape: f32[1,128], index: 9, kind: input, shape index: {}]   ;;  %s13730_s10 = inlined_call_operand.vmem [shape: bf16[128,256], index: 10, kind: input, shape index: {}]   ;;  %s13731_s11 = inlined_call_operand.vmem [shape: bf16[128,128], index: 11, kind: input, shape index: {}]   ;;  %s13732_s12 = inlined_call_operand.vmem [shape: f32[1,128], index: 12, kind: input, shape index: {}]   ;;  %s13733_s13 = inlined_call_operand.vmem [shape: bf16[128,256], index: 13, kind: input, shape index: {}]   ;;  %s13734_s14 = inlined_call_operand.vmem [shape: bf16[256,128], index: 14, kind: input, shape index: {}]   ;;  %s13735_s15 = inlined_call_operand.vmem [shape: bf16[2,16,128], index: 15, kind: output, shape index: {}]  }
   0x1 LB: > { %s9679_s19 = sadd.s32 4294967295, %s10818_s18   ;;  %p9683_p0 = scmp.ge.s32.totalorder %s10818_s18, 1  ;;  %s10818_s18 = sphi %s10912_s18, %s25_s18  }
   0x2   : > { %p455_p1 = scmp.lt.s32.totalorder %s10818_s18, 3 }
   0x4   : > { %p456_p2 = pnand %p9683_p0, %p455_p1 }
   0x6   : > { %459 = sbr.rel (%p456_p2) target bundleno = 3961 (0xf79), region = 80 }
   0xb   : > { %p511_p3 = scmp.lt.s32.totalorder %s9679_s19, 1  ;;  %v803_v0 = vlaneseq  ;;  %v10544_v1 = vld [vmem:[%s13725_s5 + $0xac] ss:$12 sps:$4 sm:$0xff]   ;;  %v13751_v2 = vmov 0.0   ;;  %v10546_v5 = vld [vmem:[%s13725_s5 + $0xa8] ss:$12 sps:$4 sm:$0xff]  }
   0xc   : > { %10150 = vmatprep.subr.bf16.mxu1 %v13751_v2  ;;  %719 = vmatprep.subr.bf16.mxu0 %v10544_v1  ;;  %v10547_v6 = vld [vmem:[%s13725_s5 + $0xb0] ss:$12 sps:$4 sm:$0xff]   ;;  %v10548_v13 = vld [vmem:[%s13725_s5 + $0x94] ss:$12 sps:$4 sm:$0xff]   ;;  %v10551_v15 = vld [vmem:[%s13725_s5 + $0x98] ss:$12 sps:$4 sm:$0xff]  }
   0xd   : > { %s13804_s19 = smov (!%p511_p3, %s9679_s19), 1  ;;  %v10926_v3 = vshrl.u32 %v803_v0, 7  ;;  %v10928_v4 = vand.u32 127, %v803_v0  ;;  %720 = vmatpush1.bf16.msra.mxu0 %v10546_v5  ;;  %10151 = vmatpush3.bf16.msra.mxu1 %v10547_v6  ;;  %v10550_v14 = vld [vmem:[%s13725_s5 + $0x90] ss:$12 sps:$4 sm:$0xff]   ;;  %v13736_v31 = vmov 0  }
   0xe   : > { %s13738_s26 = sshll.u32 %s13804_s19, 3  ;;  %10152 = vmatprep.subr.bf16.mxu1 %v13751_v2  ;;  %721 = vmatprep.subr.bf16.mxu0 %v10548_v13  ;;  %v10552_v16 = vld [vmem:[%s13725_s5 + $0x7c] ss:$12 sps:$4 sm:$0xff]   ;;  %v10554_v17 = vld [vmem:[%s13725_s5 + $0x78] ss:$12 sps:$4 sm:$0xff]   ;;  %vm10822_vm2 = vmmov 0   ;;  %s518_s22 = scalar_lea.vmem %s13722_s2, %s13804_s19 }
   0xf   : > { %v10938_v7 = vadd.s32 8, %v10926_v3  ;;  %vm808_vm0 = vcmp.le.s32.totalorder %v10928_v4, %v10926_v3  ;;  %s515_s29 = scalar_lea.vmem %s13720_s0, %s13738_s26  ;;  %v10555_v18 = vld [vmem:[%s13725_s5 + $0x80] ss:$12 sps:$4 sm:$0xff]   ;;  %v10556_v19 = vld [vmem:[%s13725_s5 + $0x64] ss:$12 sps:$4 sm:$0xff]   ;;  %751 = vmatprep.mubr.bf16.mxu0 %v13736_v31  ;;  %10166 = vmatprep.mubr.msk.bf16.mxu1 %vm10822_vm2, %v13751_v2  ;;  %s13741_s25 = smov 112  }
  0x10   : > { %v9995_v8 = vld [vmem:[%s515_s29] sm:$0xff]   ;;  %v10559_v21 = vld [vmem:[%s13725_s5 + $0x68] ss:$12 sps:$4 sm:$0xff]   ;;  %v10560_v22 = vld [vmem:[%s13725_s5 + $0x4c] ss:$12 sps:$4 sm:$0xff]   ;;  %s13739_s27 = smov 96  }
  0x11   : > { %vm809_vm1 = vcmp.le.s32.totalorder %v10928_v4, %v10938_v7  ;;  %v10950_v9 = vunpack.c.l.bf16 %v9995_v8  ;;  %v10952_v10 = vunpack.c.h.bf16 %v9995_v8  ;;  %722 = vmatpush1.bf16.msra.mxu0 %v10550_v14  ;;  %10153 = vmatpush3.bf16.msra.mxu1 %v10551_v15  ;;  %v10558_v20 = vld [vmem:[%s13725_s5 + $0x60] ss:$12 sps:$4 sm:$0xff]   ;;  %v10562_v23 = vld [vmem:[%s13725_s5 + $0x48] ss:$12 sps:$4 sm:$0xff]   ;;  %v10563_v24 = vld [vmem:[%s13725_s5 + $0x50] ss:$12 sps:$4 sm:$0xff]  }
  0x12   : > { %10154 = vmatprep.subr.bf16.mxu1 %v13751_v2  ;;  %723 = vmatprep.subr.bf16.mxu0 %v10552_v16  ;;  %v10564_v25 = vld [vmem:[%s13725_s5 + $0x34] ss:$12 sps:$4 sm:$0xff]   ;;  %v10566_v26 = vld [vmem:[%s13725_s5 + $0x30] ss:$12 sps:$4 sm:$0xff]   ;;  %v10567_v27 = vld [vmem:[%s13725_s5 + $0x38] ss:$12 sps:$4 sm:$0xff]  }
  0x13   : > { %v535_v11 = vmul.f32 %v10950_v9, %v10950_v9  ;;  %v536_v12 = vmul.f32 %v10952_v10, %v10952_v10  ;;  %v10568_v28 = vld [vmem:[%s13725_s5 + $0x1c] ss:$12 sps:$4 sm:$0xff]   ;;  %v10570_v29 = vld [vmem:[%s13725_s5 + $0x18] ss:$12 sps:$4 sm:$0xff]   ;;  %v10571_v30 = vld [vmem:[%s13725_s5 + $0x20] ss:$12 sps:$4 sm:$0xff]  }
  0x14   : > { %v10572_v32 = vld [vmem:[%s13725_s5 + $0x4] ss:$12 sps:$4 sm:$0xff]   ;;  %v10574_v33 = vld [vmem:[%s13725_s5] ss:$12 sps:$4 sm:$0xff]   ;;  %v10575_v34 = vld [vmem:[%s13725_s5 + $0x8] ss:$12 sps:$4 sm:$0xff]  }
  0x15   : > { %537 = vadd.xlane.f32.xlu0 %v535_v11  ;;  %724 = vmatpush1.bf16.msra.mxu0 %v10554_v17  ;;  %v9690_v44 = vld [vmem:[%s13724_s4] ss:$0 sm:$0xff]  ;;  %s10825_s28 = smov 80   ;;  %s13749_s29 = smov 64   ;;  %v10830_v58 = vmov 1983009808  }
  0x16   : > { %10155 = vmatpush3.bf16.msra.mxu1 %v10555_v18  ;;  %725 = vmatprep.subr.bf16.mxu0 %v10556_v19  ;;  %s13747_s30 = smov 48   ;;  %s13745_s16 = smov 32   ;;  %v906_v59 = vunpack.c.l.s4 %v10830_v58  ;;  %v10831_v60 = vmov 1934713408   ;;  %vm2647_vm3 = vcmask 130048   ;;  %v816_v7 = vld [vmem:[%s13721_s1 + $0x8] sm:$0xff] }
  0x17   : > { %10156 = vmatprep.subr.bf16.mxu1 %v13751_v2  ;;  %s13743_s17 = smov 16   ;;  %v970_v61 = vunpack.c.l.s4 %v10831_v60  ;;  %s13776_s23 = smov 96   ;;  %vm4162_vm4 = vcmask 261120   ;;  %vm4165_vm5 = vcmask 392192   ;;  %vm4168_vm6 = vcmask 523264  }
  0x18   : > { %v907_v0 = vunpack.c.0.s8 %v906_v59  ;;  %s9990_s24 = sshll.u32 %s13804_s19, 4  ;;  %vm4171_vm7 = vcmask 654336   ;;  %vm4174_vm8 = vcmask 785408   ;;  %vm4177_vm9 = vcmask 916480   ;;  %s13782_s20 = smov 48  }
  0x19   : > { %539 = vadd.xlane.f32.xlu0 %v536_v12  ;;  %726 = vmatpush1.bf16.msra.mxu0 %v10558_v20  ;;  %v971_v1 = vunpack.c.0.s8 %v970_v61  ;;  %s13783_s21 = smov 32  }
  0x1a   : > { %10157 = vmatpush3.bf16.msra.mxu1 %v10559_v21  ;;  %727 = vmatprep.subr.bf16.mxu0 %v10560_v22  ;;  %v11130_v12 = vsub.s32 %v907_v0, %v10926_v3 }
  0x1b   : > { %10158 = vmatprep.subr.bf16.mxu1 %v13751_v2  ;;  %v11133_v15 = vsub.s32 %v971_v1, %v10926_v3  ;;  %v817_v3 = vld [vmem:[%s13721_s1 + $0x10] sm:$0xff] }
  0x1d   : > { %728 = vmatpush1.bf16.msra.mxu0 %v10562_v23 }
  0x1e   : > { %10159 = vmatpush3.bf16.msra.mxu1 %v10563_v24  ;;  %729 = vmatprep.subr.bf16.mxu0 %v10564_v25 }
  0x1f   : > { %10160 = vmatprep.subr.bf16.mxu1 %v13751_v2 }
  0x21   : > { %730 = vmatpush1.bf16.msra.mxu0 %v10566_v26 }
  0x22   : > { %10161 = vmatpush3.bf16.msra.mxu1 %v10567_v27  ;;  %731 = vmatprep.subr.bf16.mxu0 %v10568_v28 }
  0x23   : > { %10162 = vmatprep.subr.bf16.mxu1 %v13751_v2 }
  0x25   : > { %732 = vmatpush1.bf16.msra.mxu0 %v10570_v29 }
  0x26   : > { %10163 = vmatpush3.bf16.msra.mxu1 %v10571_v30  ;;  %733 = vmatprep.subr.bf16.mxu0 %v10572_v32 }
  0x27   : > { %10164 = vmatprep.subr.bf16.mxu1 %v13751_v2 }
  0x29   : > { %734 = vmatpush1.bf16.msra.mxu0 %v10574_v33 }
  0x2a   : > { %10165 = vmatpush3.bf16.msra.mxu1 %v10575_v34  ;;  %10170 = vmatprep.subr.bf16.mxu0 %v13751_v2 }
  0x2b   : > { %10176 = vmatprep.subr.bf16.mxu1 %v13751_v2 }
  0x9e   : > { %v538_v35 = vpop.xlane.xlu0 %537 }
  0x9f   : > { %v542_v36 = vmul.f32 0.0078125, %v538_v35 }
  0xa1   : > { %v544_v37 = vadd.f32 1e-06, %v542_v36 }
  0xa2   : > { %v540_v38 = vpop.xlane.xlu0 %539 }
  0xa3   : > { %10664 = vrsqrt.f32 %v544_v37  ;;  %v543_v39 = vmul.f32 0.0078125, %v540_v38 }
  0xa5   : > { %v545_v40 = vadd.f32 1e-06, %v543_v39 }
  0xa7   : > { %10666 = vrsqrt.f32 %v545_v40 }
  0xb0   : > { %v10665_v41 = vpop.eup %10664 }
  0xb1   : > { %v548_v42 = vmul.f32 %v10665_v41, %v10950_v9 }
  0xb3   : > { %v556_v46 = vmul.f32 %v9690_v44, %v548_v42 }
  0xb4   : > { %v10667_v43 = vpop.eup %10666 }
  0xb5   : > { %v549_v45 = vmul.f32 %v10667_v43, %v10952_v10 }
  0xb7   : > { %v557_v47 = vmul.f32 %v9690_v44, %v549_v45 }
  0xb9   : > { %v590_v48 = vpack.c.bf16 %v557_v47, %v556_v46 }
  0xbb   : > { %752 = vmatmul.mubr.bf16.vlgmr.msra.gmra.mxu0 %v590_v48  ;;  %10167 = vmatmul.mubr.bf16.vlgmr.msra.gmra.mxu1 %v590_v48 }
  0xbc   : > { %10172 = vmatprep.mubr.msk.bf16.mxu0 %vm10822_vm2, %v13751_v2  ;;  %10178 = vmatprep.mubr.msk.bf16.mxu1 %vm10822_vm2, %v13751_v2 }
 0x17b   : > { %v11041_v49 = vpop.f32.mrf.mxu0  ;;  %v11043_v50 = vpop.f32.mrf.mxu1 }
 0x17c   : > { %861 = vrot.lane.b32.xlu1 %v11041_v49, %s13741_s25 }
 0x17d   : > { %v11047_v51 = vpop.f32.mrf.mxu0  ;;  %v10168_v52 = vpop.f32.mrf.mxu1 }
 0x17e   : > { %1463 = vrot.lane.b32.xlu0 %v11047_v51, %s13739_s27 }
 0x17f   : > { %v11051_v53 = vpop.f32.mrf.mxu1  ;;  %v11055_v54 = vpop.f32.mrf.mxu0 }
 0x180   : > { %867 = vrot.lane.b32.xlu1 %v11041_v49, %s13739_s27 }
 0x181   : > { %v10169_v55 = vpop.f32.mrf.mxu1  ;;  %v11073_v56 = vpop.f32.mrf.mxu0 }
 0x182   : > { %869 = vrot.lane.b32.xlu0 %v11055_v54, %s13739_s27 }
 0x184   : > { %873 = vrot.lane.b32.xlu1 %v11041_v49, %s10825_s28 }
 0x186   : > { %875 = vrot.lane.b32.xlu0 %v11055_v54, %s10825_s28 }
 0x188   : > { %1457 = vrot.lane.b32.xlu1 %v11047_v51, %s13741_s25 }
 0x18a   : > { %881 = vrot.lane.b32.xlu0 %v11055_v54, %s13749_s29 }
 0x18c   : > { %1469 = vrot.lane.b32.xlu1 %v11047_v51, %s10825_s28 }
 0x18e   : > { %887 = vrot.lane.b32.xlu0 %v11055_v54, %s13747_s30 }
 0x190   : > { %1475 = vrot.lane.b32.xlu1 %v11047_v51, %s13749_s29 }
 0x192   : > { %1477 = vrot.lane.b32.xlu0 %v11073_v56, %s13749_s29 }
 0x194   : > { %1481 = vrot.lane.b32.xlu1 %v11047_v51, %s13747_s30 }
 0x196   : > { %1483 = vrot.lane.b32.xlu0 %v11073_v56, %s13747_s30 }
 0x198   : > { %863 = vrot.lane.b32.xlu1 %v11055_v54, %s13741_s25 }
 0x19a   : > { %1489 = vrot.lane.b32.xlu0 %v11073_v56, %s13745_s16 }
 0x19c   : > { %1459 = vrot.lane.b32.xlu1 %v11073_v56, %s13741_s25 }
 0x19e   : > { %1495 = vrot.lane.b32.xlu0 %v11073_v56, %s13743_s17 }
 0x1a0   : > { %1465 = vrot.lane.b32.xlu1 %v11073_v56, %s13739_s27 }
 0x1a2   : > { %893 = vrot.lane.b32.xlu0 %v11055_v54, %s13745_s16 }
 0x1a4   : > { %1471 = vrot.lane.b32.xlu1 %v11073_v56, %s10825_s28 }
 0x1a6   : > { %899 = vrot.lane.b32.xlu0 %v11055_v54, %s13743_s17 }
 0x1a8   : > { %1487 = vrot.lane.b32.xlu1 %v11047_v51, %s13745_s16 }
 0x1aa   : > { %2053 = vrot.lane.b32.xlu0 %v11043_v50, %s13741_s25 }
 0x1ac   : > { %1493 = vrot.lane.b32.xlu1 %v11047_v51, %s13743_s17 }
 0x1ae   : > { %2061 = vrot.lane.b32.xlu0 %v11051_v53, %s13739_s27 }
 0x1b0   : > { %879 = vrot.lane.b32.xlu1 %v11041_v49, %s13749_s29 }
 0x1b2   : > { %2067 = vrot.lane.b32.xlu0 %v11051_v53, %s10825_s28 }
 0x1b4   : > { %885 = vrot.lane.b32.xlu1 %v11041_v49, %s13747_s30 }
 0x1b6   : > { %2071 = vrot.lane.b32.xlu0 %v11043_v50, %s13749_s29 }
 0x1b8   : > { %891 = vrot.lane.b32.xlu1 %v11041_v49, %s13745_s16 }
 0x1bc   : > { %897 = vrot.lane.b32.xlu1 %v11041_v49, %s13743_s17 }
 0x1c0   : > { %2055 = vrot.lane.b32.xlu1 %v11051_v53, %s13741_s25 }
 0x1c4   : > { %2059 = vrot.lane.b32.xlu1 %v11043_v50, %s13739_s27  ;;  %s13775_s27 = smov 112  }
 0x1c8   : > { %2065 = vrot.lane.b32.xlu1 %v11043_v50, %s10825_s28 }
 0x1cc   : > { %2073 = vrot.lane.b32.xlu1 %v11051_v53, %s13749_s29 }
 0x1ee   : > { %v862_v57 = vpop.permute.xlu1 %861 }
 0x1f0   : > { %v1464_v62 = vpop.permute.xlu0 %1463 }
 0x1f1   : > { %v1499_v32 = vcombine.low %v11047_v51, %v1464_v62  ;;  %v1500_v33 = vcombine.high %v11047_v51, %v1464_v62 }
 0x1f2   : > { %v868_v63 = vpop.permute.xlu1 %867 }
 0x1f3   : > { %v903_v6 = vcombine.low %v11041_v49, %v868_v63  ;;  %v904_v8 = vcombine.high %v11041_v49, %v868_v63  ;;  %v1507_v46 = vrot.slane %v1499_v32, %v11130_v12  ;;  %v1514_v47 = vrot.slane %v1500_v33, %v11130_v12 }
 0x1f4   : > { %v11125_v5 = vpop.permute.xlu0 %869 }
 0x1f5   : > { %v911_v17 = vrot.slane %v903_v6, %v11130_v12  ;;  %v918_v18 = vrot.slane %v904_v8, %v11130_v12 }
 0x1f6   : > { %v874_v11 = vpop.permute.xlu1 %873 }
 0x1f7   : > { %v919_v13 = vcombine.low %v862_v57, %v874_v11  ;;  %v920_v14 = vcombine.high %v862_v57, %v874_v11 }
 0x1f8   : > { %v11135_v16 = vpop.permute.xlu0 %875 }
 0x1f9   : > { %v927_v19 = vrot.slane %v919_v13, %v11130_v12  ;;  %v934_v20 = vrot.slane %v920_v14, %v11130_v12  ;;  %v1039_v13 = vcombine.low %v11055_v54, %v11125_v5  ;;  %v1040_v14 = vcombine.high %v11055_v54, %v11125_v5 }
 0x1fa   : > { %v1458_v21 = vpop.permute.xlu1 %1457 }
 0x1fb   : > { %v967_v22 = vcombine.low %v911_v17, %v927_v19  ;;  %v968_v23 = vcombine.high %v911_v17, %v927_v19  ;;  %v983_v24 = vcombine.low %v918_v18, %v934_v20  ;;  %v984_v25 = vcombine.high %v918_v18, %v934_v20 }
 0x1fc   : > { %v11141_v26 = vpop.permute.xlu0 %881  ;;  %v1047_v33 = vrot.slane %v1039_v13, %v11130_v12 }
 0x1fd   : > { %v975_v27 = vrot.slane %v967_v22, %v11133_v15  ;;  %v982_v28 = vrot.slane %v968_v23, %v11133_v15  ;;  %v991_v29 = vrot.slane %v983_v24, %v11133_v15  ;;  %v998_v30 = vrot.slane %v984_v25, %v11133_v15 }
 0x1fe   : > { %v1470_v34 = vpop.permute.xlu1 %1469 }
 0x1ff   : > { %v9718_v35 = vcombine.low %v975_v27, %v982_v28  ;;  %v9720_v36 = vcombine.high %v975_v27, %v982_v28  ;;  %v9722_v37 = vcombine.low %v991_v29, %v998_v30  ;;  %v9724_v38 = vcombine.high %v991_v29, %v998_v30 }
 0x200   : > { %v1515_v39 = vcombine.low %v1458_v21, %v1470_v34  ;;  %v1516_v40 = vcombine.high %v1458_v21, %v1470_v34  ;;  %v11149_v41 = vpop.permute.xlu0 %887 }
 0x201   : > { %v1183_v42 = vrot.slane %v9718_v35, %v11130_v12  ;;  %v1199_v43 = vrot.slane %v9720_v36, %v11130_v12  ;;  %v1215_v44 = vrot.slane %v9722_v37, %v11130_v12  ;;  %v1231_v45 = vrot.slane %v9724_v38, %v11130_v12 }
 0x202   : > { %v1523_v48 = vrot.slane %v1515_v39, %v11130_v12  ;;  %v1530_v49 = vrot.slane %v1516_v40, %v11130_v12  ;;  %v11159_v51 = vpop.permute.xlu1 %1475  ;;  %v1054_v36 = vrot.slane %v1040_v14, %v11130_v12 }
 0x203   : > { %v1239_v60 = vcombine.low %v1183_v42, %v1199_v43  ;;  %v1240_v61 = vcombine.high %v1183_v42, %v1199_v43  ;;  %v1271_v62 = vcombine.low %v1215_v44, %v1231_v45  ;;  %v1272_v63 = vcombine.high %v1215_v44, %v1231_v45 }
 0x204   : > { %v1563_v52 = vcombine.low %v1507_v46, %v1523_v48  ;;  %v1564_v55 = vcombine.high %v1507_v46, %v1523_v48  ;;  %v1579_v57 = vcombine.low %v1514_v47, %v1530_v49  ;;  %v1580_v58 = vcombine.high %v1514_v47, %v1530_v49  ;;  %v11161_v59 = vpop.permute.xlu0 %1477 }
 0x205   : > { %v11174_v22 = vrot.slane %v1239_v60, %v11133_v15  ;;  %v11177_v23 = vrot.slane %v1271_v62, %v11133_v15  ;;  %v11180_v24 = vrot.slane %v1240_v61, %v11133_v15  ;;  %v11183_v25 = vrot.slane %v1272_v63, %v11133_v15 }
 0x206   : > { %v1571_v0 = vrot.slane %v1563_v52, %v11133_v15  ;;  %v1578_v1 = vrot.slane %v1564_v55, %v11133_v15  ;;  %v1587_v6 = vrot.slane %v1579_v57, %v11133_v15  ;;  %v1594_v8 = vrot.slane %v1580_v58, %v11133_v15  ;;  %v11167_v11 = vpop.permute.xlu1 %1481 }
 0x207   : > { %v1303_v39 = vcombine.low %v11174_v22, %v11177_v23 }
 0x208   : > { %v9734_v17 = vcombine.low %v1571_v0, %v1578_v1  ;;  %v9736_v18 = vcombine.high %v1571_v0, %v1578_v1  ;;  %v9738_v19 = vcombine.low %v1587_v6, %v1594_v8  ;;  %v9740_v20 = vcombine.high %v1587_v6, %v1594_v8  ;;  %v1484_v21 = vpop.permute.xlu0 %1483 }
 0x20a   : > { %v864_v27 = vpop.permute.xlu1 %863  ;;  %v1779_v54 = vrot.slane %v9734_v17, %v11130_v12  ;;  %v1795_v5 = vrot.slane %v9736_v18, %v11130_v12  ;;  %v1811_v28 = vrot.slane %v9738_v19, %v11130_v12  ;;  %v1827_v29 = vrot.slane %v9740_v20, %v11130_v12 }
 0x20b   : > { %v1055_v30 = vcombine.low %v864_v27, %v11135_v16  ;;  %v1056_v32 = vcombine.high %v864_v27, %v11135_v16 }
 0x20c   : > { %v1490_v34 = vpop.permute.xlu0 %1489  ;;  %v1835_v35 = vcombine.low %v1779_v54, %v1795_v5  ;;  %v1867_v42 = vcombine.low %v1811_v28, %v1827_v29  ;;  %v1836_v16 = vcombine.high %v1779_v54, %v1795_v5  ;;  %v1868_v58 = vcombine.high %v1811_v28, %v1827_v29 }
 0x20d   : > { %v1063_v37 = vrot.slane %v1055_v30, %v11130_v12  ;;  %v1070_v38 = vrot.slane %v1056_v32, %v11130_v12  ;;  %v1667_v49 = vcombine.low %v11161_v59, %v1490_v34  ;;  %v1668_v52 = vcombine.high %v11161_v59, %v1490_v34 }
 0x20e   : > { %v11197_v40 = vpop.permute.xlu1 %1459  ;;  %v11206_v57 = vrot.slane %v1835_v35, %v11133_v15  ;;  %v11213_v8 = vrot.slane %v1867_v42, %v11133_v15  ;;  %v11216_v59 = vrot.slane %v1836_v16, %v11133_v15 }
 0x20f   : > { %v1103_v45 = vcombine.low %v1047_v33, %v1063_v37  ;;  %v1104_v46 = vcombine.high %v1047_v33, %v1063_v37  ;;  %v1119_v47 = vcombine.low %v1054_v36, %v1070_v38  ;;  %v1120_v48 = vcombine.high %v1054_v36, %v1070_v38 }
 0x210   : > { %v1496_v55 = vpop.permute.xlu0 %1495  ;;  %v1675_v19 = vrot.slane %v1667_v49, %v11130_v12  ;;  %v1682_v29 = vrot.slane %v1668_v52, %v11130_v12  ;;  %v1899_v42 = vcombine.low %v11206_v57, %v11213_v8  ;;  %v1900_v16 = vcombine.high %v11206_v57, %v11213_v8 }
 0x211   : > { %v1111_v60 = vrot.slane %v1103_v45, %v11133_v15  ;;  %v1118_v61 = vrot.slane %v1104_v46, %v11133_v15  ;;  %v1127_v62 = vrot.slane %v1119_v47, %v11133_v15  ;;  %v1134_v63 = vrot.slane %v1120_v48, %v11133_v15 }
 0x212   : > { %v1683_v0 = vcombine.low %v1484_v21, %v1496_v55  ;;  %v1684_v1 = vcombine.high %v1484_v21, %v1496_v55  ;;  %v1466_v6 = vpop.permute.xlu1 %1465  ;;  %v11222_v21 = vrot.slane %v1868_v58, %v11133_v15 }
 0x213   : > { %v9726_v13 = vcombine.low %v1111_v60, %v1118_v61  ;;  %v9728_v14 = vcombine.high %v1111_v60, %v1118_v61  ;;  %v9730_v17 = vcombine.low %v1127_v62, %v1134_v63  ;;  %v9732_v18 = vcombine.high %v1127_v62, %v1134_v63 }
 0x214   : > { %v1691_v20 = vrot.slane %v1683_v0, %v11130_v12  ;;  %v1698_v27 = vrot.slane %v1684_v1, %v11130_v12  ;;  %v894_v54 = vpop.permute.xlu0 %893  ;;  %v1635_v45 = vcombine.low %v11073_v56, %v1466_v6  ;;  %v1636_v46 = vcombine.high %v11073_v56, %v1466_v6 }
 0x215   : > { %v11225_v5 = vrot.slane %v9726_v13, %v11130_v12  ;;  %v11228_v28 = vrot.slane %v9728_v14, %v11130_v12  ;;  %v11234_v32 = vrot.slane %v9730_v17, %v11130_v12  ;;  %v11237_v33 = vrot.slane %v9732_v18, %v11130_v12 }
 0x216   : > { %v1731_v34 = vcombine.low %v1675_v19, %v1691_v20  ;;  %v1732_v35 = vcombine.high %v1675_v19, %v1691_v20  ;;  %v1472_v36 = vpop.permute.xlu1 %1471  ;;  %v1747_v37 = vcombine.low %v1682_v29, %v1698_v27  ;;  %v1748_v38 = vcombine.high %v1682_v29, %v1698_v27 }
 0x217   : > { %v1375_v52 = vcombine.low %v11225_v5, %v11228_v28  ;;  %v1071_v58 = vcombine.low %v11141_v26, %v894_v54  ;;  %v1072_v60 = vcombine.high %v11141_v26, %v894_v54  ;;  %v1407_v56 = vcombine.low %v11234_v32, %v11237_v33 }
 0x218   : > { %v900_v47 = vpop.permute.xlu0 %899  ;;  %v11260_v62 = vrot.slane %v1731_v34, %v11133_v15  ;;  %v11263_v63 = vrot.slane %v1732_v35, %v11133_v15  ;;  %v11266_v1 = vrot.slane %v1747_v37, %v11133_v15  ;;  %v11269_v6 = vrot.slane %v1748_v38, %v11133_v15 }
 0x219   : > { %v1651_v26 = vcombine.low %v11197_v40, %v1472_v36  ;;  %v1652_v13 = vcombine.high %v11197_v40, %v1472_v36  ;;  %v1643_v14 = vrot.slane %v1635_v45, %v11130_v12  ;;  %v1650_v17 = vrot.slane %v1636_v46, %v11130_v12 }
 0x21a   : > { %v1488_v0 = vpop.permute.xlu1 %1487  ;;  %v1087_v18 = vcombine.low %v11149_v41, %v900_v47  ;;  %v1088_v19 = vcombine.high %v11149_v41, %v900_v47  ;;  %v1079_v20 = vrot.slane %v1071_v58, %v11130_v12  ;;  %v1086_v27 = vrot.slane %v1072_v60, %v11130_v12 }
 0x21b   : > { %v1659_v54 = vrot.slane %v1651_v26, %v11130_v12  ;;  %v1666_v29 = vrot.slane %v1652_v13, %v11130_v12  ;;  %v1531_v35 = vcombine.low %v11159_v51, %v1488_v0  ;;  %v1532_v36 = vcombine.high %v11159_v51, %v1488_v0 }
 0x21c   : > { %v1095_v34 = vrot.slane %v1087_v18, %v11130_v12  ;;  %v1102_v40 = vrot.slane %v1088_v19, %v11130_v12  ;;  %v11285_v37 = vpop.permute.xlu0 %2053 }
 0x21d   : > { %v1699_v41 = vcombine.low %v1643_v14, %v1659_v54  ;;  %v1700_v45 = vcombine.high %v1643_v14, %v1659_v54  ;;  %v1715_v46 = vcombine.low %v1650_v17, %v1666_v29  ;;  %v1716_v47 = vcombine.high %v1650_v17, %v1666_v29 }
 0x21e   : > { %v1494_v38 = vpop.permute.xlu1 %1493  ;;  %v1135_v58 = vcombine.low %v1079_v20, %v1095_v34  ;;  %v1136_v60 = vcombine.high %v1079_v20, %v1095_v34  ;;  %v1151_v26 = vcombine.low %v1086_v27, %v1102_v40  ;;  %v1152_v31 = vcombine.high %v1086_v27, %v1102_v40 }
 0x21f   : > { %v1707_v13 = vrot.slane %v1699_v41, %v11133_v15  ;;  %v1714_v18 = vrot.slane %v1700_v45, %v11133_v15  ;;  %v1723_v19 = vrot.slane %v1715_v46, %v11133_v15  ;;  %v1730_v30 = vrot.slane %v1716_v47, %v11133_v15 }
 0x220   : > { %v1143_v51 = vrot.slane %v1135_v58, %v11133_v15  ;;  %v1150_v0 = vrot.slane %v1136_v60, %v11133_v15  ;;  %v1159_v14 = vrot.slane %v1151_v26, %v11133_v15  ;;  %v1166_v17 = vrot.slane %v1152_v31, %v11133_v15  ;;  %v2062_v31 = vpop.permute.xlu0 %2061 }
 0x221   : > { %v1539_v45 = vrot.slane %v1531_v35, %v11130_v12  ;;  %v1546_v46 = vrot.slane %v1532_v36, %v11130_v12  ;;  %v9742_v47 = vcombine.low %v1707_v13, %v1714_v18  ;;  %v9744_v58 = vcombine.high %v1707_v13, %v1714_v18 }
 0x222   : > { %v880_v54 = vpop.permute.xlu1 %879  ;;  %v9727_v40 = vcombine.low %v1143_v51, %v1150_v0  ;;  %v9729_v41 = vcombine.high %v1143_v51, %v1150_v0  ;;  %v1547_v60 = vcombine.low %v11167_v11, %v1494_v38  ;;  %v1548_v26 = vcombine.high %v11167_v11, %v1494_v38 }
 0x223   : > { %v9746_v27 = vcombine.low %v1723_v19, %v1730_v30  ;;  %v9748_v44 = vcombine.high %v1723_v19, %v1730_v30  ;;  %v9731_v20 = vcombine.low %v1159_v14, %v1166_v17  ;;  %v9733_v29 = vcombine.high %v1159_v14, %v1166_v17 }
 0x224   : > { %v1555_v34 = vrot.slane %v1547_v60, %v11130_v12  ;;  %v1562_v51 = vrot.slane %v1548_v26, %v11130_v12  ;;  %v2231_v35 = vcombine.low %v11051_v53, %v2062_v31  ;;  %v2232_v36 = vcombine.high %v11051_v53, %v2062_v31 }
 0x225   : > { %v11312_v0 = vrot.slane %v9727_v40, %v11130_v12  ;;  %v11315_v13 = vrot.slane %v9729_v41, %v11130_v12  ;;  %v11321_v11 = vrot.slane %v1375_v52, %v11133_v15  ;;  %v11327_v30 = vrot.slane %v1407_v56, %v11133_v15 }
 0x226   : > { %v886_v61 = vpop.permute.xlu1 %885  ;;  %v1595_v38 = vcombine.low %v1539_v45, %v1555_v34  ;;  %v1596_v18 = vcombine.high %v1539_v45, %v1555_v34  ;;  %v1611_v19 = vcombine.low %v1546_v46, %v1562_v51  ;;  %v1612_v14 = vcombine.high %v1546_v46, %v1562_v51 }
 0x227   : > { %v1915_v40 = vrot.slane %v9742_v47, %v11130_v12  ;;  %v1931_v41 = vrot.slane %v9744_v58, %v11130_v12  ;;  %v1947_v31 = vrot.slane %v9746_v27, %v11130_v12  ;;  %v1963_v52 = vrot.slane %v9748_v44, %v11130_v12 }
 0x228   : > { %v11334_v60 = vrot.slane %v9731_v20, %v11130_v12  ;;  %v11337_v56 = vrot.slane %v9733_v29, %v11130_v12  ;;  %v11340_v34 = vrot.slane %v2231_v35, %v11130_v12  ;;  %v11343_v45 = vrot.slane %v2232_v36, %v11130_v12 }
 0x229   : > { %v1971_v26 = vcombine.low %v1915_v40, %v1931_v41  ;;  %v2003_v58 = vcombine.low %v1947_v31, %v1963_v52  ;;  %v11348_v44 = vrot.slane %v1595_v38, %v11133_v15  ;;  %v11351_v20 = vrot.slane %v1596_v18, %v11133_v15 }
 0x22a   : > { %v892_v17 = vpop.permute.xlu1 %891  ;;  %v11354_v29 = vrot.slane %v1611_v19, %v11133_v15  ;;  %v11357_v51 = vrot.slane %v1612_v14, %v11133_v15  ;;  %v1439_v18 = vcombine.low %v11321_v11, %v11327_v30  ;;  %v1972_v48 = vcombine.high %v1915_v40, %v1931_v41 }
 0x22b   : > { %v935_v46 = vcombine.low %v880_v54, %v892_v17  ;;  %v936_v47 = vcombine.high %v880_v54, %v892_v17  ;;  %v1979_v54 = vrot.slane %v1971_v26, %v11133_v15  ;;  %v2011_v36 = vrot.slane %v2003_v58, %v11133_v15 }
 0x22c   : > { %v2004_v43 = vcombine.high %v1947_v31, %v1963_v52  ;;  %v1447_v26 = vpack.c.bf16 %v1439_v18, %v1303_v39  ;;  %v1986_v31 = vrot.slane %v1972_v48, %v11133_v15  ;;  %v2068_v52 = vpop.permute.xlu0 %2067 }
 0x22d   : > { %v943_v35 = vrot.slane %v935_v46, %v11130_v12  ;;  %v950_v27 = vrot.slane %v936_v47, %v11130_v12  ;;  %v2035_v49 = vcombine.low %v1979_v54, %v2011_v36  ;;  %v2036_v19 = vcombine.high %v1979_v54, %v2011_v36 }
 0x22e   : > { %v898_v17 = vpop.permute.xlu1 %897  ;;  %v1440_v47 = vcombine.high %v11321_v11, %v11327_v30 }
 0x22f   : > { %v951_v38 = vcombine.low %v886_v61, %v898_v17  ;;  %v952_v55 = vcombine.high %v886_v61, %v898_v17  ;;  %v2043_v61 = vpack.c.bf16 %v2035_v49, %v1899_v42  ;;  %v2044_v40 = vpack.c.bf16 %v2036_v19, %v1900_v16 }
 0x231   : > { %v959_v14 = vrot.slane %v951_v38, %v11130_v12  ;;  %v966_v46 = vrot.slane %v952_v55, %v11130_v12  ;;  %v2018_v55 = vrot.slane %v2004_v43, %v11133_v15  ;;  %v2652_v11 = vsel %vm2647_vm3, %v2043_v61, 0 }
 0x232   : > { %v2056_v41 = vpop.permute.xlu1 %2055  ;;  %v2699_v30 = vsel %vm2647_vm3, %v2044_v40, 0  ;;  %10171 = vmatpush3.bf16.xpose.msra.mxu0 %v2652_v11 }
 0x233   : > { %v999_v58 = vcombine.low %v943_v35, %v959_v14  ;;  %v1000_v54 = vcombine.high %v943_v35, %v959_v14  ;;  %v1015_v39 = vcombine.low %v950_v27, %v966_v46  ;;  %v1016_v36 = vcombine.high %v950_v27, %v966_v46  ;;  %10177 = vmatpush3.bf16.xpose.msra.mxu1 %v2699_v30 }
 0x234   : > { %v2247_v17 = vcombine.low %v2056_v41, %v2068_v52  ;;  %v2248_v42 = vcombine.high %v2056_v41, %v2068_v52  ;;  %10182 = vmatprep.subr.bf16.mxu0 %v13751_v2  ;;  %10188 = vmatprep.subr.bf16.mxu1 %v13751_v2  ;;  %v2037_v38 = vcombine.low %v1986_v31, %v2018_v55 }
 0x235   : > { %v1007_v57 = vrot.slane %v999_v58, %v11133_v15  ;;  %v1014_v8 = vrot.slane %v1000_v54, %v11133_v15  ;;  %v1023_v16 = vrot.slane %v1015_v39, %v11133_v15  ;;  %v1030_v43 = vrot.slane %v1016_v36, %v11133_v15 }
 0x236   : > { %v2255_v48 = vrot.slane %v2247_v17, %v11130_v12  ;;  %v2262_v49 = vrot.slane %v2248_v42, %v11130_v12  ;;  %v2038_v18 = vcombine.high %v1986_v31, %v2018_v55  ;;  %v2060_v19 = vpop.permute.xlu1 %2059  ;;  %v1423_v36 = vcombine.low %v11334_v60, %v11337_v56 }
 0x237   : > { %v9719_v27 = vcombine.low %v1007_v57, %v1014_v8  ;;  %v9721_v35 = vcombine.high %v1007_v57, %v1014_v8  ;;  %v9723_v14 = vcombine.low %v1023_v16, %v1030_v43  ;;  %v9725_v46 = vcombine.high %v1023_v16, %v1030_v43 }
 0x238   : > { %v2295_v61 = vcombine.low %v11340_v34, %v2255_v48  ;;  %v2296_v40 = vcombine.high %v11340_v34, %v2255_v48  ;;  %v2311_v58 = vcombine.low %v11343_v45, %v2262_v49  ;;  %v2312_v54 = vcombine.high %v11343_v45, %v2262_v49 }
 0x239   : > { %v11393_v41 = vrot.slane %v9719_v27, %v11130_v12  ;;  %v11396_v52 = vrot.slane %v9721_v35, %v11130_v12  ;;  %v11401_v39 = vrot.slane %v9723_v14, %v11130_v12  ;;  %v11404_v31 = vrot.slane %v9725_v46, %v11130_v12  ;;  %10173 = vmatmul.mubr.msk.bf16.vlgmr.msra.gmra.mxu0 %vm2647_vm3, %v1447_v26 }
 0x23a   : > { %v11407_v55 = vrot.slane %v2295_v61, %v11133_v15  ;;  %v11410_v34 = vrot.slane %v2296_v40, %v11133_v15  ;;  %v11415_v11 = vrot.slane %v2311_v58, %v11133_v15  ;;  %v11418_v45 = vrot.slane %v2312_v54, %v11133_v15  ;;  %v2066_v48 = vpop.permute.xlu1 %2065  ;;  %10184 = vmatprep.mubr.msk.bf16.mxu0 %vm10822_vm2, %v13751_v2 }
 0x23b   : > { %v13763_v30 = vcombine.high %v11174_v22, %v11177_v23  ;;  %v9735_v42 = vcombine.low %v11348_v44, %v11351_v20  ;;  %v9737_v57 = vcombine.high %v11348_v44, %v11351_v20  ;;  %v9739_v8 = vcombine.low %v11354_v29, %v11357_v51 }
 0x23c   : > { %v9741_v16 = vcombine.high %v11354_v29, %v11357_v51  ;;  %v1255_v43 = vcombine.low %v11393_v41, %v11396_v52  ;;  %v1256_v22 = vcombine.high %v11393_v41, %v11396_v52  ;;  %v13764_v23 = vcombine.low %v11216_v59, %v11222_v21 }
 0x23d   : > { %v1448_v17 = vpack.c.bf16 %v1440_v47, %v13763_v30  ;;  %v13765_v20 = vcombine.high %v11216_v59, %v11222_v21  ;;  %v1287_v29 = vcombine.low %v11401_v39, %v11404_v31  ;;  %v9758_v51 = vcombine.low %v11407_v55, %v11410_v34 }
 0x23e   : > { %v2045_v44 = vpack.c.bf16 %v2037_v38, %v13764_v23  ;;  %v2095_v26 = vcombine.low %v11043_v50, %v2060_v19  ;;  %v2096_v49 = vcombine.high %v11043_v50, %v2060_v19  ;;  %v9760_v27 = vcombine.high %v11407_v55, %v11410_v34 }
 0x23f   : > { %10179 = vmatmul.mubr.msk.bf16.vlgmr.msra.gmra.mxu1 %vm2647_vm3, %v1448_v17  ;;  %v2046_v47 = vpack.c.bf16 %v2038_v18, %v13765_v20  ;;  %v9762_v59 = vcombine.low %v11415_v11, %v11418_v45  ;;  %v2111_v19 = vcombine.low %v11285_v37, %v2066_v48  ;;  %v2112_v14 = vcombine.high %v11285_v37, %v2066_v48 }
 0x240   : > { %v2746_v21 = vsel %vm2647_vm3, %v2045_v44, 0  ;;  %10190 = vmatprep.mubr.msk.bf16.mxu1 %vm10822_vm2, %v13751_v2  ;;  %v2103_v38 = vrot.slane %v2095_v26, %v11130_v12  ;;  %v2110_v18 = vrot.slane %v2096_v49, %v11130_v12  ;;  %v13766_v46 = vcombine.high %v11225_v5, %v11228_v28 }
 0x241   : > { %v2793_v35 = vsel %vm2647_vm3, %v2046_v47, 0  ;;  %10183 = vmatpush3.bf16.xpose.msra.mxu0 %v2746_v21  ;;  %v13767_v40 = vcombine.high %v11234_v32, %v11237_v33  ;;  %v2119_v54 = vrot.slane %v2111_v19, %v11130_v12  ;;  %v1786_v55 = vrot.slane %v9735_v42, %v11130_v12 }
 0x242   : > { %10189 = vmatpush3.bf16.xpose.msra.mxu1 %v2793_v35  ;;  %v1390_v61 = vrot.slane %v13766_v46, %v11133_v15  ;;  %10194 = vmatprep.subr.bf16.mxu0 %v13751_v2  ;;  %v1802_v37 = vrot.slane %v9737_v57, %v11130_v12  ;;  %v1818_v34 = vrot.slane %v9739_v8, %v11130_v12 }
 0x243   : > { %v1422_v58 = vrot.slane %v13767_v40, %v11133_v15  ;;  %10200 = vmatprep.subr.bf16.mxu1 %v13751_v2  ;;  %v2126_v5 = vrot.slane %v2112_v14, %v11130_v12  ;;  %v1834_v17 = vrot.slane %v9741_v16, %v11130_v12  ;;  %v2159_v32 = vcombine.low %v2103_v38, %v2119_v54 }
 0x244   : > { %v2160_v33 = vcombine.high %v2103_v38, %v2119_v54  ;;  %v1851_v23 = vcombine.low %v1786_v55, %v1802_v37  ;;  %v13768_v44 = vcombine.low %v11260_v62, %v11263_v63  ;;  %v13769_v57 = vcombine.low %v11180_v24, %v11183_v25 }
 0x245   : > { %v1441_v28 = vcombine.low %v1390_v61, %v1422_v58  ;;  %v1442_v30 = vcombine.high %v1390_v61, %v1422_v58  ;;  %v2175_v47 = vcombine.low %v2110_v18, %v2126_v5  ;;  %v2176_v42 = vcombine.high %v2110_v18, %v2126_v5 }
 0x246   : > { %v1922_v20 = vrot.slane %v13768_v44, %v11130_v12  ;;  %v13770_v48 = vcombine.high %v11180_v24, %v11183_v25  ;;  %v9764_v16 = vcombine.high %v11415_v11, %v11418_v45  ;;  %v2167_v49 = vrot.slane %v2159_v32, %v11133_v15 }
 0x247   : > { %v1449_v8 = vpack.c.bf16 %v1441_v28, %v13769_v57  ;;  %v2174_v21 = vrot.slane %v2160_v33, %v11133_v15  ;;  %v1883_v35 = vcombine.low %v1818_v34, %v1834_v17  ;;  %v2183_v38 = vrot.slane %v2175_v47, %v11133_v15 }
 0x248   : > { %v1450_v26 = vpack.c.bf16 %v1442_v30, %v13770_v48  ;;  %v2190_v18 = vrot.slane %v2176_v42, %v11133_v15  ;;  %v13771_v24 = vcombine.high %v11260_v62, %v11263_v63  ;;  %v1288_v11 = vcombine.high %v11401_v39, %v11404_v31 }
 0x249   : > { %10185 = vmatmul.mubr.msk.bf16.vlgmr.msra.gmra.mxu0 %vm2647_vm3, %v1449_v8  ;;  %v1859_v45 = vrot.slane %v1851_v23, %v11133_v15  ;;  %v1891_v19 = vrot.slane %v1883_v35, %v11133_v15  ;;  %v13772_v14 = vcombine.low %v11266_v1, %v11269_v6  ;;  %v11512_v61 = vrot.slane %v9758_v51, %v11130_v12 }
 0x24a   : > { %10191 = vmatmul.mubr.msk.bf16.vlgmr.msra.gmra.mxu1 %vm2647_vm3, %v1450_v26  ;;  %v1938_v25 = vrot.slane %v13771_v24, %v11130_v12  ;;  %10196 = vmatprep.mubr.msk.bf16.mxu0 %vm10822_vm2, %v13751_v2  ;;  %v11515_v62 = vrot.slane %v9760_v27, %v11130_v12  ;;  %v13773_v63 = vcombine.high %v11266_v1, %v11269_v6 }
 0x24b   : > { %v1954_v46 = vrot.slane %v13772_v14, %v11130_v12  ;;  %10202 = vmatprep.mubr.msk.bf16.mxu1 %vm10822_vm2, %v13751_v2  ;;  %v11524_v54 = vrot.slane %v9762_v59, %v11130_v12  ;;  %v11527_v5 = vrot.slane %v9764_v16, %v11130_v12  ;;  %v9750_v51 = vcombine.low %v2167_v49, %v2174_v21 }
 0x24c   : > { %v1970_v40 = vrot.slane %v13773_v63, %v11130_v12  ;;  %v1987_v58 = vcombine.low %v1922_v20, %v1938_v25  ;;  %v9752_v28 = vcombine.high %v2167_v49, %v2174_v21  ;;  %v9754_v30 = vcombine.low %v2183_v38, %v2190_v18 }
 0x24d   : > { %v9756_v27 = vcombine.high %v2183_v38, %v2190_v18  ;;  %v1903_v23 = vcombine.low %v1859_v45, %v1891_v19  ;;  %v1904_v1 = vcombine.high %v1859_v45, %v1891_v19  ;;  %v1263_v6 = vrot.slane %v1255_v43, %v11133_v15 }
 0x24e   : > { %v1995_v32 = vrot.slane %v1987_v58, %v11133_v15  ;;  %v2019_v33 = vcombine.low %v1954_v46, %v1970_v40  ;;  %v1295_v59 = vrot.slane %v1287_v29, %v11133_v15  ;;  %v1852_v47 = vcombine.high %v1786_v55, %v1802_v37 }
 0x24f   : > { %v1884_v42 = vcombine.high %v1818_v34, %v1834_v17  ;;  %v1988_v57 = vcombine.high %v1922_v20, %v1938_v25  ;;  %v2375_v8 = vrot.slane %v9750_v51, %v11130_v12  ;;  %v2391_v48 = vrot.slane %v9752_v28, %v11130_v12 }
 0x250   : > { %v2027_v44 = vrot.slane %v2019_v33, %v11133_v15  ;;  %v13774_v26 = vcombine.low %v11312_v0, %v11315_v13  ;;  %v1431_v39 = vrot.slane %v1423_v36, %v11133_v15  ;;  %v1866_v29 = vrot.slane %v1852_v47, %v11133_v15 }
 0x251   : > { %v1898_v55 = vrot.slane %v1884_v42, %v11133_v15  ;;  %v2407_v37 = vrot.slane %v9754_v30, %v11130_v12  ;;  %v2423_v34 = vrot.slane %v9756_v27, %v11130_v12  ;;  %v2002_v17 = vrot.slane %v1988_v57, %v11133_v15 }
 0x252   : > { %v1399_v16 = vrot.slane %v13774_v26, %v11133_v15  ;;  %v2039_v31 = vcombine.low %v1995_v32, %v2027_v44  ;;  %v2040_v43 = vcombine.high %v1995_v32, %v2027_v44  ;;  %v2020_v20 = vcombine.high %v1954_v46, %v1970_v40 }
 0x253   : > { %v1307_v35 = vcombine.low %v1263_v6, %v1295_v59  ;;  %v1308_v38 = vcombine.high %v1263_v6, %v1295_v59  ;;  %v1905_v36 = vcombine.low %v1866_v29, %v1898_v55  ;;  %v1906_v14 = vcombine.high %v1866_v29, %v1898_v55 }
 0x254   : > { %v2047_v49 = vpack.c.bf16 %v2039_v31, %v1903_v23  ;;  %v2048_v21 = vpack.c.bf16 %v2040_v43, %v1904_v1  ;;  %v1443_v18 = vcombine.low %v1399_v16, %v1431_v39  ;;  %v1444_v24 = vcombine.high %v1399_v16, %v1431_v39 }
 0x255   : > { %v2034_v25 = vrot.slane %v2020_v20, %v11133_v15  ;;  %v2431_v63 = vcombine.low %v2375_v8, %v2391_v48  ;;  %v1392_v58 = vcombine.high %v11312_v0, %v11315_v13  ;;  %v1424_v46 = vcombine.high %v11334_v60, %v11337_v56 }
 0x256   : > { %v2840_v45 = vsel %vm2647_vm3, %v2047_v49, 0  ;;  %v2887_v19 = vsel %vm2647_vm3, %v2048_v21, 0  ;;  %v1451_v51 = vpack.c.bf16 %v1443_v18, %v1307_v35  ;;  %v1452_v28 = vpack.c.bf16 %v1444_v24, %v1308_v38 }
 0x257   : > { %10195 = vmatpush3.bf16.xpose.msra.mxu0 %v2840_v45  ;;  %10201 = vmatpush3.bf16.xpose.msra.mxu1 %v2887_v19  ;;  %v2041_v40 = vcombine.low %v2002_v17, %v2034_v25  ;;  %v2042_v30 = vcombine.high %v2002_v17, %v2034_v25  ;;  %v1270_v32 = vrot.slane %v1256_v22, %v11133_v15  ;;  %v9715_v24 = vsel %vm808_vm0, 1.0, %v13751_v2 }
 0x258   : > { %10206 = vmatprep.subr.bf16.mxu0 %v13751_v2  ;;  %10212 = vmatprep.subr.bf16.mxu1 %v13751_v2  ;;  %v1302_v0 = vrot.slane %v1288_v11, %v11133_v15  ;;  %v2463_v13 = vcombine.low %v2407_v37, %v2423_v34  ;;  %v2439_v56 = vrot.slane %v2431_v63, %v11133_v15  ;;  %v9716_v45 = vsel %vm809_vm1, 1.0, %v13751_v2 }
 0x259   : > { %v2049_v27 = vpack.c.bf16 %v2041_v40, %v1905_v36  ;;  %v2050_v60 = vpack.c.bf16 %v2042_v30, %v1906_v14  ;;  %v2567_v33 = vcombine.low %v11512_v61, %v11515_v62  ;;  %v2599_v23 = vcombine.low %v11524_v54, %v11527_v5  ;;  %v9717_v36 = vld [vmem:[%s518_s22] ss:$0 sm:$0xff]  ;;  %s523_s22 = scalar_lea.vmem %s13723_s3, %s9990_s24  ;;  %s13781_s24 = smov 64  }
 0x25a   : > { %v1406_v1 = vrot.slane %v1392_v58, %v11133_v15  ;;  %v1438_v6 = vrot.slane %v1424_v46, %v11133_v15  ;;  %v2471_v59 = vrot.slane %v2463_v13, %v11133_v15  ;;  %v2432_v41 = vcombine.high %v2375_v8, %v2391_v48  ;;  %v815_v46 = vld [vmem:[%s13721_s1] sm:$0xff] }
 0x25b   : > { %v2575_v52 = vrot.slane %v2567_v33, %v11133_v15  ;;  %v2607_v22 = vrot.slane %v2599_v23, %v11133_v15  ;;  %v2464_v11 = vcombine.high %v2407_v37, %v2423_v34  ;;  %v2568_v44 = vcombine.high %v11512_v61, %v11515_v62 }
 0x25c   : > { %v1309_v47 = vcombine.low %v1270_v32, %v1302_v0  ;;  %v1310_v42 = vcombine.high %v1270_v32, %v1302_v0  ;;  %v2446_v57 = vrot.slane %v2432_v41, %v11133_v15  ;;  %v2600_v26 = vcombine.high %v11524_v54, %v11527_v5 }
 0x25d   : > { %v2934_v8 = vsel %vm2647_vm3, %v2049_v27, 0  ;;  %v2981_v48 = vsel %vm2647_vm3, %v2050_v60, 0  ;;  %v2495_v16 = vcombine.low %v2439_v56, %v2471_v59  ;;  %v2478_v39 = vrot.slane %v2464_v11, %v11133_v15 }
 0x25e   : > { %10197 = vmatmul.mubr.msk.bf16.vlgmr.msra.gmra.mxu0 %vm2647_vm3, %v1451_v51  ;;  %10203 = vmatmul.mubr.msk.bf16.vlgmr.msra.gmra.mxu1 %vm2647_vm3, %v1452_v28  ;;  %v2496_v61 = vcombine.high %v2439_v56, %v2471_v59  ;;  %v2582_v62 = vrot.slane %v2568_v44, %v11133_v15  ;;  %v2614_v31 = vrot.slane %v2600_v26, %v11133_v15  ;;  %v818_v28 = vld [vmem:[%s13721_s1 + $0x18] sm:$0xff] }
 0x25f   : > { %10207 = vmatpush3.bf16.xpose.msra.mxu0 %v2934_v8  ;;  %10213 = vmatpush3.bf16.xpose.msra.mxu1 %v2981_v48  ;;  %v2631_v54 = vcombine.low %v2575_v52, %v2607_v22  ;;  %v2632_v5 = vcombine.high %v2575_v52, %v2607_v22  ;;  %v2497_v43 = vcombine.low %v2446_v57, %v2478_v39  ;;  %v819_v52 = vld [vmem:[%s13721_s1 + $0x20] sm:$0xff]  ;;  %v820_v8 = vld [vmem:[%s13721_s1 + $0x28] sm:$0xff] }
 0x260   : > { %10208 = vmatprep.mubr.msk.bf16.mxu0 %vm10822_vm2, %v13751_v2  ;;  %10214 = vmatprep.mubr.msk.bf16.mxu1 %vm10822_vm2, %v13751_v2  ;;  %v2633_v29 = vcombine.low %v2582_v62, %v2614_v31  ;;  %v2498_v55 = vcombine.high %v2446_v57, %v2478_v39  ;;  %v2634_v37 = vcombine.high %v2582_v62, %v2614_v31 }
 0x261   : > { %10218 = vmatprep.subr.bf16.mxu0 %v13751_v2  ;;  %10224 = vmatprep.subr.bf16.mxu1 %v13751_v2  ;;  %v1445_v34 = vcombine.low %v1406_v1, %v1438_v6  ;;  %v1446_v17 = vcombine.high %v1406_v1, %v1438_v6  ;;  %v2639_v20 = vpack.c.bf16 %v2631_v54, %v2495_v16 }
 0x262   : > { %v2640_v49 = vpack.c.bf16 %v2632_v5, %v2496_v61  ;;  %v11596_v21 = vpack.c.bf16 %v2633_v29, %v2497_v43  ;;  %v11598_v35 = vpack.c.bf16 %v2634_v37, %v2498_v55  ;;  %v837_v25 = vmul.f32 %v9717_v36, %v9715_v24  ;;  %v822_v61 = vld [vmem:[%s13721_s1 + $0x38] sm:$0xff] }
 0x263   : > { %v1453_v38 = vpack.c.bf16 %v1445_v34, %v1309_v47  ;;  %v1454_v18 = vpack.c.bf16 %v1446_v17, %v1310_v42  ;;  %v838_v19 = vmul.f32 %v9717_v36, %v9716_v45  ;;  %v821_v47 = vld [vmem:[%s13721_s1 + $0x30] sm:$0xff] }
 0x264   : > { %v839_v14 = vsub.f32 1.0, %v837_v25  ;;  %v823_v25 = vld [vmem:[%s13721_s1 + $0x40] sm:$0xff]  ;;  %v825_v45 = vld [vmem:[%s13721_s1 + $0x50] sm:$0xff] }
 0x265   : > { %v840_v63 = vsub.f32 1.0, %v838_v19 }
 0x266   : > { %10209 = vmatmul.mubr.msk.bf16.vlgmr.msra.gmra.mxu0 %vm2647_vm3, %v1453_v38  ;;  %10215 = vmatmul.mubr.msk.bf16.vlgmr.msra.gmra.mxu1 %vm2647_vm3, %v1454_v18  ;;  %v11620_v58 = vmul.f32 -1e+09, %v839_v14  ;;  %v824_v14 = vld [vmem:[%s13721_s1 + $0x48] sm:$0xff] }
 0x267   : > { %10219 = vmatpush3.bf16.msra.mxu0 %v2639_v20  ;;  %10225 = vmatpush3.bf16.msra.mxu1 %v2640_v49  ;;  %v11628_v40 = vmul.f32 -1e+09, %v840_v63 }
 0x268   : > { %10220 = vmatprep.mubr.msk.bf16.mxu0 %vm10822_vm2, %v13751_v2  ;;  %10230 = vmatprep.subr.bf16.mxu0 %v13751_v2  ;;  %v843_v51 = vadd.f32 %v11620_v58, %v815_v46  ;;  %v845_v4 = vadd.f32 %v11620_v58, %v817_v3  ;;  %v847_v26 = vadd.f32 %v11620_v58, %v819_v52 }
 0x269   : > { %10226 = vmatprep.mubr.msk.bf16.mxu1 %vm10822_vm2, %v13751_v2  ;;  %10236 = vmatprep.subr.bf16.mxu1 %v13751_v2  ;;  %v844_v0 = vadd.f32 %v11628_v40, %v816_v7  ;;  %v846_v56 = vadd.f32 %v11628_v40, %v818_v28  ;;  %v849_v48 = vadd.f32 %v11620_v58, %v821_v47 }
 0x26a   : > { %v848_v31 = vadd.f32 %v11628_v40, %v820_v8  ;;  %v850_v29 = vadd.f32 %v11628_v40, %v822_v61  ;;  %v851_v19 = vadd.f32 %v11620_v58, %v823_v25  ;;  %v853_v63 = vadd.f32 %v11620_v58, %v825_v45  ;;  %v11764_v45 = vpop.permute.xlu1 %2073 }
 0x26b   : > { %v852_v7 = vadd.f32 %v11628_v40, %v824_v14 }
 0x2f9   : > { %v2688_v30 = vpop.f32.mrf.mxu0 }
 0x2fa   : > { %v11638_v27 = vadd.f32 %v2688_v30, %v843_v51  ;;  %v826_v51 = vld [vmem:[%s13721_s1 + $0x58] sm:$0xff] }
 0x2fb   : > { %v10174_v60 = vpop.f32.mrf.mxu0 }
 0x2fc   : > { %v3024_v23 = vsel %vm2647_vm3, %v11638_v27, -inf  ;;  %v854_v60 = vadd.f32 %v11628_v40, %v826_v51 }
 0x2fd   : > { %3025 = vmax.xlane.f32.xlu1 %v3024_v23  ;;  %v2691_v6 = vpop.f32.mrf.mxu0 }
 0x2fe   : > { %v11648_v41 = vadd.f32 %v2691_v6, %v844_v0 }
 0x2ff   : > { %v2735_v32 = vpop.f32.mrf.mxu1  ;;  %v10175_v11 = vpop.f32.mrf.mxu0 }
 0x300   : > { %v11641_v13 = vadd.f32 %v2735_v32, %v845_v4  ;;  %v3027_v42 = vsel %vm2647_vm3, %v11648_v41, -inf  ;;  %v827_v32 = vld [vmem:[%s13721_s1 + $0x60] sm:$0xff] }
 0x301   : > { %v10180_v33 = vpop.f32.mrf.mxu1 }
 0x302   : > { %v3030_v1 = vsel %vm2647_vm3, %v11641_v13, -inf }
 0x303   : > { %3031 = vmax.xlane.f32.xlu0 %v3030_v1  ;;  %v2738_v59 = vpop.f32.mrf.mxu1  ;;  %v829_v1 = vld [vmem:[%s13721_s1 + $0x70] sm:$0xff] }
 0x304   : > { %v11653_v22 = vadd.f32 %v2738_v59, %v846_v56  ;;  %v855_v59 = vadd.f32 %v11620_v58, %v827_v32 }
 0x305   : > { %v10181_v44 = vpop.f32.mrf.mxu1 }
 0x306   : > { %v3033_v57 = vsel %vm2647_vm3, %v11653_v22, -inf  ;;  %v828_v44 = vld [vmem:[%s13721_s1 + $0x68] sm:$0xff] }
 0x307   : > { %3034 = vmax.xlane.f32.xlu1 %v3033_v57  ;;  %3028 = vmax.xlane.f32.xlu0 %v3027_v42  ;;  %v857_v42 = vadd.f32 %v11620_v58, %v829_v1  ;;  %v856_v61 = vadd.f32 %v11628_v40, %v828_v44 }
 0x309   : > { %v2782_v39 = vpop.f32.mrf.mxu0 }
 0x30a   : > { %v2829_v16 = vpop.f32.mrf.mxu1  ;;  %v11670_v62 = vadd.f32 %v2782_v39, %v847_v26 }
 0x30b   : > { %v10186_v54 = vpop.f32.mrf.mxu0  ;;  %v11673_v43 = vadd.f32 %v2829_v16, %v849_v48  ;;  %v830_v16 = vld [vmem:[%s13721_s1 + $0x78] sm:$0xff] }
 0x30c   : > { %v10192_v5 = vpop.f32.mrf.mxu1  ;;  %v3036_v55 = vsel %vm2647_vm3, %v11670_v62, -inf }
 0x30d   : > { %3037 = vmax.xlane.f32.xlu0 %v3036_v55  ;;  %v2785_v34 = vpop.f32.mrf.mxu0  ;;  %v3042_v18 = vsel %vm2647_vm3, %v11673_v43, -inf  ;;  %v858_v5 = vadd.f32 %v11628_v40, %v830_v16 }
 0x30e   : > { %v2832_v37 = vpop.f32.mrf.mxu1  ;;  %v11678_v17 = vadd.f32 %v2785_v34, %v848_v31 }
 0x30f   : > { %v10187_v20 = vpop.f32.mrf.mxu0  ;;  %v11680_v38 = vadd.f32 %v2832_v37, %v850_v29 }
 0x310   : > { %v10193_v49 = vpop.f32.mrf.mxu1  ;;  %v3039_v24 = vsel %vm2647_vm3, %v11678_v17, -inf }
 0x311   : > { %3043 = vmax.xlane.f32.xlu0 %v3042_v18  ;;  %3040 = vmax.xlane.f32.xlu1 %v3039_v24  ;;  %v3045_v36 = vsel %vm2647_vm3, %v11680_v38, -inf }
 0x315   : > { %3046 = vmax.xlane.f32.xlu1 %v3045_v36 }
 0x31e   : > { %v2876_v46 = vpop.f32.mrf.mxu0  ;;  %v2923_v3 = vpop.f32.mrf.mxu1 }
 0x31f   : > { %v11702_v4 = vadd.f32 %v2876_v46, %v851_v19  ;;  %v11708_v0 = vadd.f32 %v2923_v3, %v853_v63  ;;  %v11766_v19 = vpop.permute.xlu0 %2071 }
 0x320   : > { %v10198_v28 = vpop.f32.mrf.mxu0  ;;  %v10204_v30 = vpop.f32.mrf.mxu1 }
 0x321   : > { %v3048_v56 = vsel %vm2647_vm3, %v11702_v4, -inf  ;;  %v3054_v57 = vsel %vm2647_vm3, %v11708_v0, -inf }
 0x322   : > { %v2926_v33 = vpop.f32.mrf.mxu1  ;;  %3049 = vmax.xlane.f32.xlu0 %v3048_v56  ;;  %v2879_v23 = vpop.f32.mrf.mxu0 }
 0x323   : > { %v11716_v6 = vadd.f32 %v2879_v23, %v852_v7  ;;  %v11722_v47 = vadd.f32 %v2926_v33, %v854_v60 }
 0x324   : > { %v10199_v52 = vpop.f32.mrf.mxu0  ;;  %v10205_v11 = vpop.f32.mrf.mxu1 }
 0x325   : > { %v3051_v26 = vsel %vm2647_vm3, %v11716_v6, -inf  ;;  %v3057_v29 = vsel %vm2647_vm3, %v11722_v47, -inf }
 0x326   : > { %v3017_v8 = vpop.f32.mrf.mxu1  ;;  %3055 = vmax.xlane.f32.xlu0 %v3054_v57  ;;  %3052 = vmax.xlane.f32.xlu1 %v3051_v26  ;;  %v2970_v48 = vpop.f32.mrf.mxu0 }
 0x327   : > { %v11732_v39 = vadd.f32 %v2970_v48, %v855_v59  ;;  %v11735_v54 = vadd.f32 %v3017_v8, %v857_v42 }
 0x328   : > { %v10210_v31 = vpop.f32.mrf.mxu0  ;;  %v10216_v58 = vpop.f32.mrf.mxu1 }
 0x329   : > { %v3060_v55 = vsel %vm2647_vm3, %v11732_v39, -inf  ;;  %v3066_v36 = vsel %vm2647_vm3, %v11735_v54, -inf }
 0x32a   : > { %v3020_v37 = vpop.f32.mrf.mxu1  ;;  %3058 = vmax.xlane.f32.xlu1 %v3057_v29  ;;  %3061 = vmax.xlane.f32.xlu0 %v3060_v55  ;;  %v2973_v34 = vpop.f32.mrf.mxu0 }
 0x32b   : > { %v11742_v20 = vadd.f32 %v2973_v34, %v856_v61  ;;  %v11744_v24 = vadd.f32 %v3020_v37, %v858_v5 }
 0x32c   : > { %v10211_v49 = vpop.f32.mrf.mxu0  ;;  %v10217_v18 = vpop.f32.mrf.mxu1 }
 0x32d   : > { %v3063_v40 = vsel %vm2647_vm3, %v11742_v20, -inf  ;;  %v3069_v25 = vsel %vm2647_vm3, %v11744_v24, -inf }
 0x32e   : > { %3067 = vmax.xlane.f32.xlu0 %v3066_v36  ;;  %3064 = vmax.xlane.f32.xlu1 %v3063_v40 }
 0x332   : > { %3070 = vmax.xlane.f32.xlu1 %v3069_v25 }
 0x343   : > { %2077 = vrot.lane.b32.xlu1 %v11043_v50, %s13747_s30 }
 0x344   : > { %2079 = vrot.lane.b32.xlu0 %v11051_v53, %s13747_s30 }
 0x347   : > { %2083 = vrot.lane.b32.xlu1 %v11043_v50, %s13745_s16 }
 0x348   : > { %2085 = vrot.lane.b32.xlu0 %v11051_v53, %s13745_s16 }
 0x34b   : > { %2089 = vrot.lane.b32.xlu1 %v11043_v50, %s13743_s17 }
 0x34c   : > { %2091 = vrot.lane.b32.xlu0 %v11051_v53, %s13743_s17 }
 0x386   : > { %v3026_v14 = vpop.xlane.xlu1 %3025 }
 0x387   : > { %v3072_v46 = vsub.f32 %v11638_v27, %v3026_v14 }
 0x389   : > { %v3088_v51 = vmul.f32 1.442695, %v3072_v46 }
 0x38b   : > { %10668 = vpow2.f32 %v3088_v51 }
 0x38c   : > { %v3032_v63 = vpop.xlane.xlu0 %3031 }
 0x38d   : > { %v3074_v3 = vsub.f32 %v11641_v13, %v3032_v63 }
 0x38f   : > { %v3092_v7 = vmul.f32 1.442695, %v3074_v3 }
 0x390   : > { %v3029_v28 = vpop.xlane.xlu0 %3028  ;;  %v3035_v30 = vpop.xlane.xlu1 %3034 }
 0x391   : > { %v3073_v50 = vsub.f32 %v11648_v41, %v3029_v28  ;;  %v3075_v32 = vsub.f32 %v11653_v22, %v3035_v30  ;;  %10670 = vpow2.f32 %v3092_v7 }
 0x393   : > { %v3090_v53 = vmul.f32 1.442695, %v3073_v50  ;;  %v3094_v60 = vmul.f32 1.442695, %v3075_v32 }
 0x395   : > { %10672 = vpow2.f32 %v3090_v53 }
 0x396   : > { %v3038_v56 = vpop.xlane.xlu0 %3037  ;;  %10674 = vpow2.f32 %v3094_v60 }
 0x397   : > { %v3076_v33 = vsub.f32 %v11670_v62, %v3038_v56 }
 0x398   : > { %v11775_v52 = vpop.eup %10668 }
 0x399   : > { %v3096_v27 = vmul.f32 1.442695, %v3076_v33  ;;  %v3120_v44 = vsel %vm2647_vm3, %v11775_v52, 0.0 }
 0x39a   : > { %v3044_v23 = vpop.xlane.xlu0 %3043  ;;  %v3041_v13 = vpop.xlane.xlu1 %3040  ;;  %3121 = vadd.xlane.f32.xlu0 %v3120_v44 }
 0x39b   : > { %10676 = vpow2.f32 %v3096_v27  ;;  %v3078_v1 = vsub.f32 %v11673_v43, %v3044_v23  ;;  %v3077_v59 = vsub.f32 %v11678_v17, %v3041_v13 }
 0x39d   : > { %v3100_v41 = vmul.f32 1.442695, %v3078_v1  ;;  %v3098_v22 = vmul.f32 1.442695, %v3077_v59 }
 0x39e   : > { %v3047_v11 = vpop.xlane.xlu1 %3046  ;;  %v11779_v42 = vpop.eup %10670 }
 0x39f   : > { %10678 = vpow2.f32 %v3100_v41  ;;  %v3079_v62 = vsub.f32 %v11680_v38, %v3047_v11  ;;  %v3126_v43 = vsel %vm2647_vm3, %v11779_v42, 0.0 }
 0x3a0   : > { %10680 = vpow2.f32 %v3098_v22  ;;  %3127 = vadd.xlane.f32.xlu0 %v3126_v43 }
 0x3a1   : > { %v3102_v57 = vmul.f32 1.442695, %v3079_v62 }
 0x3a2   : > { %v11782_v26 = vpop.eup %10672 }
 0x3a3   : > { %10682 = vpow2.f32 %v3102_v57  ;;  %v3123_v17 = vsel %vm2647_vm3, %v11782_v26, 0.0  ;;  %v11788_v8 = vpop.eup %10674 }
 0x3a4   : > { %3124 = vadd.xlane.f32.xlu1 %v3123_v17  ;;  %v3129_v48 = vsel %vm2647_vm3, %v11788_v8, 0.0 }
 0x3a8   : > { %v11792_v38 = vpop.eup %10676  ;;  %3130 = vadd.xlane.f32.xlu1 %v3129_v48 }
 0x3a9   : > { %v3132_v31 = vsel %vm2647_vm3, %v11792_v38, 0.0 }
 0x3ab   : > { %v3050_v16 = vpop.xlane.xlu0 %3049 }
 0x3ac   : > { %v3080_v61 = vsub.f32 %v11702_v4, %v3050_v16  ;;  %v11797_v58 = vpop.eup %10678  ;;  %3133 = vadd.xlane.f32.xlu1 %v3132_v31 }
 0x3ad   : > { %v3138_v29 = vsel %vm2647_vm3, %v11797_v58, 0.0  ;;  %v11801_v55 = vpop.eup %10680 }
 0x3ae   : > { %v3104_v5 = vmul.f32 1.442695, %v3080_v61  ;;  %3139 = vadd.xlane.f32.xlu0 %v3138_v29  ;;  %v3135_v25 = vsel %vm2647_vm3, %v11801_v55, 0.0 }
 0x3af   : > { %v3056_v37 = vpop.xlane.xlu0 %3055  ;;  %v3053_v34 = vpop.xlane.xlu1 %3052 }
 0x3b0   : > { %10684 = vpow2.f32 %v3104_v5  ;;  %v3082_v49 = vsub.f32 %v11708_v0, %v3056_v37  ;;  %v3081_v4 = vsub.f32 %v11716_v6, %v3053_v34  ;;  %v11805_v18 = vpop.eup %10682 }
 0x3b1   : > { %v3141_v14 = vsel %vm2647_vm3, %v11805_v18, 0.0 }
 0x3b2   : > { %v3108_v36 = vmul.f32 1.442695, %v3082_v49  ;;  %v3106_v40 = vmul.f32 1.442695, %v3081_v4  ;;  %3136 = vadd.xlane.f32.xlu0 %v3135_v25  ;;  %3142 = vadd.xlane.f32.xlu1 %v3141_v14 }
 0x3b3   : > { %v3062_v63 = vpop.xlane.xlu0 %3061  ;;  %v3059_v46 = vpop.xlane.xlu1 %3058 }
 0x3b4   : > { %10686 = vpow2.f32 %v3108_v36  ;;  %v3084_v3 = vsub.f32 %v11732_v39, %v3062_v63  ;;  %v3083_v0 = vsub.f32 %v11722_v47, %v3059_v46 }
 0x3b5   : > { %10688 = vpow2.f32 %v3106_v40 }
 0x3b6   : > { %v3110_v6 = vmul.f32 1.442695, %v3083_v0  ;;  %v3112_v51 = vmul.f32 1.442695, %v3084_v3 }
 0x3b7   : > { %v3068_v7 = vpop.xlane.xlu0 %3067  ;;  %v3065_v28 = vpop.xlane.xlu1 %3064 }
 0x3b8   : > { %v3086_v30 = vsub.f32 %v11735_v54, %v3068_v7  ;;  %v3085_v50 = vsub.f32 %v11742_v20, %v3065_v28  ;;  %10690 = vpow2.f32 %v3110_v6 }
 0x3b9   : > { %10692 = vpow2.f32 %v3112_v51 }
 0x3ba   : > { %v3114_v32 = vmul.f32 1.442695, %v3085_v50  ;;  %v3116_v53 = vmul.f32 1.442695, %v3086_v30 }
 0x3bb   : > { %v3071_v60 = vpop.xlane.xlu1 %3070  ;;  %v2080_v43 = vpop.permute.xlu0 %2079 }
 0x3bc   : > { %v3087_v56 = vsub.f32 %v11744_v24, %v3071_v60  ;;  %10694 = vpow2.f32 %v3114_v32 }
 0x3bd   : > { %v11816_v33 = vpop.eup %10684  ;;  %10696 = vpow2.f32 %v3116_v53 }
 0x3be   : > { %v3118_v47 = vmul.f32 1.442695, %v3087_v56  ;;  %v3144_v39 = vsel %vm2647_vm3, %v11816_v33, 0.0 }
 0x3bf   : > { %3145 = vadd.xlane.f32.xlu0 %v3144_v39  ;;  %v2078_v17 = vpop.permute.xlu1 %2077  ;;  %v2086_v48 = vpop.permute.xlu0 %2085 }
 0x3c0   : > { %10698 = vpow2.f32 %v3118_v47  ;;  %v2263_v40 = vcombine.low %v11764_v45, %v2086_v48  ;;  %v2264_v14 = vcombine.high %v11764_v45, %v2086_v48 }
 0x3c1   : > { %v11820_v54 = vpop.eup %10686 }
 0x3c2   : > { %v11822_v20 = vpop.eup %10688  ;;  %v3150_v27 = vsel %vm2647_vm3, %v11820_v54, 0.0  ;;  %v2271_v7 = vrot.slane %v2263_v40, %v11130_v12  ;;  %v2278_v45 = vrot.slane %v2264_v14, %v11130_v12 }
 0x3c3   : > { %v3147_v24 = vsel %vm2647_vm3, %v11822_v20, 0.0  ;;  %3151 = vadd.xlane.f32.xlu0 %v3150_v27  ;;  %v2084_v16 = vpop.permute.xlu1 %2083  ;;  %v2092_v61 = vpop.permute.xlu0 %2091 }
 0x3c4   : > { %3148 = vadd.xlane.f32.xlu1 %v3147_v24  ;;  %v2279_v34 = vcombine.low %v2080_v43, %v2092_v61  ;;  %v2127_v49 = vcombine.low %v11766_v19, %v2084_v16  ;;  %v2280_v4 = vcombine.high %v2080_v43, %v2092_v61  ;;  %v2128_v36 = vcombine.high %v11766_v19, %v2084_v16 }
 0x3c5   : > { %v11828_v23 = vpop.eup %10690 }
 0x3c6   : > { %v3153_v13 = vsel %vm2647_vm3, %v11828_v23, 0.0  ;;  %v11832_v1 = vpop.eup %10692  ;;  %v2287_v0 = vrot.slane %v2279_v34, %v11130_v12  ;;  %v2135_v6 = vrot.slane %v2127_v49, %v11130_v12  ;;  %v2294_v51 = vrot.slane %v2280_v4, %v11130_v12 }
 0x3c7   : > { %v3156_v41 = vsel %vm2647_vm3, %v11832_v1, 0.0  ;;  %v2090_v31 = vpop.permute.xlu1 %2089  ;;  %v2142_v19 = vrot.slane %v2128_v36, %v11130_v12 }
 0x3c8   : > { %3154 = vadd.xlane.f32.xlu1 %v3153_v13  ;;  %v2143_v5 = vcombine.low %v2078_v17, %v2090_v31  ;;  %v2144_v37 = vcombine.high %v2078_v17, %v2090_v31  ;;  %v2327_v60 = vcombine.low %v2271_v7, %v2287_v0  ;;  %v2328_v56 = vcombine.high %v2271_v7, %v2287_v0 }
 0x3c9   : > { %v11834_v59 = vpop.eup %10694  ;;  %v2343_v47 = vcombine.low %v2278_v45, %v2294_v51  ;;  %v2344_v39 = vcombine.high %v2278_v45, %v2294_v51 }
 0x3ca   : > { %v3159_v22 = vsel %vm2647_vm3, %v11834_v59, 0.0  ;;  %v11840_v11 = vpop.eup %10696  ;;  %v2151_v25 = vrot.slane %v2143_v5, %v11130_v12  ;;  %v2158_v63 = vrot.slane %v2144_v37, %v11130_v12 }
 0x3cb   : > { %3160 = vadd.xlane.f32.xlu0 %v3159_v22  ;;  %v3162_v62 = vsel %vm2647_vm3, %v11840_v11, 0.0  ;;  %v2351_v43 = vrot.slane %v2343_v47, %v11133_v15  ;;  %v2358_v17 = vrot.slane %v2344_v39, %v11133_v15 }
 0x3cc   : > { %3157 = vadd.xlane.f32.xlu1 %v3156_v41  ;;  %v2191_v28 = vcombine.low %v2135_v6, %v2151_v25  ;;  %v2192_v30 = vcombine.high %v2135_v6, %v2151_v25  ;;  %v2207_v50 = vcombine.low %v2142_v19, %v2158_v63  ;;  %v2208_v32 = vcombine.high %v2142_v19, %v2158_v63 }
 0x3cd   : > { %v11842_v44 = vpop.eup %10698  ;;  %v9763_v4 = vcombine.low %v2351_v43, %v2358_v17  ;;  %v9765_v36 = vcombine.high %v2351_v43, %v2358_v17 }
 0x3ce   : > { %v3165_v57 = vsel %vm2647_vm3, %v11842_v44, 0.0  ;;  %v2199_v27 = vrot.slane %v2191_v28, %v11133_v15  ;;  %v2206_v24 = vrot.slane %v2192_v30, %v11133_v15  ;;  %v2215_v13 = vrot.slane %v2207_v50, %v11133_v15 }
 0x3cf   : > { %3163 = vadd.xlane.f32.xlu0 %v3162_v62  ;;  %v2222_v41 = vrot.slane %v2208_v32, %v11133_v15  ;;  %v2335_v62 = vrot.slane %v2327_v60, %v11133_v15  ;;  %v11892_v30 = vrot.slane %v9765_v36, %v11130_v12 }
 0x3d0   : > { %3166 = vadd.xlane.f32.xlu1 %v3165_v57  ;;  %v2342_v57 = vrot.slane %v2328_v56, %v11133_v15  ;;  %v9751_v16 = vcombine.low %v2199_v27, %v2206_v24  ;;  %v9753_v31 = vcombine.high %v2199_v27, %v2206_v24 }
 0x3d1   : > { %v9755_v5 = vcombine.low %v2215_v13, %v2222_v41 }
 0x3d2   : > { %v9759_v37 = vcombine.low %v2335_v62, %v2342_v57  ;;  %v9761_v49 = vcombine.high %v2335_v62, %v2342_v57  ;;  %v11869_v14 = vrot.slane %v9751_v16, %v11130_v12  ;;  %v11874_v0 = vrot.slane %v9753_v31, %v11130_v12 }
 0x3d3   : > { %v11877_v6 = vrot.slane %v9755_v5, %v11130_v12 }
 0x3d4   : > { %v11883_v28 = vrot.slane %v9759_v37, %v11130_v12  ;;  %v2447_v32 = vcombine.low %v11869_v14, %v11874_v0 }
 0x423   : > { %v3122_v29 = vpop.xlane.xlu0 %3121 }
 0x424   : > { %10700 = vrcp.f32 %v3122_v29  ;;  %v9757_v29 = vcombine.high %v2215_v13, %v2222_v41 }
 0x426   : > { %v11880_v51 = vrot.slane %v9757_v29, %v11130_v12 }
 0x429   : > { %v3128_v46 = vpop.xlane.xlu0 %3127 }
 0x42d   : > { %v3125_v3 = vpop.xlane.xlu1 %3124 }
 0x42e   : > { %10702 = vrcp.f32 %v3125_v3 }
 0x42f   : > { %10704 = vrcp.f32 %v3128_v46 }
 0x431   : > { %v3131_v53 = vpop.xlane.xlu1 %3130  ;;  %v10701_v61 = vpop.eup %10700 }
 0x432   : > { %10706 = vrcp.f32 %v3131_v53  ;;  %v3184_v63 = vmul.f32 %v10701_v61, %v11775_v52  ;;  %v11886_v52 = vrot.slane %v9761_v49, %v11130_v12  ;;  %v2479_v53 = vcombine.low %v11877_v6, %v11880_v51 }
 0x434   : > { %v2583_v56 = vcombine.low %v11883_v28, %v11886_v52 }
 0x435   : > { %v3134_v22 = vpop.xlane.xlu1 %3133 }
 0x436   : > { %10708 = vrcp.f32 %v3134_v22  ;;  %v2591_v27 = vrot.slane %v2583_v56, %v11133_v15 }
 0x437   : > { %v3140_v48 = vpop.xlane.xlu0 %3139 }
 0x438   : > { %10710 = vrcp.f32 %v3140_v48 }
 0x43b   : > { %v10703_v34 = vpop.eup %10702  ;;  %v3137_v40 = vpop.xlane.xlu0 %3136 }
 0x43c   : > { %v3143_v25 = vpop.xlane.xlu1 %3142  ;;  %10712 = vrcp.f32 %v3137_v40  ;;  %v3185_v46 = vmul.f32 %v10703_v34, %v11782_v26  ;;  %v10705_v3 = vpop.eup %10704  ;;  %v11889_v26 = vrot.slane %v9763_v4, %v11130_v12  ;;  %v2584_v4 = vcombine.high %v11883_v28, %v11886_v52 }
 0x43d   : > { %10714 = vrcp.f32 %v3143_v25  ;;  %v3186_v45 = vmul.f32 %v10705_v3, %v11779_v42 }
 0x43e   : > { %v3200_v19 = vpack.c.bf16 %v3185_v46, %v3184_v63  ;;  %v2615_v42 = vcombine.low %v11889_v26, %v11892_v30  ;;  %v2616_v36 = vcombine.high %v11889_v26, %v11892_v30 }
 0x43f   : > { %v10707_v7 = vpop.eup %10706 }
 0x440   : > { %10221 = vmatmul.mubr.msk.bf16.vlgmr.msra.gmra.mxu0 %vm2647_vm3, %v3200_v19  ;;  %v3187_v50 = vmul.f32 %v10707_v7, %v11788_v8  ;;  %v2487_v8 = vrot.slane %v2479_v53, %v11133_v15  ;;  %v2623_v24 = vrot.slane %v2615_v42, %v11133_v15  ;;  %v2630_v3 = vrot.slane %v2616_v36, %v11133_v15 }
 0x441   : > { %10231 = vmatpush3.bf16.msra.mxu0 %v11596_v21  ;;  %10232 = vmatprep.mubr.msk.bf16.mxu0 %vm10822_vm2, %v13751_v2  ;;  %v2455_v21 = vrot.slane %v2447_v32, %v11133_v15 }
 0x442   : > { %v3201_v60 = vpack.c.bf16 %v3187_v50, %v3186_v45  ;;  %10242 = vmatprep.subr.bf16.mxu0 %v13751_v2  ;;  %v2635_v61 = vcombine.low %v2591_v27, %v2623_v24  ;;  %v2636_v29 = vcombine.high %v2591_v27, %v2623_v24 }
 0x443   : > { %v10709_v47 = vpop.eup %10708  ;;  %v2499_v22 = vcombine.low %v2455_v21, %v2487_v8  ;;  %v2500_v43 = vcombine.high %v2455_v21, %v2487_v8 }
 0x444   : > { %10227 = vmatmul.mubr.msk.bf16.vlgmr.msra.gmra.mxu1 %vm2647_vm3, %v3201_v60  ;;  %v3188_v62 = vmul.f32 %v10709_v47, %v11792_v38 }
 0x445   : > { %10237 = vmatpush3.bf16.msra.mxu1 %v11598_v35  ;;  %10238 = vmatprep.mubr.msk.bf16.mxu1 %vm10822_vm2, %v13751_v2  ;;  %v10711_v13 = vpop.eup %10710  ;;  %v2643_v34 = vpack.c.bf16 %v2635_v61, %v2499_v22  ;;  %v2644_v49 = vpack.c.bf16 %v2636_v29, %v2500_v43 }
 0x446   : > { %10248 = vmatprep.subr.bf16.mxu1 %v13751_v2  ;;  %v3190_v48 = vmul.f32 %v10711_v13, %v11797_v58  ;;  %v2448_v58 = vcombine.high %v11869_v14, %v11874_v0  ;;  %v2598_v14 = vrot.slane %v2584_v4, %v11133_v15 }
 0x448   : > { %v3146_v39 = vpop.xlane.xlu0 %3145  ;;  %v2462_v63 = vrot.slane %v2448_v58, %v11133_v15  ;;  %v2637_v26 = vcombine.low %v2598_v14, %v2630_v3 }
 0x449   : > { %v10713_v41 = vpop.eup %10712  ;;  %10716 = vrcp.f32 %v3146_v39 }
 0x44a   : > { %v10715_v35 = vpop.eup %10714  ;;  %v3189_v57 = vmul.f32 %v10713_v41, %v11801_v55  ;;  %v2480_v55 = vcombine.high %v11877_v6, %v11880_v51 }
 0x44b   : > { %v3191_v16 = vmul.f32 %v10715_v35, %v11805_v18 }
 0x44c   : > { %v3152_v17 = vpop.xlane.xlu0 %3151  ;;  %v3202_v5 = vpack.c.bf16 %v3189_v57, %v3188_v62  ;;  %v2494_v46 = vrot.slane %v2480_v55, %v11133_v15 }
 0x44d   : > { %v3149_v31 = vpop.xlane.xlu1 %3148  ;;  %10718 = vrcp.f32 %v3152_v17  ;;  %v3203_v37 = vpack.c.bf16 %v3191_v16, %v3190_v48 }
 0x44e   : > { %10720 = vrcp.f32 %v3149_v31  ;;  %10233 = vmatmul.mubr.msk.bf16.vlgmr.msra.gmra.mxu0 %vm2647_vm3, %v3202_v5  ;;  %v2501_v28 = vcombine.low %v2462_v63, %v2494_v46  ;;  %v2502_v53 = vcombine.high %v2462_v63, %v2494_v46 }
 0x44f   : > { %10239 = vmatmul.mubr.msk.bf16.vlgmr.msra.gmra.mxu1 %vm2647_vm3, %v3203_v37  ;;  %10243 = vmatpush3.bf16.msra.mxu0 %v2643_v34 }
 0x450   : > { %10249 = vmatpush3.bf16.msra.mxu1 %v2644_v49  ;;  %10244 = vmatprep.mubr.msk.bf16.mxu0 %vm10822_vm2, %v13751_v2  ;;  %v2645_v32 = vpack.c.bf16 %v2637_v26, %v2501_v28 }
 0x451   : > { %v3155_v38 = vpop.xlane.xlu1 %3154  ;;  %10250 = vmatprep.mubr.msk.bf16.mxu1 %vm10822_vm2, %v13751_v2  ;;  %10254 = vmatprep.subr.bf16.mxu0 %v13751_v2 }
 0x452   : > { %10722 = vrcp.f32 %v3155_v38  ;;  %10260 = vmatprep.subr.bf16.mxu1 %v13751_v2 }
 0x454   : > { %v3161_v40 = vpop.xlane.xlu0 %3160 }
 0x455   : > { %v3158_v18 = vpop.xlane.xlu1 %3157 }
 0x456   : > { %10724 = vrcp.f32 %v3158_v18  ;;  %v10717_v25 = vpop.eup %10716 }
 0x457   : > { %10726 = vrcp.f32 %v3161_v40  ;;  %v3192_v51 = vmul.f32 %v10717_v25, %v11816_v33  ;;  %v2638_v33 = vcombine.high %v2598_v14, %v2630_v3 }
 0x458   : > { %v3164_v6 = vpop.xlane.xlu0 %3163 }
 0x459   : > { %10728 = vrcp.f32 %v3164_v6  ;;  %v3167_v7 = vpop.xlane.xlu1 %3166  ;;  %v2646_v42 = vpack.c.bf16 %v2638_v33, %v2502_v53 }
 0x45a   : > { %v10719_v0 = vpop.eup %10718  ;;  %10730 = vrcp.f32 %v3167_v7 }
 0x45b   : > { %v10721_v19 = vpop.eup %10720  ;;  %v3194_v45 = vmul.f32 %v10719_v0, %v11820_v54 }
 0x45c   : > { %v3193_v52 = vmul.f32 %v10721_v19, %v11822_v20 }
 0x45e   : > { %v3204_v30 = vpack.c.bf16 %v3193_v52, %v3192_v51 }
 0x45f   : > { %v10723_v50 = vpop.eup %10722 }
 0x460   : > { %10245 = vmatmul.mubr.msk.bf16.vlgmr.msra.gmra.mxu0 %vm2647_vm3, %v3204_v30  ;;  %v3195_v60 = vmul.f32 %v10723_v50, %v11828_v23 }
 0x461   : > { %10255 = vmatpush3.bf16.msra.mxu0 %v2645_v32  ;;  %10256 = vmatprep.mubr.msk.bf16.mxu0 %vm10822_vm2, %v13751_v2 }
 0x462   : > { %v3205_v56 = vpack.c.bf16 %v3195_v60, %v3194_v45  ;;  %10266 = vmatprep.subr.bf16.mxu0 %v13751_v2 }
 0x463   : > { %v10725_v20 = vpop.eup %10724 }
 0x464   : > { %v10727_v21 = vpop.eup %10726  ;;  %10251 = vmatmul.mubr.msk.bf16.vlgmr.msra.gmra.mxu1 %vm2647_vm3, %v3205_v56  ;;  %v3196_v54 = vmul.f32 %v10725_v20, %v11832_v1 }
 0x465   : > { %10261 = vmatpush3.bf16.msra.mxu1 %v2646_v42  ;;  %10262 = vmatprep.mubr.msk.bf16.mxu1 %vm10822_vm2, %v13751_v2  ;;  %v3197_v23 = vmul.f32 %v10727_v21, %v11834_v59  ;;  %v10576_v59 = vld [vmem:[%s13726_s6 + $0x38] sm:$0xff]  }
 0x466   : > { %10286 = vmatprep.subr.bf16.mxu1 %v13751_v2  ;;  %v10729_v47 = vpop.eup %10728 }
 0x467   : > { %v3206_v8 = vpack.c.bf16 %v3197_v23, %v3196_v54  ;;  %v10731_v39 = vpop.eup %10730  ;;  %v3198_v27 = vmul.f32 %v10729_v47, %v11840_v11 }
 0x468   : > { %v3199_v24 = vmul.f32 %v10731_v39, %v11842_v44 }
 0x469   : > { %10257 = vmatmul.mubr.msk.bf16.vlgmr.msra.gmra.mxu0 %vm2647_vm3, %v3206_v8 }
 0x46a   : > { %10282 = vmatprep.mubr.msk.bf16.mxu0 %vm10822_vm2, %v13751_v2  ;;  %v3207_v1 = vpack.c.bf16 %v3199_v24, %v3198_v27  ;;  %10267 = vmatpush3.bf16.msra.mxu0 %v10576_v59 }
 0x46b   : > { %10268 = vmatprep.subr.bf16.mxu0 %v13751_v2 }
 0x46c   : > { %10263 = vmatmul.mubr.msk.bf16.vlgmr.msra.gmra.mxu1 %vm2647_vm3, %v3207_v1 }
 0x46d   : > { %10302 = vmatprep.mubr.msk.bf16.mxu1 %vm10822_vm2, %v13751_v2 }
 0x500   : > { %v3245_v13 = vpop.f32.mrf.mxu0 }
 0x502   : > { %v10222_v11 = vpop.f32.mrf.mxu0 }
 0x504   : > { %v3248_v41 = vpop.f32.mrf.mxu0  ;;  %v3289_v44 = vpop.f32.mrf.mxu1 }
 0x506   : > { %v10223_v22 = vpop.f32.mrf.mxu0  ;;  %v10228_v35 = vpop.f32.mrf.mxu1 }
 0x508   : > { %v3292_v62 = vpop.f32.mrf.mxu1 }
 0x50a   : > { %v10229_v57 = vpop.f32.mrf.mxu1 }
 0x50b   : > { %v10577_v57 = vld [vmem:[%s13726_s6 + $0x30] sm:$0xff]  }
 0x50c   : > { %10269 = vmatpush3.bf16.msra.mxu0 %v10577_v57 }
 0x50d   : > { %10270 = vmatprep.subr.bf16.mxu0 %v13751_v2 }
 0x50e   : > { %v3333_v43 = vpop.f32.mrf.mxu0 }
 0x50f   : > { %v3560_v17 = vcombine.low %v3245_v13, %v3333_v43  ;;  %v3561_v48 = vcombine.high %v3245_v13, %v3333_v43  ;;  %v3377_v16 = vpop.f32.mrf.mxu1 }
 0x510   : > { %v3576_v61 = vcombine.low %v3289_v44, %v3377_v16  ;;  %v3577_v31 = vcombine.high %v3289_v44, %v3377_v16  ;;  %v10234_v5 = vpop.f32.mrf.mxu0 }
 0x511   : > { %v3568_v29 = vrot.slane %v3560_v17, %v11130_v12  ;;  %v3575_v37 = vrot.slane %v3561_v48, %v11130_v12  ;;  %v10240_v34 = vpop.f32.mrf.mxu1 }
 0x512   : > { %v3584_v49 = vrot.slane %v3576_v61, %v11130_v12  ;;  %v3591_v38 = vrot.slane %v3577_v31, %v11130_v12  ;;  %v3336_v58 = vpop.f32.mrf.mxu0 }
 0x513   : > { %v3696_v55 = vcombine.low %v3248_v41, %v3336_v58  ;;  %v3697_v18 = vcombine.high %v3248_v41, %v3336_v58  ;;  %v3380_v4 = vpop.f32.mrf.mxu1 }
 0x514   : > { %v3624_v36 = vcombine.low %v3568_v29, %v3584_v49  ;;  %v3625_v40 = vcombine.high %v3568_v29, %v3584_v49  ;;  %v3640_v25 = vcombine.low %v3575_v37, %v3591_v38  ;;  %v3641_v63 = vcombine.high %v3575_v37, %v3591_v38  ;;  %v10235_v46 = vpop.f32.mrf.mxu0  ;;  %v10578_v37 = vld [vmem:[%s13726_s6 + $0x28] sm:$0xff]  }
 0x515   : > { %v3704_v14 = vrot.slane %v3696_v55, %v11130_v12  ;;  %v3711_v3 = vrot.slane %v3697_v18, %v11130_v12  ;;  %v3712_v0 = vcombine.low %v3292_v62, %v3380_v4  ;;  %v3713_v6 = vcombine.high %v3292_v62, %v3380_v4  ;;  %v10241_v51 = vpop.f32.mrf.mxu1  ;;  %10271 = vmatpush3.bf16.msra.mxu0 %v10578_v37 }
 0x516   : > { %v3632_v19 = vrot.slane %v3624_v36, %v11133_v15  ;;  %v3639_v7 = vrot.slane %v3625_v40, %v11133_v15  ;;  %v3648_v28 = vrot.slane %v3640_v25, %v11133_v15  ;;  %v3655_v52 = vrot.slane %v3641_v63, %v11133_v15  ;;  %10272 = vmatprep.subr.bf16.mxu0 %v13751_v2 }
 0x517   : > { %v3720_v26 = vrot.slane %v3712_v0, %v11130_v12  ;;  %v3727_v30 = vrot.slane %v3713_v6, %v11130_v12 }
 0x518   : > { %v9782_v45 = vcombine.low %v3632_v19, %v3639_v7  ;;  %v9784_v50 = vcombine.high %v3632_v19, %v3639_v7  ;;  %v9786_v32 = vcombine.low %v3648_v28, %v3655_v52  ;;  %v9788_v53 = vcombine.high %v3648_v28, %v3655_v52 }
 0x519   : > { %v3760_v60 = vcombine.low %v3704_v14, %v3720_v26  ;;  %v3761_v33 = vcombine.high %v3704_v14, %v3720_v26  ;;  %v3776_v56 = vcombine.low %v3711_v3, %v3727_v30  ;;  %v3777_v20 = vcombine.high %v3711_v3, %v3727_v30  ;;  %v10579_v14 = vld [vmem:[%s13726_s6 + $0x20] sm:$0xff]  }
 0x51a   : > { %v3840_v42 = vrot.slane %v9782_v45, %v11130_v12  ;;  %v3856_v21 = vrot.slane %v9784_v50, %v11130_v12  ;;  %v3872_v54 = vrot.slane %v9786_v32, %v11130_v12  ;;  %v3888_v23 = vrot.slane %v9788_v53, %v11130_v12  ;;  %10273 = vmatpush3.bf16.msra.mxu0 %v10579_v14  ;;  %v10580_v50 = vld [vmem:[%s13726_s6 + $0x18] sm:$0xff]  }
 0x51b   : > { %v3768_v8 = vrot.slane %v3760_v60, %v11133_v15  ;;  %v3775_v47 = vrot.slane %v3761_v33, %v11133_v15  ;;  %v3784_v39 = vrot.slane %v3776_v56, %v11133_v15  ;;  %v3791_v27 = vrot.slane %v3777_v20, %v11133_v15  ;;  %10274 = vmatprep.subr.bf16.mxu0 %v13751_v2 }
 0x51c   : > { %v3897_v24 = vcombine.high %v3840_v42, %v3856_v21  ;;  %v3929_v1 = vcombine.high %v3872_v54, %v3888_v23  ;;  %v3896_v59 = vcombine.low %v3840_v42, %v3856_v21  ;;  %v3928_v13 = vcombine.low %v3872_v54, %v3888_v23  ;;  %v10581_v21 = vld [vmem:[%s13726_s6 + $0x10] sm:$0xff]  }
 0x51d   : > { %v9790_v11 = vcombine.low %v3768_v8, %v3775_v47  ;;  %v9792_v41 = vcombine.high %v3768_v8, %v3775_v47  ;;  %v9794_v44 = vcombine.low %v3784_v39, %v3791_v27  ;;  %v9796_v22 = vcombine.high %v3784_v39, %v3791_v27 }
 0x51e   : > { %v11989_v35 = vrot.slane %v3896_v59, %v11133_v15  ;;  %v11992_v62 = vrot.slane %v3928_v13, %v11133_v15  ;;  %v3911_v31 = vrot.slane %v3897_v24, %v11133_v15  ;;  %v3943_v5 = vrot.slane %v3929_v1, %v11133_v15  ;;  %10275 = vmatpush3.bf16.msra.mxu0 %v10580_v50 }
 0x51f   : > { %v3976_v43 = vrot.slane %v9790_v11, %v11130_v12  ;;  %v3992_v17 = vrot.slane %v9792_v41, %v11130_v12  ;;  %v4008_v48 = vrot.slane %v9794_v44, %v11130_v12  ;;  %v4024_v16 = vrot.slane %v9796_v22, %v11130_v12  ;;  %10276 = vmatprep.subr.bf16.mxu0 %v13751_v2 }
 0x520   : > { %v3421_v61 = vpop.f32.mrf.mxu0  ;;  %v3960_v29 = vcombine.low %v11989_v35, %v11992_v62  ;;  %v3962_v46 = vcombine.low %v3911_v31, %v3943_v5  ;;  %v3961_v51 = vcombine.high %v11989_v35, %v11992_v62  ;;  %v3963_v53 = vcombine.high %v3911_v31, %v3943_v5 }
 0x521   : > { %v4033_v49 = vcombine.high %v3976_v43, %v3992_v17  ;;  %v4065_v38 = vcombine.high %v4008_v48, %v4024_v16  ;;  %v4032_v58 = vcombine.low %v3976_v43, %v3992_v17  ;;  %v4064_v55 = vcombine.low %v4008_v48, %v4024_v16 }
 0x522   : > { %v10246_v34 = vpop.f32.mrf.mxu0  ;;  %10277 = vmatpush3.bf16.msra.mxu0 %v10581_v21 }
 0x523   : > { %v4047_v36 = vrot.slane %v4033_v49, %v11133_v15  ;;  %v4079_v40 = vrot.slane %v4065_v38, %v11133_v15  ;;  %v12012_v25 = vrot.slane %v4032_v58, %v11133_v15  ;;  %v12015_v63 = vrot.slane %v4064_v55, %v11133_v15  ;;  %10278 = vmatprep.subr.bf16.mxu0 %v13751_v2 }
 0x524   : > { %v3465_v18 = vpop.f32.mrf.mxu1  ;;  %v3424_v4 = vpop.f32.mrf.mxu0 }
 0x525   : > { %v4098_v6 = vcombine.low %v4047_v36, %v4079_v40  ;;  %v4097_v19 = vcombine.high %v12012_v25, %v12015_v63  ;;  %v4096_v7 = vcombine.low %v12012_v25, %v12015_v63  ;;  %v4099_v30 = vcombine.high %v4047_v36, %v4079_v40 }
 0x526   : > { %v10252_v3 = vpop.f32.mrf.mxu1  ;;  %v10247_v0 = vpop.f32.mrf.mxu0 }
 0x527   : > { %v10479_v52 = vpack.i.bf16 %v4098_v6, %v3962_v46  ;;  %v10474_v26 = vpack.i.bf16 %v4097_v19, %v3961_v51  ;;  %v10484_v20 = vpack.i.bf16 %v4099_v30, %v3963_v53 }
 0x528   : > { %v3468_v28 = vpop.f32.mrf.mxu1 }
 0x529   : > { %v3509_v45 = vpop.f32.mrf.mxu0  ;;  %10480 = vrot.lane.b32.xlu1 %v10479_v52, %s13745_s16  ;;  %10475 = vrot.lane.b32.xlu0 %v10474_v26, %s13743_s17 }
 0x52a   : > { %v10253_v32 = vpop.f32.mrf.mxu1  ;;  %v3592_v60 = vcombine.low %v3421_v61, %v3509_v45  ;;  %v3593_v33 = vcombine.high %v3421_v61, %v3509_v45 }
 0x52b   : > { %v10258_v56 = vpop.f32.mrf.mxu0 }
 0x52c   : > { %v3553_v54 = vpop.f32.mrf.mxu1  ;;  %v3600_v23 = vrot.slane %v3592_v60, %v11130_v12  ;;  %v3607_v8 = vrot.slane %v3593_v33, %v11130_v12 }
 0x52d   : > { %v3512_v42 = vpop.f32.mrf.mxu0  ;;  %10485 = vrot.lane.b32.xlu1 %v10484_v20, %s13747_s30  ;;  %v3608_v47 = vcombine.low %v3465_v18, %v3553_v54  ;;  %v3609_v39 = vcombine.high %v3465_v18, %v3553_v54  ;;  %v10582_v54 = vld [vmem:[%s13726_s6 + $0x8] sm:$0xff]  }
 0x52e   : > { %v10264_v24 = vpop.f32.mrf.mxu1  ;;  %v3728_v1 = vcombine.low %v3424_v4, %v3512_v42  ;;  %v3729_v59 = vcombine.high %v3424_v4, %v3512_v42  ;;  %10279 = vmatpush3.bf16.msra.mxu0 %v10582_v54 }
 0x52f   : > { %v10259_v27 = vpop.f32.mrf.mxu0  ;;  %v3616_v13 = vrot.slane %v3608_v47, %v11130_v12  ;;  %v3623_v11 = vrot.slane %v3609_v39, %v11130_v12  ;;  %10280 = vmatprep.subr.bf16.mxu0 %v13751_v2 }
 0x530   : > { %v3556_v41 = vpop.f32.mrf.mxu1  ;;  %v3736_v17 = vrot.slane %v3728_v1, %v11130_v12  ;;  %v3743_v48 = vrot.slane %v3729_v59, %v11130_v12 }
 0x531   : > { %v3656_v44 = vcombine.low %v3600_v23, %v3616_v13  ;;  %v3657_v22 = vcombine.high %v3600_v23, %v3616_v13  ;;  %v3672_v57 = vcombine.low %v3607_v8, %v3623_v11  ;;  %v3673_v43 = vcombine.high %v3607_v8, %v3623_v11 }
 0x532   : > { %v3744_v16 = vcombine.low %v3468_v28, %v3556_v41  ;;  %v3745_v61 = vcombine.high %v3468_v28, %v3556_v41  ;;  %v10265_v31 = vpop.f32.mrf.mxu1 }
 0x533   : > { %v3664_v5 = vrot.slane %v3656_v44, %v11133_v15  ;;  %v3671_v37 = vrot.slane %v3657_v22, %v11133_v15  ;;  %v3680_v34 = vrot.slane %v3672_v57, %v11133_v15  ;;  %v3687_v49 = vrot.slane %v3673_v43, %v11133_v15  ;;  %v10583_v22 = vld [vmem:[%s13726_s6] sm:$0xff]   ;;  %v10586_v31 = vld [vmem:[%s13730_s10 + $0x74] ss:$8 sps:$4 sm:$0xff]  }
 0x534   : > { %v3752_v38 = vrot.slane %v3744_v16, %v11130_v12  ;;  %v3759_v58 = vrot.slane %v3745_v61, %v11130_v12  ;;  %10281 = vmatpush3.bf16.msra.mxu0 %v10583_v22 }
 0x535   : > { %v9783_v55 = vcombine.low %v3664_v5, %v3671_v37  ;;  %v9785_v18 = vcombine.high %v3664_v5, %v3671_v37  ;;  %v9787_v4 = vcombine.low %v3680_v34, %v3687_v49  ;;  %v9789_v36 = vcombine.high %v3680_v34, %v3687_v49  ;;  %4562 = vmatprep.subr.bf16.mxu0 %v10586_v31  ;;  %v10592_v31 = vld [vmem:[%s13730_s10 + $0x54] ss:$8 sps:$4 sm:$0xff]  }
 0x536   : > { %v3792_v40 = vcombine.low %v3736_v17, %v3752_v38  ;;  %v3793_v46 = vcombine.high %v3736_v17, %v3752_v38  ;;  %v3808_v14 = vcombine.low %v3743_v48, %v3759_v58  ;;  %v3809_v3 = vcombine.high %v3743_v48, %v3759_v58 }
 0x537   : > { %v3847_v0 = vrot.slane %v9783_v55, %v11130_v12  ;;  %v3863_v6 = vrot.slane %v9785_v18, %v11130_v12  ;;  %v3879_v51 = vrot.slane %v9787_v4, %v11130_v12  ;;  %v3895_v19 = vrot.slane %v9789_v36, %v11130_v12  ;;  %v9999_v4 = vld [vmem:[%s523_s22] sm:$0xff]  }
 0x538   : > { %v3800_v28 = vrot.slane %v3792_v40, %v11133_v15  ;;  %v3807_v52 = vrot.slane %v3793_v46, %v11133_v15  ;;  %v3816_v26 = vrot.slane %v3808_v14, %v11133_v15  ;;  %v3823_v30 = vrot.slane %v3809_v3, %v11133_v15  ;;  %v10011_v40 = vld [vmem:[%s523_s22 + $0x8] sm:$0xff]   ;;  %s13784_s22 = smov 16  }
 0x539   : > { %v3912_v45 = vcombine.low %v3847_v0, %v3863_v6  ;;  %v3944_v50 = vcombine.low %v3879_v51, %v3895_v19  ;;  %v3913_v47 = vcombine.high %v3847_v0, %v3863_v6  ;;  %v3945_v39 = vcombine.high %v3879_v51, %v3895_v19 }
 0x53a   : > { %v9791_v32 = vcombine.low %v3800_v28, %v3807_v52  ;;  %v9793_v53 = vcombine.high %v3800_v28, %v3807_v52  ;;  %v9795_v60 = vcombine.low %v3816_v26, %v3823_v30  ;;  %v9797_v33 = vcombine.high %v3816_v26, %v3823_v30 }
 0x53b   : > { %v3920_v23 = vrot.slane %v3912_v45, %v11133_v15  ;;  %v3952_v8 = vrot.slane %v3944_v50, %v11133_v15  ;;  %v3927_v57 = vrot.slane %v3913_v47, %v11133_v15  ;;  %v3959_v43 = vrot.slane %v3945_v39, %v11133_v15 }
 0x53c   : > { %v3983_v56 = vrot.slane %v9791_v32, %v11130_v12  ;;  %v3999_v20 = vrot.slane %v9793_v53, %v11130_v12  ;;  %v4015_v42 = vrot.slane %v9795_v60, %v11130_v12  ;;  %v4031_v21 = vrot.slane %v9797_v33, %v11130_v12 }
 0x53d   : > { %v3965_v17 = vcombine.high %v3920_v23, %v3952_v8  ;;  %v3964_v16 = vcombine.low %v3920_v23, %v3952_v8  ;;  %v3967_v38 = vcombine.high %v3927_v57, %v3959_v43  ;;  %v3966_v58 = vcombine.low %v3927_v57, %v3959_v43  ;;  %v10584_v43 = vld [vmem:[%s13730_s10 + $0x70] ss:$8 sps:$4 sm:$0xff]  }
 0x53e   : > { %v4048_v27 = vcombine.low %v3983_v56, %v3999_v20  ;;  %v4080_v24 = vcombine.low %v4015_v42, %v4031_v21  ;;  %v4049_v1 = vcombine.high %v3983_v56, %v3999_v20  ;;  %v4081_v59 = vcombine.high %v4015_v42, %v4031_v21 }
 0x53f   : > { %v12089_v36 = vunpack.c.l.bf16 %v9999_v4  ;;  %v12093_v14 = vunpack.c.l.bf16 %v10011_v40  ;;  %v12095_v3 = vunpack.c.h.bf16 %v9999_v4  ;;  %v12099_v6 = vunpack.c.h.bf16 %v10011_v40  ;;  %v10602_v4 = vld [vmem:[%s13730_s10 + $0x10] ss:$8 sps:$4 sm:$0xff]   ;;  %v10607_v40 = vld [vmem:[%s13730_s10 + $0x4] ss:$8 sps:$4 sm:$0xff]  }
 0x540   : > { %v4056_v13 = vrot.slane %v4048_v27, %v11133_v15  ;;  %v4088_v11 = vrot.slane %v4080_v24, %v11133_v15  ;;  %v4063_v41 = vrot.slane %v4049_v1, %v11133_v15  ;;  %v4095_v44 = vrot.slane %v4081_v59, %v11133_v15 }
 0x541   : > { %v4426_v46 = vmul.f32 %v12089_v36, %v12089_v36  ;;  %v4428_v0 = vmul.f32 %v12093_v14, %v12093_v14  ;;  %v4427_v51 = vmul.f32 %v12095_v3, %v12095_v3  ;;  %v4429_v19 = vmul.f32 %v12099_v6, %v12099_v6 }
 0x542   : > { %v4101_v48 = vcombine.high %v4056_v13, %v4088_v11  ;;  %v4100_v61 = vcombine.low %v4056_v13, %v4088_v11  ;;  %v4103_v34 = vcombine.high %v4063_v41, %v4095_v44  ;;  %v4102_v49 = vcombine.low %v4063_v41, %v4095_v44 }
 0x544   : > { %v10494_v5 = vpack.i.bf16 %v4101_v48, %v3965_v17  ;;  %v10489_v37 = vpack.i.bf16 %v4100_v61, %v3964_v16  ;;  %v10504_v55 = vpack.i.bf16 %v4103_v34, %v3967_v38  ;;  %v10499_v18 = vpack.i.bf16 %v4102_v49, %v3966_v58  ;;  %v10589_v48 = vld [vmem:[%s13730_s10 + $0x64] ss:$8 sps:$4 sm:$0xff]   ;;  %v10587_v16 = vld [vmem:[%s13730_s10 + $0x60] ss:$8 sps:$4 sm:$0xff]   ;;  %v10598_v49 = vld [vmem:[%s13730_s10 + $0x34] ss:$8 sps:$4 sm:$0xff]  }
 0x545   : > { %v13777_v61 = vmov 0   ;;  %v10593_v34 = vld [vmem:[%s13730_s10 + $0x40] ss:$8 sps:$4 sm:$0xff]   ;;  %v10596_v38 = vld [vmem:[%s13730_s10 + $0x30] ss:$8 sps:$4 sm:$0xff]  }
 0x546   : > { %10495 = vrot.lane.b32.xlu1 %v10494_v5, %s10825_s28  ;;  %10490 = vrot.lane.b32.xlu0 %v10489_v37, %s13749_s29  ;;  %v10590_v5 = vld [vmem:[%s13730_s10 + $0x50] ss:$8 sps:$4 sm:$0xff]   ;;  %v10595_v37 = vld [vmem:[%s13730_s10 + $0x44] ss:$8 sps:$4 sm:$0xff]  }
 0x547   : > { %v10601_v58 = vld [vmem:[%s13730_s10 + $0x24] ss:$8 sps:$4 sm:$0xff]  }
 0x54a   : > { %10505 = vrot.lane.b32.xlu1 %v10504_v55, %s13775_s27  ;;  %10500 = vrot.lane.b32.xlu0 %v10499_v18, %s13776_s23  ;;  %v10599_v55 = vld [vmem:[%s13730_s10 + $0x20] ss:$8 sps:$4 sm:$0xff]   ;;  %v10604_v18 = vld [vmem:[%s13730_s10 + $0x14] ss:$8 sps:$4 sm:$0xff]  }
 0x569   : > { %4430 = vadd.xlane.f32.xlu0 %v4426_v46  ;;  %v10605_v46 = vld [vmem:[%s13730_s10] ss:$8 sps:$4 sm:$0xff]  }
 0x56d   : > { %4434 = vadd.xlane.f32.xlu0 %v4428_v0 }
 0x56e   : > { %4432 = vadd.xlane.f32.xlu1 %v4427_v51 }
 0x571   : > { %4436 = vadd.xlane.f32.xlu0 %v4429_v19 }
 0x59b   : > { %v10481_v28 = vpop.permute.xlu1 %10480  ;;  %v10476_v52 = vpop.permute.xlu0 %10475 }
 0x59c   : > { %v10478_v26 = vunpack.i.h.bf16 %v10476_v52  ;;  %v10477_v30 = vunpack.i.l.bf16 %v10476_v52  ;;  %v10483_v50 = vunpack.i.h.bf16 %v10481_v28  ;;  %v10482_v32 = vunpack.i.l.bf16 %v10481_v28 }
 0x59e   : > { %v4160_v53 = vsel %vm2647_vm3, %v3960_v29, %v10477_v30  ;;  %v4161_v60 = vsel %vm2647_vm3, %v4096_v7, %v10478_v26 }
 0x59f   : > { %v10486_v45 = vpop.permute.xlu1 %10485  ;;  %v4164_v21 = vsel %vm4162_vm4, %v4161_v60, %v10483_v50  ;;  %v4163_v54 = vsel %vm4162_vm4, %v4160_v53, %v10482_v32 }
 0x5a0   : > { %v10488_v33 = vunpack.i.h.bf16 %v10486_v45  ;;  %v10487_v56 = vunpack.i.l.bf16 %v10486_v45 }
 0x5a2   : > { %v4166_v35 = vsel %vm4165_vm5, %v4163_v54, %v10487_v56  ;;  %v4167_v62 = vsel %vm4165_vm5, %v4164_v21, %v10488_v33 }
 0x5b8   : > { %v10491_v20 = vpop.permute.xlu0 %10490  ;;  %v10496_v42 = vpop.permute.xlu1 %10495 }
 0x5b9   : > { %v10493_v23 = vunpack.i.h.bf16 %v10491_v20  ;;  %v10492_v8 = vunpack.i.l.bf16 %v10491_v20  ;;  %v10498_v29 = vunpack.i.h.bf16 %v10496_v42  ;;  %v10497_v25 = vunpack.i.l.bf16 %v10496_v42  ;;  %v9815_v20 = vld [vmem:[%s13729_s9] ss:$0 sm:$0xff] }
 0x5bb   : > { %v4169_v63 = vsel %vm4168_vm6, %v4166_v35, %v10492_v8  ;;  %v4170_v7 = vsel %vm4168_vm6, %v4167_v62, %v10493_v23 }
 0x5bc   : > { %v10501_v47 = vpop.permute.xlu0 %10500  ;;  %v10506_v39 = vpop.permute.xlu1 %10505  ;;  %v4172_v13 = vsel %vm4171_vm7, %v4169_v63, %v10497_v25  ;;  %v4173_v11 = vsel %vm4171_vm7, %v4170_v7, %v10498_v29  ;;  %v10608_v29 = vld [vmem:[%s13728_s8 + $0x38] sm:$0xff]  }
 0x5bd   : > { %v10503_v27 = vunpack.i.h.bf16 %v10501_v47  ;;  %v10502_v24 = vunpack.i.l.bf16 %v10501_v47  ;;  %v10508_v1 = vunpack.i.h.bf16 %v10506_v39  ;;  %v10507_v59 = vunpack.i.l.bf16 %v10506_v39  ;;  %10287 = vmatpush3.bf16.msra.mxu1 %v10608_v29 }
 0x5be   : > { %10288 = vmatprep.subr.bf16.mxu1 %v13751_v2 }
 0x5bf   : > { %v4175_v41 = vsel %vm4174_vm8, %v4172_v13, %v10502_v24  ;;  %v4176_v44 = vsel %vm4174_vm8, %v4173_v11, %v10503_v27  ;;  %v10609_v13 = vld [vmem:[%s13728_s8 + $0x30] sm:$0xff]   ;;  %v10612_v11 = vld [vmem:[%s13728_s8 + $0x18] sm:$0xff]  }
 0x5c0   : > { %v4178_v22 = vsel %vm4177_vm9, %v4175_v41, %v10507_v59  ;;  %v4179_v57 = vsel %vm4177_vm9, %v4176_v44, %v10508_v1  ;;  %v10613_v41 = vld [vmem:[%s13728_s8 + $0x10] sm:$0xff]   ;;  %v10614_v44 = vld [vmem:[%s13728_s8 + $0x8] sm:$0xff]  }
 0x5c1   : > { %v4196_v17 = vpack.c.bf16 %v4179_v57, %v4178_v22  ;;  %10289 = vmatpush3.bf16.msra.mxu1 %v10609_v13  ;;  %v10615_v22 = vld [vmem:[%s13728_s8] sm:$0xff]  }
 0x5c2   : > { %10290 = vmatprep.subr.bf16.mxu1 %v13751_v2 }
 0x5c3   : > { %10283 = vmatmul.mubr.bf16.vlgmr.msra.gmra.mxu0 %v4196_v17 }
 0x5c4   : > { %4563 = vmatpush1.bf16.msra.mxu0 %v10584_v43  ;;  %4594 = vmatprep.mubr.bf16.mxu0 %v13777_v61 }
 0x5c5   : > { %4564 = vmatprep.subr.bf16.mxu0 %v10589_v48 }
 0x5c8   : > { %4565 = vmatpush1.bf16.msra.mxu0 %v10587_v16 }
 0x5c9   : > { %4566 = vmatprep.subr.bf16.mxu0 %v10592_v31 }
 0x5cc   : > { %4567 = vmatpush1.bf16.msra.mxu0 %v10590_v5 }
 0x5cd   : > { %4568 = vmatprep.subr.bf16.mxu0 %v10595_v37 }
 0x5d0   : > { %4569 = vmatpush1.bf16.msra.mxu0 %v10593_v34 }
 0x5d1   : > { %4570 = vmatprep.subr.bf16.mxu0 %v10598_v49 }
 0x5d4   : > { %4571 = vmatpush1.bf16.msra.mxu0 %v10596_v38 }
 0x5d5   : > { %4572 = vmatprep.subr.bf16.mxu0 %v10601_v58 }
 0x5d8   : > { %4573 = vmatpush1.bf16.msra.mxu0 %v10599_v55 }
 0x5d9   : > { %4574 = vmatprep.subr.bf16.mxu0 %v10604_v18 }
 0x5dc   : > { %4575 = vmatpush1.bf16.msra.mxu0 %v10602_v4 }
 0x5dd   : > { %4576 = vmatprep.subr.bf16.mxu0 %v10607_v40 }
 0x5e0   : > { %4577 = vmatpush1.bf16.msra.mxu0 %v10605_v46  ;;  %v9806_v46 = vld [vmem:[%s13727_s7] ss:$0 sm:$0xff] }
 0x5e1   : > { %10338 = vmatprep.subr.bf16.mxu0 %v13751_v2 }
 0x5f2   : > { %v4431_v0 = vpop.xlane.xlu0 %4430 }
 0x5f3   : > { %v4438_v51 = vmul.f32 0.0078125, %v4431_v0 }
 0x5f5   : > { %v4442_v19 = vadd.f32 1e-06, %v4438_v51 }
 0x5f6   : > { %v4435_v28 = vpop.xlane.xlu0 %4434 }
 0x5f7   : > { %10732 = vrsqrt.f32 %v4442_v19  ;;  %v4433_v52 = vpop.xlane.xlu1 %4432  ;;  %v4440_v26 = vmul.f32 0.0078125, %v4435_v28 }
 0x5f8   : > { %v4439_v30 = vmul.f32 0.0078125, %v4433_v52 }
 0x5f9   : > { %v4444_v45 = vadd.f32 1e-06, %v4440_v26 }
 0x5fa   : > { %v4443_v50 = vadd.f32 1e-06, %v4439_v30  ;;  %v4437_v32 = vpop.xlane.xlu0 %4436 }
 0x5fb   : > { %10734 = vrsqrt.f32 %v4444_v45  ;;  %v4441_v53 = vmul.f32 0.0078125, %v4437_v32 }
 0x5fc   : > { %10736 = vrsqrt.f32 %v4443_v50 }
 0x5fd   : > { %v4445_v60 = vadd.f32 1e-06, %v4441_v53 }
 0x5ff   : > { %10738 = vrsqrt.f32 %v4445_v60 }
 0x604   : > { %v10733_v33 = vpop.eup %10732 }
 0x605   : > { %v4450_v56 = vmul.f32 %v10733_v33, %v12089_v36 }
 0x607   : > { %v4460_v23 = vmul.f32 %v9815_v20, %v4450_v56 }
 0x608   : > { %v10735_v42 = vpop.eup %10734 }
 0x609   : > { %v10737_v21 = vpop.eup %10736  ;;  %v4452_v62 = vmul.f32 %v10735_v42, %v12093_v14 }
 0x60a   : > { %v4451_v54 = vmul.f32 %v10737_v21, %v12095_v3 }
 0x60b   : > { %v4462_v63 = vmul.f32 %v9815_v20, %v4452_v62 }
 0x60c   : > { %v10739_v8 = vpop.eup %10738  ;;  %v4461_v35 = vmul.f32 %v9815_v20, %v4451_v54 }
 0x60d   : > { %v4453_v25 = vmul.f32 %v10739_v8, %v12099_v6 }
 0x60e   : > { %v4480_v36 = vpack.c.bf16 %v4461_v35, %v4460_v23 }
 0x60f   : > { %v4463_v7 = vmul.f32 %v9815_v20, %v4453_v25 }
 0x610   : > { %4595 = vmatmul.mubr.bf16.vlgmr.msra.gmra.mxu0 %v4480_v36 }
 0x611   : > { %4604 = vmatprep.mubr.bf16.mxu0 %v13777_v61  ;;  %v4481_v3 = vpack.c.bf16 %v4463_v7, %v4462_v63 }
 0x618   : > { %4605 = vmatmul.mubr.bf16.gmra.mxu0 %v4481_v3 }
 0x619   : > { %10342 = vmatprep.mubr.msk.bf16.mxu0 %vm10822_vm2, %v13751_v2 }
 0x683   : > { %v4279_v14 = vpop.f32.mrf.mxu0 }
 0x684   : > { %v12187_v47 = vadd.f32 %v10950_v9, %v4279_v14  ;;  %v10610_v9 = vld [vmem:[%s13728_s8 + $0x28] sm:$0xff]  }
 0x685   : > { %v10284_v39 = vpop.f32.mrf.mxu0  ;;  %10291 = vmatpush3.bf16.msra.mxu1 %v10610_v9 }
 0x686   : > { %13778 = vst [vmem:[#allocation2_spill] sm:$0xff] %v12187_v47  ;;  %v4289_v6 = vmul.f32 %v12187_v47, %v12187_v47  ;;  %10292 = vmatprep.subr.bf16.mxu1 %v13751_v2 }
 0x687   : > { %v4282_v27 = vpop.f32.mrf.mxu0 }
 0x688   : > { %v12192_v24 = vadd.f32 %v10952_v10, %v4282_v27  ;;  %4291 = vadd.xlane.f32.xlu1 %v4289_v6  ;;  %v10611_v10 = vld [vmem:[%s13728_s8 + $0x20] sm:$0xff]  }
 0x689   : > { %v10285_v1 = vpop.f32.mrf.mxu0  ;;  %10293 = vmatpush3.bf16.msra.mxu1 %v10611_v10 }
 0x68a   : > { %13779 = vst [vmem:[#allocation3_spill] sm:$0xff] %v12192_v24  ;;  %v4290_v59 = vmul.f32 %v12192_v24, %v12192_v24  ;;  %10294 = vmatprep.subr.bf16.mxu1 %v13751_v2 }
 0x68c   : > { %4293 = vadd.xlane.f32.xlu0 %v4290_v59 }
 0x68d   : > { %10295 = vmatpush3.bf16.msra.mxu1 %v10612_v11 }
 0x68e   : > { %10296 = vmatprep.subr.bf16.mxu1 %v13751_v2 }
 0x691   : > { %10297 = vmatpush3.bf16.msra.mxu1 %v10613_v41 }
 0x692   : > { %10298 = vmatprep.subr.bf16.mxu1 %v13751_v2 }
 0x695   : > { %10299 = vmatpush3.bf16.msra.mxu1 %v10614_v44 }
 0x696   : > { %10300 = vmatprep.subr.bf16.mxu1 %v13751_v2 }
 0x699   : > { %10301 = vmatpush3.bf16.msra.mxu1 %v10615_v22 }
 0x69a   : > { %10306 = vmatprep.subr.bf16.mxu1 %v13751_v2 }
 0x6d0   : > { %v12224_v57 = vpop.f32.mrf.mxu0 }
 0x6d1   : > { %5215 = vrot.lane.b32.xlu0 %v12224_v57, %s13775_s27 }
 0x6d2   : > { %v12228_v43 = vpop.f32.mrf.mxu0 }
 0x6d3   : > { %13780 = vst [vmem:[#allocation4_spill] sm:$0xff] %v12228_v43 }
 0x6d4   : > { %v12230_v17 = vpop.f32.mrf.mxu0 }
 0x6d5   : > { %5217 = vrot.lane.b32.xlu1 %v12230_v17, %s13775_s27 }
 0x6d6   : > { %v12234_v48 = vpop.f32.mrf.mxu0 }
 0x6d8   : > { %v12236_v16 = vpop.f32.mrf.mxu0 }
 0x6d9   : > { %5219 = vrot.lane.b32.xlu1 %v12236_v16, %s13775_s27  ;;  %5243 = vrot.lane.b32.xlu0 %v12236_v16, %s10825_s28 }
 0x6da   : > { %v12242_v31 = vpop.f32.mrf.mxu0 }
 0x6dc   : > { %v12244_v5 = vpop.f32.mrf.mxu0 }
 0x6dd   : > { %5231 = vrot.lane.b32.xlu1 %v12236_v16, %s13776_s23  ;;  %5221 = vrot.lane.b32.xlu0 %v12244_v5, %s13775_s27 }
 0x6e1   : > { %5233 = vrot.lane.b32.xlu1 %v12244_v5, %s13776_s23  ;;  %5227 = vrot.lane.b32.xlu0 %v12224_v57, %s13776_s23 }
 0x6e5   : > { %5245 = vrot.lane.b32.xlu1 %v12244_v5, %s10825_s28  ;;  %5239 = vrot.lane.b32.xlu0 %v12224_v57, %s10825_s28 }
 0x6e9   : > { %5229 = vrot.lane.b32.xlu1 %v12230_v17, %s13776_s23 }
 0x6ed   : > { %5241 = vrot.lane.b32.xlu1 %v12230_v17, %s10825_s28 }
 0x711   : > { %v4292_v37 = vpop.xlane.xlu1 %4291 }
 0x712   : > { %v4295_v34 = vmul.f32 0.0078125, %v4292_v37 }
 0x714   : > { %v4297_v49 = vadd.f32 1e-06, %v4295_v34 }
 0x715   : > { %v4294_v38 = vpop.xlane.xlu0 %4293 }
 0x716   : > { %10740 = vrsqrt.f32 %v4297_v49  ;;  %v4296_v58 = vmul.f32 0.0078125, %v4294_v38 }
 0x718   : > { %v4298_v55 = vadd.f32 1e-06, %v4296_v58 }
 0x71a   : > { %10742 = vrsqrt.f32 %v4298_v55 }
 0x723   : > { %v10741_v18 = vpop.eup %10740 }
 0x724   : > { %v4301_v4 = vmul.f32 %v10741_v18, %v12187_v47 }
 0x726   : > { %v4309_v51 = vmul.f32 %v9806_v46, %v4301_v4 }
 0x727   : > { %v10743_v40 = vpop.eup %10742 }
 0x728   : > { %v4302_v0 = vmul.f32 %v10743_v40, %v12192_v24 }
 0x72a   : > { %v4310_v19 = vmul.f32 %v9806_v46, %v4302_v0 }
 0x72c   : > { %v4327_v28 = vpack.c.bf16 %v4310_v19, %v4309_v51 }
 0x72e   : > { %10303 = vmatmul.mubr.bf16.vlgmr.msra.gmra.mxu1 %v4327_v28 }
 0x72f   : > { %10310 = vmatprep.mubr.msk.bf16.mxu1 %vm10822_vm2, %v13751_v2 }
 0x743   : > { %v5216_v52 = vpop.permute.xlu0 %5215 }
 0x747   : > { %v12269_v26 = vpop.permute.xlu1 %5217 }
 0x74b   : > { %v5220_v30 = vpop.permute.xlu1 %5219  ;;  %v5244_v45 = vpop.permute.xlu0 %5243 }
 0x74c   : > { %v5587_v50 = vcombine.low %v5220_v30, %v5244_v45  ;;  %v5588_v32 = vcombine.high %v5220_v30, %v5244_v45 }
 0x74e   : > { %v5595_v20 = vrot.slane %v5587_v50, %v11130_v12  ;;  %v5602_v42 = vrot.slane %v5588_v32, %v11130_v12 }
 0x74f   : > { %v5232_v53 = vpop.permute.xlu1 %5231  ;;  %v5222_v60 = vpop.permute.xlu0 %5221 }
 0x750   : > { %v5571_v33 = vcombine.low %v12236_v16, %v5232_v53  ;;  %v5572_v56 = vcombine.high %v12236_v16, %v5232_v53 }
 0x752   : > { %v5579_v21 = vrot.slane %v5571_v33, %v11130_v12  ;;  %v5586_v54 = vrot.slane %v5572_v56, %v11130_v12 }
 0x753   : > { %v5234_v23 = vpop.permute.xlu1 %5233  ;;  %v5228_v8 = vpop.permute.xlu0 %5227 }
 0x754   : > { %v5635_v35 = vcombine.low %v5579_v21, %v5595_v20  ;;  %v5636_v62 = vcombine.high %v5579_v21, %v5595_v20  ;;  %v5651_v29 = vcombine.low %v5586_v54, %v5602_v42  ;;  %v5652_v25 = vcombine.high %v5586_v54, %v5602_v42 }
 0x755   : > { %v5707_v36 = vcombine.low %v12244_v5, %v5234_v23  ;;  %v5708_v63 = vcombine.high %v12244_v5, %v5234_v23  ;;  %v5299_v7 = vcombine.low %v12224_v57, %v5228_v8  ;;  %v5300_v3 = vcombine.high %v12224_v57, %v5228_v8 }
 0x756   : > { %v5643_v14 = vrot.slane %v5635_v35, %v11133_v15  ;;  %v5650_v39 = vrot.slane %v5636_v62, %v11133_v15  ;;  %v5659_v6 = vrot.slane %v5651_v29, %v11133_v15  ;;  %v5666_v27 = vrot.slane %v5652_v25, %v11133_v15 }
 0x757   : > { %v5715_v1 = vrot.slane %v5707_v36, %v11130_v12  ;;  %v5722_v59 = vrot.slane %v5708_v63, %v11130_v12  ;;  %v5246_v13 = vpop.permute.xlu1 %5245  ;;  %v5307_v9 = vrot.slane %v5299_v7, %v11130_v12  ;;  %v5240_v10 = vpop.permute.xlu0 %5239  ;;  %v5314_v58 = vrot.slane %v5300_v3, %v11130_v12 }
 0x758   : > { %v9864_v11 = vcombine.low %v5643_v14, %v5650_v39  ;;  %v9866_v41 = vcombine.high %v5643_v14, %v5650_v39  ;;  %v9868_v44 = vcombine.low %v5659_v6, %v5666_v27  ;;  %v9870_v22 = vcombine.high %v5659_v6, %v5666_v27 }
 0x759   : > { %v5723_v37 = vcombine.low %v5222_v60, %v5246_v13  ;;  %v5724_v34 = vcombine.high %v5222_v60, %v5246_v13  ;;  %v5315_v49 = vcombine.low %v5216_v52, %v5240_v10  ;;  %v5316_v38 = vcombine.high %v5216_v52, %v5240_v10 }
 0x75a   : > { %v12290_v55 = vrot.slane %v9864_v11, %v11130_v12  ;;  %v12293_v18 = vrot.slane %v9866_v41, %v11130_v12  ;;  %v12296_v4 = vrot.slane %v9868_v44, %v11130_v12  ;;  %v12302_v19 = vrot.slane %v9870_v22, %v11130_v12 }
 0x75b   : > { %v5731_v40 = vrot.slane %v5723_v37, %v11130_v12  ;;  %v5738_v46 = vrot.slane %v5724_v34, %v11130_v12  ;;  %v5230_v0 = vpop.permute.xlu1 %5229  ;;  %v5323_v51 = vrot.slane %v5315_v49, %v11130_v12  ;;  %v5330_v30 = vrot.slane %v5316_v38, %v11130_v12 }
 0x75c   : > { %v5435_v28 = vcombine.low %v12230_v17, %v5230_v0  ;;  %v5436_v52 = vcombine.high %v12230_v17, %v5230_v0  ;;  %v6179_v45 = vcombine.low %v12290_v55, %v12293_v18  ;;  %v6211_v14 = vcombine.low %v12296_v4, %v12302_v19 }
 0x75d   : > { %v5771_v50 = vcombine.low %v5715_v1, %v5731_v40  ;;  %v5772_v32 = vcombine.high %v5715_v1, %v5731_v40  ;;  %v5787_v53 = vcombine.low %v5722_v59, %v5738_v46  ;;  %v5788_v60 = vcombine.high %v5722_v59, %v5738_v46 }
 0x75e   : > { %v5443_v33 = vrot.slane %v5435_v28, %v11130_v12  ;;  %v5450_v56 = vrot.slane %v5436_v52, %v11130_v12  ;;  %v5363_v20 = vcombine.low %v5307_v9, %v5323_v51  ;;  %v5364_v42 = vcombine.high %v5307_v9, %v5323_v51 }
 0x75f   : > { %v5779_v21 = vrot.slane %v5771_v50, %v11133_v15  ;;  %v5786_v54 = vrot.slane %v5772_v32, %v11133_v15  ;;  %v5795_v23 = vrot.slane %v5787_v53, %v11133_v15  ;;  %v5802_v8 = vrot.slane %v5788_v60, %v11133_v15  ;;  %v5242_v35 = vpop.permute.xlu1 %5241 }
 0x760   : > { %v5451_v62 = vcombine.low %v12269_v26, %v5242_v35  ;;  %v5452_v29 = vcombine.high %v12269_v26, %v5242_v35  ;;  %v5371_v25 = vrot.slane %v5363_v20, %v11133_v15  ;;  %v5378_v36 = vrot.slane %v5364_v42, %v11133_v15 }
 0x761   : > { %v9872_v63 = vcombine.low %v5779_v21, %v5786_v54  ;;  %v9874_v7 = vcombine.high %v5779_v21, %v5786_v54  ;;  %v9876_v3 = vcombine.low %v5795_v23, %v5802_v8  ;;  %v5379_v27 = vcombine.low %v5314_v58, %v5330_v30 }
 0x762   : > { %v5459_v39 = vrot.slane %v5451_v62, %v11130_v12  ;;  %v5466_v6 = vrot.slane %v5452_v29, %v11130_v12  ;;  %v5380_v1 = vcombine.high %v5314_v58, %v5330_v30  ;;  %v9878_v59 = vcombine.high %v5795_v23, %v5802_v8 }
 0x763   : > { %v9848_v13 = vcombine.low %v5371_v25, %v5378_v36  ;;  %v9850_v9 = vcombine.high %v5371_v25, %v5378_v36  ;;  %v12324_v26 = vrot.slane %v6179_v45, %v11133_v15  ;;  %v5387_v22 = vrot.slane %v5379_v27, %v11133_v15 }
 0x764   : > { %v5499_v10 = vcombine.low %v5443_v33, %v5459_v39  ;;  %v5500_v11 = vcombine.high %v5443_v33, %v5459_v39  ;;  %v5515_v41 = vcombine.low %v5450_v56, %v5466_v6  ;;  %v5516_v44 = vcombine.high %v5450_v56, %v5466_v6 }
 0x765   : > { %v5394_v37 = vrot.slane %v5380_v1, %v11133_v15  ;;  %v12329_v34 = vrot.slane %v6211_v14, %v11133_v15  ;;  %v12332_v49 = vrot.slane %v9872_v63, %v11130_v12  ;;  %v6275_v28 = vrot.slane %v9874_v7, %v11130_v12 }
 0x766   : > { %v5507_v38 = vrot.slane %v5499_v10, %v11133_v15  ;;  %v5514_v58 = vrot.slane %v5500_v11, %v11133_v15  ;;  %v5523_v40 = vrot.slane %v5515_v41, %v11133_v15  ;;  %v5530_v46 = vrot.slane %v5516_v44, %v11133_v15 }
 0x767   : > { %v9852_v0 = vcombine.low %v5387_v22, %v5394_v37  ;;  %v9854_v51 = vcombine.high %v5387_v22, %v5394_v37  ;;  %v6291_v52 = vrot.slane %v9876_v3, %v11130_v12  ;;  %v6307_v53 = vrot.slane %v9878_v59, %v11130_v12 }
 0x768   : > { %v9856_v30 = vcombine.low %v5507_v38, %v5514_v58  ;;  %v9858_v45 = vcombine.high %v5507_v38, %v5514_v58  ;;  %v9860_v50 = vcombine.low %v5523_v40, %v5530_v46  ;;  %v9862_v32 = vcombine.high %v5523_v40, %v5530_v46 }
 0x769   : > { %v6315_v60 = vcombine.low %v12332_v49, %v6275_v28  ;;  %v5851_v33 = vrot.slane %v9848_v13, %v11130_v12  ;;  %v5867_v56 = vrot.slane %v9850_v9, %v11130_v12  ;;  %v5883_v20 = vrot.slane %v9852_v0, %v11130_v12 }
 0x76a   : > { %v5899_v42 = vrot.slane %v9854_v51, %v11130_v12  ;;  %v5987_v21 = vrot.slane %v9856_v30, %v11130_v12  ;;  %v6003_v54 = vrot.slane %v9858_v45, %v11130_v12  ;;  %v6347_v8 = vcombine.low %v6291_v52, %v6307_v53 }
 0x76b   : > { %v6323_v23 = vrot.slane %v6315_v60, %v11133_v15  ;;  %v5907_v35 = vcombine.low %v5851_v33, %v5867_v56  ;;  %v6019_v62 = vrot.slane %v9860_v50, %v11130_v12  ;;  %v6035_v25 = vrot.slane %v9862_v32, %v11130_v12 }
 0x76c   : > { %v5939_v29 = vcombine.low %v5883_v20, %v5899_v42  ;;  %v6043_v36 = vcombine.low %v5987_v21, %v6003_v54  ;;  %v6243_v63 = vcombine.low %v12324_v26, %v12329_v34  ;;  %v6355_v7 = vrot.slane %v6347_v8, %v11133_v15 }
 0x76d   : > { %v5915_v3 = vrot.slane %v5907_v35, %v11133_v15  ;;  %v6075_v6 = vcombine.low %v6019_v62, %v6035_v25  ;;  %v5908_v41 = vcombine.high %v5851_v33, %v5867_v56  ;;  %v5940_v44 = vcombine.high %v5883_v20, %v5899_v42 }
 0x76e   : > { %v5947_v14 = vrot.slane %v5939_v29, %v11133_v15  ;;  %v6051_v39 = vrot.slane %v6043_v36, %v11133_v15  ;;  %v6379_v27 = vcombine.low %v6323_v23, %v6355_v7  ;;  %v6044_v22 = vcombine.high %v5987_v21, %v6003_v54 }
 0x76f   : > { %v6083_v1 = vrot.slane %v6075_v6, %v11133_v15  ;;  %v6076_v37 = vcombine.high %v6019_v62, %v6035_v25  ;;  %v5922_v38 = vrot.slane %v5908_v41, %v11133_v15  ;;  %v5954_v58 = vrot.slane %v5940_v44, %v11133_v15 }
 0x770   : > { %v6388_v59 = vpack.c.bf16 %v6379_v27, %v6243_v63  ;;  %v5971_v13 = vcombine.low %v5915_v3, %v5947_v14  ;;  %v6058_v40 = vrot.slane %v6044_v22, %v11133_v15  ;;  %v5972_v51 = vcombine.high %v5915_v3, %v5947_v14 }
 0x771   : > { %v6107_v9 = vcombine.low %v6051_v39, %v6083_v1  ;;  %v6090_v0 = vrot.slane %v6076_v37, %v11133_v15  ;;  %v6108_v30 = vcombine.high %v6051_v39, %v6083_v1  ;;  %v6180_v45 = vcombine.high %v12290_v55, %v12293_v18 }
 0x772   : > { %v7602_v10 = vsel %vm2647_vm3, %v6388_v59, 0  ;;  %v6212_v50 = vcombine.high %v12296_v4, %v12302_v19  ;;  %v6316_v32 = vcombine.high %v12332_v49, %v6275_v28  ;;  %v6348_v60 = vcombine.high %v6291_v52, %v6307_v53 }
 0x773   : > { %10307 = vmatpush3.bf16.xpose.msra.mxu1 %v7602_v10  ;;  %v6387_v11 = vpack.c.bf16 %v6107_v9, %v5971_v13  ;;  %v5973_v33 = vcombine.low %v5922_v38, %v5954_v58  ;;  %v6109_v56 = vcombine.low %v6058_v40, %v6090_v0  ;;  %v12370_v20 = vpack.c.bf16 %v6108_v30, %v5972_v51 }
 0x774   : > { %10308 = vmatprep.subr.bf16.mxu1 %v13751_v2  ;;  %v6194_v42 = vrot.slane %v6180_v45, %v11133_v15  ;;  %v6226_v21 = vrot.slane %v6212_v50, %v11133_v15  ;;  %v5974_v54 = vcombine.high %v5922_v38, %v5954_v58  ;;  %v6330_v55 = vrot.slane %v6316_v32, %v11133_v15 }
 0x775   : > { %v7599_v46 = vsel %vm2647_vm3, %v6387_v11, 0  ;;  %v6362_v18 = vrot.slane %v6348_v60, %v11133_v15  ;;  %v12377_v4 = vpack.c.bf16 %v6109_v56, %v5973_v33  ;;  %v6110_v19 = vcombine.high %v6058_v40, %v6090_v0 }
 0x776   : > { %v6244_v49 = vcombine.high %v12324_v26, %v12329_v34  ;;  %v6380_v28 = vcombine.high %v6323_v23, %v6355_v7  ;;  %v6245_v52 = vcombine.low %v6194_v42, %v6226_v21  ;;  %v6246_v8 = vcombine.high %v6194_v42, %v6226_v21 }
 0x777   : > { %v6381_v53 = vcombine.low %v6330_v55, %v6362_v18  ;;  %v6382_v35 = vcombine.high %v6330_v55, %v6362_v18  ;;  %v12383_v29 = vpack.c.bf16 %v6110_v19, %v5974_v54  ;;  %v12507_v1 = vsel %vm2647_vm3, %v12370_v20, 0 }
 0x778   : > { %v12381_v62 = vpack.c.bf16 %v6380_v28, %v6244_v49  ;;  %v12511_v59 = vsel %vm2647_vm3, %v12377_v4, 0 }
 0x779   : > { %v12385_v25 = vpack.c.bf16 %v6381_v53, %v6245_v52  ;;  %v12387_v36 = vpack.c.bf16 %v6382_v35, %v6246_v8  ;;  %v12527_v58 = vsel %vm2647_vm3, %v12383_v29, 0 }
 0x77a   : > { %v12523_v38 = vsel %vm2647_vm3, %v12381_v62, 0 }
 0x77b   : > { %10309 = vmatpush3.bf16.xpose.msra.mxu1 %v7599_v46  ;;  %v12531_v50 = vsel %vm2647_vm3, %v12385_v25, 0  ;;  %v12535_v32 = vsel %vm2647_vm3, %v12387_v36, 0 }
 0x77c   : > { %10314 = vmatprep.subr.bf16.mxu1 %v13751_v2 }
 0x7ee   : > { %v12389_v63 = vpop.f32.mrf.mxu1 }
 0x7ef   : > { %4617 = vrot.lane.b32.xlu0 %v12389_v63, %s13775_s27 }
 0x7f0   : > { %v10304_v3 = vpop.f32.mrf.mxu1 }
 0x7f2   : > { %v12393_v26 = vpop.f32.mrf.mxu1 }
 0x7f3   : > { %4619 = vrot.lane.b32.xlu1 %v12393_v26, %s13775_s27  ;;  %4623 = vrot.lane.b32.xlu0 %v12389_v63, %s13776_s23 }
 0x7f4   : > { %v10305_v34 = vpop.f32.mrf.mxu1 }
 0x7f7   : > { %4625 = vrot.lane.b32.xlu1 %v12393_v26, %s13776_s23  ;;  %4629 = vrot.lane.b32.xlu0 %v12389_v63, %s10825_s28 }
 0x7fb   : > { %4631 = vrot.lane.b32.xlu1 %v12393_v26, %s10825_s28  ;;  %5255 = vrot.lane.b32.xlu0 %v12236_v16, %s13781_s24 }
 0x7ff   : > { %5257 = vrot.lane.b32.xlu1 %v12244_v5, %s13781_s24  ;;  %5267 = vrot.lane.b32.xlu0 %v12236_v16, %s13782_s20 }
 0x803   : > { %5269 = vrot.lane.b32.xlu1 %v12244_v5, %s13782_s20  ;;  %5279 = vrot.lane.b32.xlu0 %v12236_v16, %s13783_s21 }
 0x807   : > { %5281 = vrot.lane.b32.xlu1 %v12244_v5, %s13783_s21  ;;  %5291 = vrot.lane.b32.xlu0 %v12236_v16, %s13784_s22 }
 0x80b   : > { %5293 = vrot.lane.b32.xlu1 %v12244_v5, %s13784_s22  ;;  %5251 = vrot.lane.b32.xlu0 %v12224_v57, %s13781_s24 }
 0x80f   : > { %5253 = vrot.lane.b32.xlu1 %v12230_v17, %s13781_s24  ;;  %5263 = vrot.lane.b32.xlu0 %v12224_v57, %s13782_s20 }
 0x813   : > { %5265 = vrot.lane.b32.xlu1 %v12230_v17, %s13782_s20  ;;  %5275 = vrot.lane.b32.xlu0 %v12224_v57, %s13783_s21 }
 0x817   : > { %5277 = vrot.lane.b32.xlu1 %v12230_v17, %s13783_s21  ;;  %5287 = vrot.lane.b32.xlu0 %v12224_v57, %s13784_s22  ;;  %v12451_v57 = vpop.f32.mrf.mxu0 }
 0x81b   : > { %5289 = vrot.lane.b32.xlu1 %v12230_v17, %s13784_s22  ;;  %4635 = vrot.lane.b32.xlu0 %v12389_v63, %s13781_s24 }
 0x81f   : > { %4637 = vrot.lane.b32.xlu1 %v12393_v26, %s13781_s24  ;;  %4641 = vrot.lane.b32.xlu0 %v12389_v63, %s13782_s20 }
 0x823   : > { %4643 = vrot.lane.b32.xlu1 %v12393_v26, %s13782_s20  ;;  %4647 = vrot.lane.b32.xlu0 %v12389_v63, %s13783_s21 }
 0x827   : > { %4649 = vrot.lane.b32.xlu1 %v12393_v26, %s13783_s21  ;;  %4653 = vrot.lane.b32.xlu0 %v12389_v63, %s13784_s22 }
 0x82b   : > { %4655 = vrot.lane.b32.xlu1 %v12393_v26, %s13784_s22  ;;  %6413 = vrot.lane.b32.xlu0 %v12451_v57, %s13775_s27 }
 0x82f   : > { %6411 = vrot.lane.b32.xlu1 %v12242_v31, %s13775_s27  ;;  %6435 = vrot.lane.b32.xlu0 %v12242_v31, %s10825_s28 }
 0x833   : > { %6423 = vrot.lane.b32.xlu1 %v12242_v31, %s13776_s23  ;;  %6407 = vrot.lane.b32.xlu0 %v12228_v43, %s13775_s27 }
 0x837   : > { %6425 = vrot.lane.b32.xlu1 %v12451_v57, %s13776_s23  ;;  %6419 = vrot.lane.b32.xlu0 %v12228_v43, %s13776_s23 }
 0x83b   : > { %6437 = vrot.lane.b32.xlu1 %v12451_v57, %s10825_s28  ;;  %6431 = vrot.lane.b32.xlu0 %v12228_v43, %s10825_s28 }
 0x83f   : > { %6409 = vrot.lane.b32.xlu1 %v12234_v48, %s13775_s27  ;;  %6449 = vrot.lane.b32.xlu0 %v12451_v57, %s13781_s24 }
 0x843   : > { %6421 = vrot.lane.b32.xlu1 %v12234_v48, %s13776_s23  ;;  %6471 = vrot.lane.b32.xlu0 %v12242_v31, %s13783_s21 }
 0x847   : > { %6433 = vrot.lane.b32.xlu1 %v12234_v48, %s10825_s28  ;;  %6483 = vrot.lane.b32.xlu0 %v12242_v31, %s13784_s22 }
 0x84b   : > { %6447 = vrot.lane.b32.xlu1 %v12242_v31, %s13781_s24  ;;  %6443 = vrot.lane.b32.xlu0 %v12228_v43, %s13781_s24 }
 0x84f   : > { %6459 = vrot.lane.b32.xlu1 %v12242_v31, %s13782_s20  ;;  %6455 = vrot.lane.b32.xlu0 %v12228_v43, %s13782_s20 }
 0x853   : > { %6461 = vrot.lane.b32.xlu1 %v12451_v57, %s13782_s20 }
 0x857   : > { %6473 = vrot.lane.b32.xlu1 %v12451_v57, %s13783_s21 }
 0x85b   : > { %6485 = vrot.lane.b32.xlu1 %v12451_v57, %s13784_s22 }
 0x85f   : > { %6445 = vrot.lane.b32.xlu1 %v12234_v48, %s13781_s24 }
 0x861   : > { %v4618_v17 = vpop.permute.xlu0 %4617 }
 0x863   : > { %6457 = vrot.lane.b32.xlu1 %v12234_v48, %s13782_s20 }
 0x865   : > { %v4620_v16 = vpop.permute.xlu1 %4619  ;;  %v4624_v5 = vpop.permute.xlu0 %4623 }
 0x866   : > { %v4659_v23 = vcombine.low %v12389_v63, %v4624_v5  ;;  %v4660_v7 = vcombine.high %v12389_v63, %v4624_v5 }
 0x868   : > { %v4667_v13 = vrot.slane %v4659_v23, %v11130_v12  ;;  %v4674_v9 = vrot.slane %v4660_v7, %v11130_v12 }
 0x869   : > { %v4626_v14 = vpop.permute.xlu1 %4625  ;;  %v4630_v39 = vpop.permute.xlu0 %4629 }
 0x86a   : > { %v4675_v6 = vcombine.low %v4618_v17, %v4630_v39  ;;  %v4676_v27 = vcombine.high %v4618_v17, %v4630_v39  ;;  %v4795_v41 = vcombine.low %v12393_v26, %v4626_v14  ;;  %v4796_v44 = vcombine.high %v12393_v26, %v4626_v14 }
 0x86c   : > { %v4683_v10 = vrot.slane %v4675_v6, %v11130_v12  ;;  %v4690_v11 = vrot.slane %v4676_v27, %v11130_v12  ;;  %v4803_v42 = vrot.slane %v4795_v41, %v11130_v12  ;;  %v4810_v21 = vrot.slane %v4796_v44, %v11130_v12 }
 0x86d   : > { %v4632_v22 = vpop.permute.xlu1 %4631  ;;  %v12519_v37 = vpop.permute.xlu0 %5255 }
 0x86e   : > { %v4723_v40 = vcombine.low %v4667_v13, %v4683_v10  ;;  %v4724_v46 = vcombine.high %v4667_v13, %v4683_v10  ;;  %v4739_v0 = vcombine.low %v4674_v9, %v4690_v11  ;;  %v4740_v51 = vcombine.high %v4674_v9, %v4690_v11 }
 0x86f   : > { %v4811_v30 = vcombine.low %v4620_v16, %v4632_v22  ;;  %v4812_v45 = vcombine.high %v4620_v16, %v4632_v22 }
 0x870   : > { %v4731_v60 = vrot.slane %v4723_v40, %v11133_v15  ;;  %v4738_v33 = vrot.slane %v4724_v46, %v11133_v15  ;;  %v4747_v56 = vrot.slane %v4739_v0, %v11133_v15  ;;  %v4754_v20 = vrot.slane %v4740_v51, %v11133_v15 }
 0x871   : > { %v4819_v54 = vrot.slane %v4811_v30, %v11130_v12  ;;  %v4826_v55 = vrot.slane %v4812_v45, %v11130_v12  ;;  %v5258_v18 = vpop.permute.xlu1 %5257  ;;  %v12545_v4 = vpop.permute.xlu0 %5267 }
 0x872   : > { %v9832_v19 = vcombine.low %v4731_v60, %v4738_v33  ;;  %v9834_v49 = vcombine.high %v4731_v60, %v4738_v33  ;;  %v9836_v28 = vcombine.low %v4747_v56, %v4754_v20  ;;  %v9838_v52 = vcombine.high %v4747_v56, %v4754_v20 }
 0x873   : > { %v4859_v53 = vcombine.low %v4803_v42, %v4819_v54  ;;  %v4860_v8 = vcombine.high %v4803_v42, %v4819_v54  ;;  %v4875_v35 = vcombine.low %v4810_v21, %v4826_v55  ;;  %v4876_v62 = vcombine.high %v4810_v21, %v4826_v55 }
 0x874   : > { %v4939_v29 = vrot.slane %v9832_v19, %v11130_v12  ;;  %v4955_v25 = vrot.slane %v9834_v49, %v11130_v12  ;;  %v4971_v36 = vrot.slane %v9836_v28, %v11130_v12  ;;  %v4987_v63 = vrot.slane %v9838_v52, %v11130_v12 }
 0x875   : > { %v4867_v3 = vrot.slane %v4859_v53, %v11133_v15  ;;  %v4874_v26 = vrot.slane %v4860_v8, %v11133_v15  ;;  %v4883_v34 = vrot.slane %v4875_v35, %v11133_v15  ;;  %v4890_v17 = vrot.slane %v4876_v62, %v11133_v15  ;;  %v5270_v16 = vpop.permute.xlu1 %5269  ;;  %v5280_v5 = vpop.permute.xlu0 %5279 }
 0x876   : > { %v4995_v23 = vcombine.low %v4939_v29, %v4955_v25  ;;  %v4996_v7 = vcombine.high %v4939_v29, %v4955_v25  ;;  %v5027_v14 = vcombine.low %v4971_v36, %v4987_v63  ;;  %v5028_v39 = vcombine.high %v4971_v36, %v4987_v63 }
 0x877   : > { %v9840_v6 = vcombine.low %v4867_v3, %v4874_v26  ;;  %v9842_v27 = vcombine.high %v4867_v3, %v4874_v26  ;;  %v9844_v13 = vcombine.low %v4883_v34, %v4890_v17  ;;  %v9846_v9 = vcombine.high %v4883_v34, %v4890_v17 }
 0x878   : > { %v5003_v10 = vrot.slane %v4995_v23, %v11133_v15  ;;  %v12557_v11 = vrot.slane %v4996_v7, %v11133_v15  ;;  %v5035_v41 = vrot.slane %v5027_v14, %v11133_v15  ;;  %v12561_v44 = vrot.slane %v5028_v39, %v11133_v15 }
 0x879   : > { %v5075_v22 = vrot.slane %v9840_v6, %v11130_v12  ;;  %v5091_v40 = vrot.slane %v9842_v27, %v11130_v12  ;;  %v5107_v46 = vrot.slane %v9844_v13, %v11130_v12  ;;  %v5123_v0 = vrot.slane %v9846_v9, %v11130_v12  ;;  %v5282_v51 = vpop.permute.xlu1 %5281  ;;  %v5292_v30 = vpop.permute.xlu0 %5291 }
 0x87a   : > { %v5603_v45 = vcombine.low %v12519_v37, %v5280_v5  ;;  %v5604_v60 = vcombine.high %v12519_v37, %v5280_v5  ;;  %v5739_v33 = vcombine.low %v5258_v18, %v5282_v51  ;;  %v5740_v56 = vcombine.high %v5258_v18, %v5282_v51 }
 0x87b   : > { %v5131_v20 = vcombine.low %v5075_v22, %v5091_v40  ;;  %v5132_v42 = vcombine.high %v5075_v22, %v5091_v40  ;;  %v5163_v21 = vcombine.low %v5107_v46, %v5123_v0  ;;  %v5164_v54 = vcombine.high %v5107_v46, %v5123_v0 }
 0x87c   : > { %v5611_v55 = vrot.slane %v5603_v45, %v11130_v12  ;;  %v5618_v19 = vrot.slane %v5604_v60, %v11130_v12  ;;  %v5747_v49 = vrot.slane %v5739_v33, %v11130_v12  ;;  %v5754_v28 = vrot.slane %v5740_v56, %v11130_v12 }
 0x87d   : > { %v5139_v52 = vrot.slane %v5131_v20, %v11133_v15  ;;  %v12575_v53 = vrot.slane %v5132_v42, %v11133_v15  ;;  %v5171_v37 = vrot.slane %v5163_v21, %v11133_v15  ;;  %v12579_v18 = vrot.slane %v5164_v54, %v11133_v15  ;;  %v5294_v8 = vpop.permute.xlu1 %5293  ;;  %v12581_v35 = vpop.permute.xlu0 %5251 }
 0x87e   : > { %v5619_v62 = vcombine.low %v12545_v4, %v5292_v30  ;;  %v5620_v29 = vcombine.high %v12545_v4, %v5292_v30  ;;  %v5755_v25 = vcombine.low %v5270_v16, %v5294_v8  ;;  %v5756_v36 = vcombine.high %v5270_v16, %v5294_v8 }
 0x87f   : > { %v5059_v63 = vcombine.low %v5003_v10, %v5035_v41  ;;  %v5195_v3 = vcombine.low %v5139_v52, %v5171_v37  ;;  %v5060_v26 = vcombine.high %v5003_v10, %v5035_v41  ;;  %v5196_v34 = vcombine.high %v5139_v52, %v5171_v37 }
 0x880   : > { %v5627_v17 = vrot.slane %v5619_v62, %v11130_v12  ;;  %v5634_v5 = vrot.slane %v5620_v29, %v11130_v12  ;;  %v5763_v23 = vrot.slane %v5755_v25, %v11130_v12  ;;  %v5770_v7 = vrot.slane %v5756_v36, %v11130_v12 }
 0x881   : > { %v5254_v14 = vpop.permute.xlu1 %5253  ;;  %v5264_v39 = vpop.permute.xlu0 %5263  ;;  %v5203_v6 = vpack.c.bf16 %v5195_v3, %v5059_v63  ;;  %v12589_v27 = vpack.c.bf16 %v5196_v34, %v5060_v26  ;;  %v5061_v4 = vcombine.low %v12557_v11, %v12561_v44  ;;  %v5197_v16 = vcombine.low %v12575_v53, %v12579_v18 }
 0x882   : > { %v5667_v13 = vcombine.low %v5611_v55, %v5627_v17  ;;  %v5668_v9 = vcombine.high %v5611_v55, %v5627_v17  ;;  %v5683_v10 = vcombine.low %v5618_v19, %v5634_v5  ;;  %v5684_v41 = vcombine.high %v5618_v19, %v5634_v5 }
 0x883   : > { %v5803_v22 = vcombine.low %v5747_v49, %v5763_v23  ;;  %v5804_v40 = vcombine.high %v5747_v49, %v5763_v23  ;;  %v5819_v46 = vcombine.low %v5754_v28, %v5770_v7  ;;  %v5820_v0 = vcombine.high %v5754_v28, %v5770_v7  ;;  %10311 = vmatmul.mubr.msk.bf16.vlgmr.msra.gmra.mxu1 %vm2647_vm3, %v5203_v6 }
 0x884   : > { %v5675_v51 = vrot.slane %v5667_v13, %v11133_v15  ;;  %v5682_v30 = vrot.slane %v5668_v9, %v11133_v15  ;;  %v5691_v45 = vrot.slane %v5683_v10, %v11133_v15  ;;  %v5698_v60 = vrot.slane %v5684_v41, %v11133_v15  ;;  %10315 = vmatpush3.bf16.xpose.msra.mxu1 %v12523_v38 }
 0x885   : > { %v5811_v33 = vrot.slane %v5803_v22, %v11133_v15  ;;  %v5818_v56 = vrot.slane %v5804_v40, %v11133_v15  ;;  %v5827_v20 = vrot.slane %v5819_v46, %v11133_v15  ;;  %v5834_v42 = vrot.slane %v5820_v0, %v11133_v15  ;;  %v5266_v21 = vpop.permute.xlu1 %5265  ;;  %v5276_v54 = vpop.permute.xlu0 %5275  ;;  %10316 = vmatprep.subr.bf16.mxu1 %v13751_v2 }
 0x886   : > { %v9865_v55 = vcombine.low %v5675_v51, %v5682_v30  ;;  %v9867_v19 = vcombine.high %v5675_v51, %v5682_v30  ;;  %v9869_v49 = vcombine.low %v5691_v45, %v5698_v60  ;;  %v9871_v28 = vcombine.high %v5691_v45, %v5698_v60  ;;  %10318 = vmatprep.mubr.msk.bf16.mxu1 %vm10822_vm2, %v13751_v2 }
 0x887   : > { %v9873_v38 = vcombine.low %v5811_v33, %v5818_v56  ;;  %v9875_v52 = vcombine.high %v5811_v33, %v5818_v56  ;;  %v9877_v37 = vcombine.low %v5827_v20, %v5834_v42  ;;  %v9879_v8 = vcombine.high %v5827_v20, %v5834_v42 }
 0x888   : > { %v12609_v62 = vrot.slane %v9865_v55, %v11130_v12  ;;  %v12612_v29 = vrot.slane %v9867_v19, %v11130_v12  ;;  %v12615_v25 = vrot.slane %v9869_v49, %v11130_v12  ;;  %v12618_v36 = vrot.slane %v9871_v28, %v11130_v12 }
 0x889   : > { %v12621_v63 = vrot.slane %v9873_v38, %v11130_v12  ;;  %v12624_v3 = vrot.slane %v9875_v52, %v11130_v12  ;;  %v12627_v26 = vrot.slane %v9877_v37, %v11130_v12  ;;  %v12630_v34 = vrot.slane %v9879_v8, %v11130_v12  ;;  %v5278_v17 = vpop.permute.xlu1 %5277  ;;  %v5288_v5 = vpop.permute.xlu0 %5287 }
 0x88a   : > { %v5331_v23 = vcombine.low %v12581_v35, %v5276_v54  ;;  %v5332_v7 = vcombine.high %v12581_v35, %v5276_v54  ;;  %v5467_v6 = vcombine.low %v5254_v14, %v5278_v17  ;;  %v5468_v13 = vcombine.high %v5254_v14, %v5278_v17 }
 0x88b   : > { %v5347_v9 = vcombine.low %v5264_v39, %v5288_v5  ;;  %v5348_v10 = vcombine.high %v5264_v39, %v5288_v5  ;;  %v6195_v41 = vcombine.low %v12609_v62, %v12612_v29  ;;  %v6227_v22 = vcombine.low %v12615_v25, %v12618_v36 }
 0x88c   : > { %v5339_v40 = vrot.slane %v5331_v23, %v11130_v12  ;;  %v5346_v46 = vrot.slane %v5332_v7, %v11130_v12  ;;  %v5475_v0 = vrot.slane %v5467_v6, %v11130_v12  ;;  %v5482_v51 = vrot.slane %v5468_v13, %v11130_v12  ;;  %10317 = vmatpush3.bf16.xpose.msra.mxu1 %v12507_v1 }
 0x88d   : > { %v5355_v35 = vrot.slane %v5347_v9, %v11130_v12  ;;  %v5362_v14 = vrot.slane %v5348_v10, %v11130_v12  ;;  %v5290_v39 = vpop.permute.xlu1 %5289  ;;  %v4636_v30 = vpop.permute.xlu0 %4635  ;;  %10322 = vmatprep.subr.bf16.mxu1 %v13751_v2  ;;  %v12647_v45 = vrot.slane %v6195_v41, %v11133_v15  ;;  %v12650_v60 = vrot.slane %v6227_v22, %v11133_v15 }
 0x88e   : > { %v5483_v33 = vcombine.low %v5266_v21, %v5290_v39  ;;  %v5484_v56 = vcombine.high %v5266_v21, %v5290_v39  ;;  %v6331_v20 = vcombine.low %v12621_v63, %v12624_v3  ;;  %v6363_v1 = vcombine.low %v12627_v26, %v12630_v34 }
 0x88f   : > { %v5395_v42 = vcombine.low %v5339_v40, %v5355_v35  ;;  %v5396_v54 = vcombine.high %v5339_v40, %v5355_v35  ;;  %v5411_v55 = vcombine.low %v5346_v46, %v5362_v14  ;;  %v5412_v19 = vcombine.high %v5346_v46, %v5362_v14 }
 0x890   : > { %v5491_v49 = vrot.slane %v5483_v33, %v11130_v12  ;;  %v5498_v28 = vrot.slane %v5484_v56, %v11130_v12  ;;  %v6247_v38 = vcombine.low %v12647_v45, %v12650_v60  ;;  %v12661_v52 = vrot.slane %v6331_v20, %v11133_v15 }
 0x891   : > { %v5403_v21 = vrot.slane %v5395_v42, %v11133_v15  ;;  %v5410_v37 = vrot.slane %v5396_v54, %v11133_v15  ;;  %v5419_v8 = vrot.slane %v5411_v55, %v11133_v15  ;;  %v5426_v17 = vrot.slane %v5412_v19, %v11133_v15  ;;  %v4638_v5 = vpop.permute.xlu1 %4637  ;;  %v4642_v23 = vpop.permute.xlu0 %4641 }
 0x892   : > { %v5531_v7 = vcombine.low %v5475_v0, %v5491_v49  ;;  %v5532_v6 = vcombine.high %v5475_v0, %v5491_v49  ;;  %v5547_v13 = vcombine.low %v5482_v51, %v5498_v28  ;;  %v5548_v9 = vcombine.high %v5482_v51, %v5498_v28 }
 0x893   : > { %v9849_v10 = vcombine.low %v5403_v21, %v5410_v37  ;;  %v9851_v41 = vcombine.high %v5403_v21, %v5410_v37  ;;  %v9853_v22 = vcombine.low %v5419_v8, %v5426_v17  ;;  %v9855_v40 = vcombine.high %v5419_v8, %v5426_v17  ;;  %10319 = vmatmul.mubr.msk.bf16.vlgmr.msra.gmra.mxu1 %vm2647_vm3, %v12589_v27 }
 0x894   : > { %v5539_v46 = vrot.slane %v5531_v7, %v11133_v15  ;;  %v5546_v35 = vrot.slane %v5532_v6, %v11133_v15  ;;  %v5555_v14 = vrot.slane %v5547_v13, %v11133_v15  ;;  %v5562_v39 = vrot.slane %v5548_v9, %v11133_v15  ;;  %10323 = vmatpush3.bf16.xpose.msra.mxu1 %v12531_v50 }
 0x895   : > { %v12675_v0 = vrot.slane %v9849_v10, %v11130_v12  ;;  %v12678_v51 = vrot.slane %v9851_v41, %v11130_v12  ;;  %v12681_v33 = vrot.slane %v9853_v22, %v11130_v12  ;;  %v12684_v27 = vrot.slane %v9855_v40, %v11130_v12  ;;  %v4644_v56 = vpop.permute.xlu1 %4643  ;;  %v4648_v20 = vpop.permute.xlu0 %4647  ;;  %10324 = vmatprep.subr.bf16.mxu1 %v13751_v2 }
 0x896   : > { %v9857_v42 = vcombine.low %v5539_v46, %v5546_v35  ;;  %v9859_v54 = vcombine.high %v5539_v46, %v5546_v35  ;;  %v9861_v55 = vcombine.low %v5555_v14, %v5562_v39  ;;  %v9863_v50 = vcombine.high %v5555_v14, %v5562_v39  ;;  %10326 = vmatprep.mubr.msk.bf16.mxu1 %vm10822_vm2, %v13751_v2 }
 0x897   : > { %v12690_v19 = vrot.slane %v6363_v1, %v11133_v15  ;;  %v4691_v49 = vcombine.low %v4636_v30, %v4648_v20  ;;  %v4692_v28 = vcombine.high %v4636_v30, %v4648_v20  ;;  %v5205_v21 = vpack.c.bf16 %v5197_v16, %v5061_v4 }
 0x898   : > { %v12699_v37 = vrot.slane %v9857_v42, %v11130_v12  ;;  %v12702_v8 = vrot.slane %v9859_v54, %v11130_v12  ;;  %v12705_v17 = vrot.slane %v9861_v55, %v11130_v12  ;;  %v12708_v1 = vrot.slane %v9863_v50, %v11130_v12 }
 0x899   : > { %v6383_v30 = vcombine.low %v12661_v52, %v12690_v19  ;;  %v4699_v7 = vrot.slane %v4691_v49, %v11130_v12  ;;  %v4706_v6 = vrot.slane %v4692_v28, %v11130_v12  ;;  %v4650_v4 = vpop.permute.xlu1 %4649  ;;  %v4654_v16 = vpop.permute.xlu0 %4653  ;;  %v5923_v13 = vcombine.low %v12675_v0, %v12678_v51 }
 0x89a   : > { %v4827_v9 = vcombine.low %v4638_v5, %v4650_v4  ;;  %v4828_v10 = vcombine.high %v4638_v5, %v4650_v4  ;;  %v4707_v41 = vcombine.low %v4642_v23, %v4654_v16  ;;  %v4708_v22 = vcombine.high %v4642_v23, %v4654_v16 }
 0x89b   : > { %v6396_v40 = vpack.c.bf16 %v6383_v30, %v6247_v38  ;;  %v12717_v46 = vrot.slane %v5923_v13, %v11133_v15  ;;  %v5955_v35 = vcombine.low %v12681_v33, %v12684_v27  ;;  %v6059_v14 = vcombine.low %v12699_v37, %v12702_v8 }
 0x89c   : > { %v4835_v39 = vrot.slane %v4827_v9, %v11130_v12  ;;  %v4842_v20 = vrot.slane %v4828_v10, %v11130_v12  ;;  %v4715_v42 = vrot.slane %v4707_v41, %v11130_v12  ;;  %v4722_v5 = vrot.slane %v4708_v22, %v11130_v12  ;;  %10325 = vmatpush3.bf16.xpose.msra.mxu1 %v12511_v59 }
 0x89d   : > { %v7802_v38 = vsel %vm2647_vm3, %v6396_v40, 0  ;;  %v4656_v23 = vpop.permute.xlu1 %4655  ;;  %v12729_v54 = vpop.permute.xlu0 %6413  ;;  %10330 = vmatprep.subr.bf16.mxu1 %v13751_v2  ;;  %v12733_v55 = vrot.slane %v5955_v35, %v11133_v15  ;;  %v12736_v50 = vrot.slane %v6059_v14, %v11133_v15  ;;  %v6091_v49 = vcombine.low %v12705_v17, %v12708_v1 }
 0x89e   : > { %10339 = vmatpush3.bf16.xpose.msra.mxu0 %v7802_v38  ;;  %v4755_v28 = vcombine.low %v4699_v7, %v4715_v42  ;;  %v4756_v30 = vcombine.high %v4699_v7, %v4715_v42  ;;  %v4771_v59 = vcombine.low %v4706_v6, %v4722_v5  ;;  %v4772_v4 = vcombine.high %v4706_v6, %v4722_v5 }
 0x89f   : > { %v4843_v16 = vcombine.low %v4644_v56, %v4656_v23  ;;  %v4844_v13 = vcombine.high %v4644_v56, %v4656_v23  ;;  %10340 = vmatprep.subr.bf16.mxu0 %v13751_v2  ;;  %v5975_v9 = vcombine.low %v12717_v46, %v12733_v55  ;;  %v12744_v10 = vrot.slane %v6091_v49, %v11133_v15 }
 0x8a0   : > { %v4763_v41 = vrot.slane %v4755_v28, %v11133_v15  ;;  %v4770_v22 = vrot.slane %v4756_v30, %v11133_v15  ;;  %v4779_v40 = vrot.slane %v4771_v59, %v11133_v15  ;;  %v4786_v7 = vrot.slane %v4772_v4, %v11133_v15 }
 0x8a1   : > { %v4851_v6 = vrot.slane %v4843_v16, %v11130_v12  ;;  %v4858_v56 = vrot.slane %v4844_v13, %v11130_v12  ;;  %v6412_v35 = vpop.permute.xlu1 %6411  ;;  %v6436_v14 = vpop.permute.xlu0 %6435  ;;  %v6111_v42 = vcombine.low %v12736_v50, %v12744_v10 }
 0x8a2   : > { %v9833_v38 = vcombine.low %v4763_v41, %v4770_v22  ;;  %v9835_v23 = vcombine.high %v4763_v41, %v4770_v22  ;;  %v9837_v49 = vcombine.low %v4779_v40, %v4786_v7  ;;  %v9839_v28 = vcombine.high %v4779_v40, %v4786_v7 }
 0x8a3   : > { %v4891_v30 = vcombine.low %v4835_v39, %v4851_v6  ;;  %v4892_v59 = vcombine.high %v4835_v39, %v4851_v6  ;;  %v4907_v2 = vcombine.low %v4842_v20, %v4858_v56  ;;  %v4908_v4 = vcombine.high %v4842_v20, %v4858_v56  ;;  %10327 = vmatmul.mubr.msk.bf16.vlgmr.msra.gmra.mxu1 %vm2647_vm3, %v5205_v21 }
 0x8a4   : > { %v4946_v16 = vrot.slane %v9833_v38, %v11130_v12  ;;  %v4962_v13 = vrot.slane %v9835_v23, %v11130_v12  ;;  %v4978_v24 = vrot.slane %v9837_v49, %v11130_v12  ;;  %v4994_v47 = vrot.slane %v9839_v28, %v11130_v12  ;;  %10331 = vmatpush3.bf16.xpose.msra.mxu1 %v12535_v32 }
 0x8a5   : > { %v4899_v41 = vrot.slane %v4891_v30, %v11133_v15  ;;  %v4906_v22 = vrot.slane %v4892_v59, %v11133_v15  ;;  %v4915_v39 = vrot.slane %v4907_v2, %v11133_v15  ;;  %v4922_v20 = vrot.slane %v4908_v4, %v11133_v15  ;;  %v6424_v40 = vpop.permute.xlu1 %6423  ;;  %v12766_v21 = vpop.permute.xlu0 %6407 }
 0x8a6   : > { %v13785_v7 = vmov 0.0   ;;  %v5011_v6 = vcombine.low %v4946_v16, %v4962_v13  ;;  %v5012_v56 = vcombine.high %v4946_v16, %v4962_v13  ;;  %v5043_v38 = vcombine.low %v4978_v24, %v4994_v47 }
 0x8a7   : > { %10332 = vmatprep.subr.bf16.mxu1 %v13785_v7  ;;  %v5044_v23 = vcombine.high %v4978_v24, %v4994_v47  ;;  %10334 = vmatprep.mubr.msk.bf16.mxu1 %vm10822_vm2, %v13785_v7  ;;  %v9841_v32 = vcombine.low %v4899_v41, %v4906_v22  ;;  %v9843_v49 = vcombine.high %v4899_v41, %v4906_v22 }
 0x8a8   : > { %v9845_v28 = vcombine.low %v4915_v39, %v4922_v20  ;;  %v9847_v30 = vcombine.high %v4915_v39, %v4922_v20  ;;  %v12772_v2 = vrot.slane %v5011_v6, %v11133_v15  ;;  %v12775_v59 = vrot.slane %v5012_v56, %v11133_v15 }
 0x8a9   : > { %v12778_v4 = vrot.slane %v5043_v38, %v11133_v15  ;;  %v12781_v16 = vrot.slane %v5044_v23, %v11133_v15  ;;  %v5082_v47 = vrot.slane %v9841_v32, %v11130_v12  ;;  %v5098_v24 = vrot.slane %v9843_v49, %v11130_v12  ;;  %v6426_v22 = vpop.permute.xlu1 %6425  ;;  %v6420_v38 = vpop.permute.xlu0 %6419 }
 0x8aa   : > { %13786 = vst [vmem:[#allocation5_spill] sm:$0xff] %v12775_v59  ;;  %v5114_v13 = vrot.slane %v9845_v28, %v11130_v12  ;;  %v5130_v41 = vrot.slane %v9847_v30, %v11130_v12  ;;  %v6779_v20 = vcombine.low %v6412_v35, %v6436_v14  ;;  %v6780_v6 = vcombine.high %v6412_v35, %v6436_v14 }
 0x8ab   : > { %13787 = vst [vmem:[#allocation6_spill] sm:$0xff] %v12781_v16  ;;  %v6395_v56 = vpack.c.bf16 %v6111_v42, %v5975_v9  ;;  %v5147_v5 = vcombine.low %v5082_v47, %v5098_v24  ;;  %v5148_v61 = vcombine.high %v5082_v47, %v5098_v24  ;;  %v6763_v30 = vcombine.low %v12242_v31, %v6424_v40 }
 0x8ac   : > { %v5179_v23 = vcombine.low %v5114_v13, %v5130_v41  ;;  %v5180_v59 = vcombine.high %v5114_v13, %v5130_v41  ;;  %v6787_v32 = vrot.slane %v6779_v20, %v11130_v12  ;;  %v6794_v49 = vrot.slane %v6780_v6, %v11130_v12  ;;  %10333 = vmatpush3.bf16.xpose.msra.mxu1 %v12527_v58 }
 0x8ad   : > { %v7799_v28 = vsel %vm2647_vm3, %v6395_v56, 0  ;;  %v12795_v39 = vrot.slane %v5147_v5, %v11133_v15  ;;  %v12798_v9 = vrot.slane %v5148_v61, %v11133_v15  ;;  %v6438_v42 = vpop.permute.xlu1 %6437  ;;  %v6764_v47 = vcombine.high %v12242_v31, %v6424_v40  ;;  %10346 = vmatprep.subr.bf16.mxu1 %v13785_v7 }
 0x8ae   : > { %v12801_v35 = vrot.slane %v5179_v23, %v11133_v15  ;;  %v12804_v14 = vrot.slane %v5180_v59, %v11133_v15  ;;  %10341 = vmatpush3.bf16.xpose.msra.mxu0 %v7799_v28  ;;  %v6771_v24 = vrot.slane %v6763_v30, %v11130_v12  ;;  %v6899_v58 = vcombine.low %v12451_v57, %v6426_v22 }
 0x8af   : > { %13788 = vst [vmem:[#allocation7_spill] sm:$0xff] %v12795_v39  ;;  %13789 = vst [vmem:[#allocation8_spill] sm:$0xff] %v12798_v9  ;;  %v6900_v5 = vcombine.high %v12451_v57, %v6426_v22  ;;  %v6491_v13 = vcombine.low %v12228_v43, %v6420_v38  ;;  %v6492_v59 = vcombine.high %v12228_v43, %v6420_v38  ;;  %10354 = vmatprep.subr.bf16.mxu0 %v13785_v7  ;;  %v6432_v57 = vpop.permute.xlu0 %6431 }
 0x8b0   : > { %13790 = vst [vmem:[#allocation9_spill] sm:$0xff] %v12804_v14  ;;  %v5199_v61 = vcombine.low %v12795_v39, %v12801_v35  ;;  %v6915_v41 = vcombine.low %v12729_v54, %v6438_v42  ;;  %v6778_v31 = vrot.slane %v6764_v47, %v11130_v12  ;;  %v6827_v40 = vcombine.low %v6771_v24, %v6787_v32 }
 0x8b1   : > { %v6828_v20 = vcombine.high %v6771_v24, %v6787_v32  ;;  %v6907_v6 = vrot.slane %v6899_v58, %v11130_v12  ;;  %v6914_v22 = vrot.slane %v6900_v5, %v11130_v12  ;;  %v6499_v56 = vrot.slane %v6491_v13, %v11130_v12  ;;  %v12823_v38 = vpop.permute.xlu1 %6409 }
 0x8b2   : > { %v6506_v23 = vrot.slane %v6492_v59, %v11130_v12  ;;  %v6916_v28 = vcombine.high %v12729_v54, %v6438_v42  ;;  %v6835_v30 = vrot.slane %v6827_v40, %v11133_v15  ;;  %v6843_v47 = vcombine.low %v6778_v31, %v6794_v49 }
 0x8b3   : > { %v6842_v43 = vrot.slane %v6828_v20, %v11133_v15  ;;  %v6844_v9 = vcombine.high %v6778_v31, %v6794_v49  ;;  %v6923_v32 = vrot.slane %v6915_v41, %v11130_v12  ;;  %v6507_v58 = vcombine.low %v12766_v21, %v6432_v57 }
 0x8b4   : > { %v6930_v24 = vrot.slane %v6916_v28, %v11130_v12  ;;  %v6508_v5 = vcombine.high %v12766_v21, %v6432_v57  ;;  %v6851_v13 = vrot.slane %v6843_v47, %v11133_v15 }
 0x8b5   : > { %v6858_v54 = vrot.slane %v6844_v9, %v11133_v15  ;;  %v9896_v42 = vcombine.low %v6835_v30, %v6842_v43  ;;  %v9898_v59 = vcombine.high %v6835_v30, %v6842_v43  ;;  %v6963_v14 = vcombine.low %v6907_v6, %v6923_v32  ;;  %v12833_v39 = vpop.permute.xlu1 %6421 }
 0x8b6   : > { %v6964_v40 = vcombine.high %v6907_v6, %v6923_v32  ;;  %v6979_v16 = vcombine.low %v6914_v22, %v6930_v24  ;;  %v6980_v20 = vcombine.high %v6914_v22, %v6930_v24  ;;  %v6515_v30 = vrot.slane %v6507_v58, %v11130_v12 }
 0x8b7   : > { %v12836_v49 = vrot.slane %v9896_v42, %v11130_v12  ;;  %v12839_v41 = vrot.slane %v9898_v59, %v11130_v12  ;;  %v9900_v31 = vcombine.low %v6851_v13, %v6858_v54  ;;  %v9902_v21 = vcombine.high %v6851_v13, %v6858_v54 }
 0x8b8   : > { %v6971_v57 = vrot.slane %v6963_v14, %v11133_v15  ;;  %v6978_v9 = vrot.slane %v6964_v40, %v11133_v15  ;;  %v6987_v43 = vrot.slane %v6979_v16, %v11133_v15  ;;  %v6994_v6 = vrot.slane %v6980_v20, %v11133_v15 }
 0x8b9   : > { %v12846_v22 = vrot.slane %v9900_v31, %v11130_v12  ;;  %v12849_v28 = vrot.slane %v9902_v21, %v11130_v12  ;;  %v6522_v47 = vrot.slane %v6508_v5, %v11130_v12  ;;  %v6434_v54 = vpop.permute.xlu1 %6433  ;;  %v6555_v42 = vcombine.low %v6499_v56, %v6515_v30 }
 0x8ba   : > { %v9904_v32 = vcombine.low %v6971_v57, %v6978_v9  ;;  %v9906_v24 = vcombine.high %v6971_v57, %v6978_v9  ;;  %v9908_v13 = vcombine.low %v6987_v43, %v6994_v6  ;;  %v9910_v14 = vcombine.high %v6987_v43, %v6994_v6 }
 0x8bb   : > { %v6556_v59 = vcombine.high %v6499_v56, %v6515_v30  ;;  %v6571_v16 = vcombine.low %v6506_v23, %v6522_v47  ;;  %v6572_v40 = vcombine.high %v6506_v23, %v6522_v47  ;;  %v6563_v5 = vrot.slane %v6555_v42, %v11133_v15 }
 0x8bc   : > { %v12854_v20 = vrot.slane %v9904_v32, %v11130_v12  ;;  %v12857_v31 = vrot.slane %v9906_v24, %v11130_v12  ;;  %v12860_v21 = vrot.slane %v9908_v13, %v11130_v12  ;;  %v12863_v58 = vrot.slane %v9910_v14, %v11130_v12 }
 0x8bd   : > { %v6570_v57 = vrot.slane %v6556_v59, %v11133_v15  ;;  %v6579_v56 = vrot.slane %v6571_v16, %v11133_v15  ;;  %v6586_v23 = vrot.slane %v6572_v40, %v11133_v15  ;;  %v5198_v9 = vcombine.high %v12575_v53, %v12579_v18 }
 0x8be   : > { %v13791_v43 = vcombine.low %v12772_v2, %v12778_v4  ;;  %v6248_v30 = vcombine.high %v12647_v45, %v12650_v60  ;;  %v6384_v47 = vcombine.high %v12661_v52, %v12690_v19  ;;  %v13792_v42 = vcombine.high %v12557_v11, %v12561_v44  ;;  %v12886_v60 = vpop.permute.xlu1 %6447 }
 0x8bf   : > { %v9880_v32 = vcombine.low %v6563_v5, %v6570_v57  ;;  %v9882_v24 = vcombine.high %v6563_v5, %v6570_v57  ;;  %v9884_v13 = vcombine.low %v6579_v56, %v6586_v23  ;;  %v9886_v14 = vcombine.high %v6579_v56, %v6586_v23 }
 0x8c0   : > { %v5207_v6 = vpack.c.bf16 %v5199_v61, %v13791_v43  ;;  %v5206_v59 = vpack.c.bf16 %v5198_v9, %v13792_v42  ;;  %v6398_v53 = vpack.c.bf16 %v6384_v47, %v6248_v30  ;;  %v6196_v18 = vcombine.high %v12609_v62, %v12612_v29  ;;  %v12912_v61 = vpop.permute.xlu0 %6449 }
 0x8c1   : > { %v6228_v45 = vcombine.high %v12615_v25, %v12618_v36  ;;  %v12889_v52 = vrot.slane %v9880_v32, %v11130_v12  ;;  %v12892_v19 = vrot.slane %v9882_v24, %v11130_v12  ;;  %v12895_v11 = vrot.slane %v9884_v13, %v11130_v12 }
 0x8c2   : > { %10343 = vmatmul.mubr.msk.bf16.vlgmr.msra.gmra.mxu0 %vm2647_vm3, %v5207_v6  ;;  %v12898_v44 = vrot.slane %v9886_v14, %v11130_v12  ;;  %10335 = vmatmul.mubr.msk.bf16.vlgmr.msra.gmra.mxu1 %vm2647_vm3, %v5206_v59  ;;  %v7852_v62 = vsel %vm2647_vm3, %v6398_v53, 0  ;;  %v12905_v29 = vrot.slane %v6196_v18, %v11133_v15  ;;  %v6332_v36 = vcombine.high %v12621_v63, %v12624_v3 }
 0x8c3   : > { %10358 = vmatprep.mubr.msk.bf16.mxu0 %vm10822_vm2, %v13785_v7  ;;  %v12908_v25 = vrot.slane %v6228_v45, %v11133_v15  ;;  %10347 = vmatpush3.bf16.xpose.msra.mxu1 %v7852_v62  ;;  %v6364_v16 = vcombine.high %v12627_v26, %v12630_v34  ;;  %v6627_v40 = vcombine.low %v12234_v48, %v12833_v39 }
 0x8c4   : > { %v6628_v5 = vcombine.high %v12234_v48, %v12833_v39  ;;  %v6643_v57 = vcombine.low %v12823_v38, %v6434_v54  ;;  %v12924_v23 = vrot.slane %v6332_v36, %v11133_v15  ;;  %10348 = vmatprep.subr.bf16.mxu1 %v13785_v7  ;;  %v6644_v63 = vcombine.high %v12823_v38, %v6434_v54  ;;  %v6460_v54 = vpop.permute.xlu1 %6459 }
 0x8c5   : > { %v6249_v56 = vcombine.low %v12905_v29, %v12908_v25  ;;  %v5976_v3 = vcombine.high %v12717_v46, %v12733_v55  ;;  %v12931_v26 = vrot.slane %v6364_v16, %v11133_v15  ;;  %v6635_v34 = vrot.slane %v6627_v40, %v11130_v12  ;;  %10350 = vmatprep.mubr.msk.bf16.mxu1 %vm10822_vm2, %v13785_v7 }
 0x8c6   : > { %v6642_v39 = vrot.slane %v6628_v5, %v11130_v12  ;;  %v6651_v9 = vrot.slane %v6643_v57, %v11130_v12  ;;  %v6658_v43 = vrot.slane %v6644_v63, %v11130_v12  ;;  %v6112_v38 = vcombine.high %v12736_v50, %v12744_v10 }
 0x8c7   : > { %v5924_v46 = vcombine.high %v12675_v0, %v12678_v51  ;;  %v5956_v55 = vcombine.high %v12681_v33, %v12684_v27  ;;  %v6385_v6 = vcombine.low %v12924_v23, %v12931_v26  ;;  %v6060_v32 = vcombine.high %v12699_v37, %v12702_v8  ;;  %v6472_v0 = vpop.permute.xlu0 %6471 }
 0x8c8   : > { %v6691_v30 = vcombine.low %v6635_v34, %v6651_v9  ;;  %v6692_v47 = vcombine.high %v6635_v34, %v6651_v9  ;;  %v6707_v24 = vcombine.low %v6642_v39, %v6658_v43  ;;  %v6708_v13 = vcombine.high %v6642_v39, %v6658_v43  ;;  %v12969_v57 = vpop.permute.xlu1 %6461 }
 0x8c9   : > { %v6397_v14 = vpack.c.bf16 %v6112_v38, %v5976_v3  ;;  %v12950_v50 = vrot.slane %v5924_v46, %v11133_v15  ;;  %v6400_v10 = vpack.c.bf16 %v6385_v6, %v6249_v56  ;;  %v12955_v27 = vrot.slane %v5956_v55, %v11133_v15  ;;  %v13796_v6 = vld [vmem:[#allocation9_spill] sm:$0xff] }
 0x8ca   : > { %v6699_v51 = vrot.slane %v6691_v30, %v11133_v15  ;;  %v6706_v33 = vrot.slane %v6692_v47, %v11133_v15  ;;  %v6715_v42 = vrot.slane %v6707_v24, %v11133_v15  ;;  %v6722_v59 = vrot.slane %v6708_v13, %v11133_v15  ;;  %v13797_v30 = vld [vmem:[#allocation8_spill] sm:$0xff] }
 0x8cb   : > { %v7849_v37 = vsel %vm2647_vm3, %v6397_v14, 0  ;;  %v12961_v8 = vrot.slane %v6060_v32, %v11133_v15  ;;  %v7902_v53 = vsel %vm2647_vm3, %v6400_v10, 0  ;;  %v5977_v62 = vcombine.low %v12950_v50, %v12955_v27  ;;  %v6484_v43 = vpop.permute.xlu0 %6483 }
 0x8cc   : > { %v9888_v18 = vcombine.low %v6699_v51, %v6706_v33  ;;  %v9890_v45 = vcombine.high %v6699_v51, %v6706_v33  ;;  %10349 = vmatpush3.bf16.xpose.msra.mxu1 %v7849_v37  ;;  %10355 = vmatpush3.bf16.xpose.msra.mxu0 %v7902_v53  ;;  %v9892_v36 = vcombine.low %v6715_v42, %v6722_v59 }
 0x8cd   : > { %v9894_v16 = vcombine.high %v6715_v42, %v6722_v59  ;;  %v6092_v40 = vcombine.high %v12705_v17, %v12708_v1  ;;  %v6795_v5 = vcombine.low %v12886_v60, %v6472_v0  ;;  %10356 = vmatprep.subr.bf16.mxu0 %v13785_v7  ;;  %v6796_v3 = vcombine.high %v12886_v60, %v6472_v0  ;;  %v13793_v60 = vld [vmem:[#allocation7_spill] sm:$0xff] }
 0x8ce   : > { %v12973_v56 = vrot.slane %v9888_v18, %v11130_v12  ;;  %v12976_v63 = vrot.slane %v9890_v45, %v11130_v12  ;;  %v5064_v34 = vcombine.high %v12772_v2, %v12778_v4  ;;  %v12982_v39 = vrot.slane %v9892_v36, %v11130_v12  ;;  %10362 = vmatprep.subr.bf16.mxu1 %v13785_v7  ;;  %v13794_v2 = vld [vmem:[#allocation6_spill] sm:$0xff]  ;;  %v13795_v4 = vld [vmem:[#allocation5_spill] sm:$0xff] }
 0x8cf   : > { %v12985_v17 = vrot.slane %v9894_v16, %v11130_v12  ;;  %v12988_v1 = vrot.slane %v6092_v40, %v11133_v15  ;;  %v6803_v9 = vrot.slane %v6795_v5, %v11130_v12  ;;  %v6810_v38 = vrot.slane %v6796_v3, %v11130_v12 }
 0x8d0   : > { %v5200_v46 = vcombine.high %v13793_v60, %v12801_v35  ;;  %v5065_v55 = vcombine.low %v13795_v4, %v13794_v2  ;;  %v5201_v47 = vcombine.low %v13797_v30, %v13796_v6  ;;  %v6811_v24 = vcombine.low %v6460_v54, %v6484_v43 }
 0x8d1   : > { %v6113_v32 = vcombine.low %v12961_v8, %v12988_v1  ;;  %v6812_v13 = vcombine.high %v6460_v54, %v6484_v43  ;;  %v6250_v14 = vcombine.high %v12905_v29, %v12908_v25  ;;  %v6386_v51 = vcombine.high %v12924_v23, %v12931_v26  ;;  %v6474_v54 = vpop.permute.xlu1 %6473 }
 0x8d2   : > { %v5208_v10 = vpack.c.bf16 %v5200_v46, %v5064_v34  ;;  %v5209_v0 = vpack.c.bf16 %v5201_v47, %v5065_v55  ;;  %v7371_v35 = vcombine.low %v12836_v49, %v12839_v41  ;;  %v6819_v42 = vrot.slane %v6811_v24, %v11130_v12 }
 0x8d3   : > { %v6399_v33 = vpack.c.bf16 %v6113_v32, %v5977_v62  ;;  %v6826_v59 = vrot.slane %v6812_v13, %v11130_v12  ;;  %v7403_v37 = vcombine.low %v12846_v22, %v12849_v28  ;;  %v6402_v29 = vpack.c.bf16 %v6386_v51, %v6250_v14 }
 0x8d4   : > { %10351 = vmatmul.mubr.msk.bf16.vlgmr.msra.gmra.mxu1 %vm2647_vm3, %v5208_v10  ;;  %v13013_v25 = vrot.slane %v7371_v35, %v11133_v15  ;;  %v7507_v23 = vcombine.low %v12854_v20, %v12857_v31  ;;  %v7539_v26 = vcombine.low %v12860_v21, %v12863_v58  ;;  %v6859_v18 = vcombine.low %v6803_v9, %v6819_v42 }
 0x8d5   : > { %v7899_v53 = vsel %vm2647_vm3, %v6399_v33, 0  ;;  %v6860_v45 = vcombine.high %v6803_v9, %v6819_v42  ;;  %v6875_v62 = vcombine.low %v6810_v38, %v6826_v59  ;;  %10366 = vmatprep.mubr.msk.bf16.mxu1 %vm10822_vm2, %v13785_v7  ;;  %v6876_v36 = vcombine.high %v6810_v38, %v6826_v59  ;;  %v6486_v13 = vpop.permute.xlu1 %6485 }
 0x8d6   : > { %10357 = vmatpush3.bf16.xpose.msra.mxu0 %v7899_v53  ;;  %v7952_v16 = vsel %vm2647_vm3, %v6402_v29, 0  ;;  %v13024_v40 = vrot.slane %v7403_v37, %v11133_v15  ;;  %v13027_v5 = vrot.slane %v7507_v23, %v11133_v15  ;;  %v6867_v3 = vrot.slane %v6859_v18, %v11133_v15 }
 0x8d7   : > { %10370 = vmatprep.subr.bf16.mxu0 %v13785_v7  ;;  %v6874_v34 = vrot.slane %v6860_v45, %v11133_v15  ;;  %v6883_v9 = vrot.slane %v6875_v62, %v11133_v15  ;;  %10363 = vmatpush3.bf16.xpose.msra.mxu1 %v7952_v16  ;;  %v6890_v43 = vrot.slane %v6876_v36, %v11133_v15 }
 0x8d8   : > { %v7435_v38 = vcombine.low %v13013_v25, %v13024_v40  ;;  %v7547_v60 = vrot.slane %v7539_v26, %v11133_v15  ;;  %10364 = vmatprep.subr.bf16.mxu1 %v13785_v7  ;;  %v6931_v46 = vcombine.low %v12912_v61, %v6474_v54  ;;  %v6932_v32 = vcombine.high %v12912_v61, %v6474_v54 }
 0x8d9   : > { %v9897_v55 = vcombine.low %v6867_v3, %v6874_v34  ;;  %v9899_v47 = vcombine.high %v6867_v3, %v6874_v34  ;;  %v5978_v24 = vcombine.high %v12950_v50, %v12955_v27  ;;  %v9901_v14 = vcombine.low %v6883_v9, %v6890_v43 }
 0x8da   : > { %v9903_v10 = vcombine.high %v6883_v9, %v6890_v43  ;;  %v7571_v51 = vcombine.low %v13027_v5, %v7547_v60  ;;  %v6939_v35 = vrot.slane %v6931_v46, %v11130_v12  ;;  %v6946_v59 = vrot.slane %v6932_v32, %v11130_v12 }
 0x8db   : > { %v13045_v33 = vrot.slane %v9897_v55, %v11130_v12  ;;  %v13048_v42 = vrot.slane %v9899_v47, %v11130_v12  ;;  %v6114_v61 = vcombine.high %v12961_v8, %v12988_v1  ;;  %v13054_v50 = vrot.slane %v9901_v14, %v11130_v12 }
 0x8dc   : > { %v13057_v27 = vrot.slane %v9903_v10, %v11130_v12  ;;  %v7580_v37 = vpack.c.bf16 %v7571_v51, %v7435_v38  ;;  %v6947_v54 = vcombine.low %v12969_v57, %v6486_v13  ;;  %v6948_v23 = vcombine.high %v12969_v57, %v6486_v13 }
 0x8dd   : > { %10359 = vmatmul.mubr.msk.bf16.vlgmr.msra.gmra.mxu0 %vm2647_vm3, %v5209_v0  ;;  %v6401_v29 = vpack.c.bf16 %v6114_v61, %v5978_v24  ;;  %v7099_v26 = vcombine.low %v12889_v52, %v12892_v19  ;;  %v7131_v8 = vcombine.low %v12895_v11, %v12898_v44  ;;  %v7235_v53 = vcombine.low %v12973_v56, %v12976_v63 }
 0x8de   : > { %10371 = vmatpush3.bf16.msra.mxu0 %v7580_v37  ;;  %v6955_v1 = vrot.slane %v6947_v54, %v11130_v12  ;;  %v7267_v18 = vcombine.low %v12982_v39, %v12985_v17  ;;  %v5066_v0 = vcombine.high %v13795_v4, %v13794_v2  ;;  %v6962_v45 = vrot.slane %v6948_v23, %v11130_v12 }
 0x8df   : > { %v7949_v57 = vsel %vm2647_vm3, %v6401_v29, 0  ;;  %10372 = vmatprep.subr.bf16.mxu0 %v13785_v7  ;;  %v7107_v62 = vrot.slane %v7099_v26, %v11133_v15  ;;  %v7139_v36 = vrot.slane %v7131_v8, %v11133_v15  ;;  %10374 = vmatprep.mubr.msk.bf16.mxu0 %vm10822_vm2, %v13785_v7  ;;  %v7243_v34 = vrot.slane %v7235_v53, %v11133_v15 }
 0x8e0   : > { %10365 = vmatpush3.bf16.xpose.msra.mxu1 %v7949_v57  ;;  %v6995_v16 = vcombine.low %v6939_v35, %v6955_v1  ;;  %v6996_v3 = vcombine.high %v6939_v35, %v6955_v1  ;;  %v7275_v2 = vrot.slane %v7267_v18, %v11133_v15  ;;  %v7011_v4 = vcombine.low %v6946_v59, %v6962_v45 }
 0x8e1   : > { %v7012_v9 = vcombine.high %v6946_v59, %v6962_v45  ;;  %v7163_v43 = vcombine.low %v7107_v62, %v7139_v36  ;;  %v5202_v38 = vcombine.high %v13797_v30, %v13796_v6  ;;  %10378 = vmatprep.subr.bf16.mxu1 %v13785_v7  ;;  %v7436_v32 = vcombine.high %v13013_v25, %v13024_v40 }
 0x8e2   : > { %v7003_v46 = vrot.slane %v6995_v16, %v11133_v15  ;;  %v7010_v55 = vrot.slane %v6996_v3, %v11133_v15  ;;  %v7299_v47 = vcombine.low %v7243_v34, %v7275_v2  ;;  %v7019_v24 = vrot.slane %v7011_v4, %v11133_v15 }
 0x8e3   : > { %v7026_v13 = vrot.slane %v7012_v9, %v11133_v15  ;;  %v5210_v14 = vpack.c.bf16 %v5202_v38, %v5066_v0  ;;  %v7572_v10 = vcombine.high %v13027_v5, %v7547_v60  ;;  %v7164_v30 = vcombine.high %v7107_v62, %v7139_v36 }
 0x8e4   : > { %v9905_v51 = vcombine.low %v7003_v46, %v7010_v55  ;;  %v9907_v35 = vcombine.high %v7003_v46, %v7010_v55  ;;  %v7579_v6 = vpack.c.bf16 %v7299_v47, %v7163_v43  ;;  %v7300_v54 = vcombine.high %v7243_v34, %v7275_v2 }
 0x8e5   : > { %v9909_v59 = vcombine.low %v7019_v24, %v7026_v13  ;;  %v9911_v61 = vcombine.high %v7019_v24, %v7026_v13  ;;  %v7582_v37 = vpack.c.bf16 %v7572_v10, %v7436_v32  ;;  %v7372_v25 = vcombine.high %v12836_v49, %v12839_v41 }
 0x8e6   : > { %v7458_v29 = vrot.slane %v9905_v51, %v11130_v12  ;;  %v7474_v23 = vrot.slane %v9907_v35, %v11130_v12  ;;  %10373 = vmatpush3.bf16.msra.mxu0 %v7579_v6  ;;  %v7404_v40 = vcombine.high %v12846_v22, %v12849_v28  ;;  %v7581_v26 = vpack.c.bf16 %v7300_v54, %v7164_v30 }
 0x8e7   : > { %v7490_v5 = vrot.slane %v9909_v59, %v11130_v12  ;;  %v7506_v60 = vrot.slane %v9911_v61, %v11130_v12  ;;  %10367 = vmatmul.mubr.msk.bf16.vlgmr.msra.gmra.mxu1 %vm2647_vm3, %v5210_v14  ;;  %10386 = vmatprep.subr.bf16.mxu0 %v13785_v7  ;;  %v7386_v8 = vrot.slane %v7372_v25, %v11133_v15 }
 0x8e8   : > { %10379 = vmatpush3.bf16.msra.mxu1 %v7582_v37  ;;  %v7418_v1 = vrot.slane %v7404_v40, %v11133_v15  ;;  %v7508_v49 = vcombine.high %v12854_v20, %v12857_v31  ;;  %v7540_v41 = vcombine.high %v12860_v21, %v12863_v58  ;;  %v7100_v22 = vcombine.high %v12889_v52, %v12892_v19 }
 0x8e9   : > { %10380 = vmatprep.subr.bf16.mxu1 %v13785_v7  ;;  %v7132_v28 = vcombine.high %v12895_v11, %v12898_v44  ;;  %v7236_v53 = vcombine.high %v12973_v56, %v12976_v63  ;;  %v7268_v18 = vcombine.high %v12982_v39, %v12985_v17  ;;  %10382 = vmatprep.mubr.msk.bf16.mxu1 %vm10822_vm2, %v13785_v7 }
 0x8ea   : > { %v7437_v0 = vcombine.low %v7386_v8, %v7418_v1  ;;  %v7522_v20 = vrot.slane %v7508_v49, %v11133_v15  ;;  %v7554_v31 = vrot.slane %v7540_v41, %v11133_v15  ;;  %v7438_v21 = vcombine.high %v7386_v8, %v7418_v1 }
 0x8eb   : > { %v7114_v58 = vrot.slane %v7100_v22, %v11133_v15  ;;  %v7146_v52 = vrot.slane %v7132_v28, %v11133_v15  ;;  %v7250_v19 = vrot.slane %v7236_v53, %v11133_v15  ;;  %v7282_v11 = vrot.slane %v7268_v18, %v11133_v15 }
 0x8ec   : > { %10381 = vmatpush3.bf16.msra.mxu1 %v7581_v26  ;;  %v7573_v44 = vcombine.low %v7522_v20, %v7554_v31  ;;  %v7574_v56 = vcombine.high %v7522_v20, %v7554_v31  ;;  %v7387_v63 = vcombine.low %v13045_v33, %v13048_v42  ;;  %v7419_v39 = vcombine.low %v13054_v50, %v13057_v27 }
 0x8ed   : > { %v7165_v17 = vcombine.low %v7114_v58, %v7146_v52  ;;  %v7301_v57 = vcombine.low %v7250_v19, %v7282_v11  ;;  %10394 = vmatprep.subr.bf16.mxu1 %v13785_v7  ;;  %v7166_v45 = vcombine.high %v7114_v58, %v7146_v52  ;;  %v7302_v62 = vcombine.high %v7250_v19, %v7282_v11 }
 0x8ee   : > { %v13130_v36 = vpack.c.bf16 %v7573_v44, %v7437_v0  ;;  %v13132_v16 = vpack.c.bf16 %v7574_v56, %v7438_v21  ;;  %v7395_v3 = vrot.slane %v7387_v63, %v11133_v15  ;;  %v7427_v34 = vrot.slane %v7419_v39, %v11133_v15 }
 0x8ef   : > { %v13136_v2 = vpack.c.bf16 %v7301_v57, %v7165_v17  ;;  %v13138_v4 = vpack.c.bf16 %v7302_v62, %v7166_v45  ;;  %v7523_v9 = vcombine.low %v7458_v29, %v7474_v23  ;;  %v7555_v43 = vcombine.low %v7490_v5, %v7506_v60 }
 0x8f0   : > { %v7439_v38 = vcombine.low %v7395_v3, %v7427_v34  ;;  %v7440_v46 = vcombine.high %v7395_v3, %v7427_v34  ;;  %v7388_v55 = vcombine.high %v13045_v33, %v13048_v42  ;;  %v7420_v47 = vcombine.high %v13054_v50, %v13057_v27 }
 0x8f1   : > { %v7531_v32 = vrot.slane %v7523_v9, %v11133_v15  ;;  %v7563_v24 = vrot.slane %v7555_v43, %v11133_v15  ;;  %v7524_v13 = vcombine.high %v7458_v29, %v7474_v23  ;;  %v7556_v14 = vcombine.high %v7490_v5, %v7506_v60 }
 0x8f2   : > { %v7402_v10 = vrot.slane %v7388_v55, %v11133_v15  ;;  %v7434_v51 = vrot.slane %v7420_v47, %v11133_v15 }
 0x8f3   : > { %v7575_v35 = vcombine.low %v7531_v32, %v7563_v24  ;;  %v7576_v6 = vcombine.high %v7531_v32, %v7563_v24  ;;  %v7538_v30 = vrot.slane %v7524_v13, %v11133_v15  ;;  %v7570_v59 = vrot.slane %v7556_v14, %v11133_v15 }
 0x8f4   : > { %v7441_v33 = vcombine.low %v7402_v10, %v7434_v51  ;;  %v7442_v42 = vcombine.high %v7402_v10, %v7434_v51 }
 0x8f5   : > { %v13150_v61 = vpack.c.bf16 %v7575_v35, %v7439_v38  ;;  %v13152_v50 = vpack.c.bf16 %v7576_v6, %v7440_v46  ;;  %v7577_v27 = vcombine.low %v7538_v30, %v7570_v59  ;;  %v7578_v37 = vcombine.high %v7538_v30, %v7570_v59  ;;  %v13798_v59 = vld [vmem:[#allocation4_spill] sm:$0xff] }
 0x8f7   : > { %v13154_v54 = vpack.c.bf16 %v7577_v27, %v7441_v33  ;;  %v13156_v29 = vpack.c.bf16 %v7578_v37, %v7442_v42  ;;  %v13224_v33 = vpop.permute.xlu0 %6443 }
 0x8fb   : > { %v13226_v42 = vpop.permute.xlu0 %6455 }
 0x943   : > { %v13158_v23 = vpop.f32.mrf.mxu1 }
 0x944   : > { %v7995_v25 = vsel %vm4162_vm4, %v13158_v23, -inf }
 0x945   : > { %v10312_v40 = vpop.f32.mrf.mxu1  ;;  %7996 = vmax.xlane.f32.xlu0 %v7995_v25 }
 0x947   : > { %v13162_v5 = vpop.f32.mrf.mxu1 }
 0x948   : > { %v7998_v52 = vsel %vm4162_vm4, %v13162_v5, -inf }
 0x949   : > { %v10313_v60 = vpop.f32.mrf.mxu1 }
 0x953   : > { %v13164_v26 = vpop.f32.mrf.mxu1 }
 0x954   : > { %v8001_v63 = vsel %vm4162_vm4, %v13164_v26, -inf }
 0x955   : > { %v10320_v8 = vpop.f32.mrf.mxu1 }
 0x957   : > { %v13166_v1 = vpop.f32.mrf.mxu1 }
 0x958   : > { %v8004_v39 = vsel %vm4162_vm4, %v13166_v1, -inf }
 0x959   : > { %v10321_v49 = vpop.f32.mrf.mxu1 }
 0x95a   : > { %v13237_v49 = vpop.permute.xlu1 %6445 }
 0x963   : > { %v13168_v41 = vpop.f32.mrf.mxu1 }
 0x964   : > { %v8007_v38 = vsel %vm4162_vm4, %v13168_v41, -inf }
 0x965   : > { %v10328_v22 = vpop.f32.mrf.mxu1 }
 0x966   : > { %v13239_v22 = vpop.permute.xlu1 %6457 }
 0x967   : > { %v13170_v28 = vpop.f32.mrf.mxu1 }
 0x968   : > { %v8010_v32 = vsel %vm4162_vm4, %v13170_v28, -inf }
 0x969   : > { %v10329_v53 = vpop.f32.mrf.mxu1 }
 0x982   : > { %v13172_v18 = vpop.f32.mrf.mxu0  ;;  %v13176_v20 = vpop.f32.mrf.mxu1 }
 0x983   : > { %v8019_v0 = vsel %vm4162_vm4, %v13172_v18, -inf  ;;  %v8013_v47 = vsel %vm4162_vm4, %v13176_v20, -inf }
 0x984   : > { %8020 = vmax.xlane.f32.xlu1 %v8019_v0  ;;  %v10344_v31 = vpop.f32.mrf.mxu0  ;;  %v10336_v21 = vpop.f32.mrf.mxu1 }
 0x986   : > { %v13178_v58 = vpop.f32.mrf.mxu0  ;;  %v13184_v11 = vpop.f32.mrf.mxu1 }
 0x987   : > { %v8022_v19 = vsel %vm4162_vm4, %v13178_v58, -inf  ;;  %v8016_v10 = vsel %vm4162_vm4, %v13184_v11, -inf }
 0x988   : > { %7999 = vmax.xlane.f32.xlu1 %v7998_v52  ;;  %8023 = vmax.xlane.f32.xlu0 %v8022_v19  ;;  %v10345_v44 = vpop.f32.mrf.mxu0  ;;  %v10337_v56 = vpop.f32.mrf.mxu1 }
 0x98c   : > { %8002 = vmax.xlane.f32.xlu0 %v8001_v63 }
 0x990   : > { %8005 = vmax.xlane.f32.xlu0 %v8004_v39 }
 0x994   : > { %v13190_v17 = vpop.f32.mrf.mxu1 }
 0x995   : > { %v8025_v14 = vsel %vm4162_vm4, %v13190_v17, -inf }
 0x996   : > { %v10352_v57 = vpop.f32.mrf.mxu1 }
 0x998   : > { %v13192_v45 = vpop.f32.mrf.mxu1 }
 0x999   : > { %v8028_v30 = vsel %vm4162_vm4, %v13192_v45, -inf }
 0x99a   : > { %v10353_v62 = vpop.f32.mrf.mxu1 }
 0x99d   : > { %v13194_v3 = vpop.f32.mrf.mxu0 }
 0x99e   : > { %v8031_v34 = vsel %vm4162_vm4, %v13194_v3, -inf }
 0x99f   : > { %8032 = vmax.xlane.f32.xlu1 %v8031_v34  ;;  %v10360_v9 = vpop.f32.mrf.mxu0 }
 0x9a1   : > { %v13198_v43 = vpop.f32.mrf.mxu0 }
 0x9a2   : > { %v8034_v46 = vsel %vm4162_vm4, %v13198_v43, -inf }
 0x9a3   : > { %8008 = vmax.xlane.f32.xlu1 %v8007_v38  ;;  %8035 = vmax.xlane.f32.xlu0 %v8034_v46  ;;  %v10361_v55 = vpop.f32.mrf.mxu0 }
 0x9a7   : > { %8014 = vmax.xlane.f32.xlu1 %v8013_v47  ;;  %8011 = vmax.xlane.f32.xlu0 %v8010_v32  ;;  %v13208_v24 = vpop.f32.mrf.mxu1 }
 0x9a8   : > { %v8037_v35 = vsel %vm4162_vm4, %v13208_v24, -inf }
 0x9a9   : > { %v10368_v13 = vpop.f32.mrf.mxu1 }
 0x9ab   : > { %8026 = vmax.xlane.f32.xlu1 %v8025_v14  ;;  %8017 = vmax.xlane.f32.xlu0 %v8016_v10  ;;  %v13214_v51 = vpop.f32.mrf.mxu1 }
 0x9ac   : > { %v8040_v60 = vsel %vm4162_vm4, %v13214_v51, -inf }
 0x9ad   : > { %v10369_v6 = vpop.f32.mrf.mxu1 }
 0x9af   : > { %8038 = vmax.xlane.f32.xlu1 %v8037_v35  ;;  %8029 = vmax.xlane.f32.xlu0 %v8028_v30 }
 0x9c0   : > { %6469 = vrot.lane.b32.xlu1 %v12234_v48, %s13783_s21 }
 0x9c5   : > { %6467 = vrot.lane.b32.xlu0 %v13798_v59, %s13783_s21 }
 0x9ce   : > { %v7997_v27 = vpop.xlane.xlu0 %7996 }
 0x9cf   : > { %v8043_v37 = vsub.f32 %v13158_v23, %v7997_v27 }
 0x9d1   : > { %v8059_v25 = vmul.f32 1.442695, %v8043_v37 }
 0x9d3   : > { %10744 = vpow2.f32 %v8059_v25 }
 0x9e0   : > { %v13229_v40 = vpop.eup %10744 }
 0x9e1   : > { %v8091_v8 = vsel %vm4162_vm4, %v13229_v40, 0.0 }
 0x9e4   : > { %8041 = vmax.xlane.f32.xlu0 %v8040_v60  ;;  %8092 = vadd.xlane.f32.xlu1 %v8091_v8 }
 0x9fa   : > { %6479 = vrot.lane.b32.xlu0 %v13798_v59, %s13784_s22 }
 0xa0d   : > { %v8021_v23 = vpop.xlane.xlu1 %8020 }
 0xa0e   : > { %v8051_v53 = vsub.f32 %v13172_v18, %v8021_v23 }
 0xa10   : > { %v8075_v0 = vmul.f32 1.442695, %v8051_v53 }
 0xa11   : > { %v8000_v31 = vpop.xlane.xlu1 %7999  ;;  %v8024_v21 = vpop.xlane.xlu0 %8023 }
 0xa12   : > { %10746 = vpow2.f32 %v8075_v0  ;;  %v8044_v52 = vsub.f32 %v13162_v5, %v8000_v31  ;;  %v8052_v19 = vsub.f32 %v13178_v58, %v8024_v21 }
 0xa14   : > { %v8061_v44 = vmul.f32 1.442695, %v8044_v52  ;;  %v8077_v56 = vmul.f32 1.442695, %v8052_v19 }
 0xa15   : > { %v8003_v63 = vpop.xlane.xlu0 %8002 }
 0xa16   : > { %10748 = vpow2.f32 %v8061_v44  ;;  %v8045_v39 = vsub.f32 %v13164_v26, %v8003_v63 }
 0xa17   : > { %10750 = vpow2.f32 %v8077_v56 }
 0xa18   : > { %v8063_v57 = vmul.f32 1.442695, %v8045_v39 }
 0xa19   : > { %v8006_v62 = vpop.xlane.xlu0 %8005 }
 0xa1a   : > { %10752 = vpow2.f32 %v8063_v57  ;;  %v8046_v18 = vsub.f32 %v13166_v1, %v8006_v62 }
 0xa1c   : > { %v8065_v34 = vmul.f32 1.442695, %v8046_v18 }
 0xa1e   : > { %10754 = vpow2.f32 %v8065_v34 }
 0xa1f   : > { %v13246_v9 = vpop.eup %10746 }
 0xa20   : > { %v8115_v5 = vsel %vm4162_vm4, %v13246_v9, 0.0 }
 0xa21   : > { %8116 = vadd.xlane.f32.xlu1 %v8115_v5 }
 0xa23   : > { %v13250_v58 = vpop.eup %10748 }
 0xa24   : > { %v8094_v38 = vsel %vm4162_vm4, %v13250_v58, 0.0  ;;  %v13254_v26 = vpop.eup %10750 }
 0xa25   : > { %8095 = vadd.xlane.f32.xlu0 %v8094_v38  ;;  %v8118_v55 = vsel %vm4162_vm4, %v13254_v26, 0.0 }
 0xa27   : > { %v13256_v46 = vpop.eup %10752 }
 0xa28   : > { %v8097_v1 = vsel %vm4162_vm4, %v13256_v46, 0.0  ;;  %v8033_v47 = vpop.xlane.xlu1 %8032 }
 0xa29   : > { %8098 = vadd.xlane.f32.xlu1 %v8097_v1  ;;  %8119 = vadd.xlane.f32.xlu0 %v8118_v55  ;;  %v8055_v8 = vsub.f32 %v13194_v3, %v8033_v47 }
 0xa2b   : > { %v13262_v32 = vpop.eup %10754  ;;  %v8083_v52 = vmul.f32 1.442695, %v8055_v8 }
 0xa2c   : > { %v8100_v13 = vsel %vm4162_vm4, %v13262_v32, 0.0  ;;  %v8009_v14 = vpop.xlane.xlu1 %8008  ;;  %v8036_v10 = vpop.xlane.xlu0 %8035 }
 0xa2d   : > { %8101 = vadd.xlane.f32.xlu0 %v8100_v13  ;;  %v8047_v35 = vsub.f32 %v13168_v41, %v8009_v14  ;;  %v8056_v14 = vsub.f32 %v13198_v43, %v8036_v10 }
 0xa2f   : > { %v8067_v6 = vmul.f32 1.442695, %v8047_v35  ;;  %v8085_v35 = vmul.f32 1.442695, %v8056_v14 }
 0xa30   : > { %v8015_v30 = vpop.xlane.xlu1 %8014  ;;  %v8012_v59 = vpop.xlane.xlu0 %8011 }
 0xa31   : > { %10756 = vpow2.f32 %v8067_v6  ;;  %v8049_v27 = vsub.f32 %v13176_v20, %v8015_v30  ;;  %v8048_v37 = vsub.f32 %v13170_v28, %v8012_v59 }
 0xa33   : > { %v8071_v25 = vmul.f32 1.442695, %v8049_v27  ;;  %v8069_v60 = vmul.f32 1.442695, %v8048_v37 }
 0xa34   : > { %v8027_v23 = vpop.xlane.xlu1 %8026  ;;  %v8018_v53 = vpop.xlane.xlu0 %8017 }
 0xa35   : > { %10758 = vpow2.f32 %v8071_v25  ;;  %v8053_v0 = vsub.f32 %v13190_v17, %v8027_v23  ;;  %v8050_v31 = vsub.f32 %v13184_v11, %v8018_v53 }
 0xa36   : > { %10760 = vpow2.f32 %v8069_v60 }
 0xa37   : > { %v8079_v41 = vmul.f32 1.442695, %v8053_v0  ;;  %v8073_v21 = vmul.f32 1.442695, %v8050_v31 }
 0xa38   : > { %v8030_v19 = vpop.xlane.xlu0 %8029  ;;  %v8039_v20 = vpop.xlane.xlu1 %8038 }
 0xa39   : > { %10762 = vpow2.f32 %v8079_v41  ;;  %v8054_v28 = vsub.f32 %v13192_v45, %v8030_v19  ;;  %v8057_v3 = vsub.f32 %v13208_v24, %v8039_v20 }
 0xa3a   : > { %10764 = vpow2.f32 %v8073_v21 }
 0xa3b   : > { %10766 = vpow2.f32 %v8083_v52  ;;  %v8081_v44 = vmul.f32 1.442695, %v8054_v28  ;;  %v8087_v11 = vmul.f32 1.442695, %v8057_v3 }
 0xa3c   : > { %v6468_v6 = vpop.permute.xlu0 %6467  ;;  %v13318_v43 = vpop.permute.xlu1 %6469 }
 0xa3d   : > { %10768 = vpow2.f32 %v8081_v44 }
 0xa3e   : > { %v13274_v56 = vpop.eup %10756  ;;  %10770 = vpow2.f32 %v8087_v11 }
 0xa3f   : > { %v8103_v17 = vsel %vm4162_vm4, %v13274_v56, 0.0  ;;  %10772 = vpow2.f32 %v8085_v35 }
 0xa40   : > { %8104 = vadd.xlane.f32.xlu0 %v8103_v17 }
 0xa42   : > { %v13278_v63 = vpop.eup %10758 }
 0xa43   : > { %v13280_v39 = vpop.eup %10760  ;;  %v8109_v45 = vsel %vm4162_vm4, %v13278_v63, 0.0 }
 0xa44   : > { %8110 = vadd.xlane.f32.xlu0 %v8109_v45  ;;  %v8106_v24 = vsel %vm4162_vm4, %v13280_v39, 0.0  ;;  %v6524_v45 = vcombine.high %v13224_v33, %v6468_v6 }
 0xa45   : > { %8107 = vadd.xlane.f32.xlu1 %v8106_v24 }
 0xa46   : > { %v13286_v57 = vpop.eup %10762 }
 0xa47   : > { %v13288_v62 = vpop.eup %10764  ;;  %v8121_v18 = vsel %vm4162_vm4, %v13286_v57, 0.0 }
 0xa48   : > { %v8112_v34 = vsel %vm4162_vm4, %v13288_v62, 0.0  ;;  %v13294_v5 = vpop.eup %10766 }
 0xa49   : > { %8122 = vadd.xlane.f32.xlu1 %v8121_v18  ;;  %8113 = vadd.xlane.f32.xlu0 %v8112_v34  ;;  %v8127_v38 = vsel %vm4162_vm4, %v13294_v5, 0.0 }
 0xa4a   : > { %v13298_v1 = vpop.eup %10768 }
 0xa4b   : > { %v8124_v55 = vsel %vm4162_vm4, %v13298_v1, 0.0  ;;  %v13302_v47 = vpop.eup %10770 }
 0xa4c   : > { %v8133_v13 = vsel %vm4162_vm4, %v13302_v47, 0.0  ;;  %v13310_v37 = vpop.eup %10772 }
 0xa4d   : > { %8128 = vadd.xlane.f32.xlu0 %v8127_v38  ;;  %v8130_v25 = vsel %vm4162_vm4, %v13310_v37, 0.0 }
 0xa51   : > { %8125 = vadd.xlane.f32.xlu0 %v8124_v55 }
 0xa55   : > { %8134 = vadd.xlane.f32.xlu0 %v8133_v13 }
 0xa5a   : > { %6481 = vrot.lane.b32.xlu1 %v12234_v48, %s13784_s22 }
 0xa6d   : > { %v8042_v30 = vpop.xlane.xlu0 %8041  ;;  %v8093_v8 = vpop.xlane.xlu1 %8092 }
 0xa6e   : > { %v8058_v59 = vsub.f32 %v13214_v51, %v8042_v30 }
 0xa70   : > { %v8089_v27 = vmul.f32 1.442695, %v8058_v59 }
 0xa71   : > { %v6480_v10 = vpop.permute.xlu0 %6479 }
 0xa72   : > { %10774 = vpow2.f32 %v8089_v27  ;;  %v6660_v27 = vcombine.high %v13237_v49, %v13318_v43 }
 0xa73   : > { %10776 = vrcp.f32 %v8093_v8 }
 0xa7e   : > { %8131 = vadd.xlane.f32.xlu1 %v8130_v25 }
 0xa7f   : > { %v13314_v60 = vpop.eup %10774 }
 0xa80   : > { %v8136_v48 = vsel %vm4162_vm4, %v13314_v60, 0.0  ;;  %v10777_v41 = vpop.eup %10776 }
 0xa81   : > { %8137 = vadd.xlane.f32.xlu0 %v8136_v48  ;;  %v8155_v52 = vmul.f32 %v10777_v41, %v13229_v40  ;;  %v6539_v40 = vcombine.low %v13226_v42, %v6480_v10 }
 0xa83   : > { %v6547_v24 = vrot.slane %v6539_v40, %v11130_v12 }
 0xaaa   : > { %v13320_v51 = vpop.xlane.xlu1 %8116 }
 0xaae   : > { %v8096_v23 = vpop.xlane.xlu0 %8095 }
 0xaaf   : > { %10778 = vrcp.f32 %v8096_v23 }
 0xab2   : > { %v8099_v53 = vpop.xlane.xlu1 %8098  ;;  %v13322_v0 = vpop.xlane.xlu0 %8119 }
 0xab3   : > { %10780 = vrcp.f32 %v8099_v53 }
 0xab6   : > { %v8102_v31 = vpop.xlane.xlu0 %8101 }
 0xab7   : > { %10782 = vrcp.f32 %v8102_v31 }
 0xabc   : > { %v10779_v21 = vpop.eup %10778 }
 0xabd   : > { %v8156_v19 = vmul.f32 %v10779_v21, %v13250_v58  ;;  %v6540_v58 = vcombine.high %v13226_v42, %v6480_v10 }
 0xabf   : > { %v8171_v20 = vpack.c.bf16 %v8156_v19, %v8155_v52  ;;  %v6674_v52 = vrot.slane %v6660_v27, %v11130_v12 }
 0xac0   : > { %v10781_v28 = vpop.eup %10780 }
 0xac1   : > { %10375 = vmatmul.mubr.msk.bf16.vlgmr.msra.gmra.mxu0 %vm4162_vm4, %v8171_v20  ;;  %v8157_v44 = vmul.f32 %v10781_v28, %v13256_v46 }
 0xac2   : > { %10387 = vmatpush3.bf16.msra.mxu0 %v13130_v36  ;;  %10390 = vmatprep.mubr.msk.bf16.mxu0 %vm10822_vm2, %v13785_v7  ;;  %v6523_v36 = vcombine.low %v13224_v33, %v6468_v6 }
 0xac3   : > { %10388 = vmatprep.subr.bf16.mxu0 %v13785_v7 }
 0xac4   : > { %v10783_v3 = vpop.eup %10782  ;;  %v6531_v42 = vrot.slane %v6523_v36, %v11130_v12 }
 0xac5   : > { %v8158_v17 = vmul.f32 %v10783_v3, %v13262_v32  ;;  %v6538_v32 = vrot.slane %v6524_v45, %v11130_v12 }
 0xac6   : > { %10389 = vmatpush3.bf16.msra.mxu0 %v13136_v2  ;;  %v6554_v2 = vrot.slane %v6540_v58, %v11130_v12  ;;  %v6587_v18 = vcombine.low %v6531_v42, %v6547_v24  ;;  %v6588_v33 = vcombine.high %v6531_v42, %v6547_v24 }
 0xac7   : > { %v8172_v11 = vpack.c.bf16 %v8158_v17, %v8157_v44  ;;  %10402 = vmatprep.subr.bf16.mxu0 %v13785_v7 }
 0xac8   : > { %v6603_v38 = vcombine.low %v6538_v32, %v6554_v2  ;;  %v6604_v55 = vcombine.high %v6538_v32, %v6554_v2  ;;  %v6595_v13 = vrot.slane %v6587_v18, %v11133_v15  ;;  %v6602_v14 = vrot.slane %v6588_v33, %v11133_v15 }
 0xac9   : > { %10383 = vmatmul.mubr.msk.bf16.vlgmr.msra.gmra.mxu1 %vm4162_vm4, %v8172_v11  ;;  %v8105_v46 = vpop.xlane.xlu0 %8104 }
 0xaca   : > { %10395 = vmatpush3.bf16.msra.mxu1 %v13132_v16  ;;  %10398 = vmatprep.mubr.msk.bf16.mxu1 %vm10822_vm2, %v13785_v7  ;;  %10784 = vrcp.f32 %v8105_v46  ;;  %v6611_v35 = vrot.slane %v6603_v38, %v11133_v15  ;;  %v6618_v6 = vrot.slane %v6604_v55, %v11133_v15  ;;  %v9881_v25 = vcombine.low %v6595_v13, %v6602_v14 }
 0xacb   : > { %10396 = vmatprep.subr.bf16.mxu1 %v13785_v7  ;;  %v9883_v48 = vcombine.high %v6595_v13, %v6602_v14 }
 0xacc   : > { %v9885_v10 = vcombine.low %v6611_v35, %v6618_v6  ;;  %v9887_v8 = vcombine.high %v6611_v35, %v6618_v6 }
 0xacd   : > { %v8111_v34 = vpop.xlane.xlu0 %8110  ;;  %v13372_v20 = vrot.slane %v9883_v48, %v11130_v12 }
 0xace   : > { %10397 = vmatpush3.bf16.msra.mxu1 %v13138_v4  ;;  %v8108_v16 = vpop.xlane.xlu1 %8107  ;;  %v6659_v4 = vcombine.low %v13237_v49, %v13318_v43  ;;  %v13366_v49 = vrot.slane %v9881_v25, %v11130_v12  ;;  %v13378_v28 = vrot.slane %v9887_v8, %v11130_v12 }
 0xacf   : > { %10410 = vmatprep.subr.bf16.mxu1 %v13785_v7  ;;  %10786 = vrcp.f32 %v8108_v16 }
 0xad0   : > { %10788 = vrcp.f32 %v8111_v34  ;;  %v6667_v21 = vrot.slane %v6659_v4, %v11130_v12  ;;  %v7115_v42 = vcombine.low %v13366_v49, %v13372_v20 }
 0xad2   : > { %v8123_v30 = vpop.xlane.xlu1 %8122  ;;  %v8114_v59 = vpop.xlane.xlu0 %8113 }
 0xad3   : > { %10790 = vrcp.f32 %v8114_v59  ;;  %v7123_v59 = vrot.slane %v7115_v42, %v11133_v15 }
 0xad4   : > { %10792 = vrcp.f32 %v13322_v0 }
 0xad5   : > { %10794 = vrcp.f32 %v13320_v51 }
 0xad6   : > { %v6482_v23 = vpop.permute.xlu1 %6481  ;;  %v13358_v53 = vpop.xlane.xlu0 %8128  ;;  %10796 = vrcp.f32 %v8123_v30 }
 0xad7   : > { %v6675_v31 = vcombine.low %v13239_v22, %v6482_v23  ;;  %v6676_v41 = vcombine.high %v13239_v22, %v6482_v23  ;;  %v13375_v22 = vrot.slane %v9885_v10, %v11130_v12  ;;  %v10785_v3 = vpop.eup %10784 }
 0xad8   : > { %v8159_v46 = vmul.f32 %v10785_v3, %v13274_v56 }
 0xad9   : > { %v6683_v43 = vrot.slane %v6675_v31, %v11130_v12  ;;  %v6690_v19 = vrot.slane %v6676_v41, %v11130_v12  ;;  %v7147_v32 = vcombine.low %v13375_v22, %v13378_v28 }
 0xada   : > { %v8126_v0 = vpop.xlane.xlu0 %8125 }
 0xadb   : > { %v6723_v44 = vcombine.low %v6667_v21, %v6683_v43  ;;  %v6724_v17 = vcombine.high %v6667_v21, %v6683_v43  ;;  %v6739_v40 = vcombine.low %v6674_v52, %v6690_v19  ;;  %v6740_v51 = vcombine.high %v6674_v52, %v6690_v19 }
 0xadc   : > { %v10787_v58 = vpop.eup %10786  ;;  %10798 = vrcp.f32 %v8126_v0  ;;  %v7155_v4 = vrot.slane %v7147_v32, %v11133_v15  ;;  %v7148_v21 = vcombine.high %v13375_v22, %v13378_v28 }
 0xadd   : > { %v6731_v11 = vrot.slane %v6723_v44, %v11133_v15  ;;  %v6738_v36 = vrot.slane %v6724_v17, %v11133_v15  ;;  %v6747_v45 = vrot.slane %v6739_v40, %v11133_v15  ;;  %v6754_v24 = vrot.slane %v6740_v51, %v11133_v15  ;;  %v10789_v18 = vpop.eup %10788 }
 0xade   : > { %v8160_v2 = vmul.f32 %v10787_v58, %v13280_v39  ;;  %v8161_v6 = vmul.f32 %v10789_v18, %v13278_v63  ;;  %v7167_v41 = vcombine.low %v7123_v59, %v7155_v4  ;;  %v7168_v19 = vcombine.high %v7123_v59, %v7155_v4 }
 0xadf   : > { %v9889_v33 = vcombine.low %v6731_v11, %v6738_v36  ;;  %v9891_v34 = vcombine.high %v6731_v11, %v6738_v36  ;;  %v9893_v38 = vcombine.low %v6747_v45, %v6754_v24  ;;  %v9895_v55 = vcombine.high %v6747_v45, %v6754_v24 }
 0xae0   : > { %v8173_v16 = vpack.c.bf16 %v8160_v2, %v8159_v46  ;;  %v10791_v13 = vpop.eup %10790  ;;  %v7162_v58 = vrot.slane %v7148_v21, %v11133_v15  ;;  %10800 = vrcp.f32 %v13358_v53 }
 0xae1   : > { %v7186_v14 = vrot.slane %v9889_v33, %v11130_v12  ;;  %v7202_v35 = vrot.slane %v9891_v34, %v11130_v12  ;;  %v7218_v56 = vrot.slane %v9893_v38, %v11130_v12  ;;  %v7234_v39 = vrot.slane %v9895_v55, %v11130_v12  ;;  %v10793_v10 = vpop.eup %10792 }
 0xae2   : > { %10391 = vmatmul.mubr.msk.bf16.vlgmr.msra.gmra.mxu0 %vm4162_vm4, %v8173_v16  ;;  %v8162_v30 = vmul.f32 %v10791_v13, %v13288_v62  ;;  %v10795_v31 = vpop.eup %10794  ;;  %v8164_v3 = vmul.f32 %v10793_v10, %v13254_v26  ;;  %v13799_v13 = vmov 0  }
 0xae3   : > { %10403 = vmatpush3.bf16.msra.mxu0 %v13150_v61  ;;  %v7251_v27 = vcombine.low %v7186_v14, %v7202_v35  ;;  %v7283_v25 = vcombine.low %v7218_v56, %v7234_v39  ;;  %10406 = vmatprep.mubr.msk.bf16.mxu0 %vm10822_vm2, %v13785_v7  ;;  %v7252_v62 = vcombine.high %v7186_v14, %v7202_v35  ;;  %v10797_v52 = vpop.eup %10796 }
 0xae4   : > { %v8174_v48 = vpack.c.bf16 %v8162_v30, %v8161_v6  ;;  %10404 = vmatprep.subr.bf16.mxu0 %v13785_v7  ;;  %v7284_v23 = vcombine.high %v7218_v56, %v7234_v39  ;;  %v7116_v61 = vcombine.high %v13366_v49, %v13372_v20  ;;  %v8163_v22 = vmul.f32 %v10795_v31, %v13246_v9 }
 0xae5   : > { %v7259_v8 = vrot.slane %v7251_v27, %v11133_v15  ;;  %v7291_v63 = vrot.slane %v7283_v25, %v11133_v15  ;;  %v7266_v49 = vrot.slane %v7252_v62, %v11133_v15 }
 0xae6   : > { %10399 = vmatmul.mubr.msk.bf16.vlgmr.msra.gmra.mxu1 %vm4162_vm4, %v8174_v48  ;;  %v7298_v20 = vrot.slane %v7284_v23, %v11133_v15  ;;  %v7130_v51 = vrot.slane %v7116_v61, %v11133_v15  ;;  %v8175_v26 = vpack.c.bf16 %v8164_v3, %v8163_v22 }
 0xae7   : > { %10411 = vmatpush3.bf16.msra.mxu1 %v13152_v50  ;;  %v7303_v43 = vcombine.low %v7259_v8, %v7291_v63  ;;  %v7304_v0 = vcombine.high %v7259_v8, %v7291_v63  ;;  %10414 = vmatprep.mubr.msk.bf16.mxu1 %vm10822_vm2, %v13785_v7  ;;  %v8165_v50 = vmul.f32 %v10797_v52, %v13286_v57 }
 0xae8   : > { %10412 = vmatprep.subr.bf16.mxu1 %v13785_v7  ;;  %v7305_v36 = vcombine.low %v7266_v49, %v7298_v20  ;;  %v7306_v45 = vcombine.high %v7266_v49, %v7298_v20  ;;  %v7169_v9 = vcombine.low %v7130_v51, %v7162_v58  ;;  %v7170_v57 = vcombine.high %v7130_v51, %v7162_v58 }
 0xae9   : > { %v10799_v44 = vpop.eup %10798  ;;  %v7587_v17 = vpack.c.bf16 %v7303_v43, %v7167_v41  ;;  %v7589_v40 = vpack.c.bf16 %v7304_v0, %v7168_v19 }
 0xaea   : > { %v8166_v28 = vmul.f32 %v10799_v44, %v13298_v1  ;;  %v7591_v1 = vpack.c.bf16 %v7305_v36, %v7169_v9  ;;  %v7593_v24 = vpack.c.bf16 %v7306_v45, %v7170_v57 }
 0xaeb   : > { %10405 = vmatpush3.bf16.msra.mxu0 %v7587_v17  ;;  %10413 = vmatpush3.bf16.msra.mxu1 %v7589_v40 }
 0xaec   : > { %v8176_v11 = vpack.c.bf16 %v8166_v28, %v8165_v50  ;;  %10418 = vmatprep.subr.bf16.mxu0 %v13785_v7  ;;  %10426 = vmatprep.subr.bf16.mxu1 %v13785_v7 }
 0xaed   : > { %v10801_v2 = vpop.eup %10800 }
 0xaee   : > { %10407 = vmatmul.mubr.msk.bf16.vlgmr.msra.gmra.mxu0 %vm4162_vm4, %v8175_v26  ;;  %10415 = vmatmul.mubr.msk.bf16.vlgmr.msra.gmra.mxu1 %vm4162_vm4, %v8176_v11  ;;  %v8167_v18 = vmul.f32 %v10801_v2, %v13294_v5 }
 0xaef   : > { %10419 = vmatpush3.bf16.msra.mxu0 %v13154_v54  ;;  %10427 = vmatpush3.bf16.msra.mxu1 %v13156_v29  ;;  %v8135_v54 = vpop.xlane.xlu0 %8134 }
 0xaf0   : > { %10420 = vmatprep.subr.bf16.mxu0 %v13785_v7  ;;  %10428 = vmatprep.subr.bf16.mxu1 %v13785_v7 }
 0xaf1   : > { %10422 = vmatprep.mubr.msk.bf16.mxu0 %vm10822_vm2, %v13785_v7  ;;  %10430 = vmatprep.mubr.msk.bf16.mxu1 %vm10822_vm2, %v13785_v7 }
 0xaf3   : > { %10421 = vmatpush3.bf16.msra.mxu0 %v7591_v1  ;;  %10429 = vmatpush3.bf16.msra.mxu1 %v7593_v24 }
 0xaf4   : > { %10434 = vmatprep.subr.bf16.mxu0 %v13785_v7 }
 0xb07   : > { %v8132_v29 = vpop.xlane.xlu1 %8131 }
 0xb08   : > { %10802 = vrcp.f32 %v8132_v29 }
 0xb09   : > { %10804 = vrcp.f32 %v8135_v54 }
 0xb0a   : > { %v8138_v46 = vpop.xlane.xlu0 %8137 }
 0xb0b   : > { %10806 = vrcp.f32 %v8138_v46 }
 0xb15   : > { %v10803_v42 = vpop.eup %10802 }
 0xb16   : > { %v10805_v32 = vpop.eup %10804  ;;  %v8168_v33 = vmul.f32 %v10803_v42, %v13310_v37 }
 0xb17   : > { %v8169_v55 = vmul.f32 %v10805_v32, %v13302_v47 }
 0xb18   : > { %v10807_v34 = vpop.eup %10806  ;;  %v8177_v38 = vpack.c.bf16 %v8168_v33, %v8167_v18 }
 0xb19   : > { %v8170_v16 = vmul.f32 %v10807_v34, %v13314_v60 }
 0xb1a   : > { %10423 = vmatmul.mubr.msk.bf16.vlgmr.msra.gmra.mxu0 %vm4162_vm4, %v8177_v38 }
 0xb1b   : > { %v8178_v53 = vpack.c.bf16 %v8170_v16, %v8169_v55  ;;  %10450 = vmatprep.mubr.msk.bf16.mxu0 %vm10822_vm2, %v13785_v7 }
 0xb1d   : > { %10431 = vmatmul.mubr.msk.bf16.vlgmr.msra.gmra.mxu1 %vm4162_vm4, %v8178_v53 }
 0xb1e   : > { %9405 = vmatprep.mubr.bf16.mxu1 %v13799_v13 }
 0xb81   : > { %v8216_v14 = vpop.f32.mrf.mxu0 }
 0xb83   : > { %v10376_v5 = vpop.f32.mrf.mxu0 }
 0xb85   : > { %v8219_v35 = vpop.f32.mrf.mxu0 }
 0xb87   : > { %v10377_v37 = vpop.f32.mrf.mxu0 }
 0xb89   : > { %v8260_v56 = vpop.f32.mrf.mxu1 }
 0xb8b   : > { %v10384_v39 = vpop.f32.mrf.mxu1 }
 0xb8d   : > { %v8263_v6 = vpop.f32.mrf.mxu1 }
 0xb8f   : > { %v10385_v47 = vpop.f32.mrf.mxu1 }
 0xba2   : > { %v8304_v30 = vpop.f32.mrf.mxu0 }
 0xba3   : > { %v8531_v59 = vcombine.low %v8216_v14, %v8304_v30  ;;  %v8532_v4 = vcombine.high %v8216_v14, %v8304_v30 }
 0xba4   : > { %v10392_v60 = vpop.f32.mrf.mxu0 }
 0xba5   : > { %v8539_v62 = vrot.slane %v8531_v59, %v11130_v12  ;;  %v8546_v23 = vrot.slane %v8532_v4, %v11130_v12 }
 0xba6   : > { %v8307_v27 = vpop.f32.mrf.mxu0  ;;  %v8348_v25 = vpop.f32.mrf.mxu1 }
 0xba7   : > { %v8547_v48 = vcombine.low %v8260_v56, %v8348_v25  ;;  %v8548_v10 = vcombine.high %v8260_v56, %v8348_v25  ;;  %v8667_v61 = vcombine.low %v8219_v35, %v8307_v27  ;;  %v8668_v21 = vcombine.high %v8219_v35, %v8307_v27 }
 0xba8   : > { %v10393_v8 = vpop.f32.mrf.mxu0  ;;  %v10400_v63 = vpop.f32.mrf.mxu1 }
 0xba9   : > { %v8555_v31 = vrot.slane %v8547_v48, %v11130_v12  ;;  %v8562_v41 = vrot.slane %v8548_v10, %v11130_v12  ;;  %v8675_v28 = vrot.slane %v8667_v61, %v11130_v12  ;;  %v8682_v51 = vrot.slane %v8668_v21, %v11130_v12 }
 0xbaa   : > { %v8351_v52 = vpop.f32.mrf.mxu1 }
 0xbab   : > { %v8595_v43 = vcombine.low %v8539_v62, %v8555_v31  ;;  %v8596_v19 = vcombine.high %v8539_v62, %v8555_v31  ;;  %v8611_v0 = vcombine.low %v8546_v23, %v8562_v41  ;;  %v8612_v3 = vcombine.high %v8546_v23, %v8562_v41 }
 0xbac   : > { %v8683_v44 = vcombine.low %v8263_v6, %v8351_v52  ;;  %v8684_v17 = vcombine.high %v8263_v6, %v8351_v52  ;;  %v10401_v40 = vpop.f32.mrf.mxu1  ;;  %v10616_v52 = vld [vmem:[%s13731_s11 + $0x38] sm:$0xff]  }
 0xbad   : > { %v8603_v49 = vrot.slane %v8595_v43, %v11133_v15  ;;  %v8610_v20 = vrot.slane %v8596_v19, %v11133_v15  ;;  %v8619_v22 = vrot.slane %v8611_v0, %v11133_v15  ;;  %v8626_v50 = vrot.slane %v8612_v3, %v11133_v15  ;;  %10435 = vmatpush3.bf16.msra.mxu0 %v10616_v52 }
 0xbae   : > { %v8691_v58 = vrot.slane %v8683_v44, %v11130_v12  ;;  %v8698_v26 = vrot.slane %v8684_v17, %v11130_v12  ;;  %v13457_v11 = vpop.f32.mrf.mxu0  ;;  %v13459_v36 = vpop.f32.mrf.mxu1  ;;  %v10617_v17 = vld [vmem:[%s13731_s11 + $0x30] sm:$0xff]   ;;  %10436 = vmatprep.subr.bf16.mxu0 %v13785_v7 }
 0xbaf   : > { %v9928_v45 = vcombine.low %v8603_v49, %v8610_v20  ;;  %v9930_v9 = vcombine.high %v8603_v49, %v8610_v20  ;;  %v9932_v57 = vcombine.low %v8619_v22, %v8626_v50  ;;  %v9934_v1 = vcombine.high %v8619_v22, %v8626_v50 }
 0xbb0   : > { %v8731_v24 = vcombine.low %v8675_v28, %v8691_v58  ;;  %v8732_v54 = vcombine.high %v8675_v28, %v8691_v58  ;;  %v8747_v29 = vcombine.low %v8682_v51, %v8698_v26  ;;  %v8748_v46 = vcombine.high %v8682_v51, %v8698_v26  ;;  %v10408_v2 = vpop.f32.mrf.mxu0  ;;  %v10416_v42 = vpop.f32.mrf.mxu1  ;;  %v10618_v58 = vld [vmem:[%s13731_s11 + $0x28] sm:$0xff]  }
 0xbb1   : > { %v8811_v32 = vrot.slane %v9928_v45, %v11130_v12  ;;  %v8827_v18 = vrot.slane %v9930_v9, %v11130_v12  ;;  %v8843_v33 = vrot.slane %v9932_v57, %v11130_v12  ;;  %v8859_v34 = vrot.slane %v9934_v1, %v11130_v12  ;;  %10437 = vmatpush3.bf16.msra.mxu0 %v10617_v17  ;;  %v10619_v9 = vld [vmem:[%s13731_s11 + $0x20] sm:$0xff]   ;;  %v10620_v57 = vld [vmem:[%s13731_s11 + $0x18] sm:$0xff]   ;;  %v10621_v1 = vld [vmem:[%s13731_s11 + $0x10] sm:$0xff]  }
 0xbb2   : > { %v8739_v38 = vrot.slane %v8731_v24, %v11133_v15  ;;  %v8746_v55 = vrot.slane %v8732_v54, %v11133_v15  ;;  %v8755_v16 = vrot.slane %v8747_v29, %v11133_v15  ;;  %v8762_v53 = vrot.slane %v8748_v46, %v11133_v15  ;;  %v13469_v13 = vpop.f32.mrf.mxu0  ;;  %v13471_v14 = vpop.f32.mrf.mxu1  ;;  %10438 = vmatprep.subr.bf16.mxu0 %v13785_v7 }
 0xbb3   : > { %v8868_v5 = vcombine.high %v8811_v32, %v8827_v18  ;;  %v8900_v35 = vcombine.high %v8843_v33, %v8859_v34  ;;  %v8867_v37 = vcombine.low %v8811_v32, %v8827_v18  ;;  %v8899_v56 = vcombine.low %v8843_v33, %v8859_v34 }
 0xbb4   : > { %v9936_v39 = vcombine.low %v8739_v38, %v8746_v55  ;;  %v9938_v6 = vcombine.high %v8739_v38, %v8746_v55  ;;  %v9940_v47 = vcombine.low %v8755_v16, %v8762_v53  ;;  %v9942_v30 = vcombine.high %v8755_v16, %v8762_v53  ;;  %v10409_v60 = vpop.f32.mrf.mxu0  ;;  %v10417_v59 = vpop.f32.mrf.mxu1 }
 0xbb5   : > { %v13474_v4 = vrot.slane %v8867_v37, %v11133_v15  ;;  %v13477_v27 = vrot.slane %v8899_v56, %v11133_v15  ;;  %v8882_v63 = vrot.slane %v8868_v5, %v11133_v15  ;;  %v8914_v62 = vrot.slane %v8900_v35, %v11133_v15  ;;  %10439 = vmatpush3.bf16.msra.mxu0 %v10618_v58 }
 0xbb6   : > { %v8947_v25 = vrot.slane %v9936_v39, %v11130_v12  ;;  %v8963_v48 = vrot.slane %v9938_v6, %v11130_v12  ;;  %v8979_v10 = vrot.slane %v9940_v47, %v11130_v12  ;;  %v8995_v8 = vrot.slane %v9942_v30, %v11130_v12  ;;  %10440 = vmatprep.subr.bf16.mxu0 %v13785_v7 }
 0xbb7   : > { %v8931_v23 = vcombine.low %v13474_v4, %v13477_v27  ;;  %v8933_v44 = vcombine.low %v8882_v63, %v8914_v62  ;;  %v8932_v49 = vcombine.high %v13474_v4, %v13477_v27  ;;  %v8934_v26 = vcombine.high %v8882_v63, %v8914_v62 }
 0xbb8   : > { %v9004_v31 = vcombine.high %v8947_v25, %v8963_v48  ;;  %v9036_v41 = vcombine.high %v8979_v10, %v8995_v8  ;;  %v9003_v61 = vcombine.low %v8947_v25, %v8963_v48  ;;  %v9035_v21 = vcombine.low %v8979_v10, %v8995_v8 }
 0xbb9   : > { %10441 = vmatpush3.bf16.msra.mxu0 %v10619_v9 }
 0xbba   : > { %v9018_v43 = vrot.slane %v9004_v31, %v11133_v15  ;;  %v9050_v19 = vrot.slane %v9036_v41, %v11133_v15  ;;  %v13493_v0 = vrot.slane %v9003_v61, %v11133_v15  ;;  %v13496_v3 = vrot.slane %v9035_v21, %v11133_v15  ;;  %10442 = vmatprep.subr.bf16.mxu0 %v13785_v7 }
 0xbbc   : > { %v9069_v40 = vcombine.low %v9018_v43, %v9050_v19  ;;  %v9068_v20 = vcombine.high %v13493_v0, %v13496_v3  ;;  %v9067_v22 = vcombine.low %v13493_v0, %v13496_v3  ;;  %v9070_v51 = vcombine.high %v9018_v43, %v9050_v19 }
 0xbbd   : > { %10443 = vmatpush3.bf16.msra.mxu0 %v10620_v57 }
 0xbbe   : > { %v10514_v50 = vpack.i.bf16 %v9069_v40, %v8933_v44  ;;  %v10509_v28 = vpack.i.bf16 %v9068_v20, %v8932_v49  ;;  %v10519_v45 = vpack.i.bf16 %v9070_v51, %v8934_v26  ;;  %10444 = vmatprep.subr.bf16.mxu0 %v13785_v7 }
 0xbc0   : > { %10515 = vrot.lane.b32.xlu0 %v10514_v50, %s13783_s21  ;;  %10510 = vrot.lane.b32.xlu1 %v10509_v28, %s13784_s22 }
 0xbc1   : > { %10445 = vmatpush3.bf16.msra.mxu0 %v10621_v1  ;;  %v10622_v1 = vld [vmem:[%s13731_s11 + $0x8] sm:$0xff]  }
 0xbc2   : > { %10446 = vmatprep.subr.bf16.mxu0 %v13785_v7 }
 0xbc4   : > { %10520 = vrot.lane.b32.xlu1 %v10519_v45, %s13782_s20 }
 0xbc5   : > { %10447 = vmatpush3.bf16.msra.mxu0 %v10622_v1 }
 0xbc6   : > { %10448 = vmatprep.subr.bf16.mxu0 %v13785_v7 }
 0xbda   : > { %v8480_v24 = vpop.f32.mrf.mxu0 }
 0xbdb   : > { %v8563_v54 = vcombine.low %v13457_v11, %v8480_v24  ;;  %v8564_v29 = vcombine.high %v13457_v11, %v8480_v24 }
 0xbdc   : > { %v10424_v46 = vpop.f32.mrf.mxu0 }
 0xbdd   : > { %v8524_v2 = vpop.f32.mrf.mxu1  ;;  %v8571_v34 = vrot.slane %v8563_v54, %v11130_v12  ;;  %v8578_v38 = vrot.slane %v8564_v29, %v11130_v12 }
 0xbde   : > { %v8483_v42 = vpop.f32.mrf.mxu0  ;;  %v8579_v32 = vcombine.low %v13459_v36, %v8524_v2  ;;  %v8580_v18 = vcombine.high %v13459_v36, %v8524_v2 }
 0xbdf   : > { %v10432_v33 = vpop.f32.mrf.mxu1  ;;  %v8699_v5 = vcombine.low %v13469_v13, %v8483_v42  ;;  %v8700_v11 = vcombine.high %v13469_v13, %v8483_v42 }
 0xbe0   : > { %v8587_v55 = vrot.slane %v8579_v32, %v11130_v12  ;;  %v8594_v16 = vrot.slane %v8580_v18, %v11130_v12  ;;  %v10425_v53 = vpop.f32.mrf.mxu0 }
 0xbe1   : > { %v8527_v35 = vpop.f32.mrf.mxu1  ;;  %v8707_v13 = vrot.slane %v8699_v5, %v11130_v12  ;;  %v8714_v10 = vrot.slane %v8700_v11, %v11130_v12 }
 0xbe2   : > { %v8627_v37 = vcombine.low %v8571_v34, %v8587_v55  ;;  %v8628_v56 = vcombine.high %v8571_v34, %v8587_v55  ;;  %v8643_v39 = vcombine.low %v8578_v38, %v8594_v16  ;;  %v8644_v6 = vcombine.high %v8578_v38, %v8594_v16  ;;  %v10623_v16 = vld [vmem:[%s13731_s11] sm:$0xff]  }
 0xbe3   : > { %v8715_v36 = vcombine.low %v13471_v14, %v8527_v35  ;;  %v8716_v47 = vcombine.high %v13471_v14, %v8527_v35  ;;  %v10433_v30 = vpop.f32.mrf.mxu1  ;;  %10449 = vmatpush3.bf16.msra.mxu0 %v10623_v16 }
 0xbe4   : > { %v8635_v60 = vrot.slane %v8627_v37, %v11133_v15  ;;  %v8642_v59 = vrot.slane %v8628_v56, %v11133_v15  ;;  %v8651_v25 = vrot.slane %v8643_v39, %v11133_v15  ;;  %v8658_v48 = vrot.slane %v8644_v6, %v11133_v15 }
 0xbe5   : > { %v8723_v8 = vrot.slane %v8715_v36, %v11130_v12  ;;  %v8730_v63 = vrot.slane %v8716_v47, %v11130_v12 }
 0xbe6   : > { %v9929_v62 = vcombine.low %v8635_v60, %v8642_v59  ;;  %v9931_v31 = vcombine.high %v8635_v60, %v8642_v59  ;;  %v9933_v14 = vcombine.low %v8651_v25, %v8658_v48  ;;  %v9935_v41 = vcombine.high %v8651_v25, %v8658_v48 }
 0xbe7   : > { %v8763_v61 = vcombine.low %v8707_v13, %v8723_v8  ;;  %v8764_v21 = vcombine.high %v8707_v13, %v8723_v8  ;;  %v8779_v52 = vcombine.low %v8714_v10, %v8730_v63  ;;  %v8780_v43 = vcombine.high %v8714_v10, %v8730_v63 }
 0xbe8   : > { %v8818_v19 = vrot.slane %v9929_v62, %v11130_v12  ;;  %v8834_v44 = vrot.slane %v9931_v31, %v11130_v12  ;;  %v8850_v17 = vrot.slane %v9933_v14, %v11130_v12  ;;  %v8866_v40 = vrot.slane %v9935_v41, %v11130_v12 }
 0xbe9   : > { %v8771_v49 = vrot.slane %v8763_v61, %v11133_v15  ;;  %v8778_v20 = vrot.slane %v8764_v21, %v11133_v15  ;;  %v8787_v50 = vrot.slane %v8779_v52, %v11133_v15  ;;  %v8794_v28 = vrot.slane %v8780_v43, %v11133_v15 }
 0xbea   : > { %v8883_v51 = vcombine.low %v8818_v19, %v8834_v44  ;;  %v8915_v58 = vcombine.low %v8850_v17, %v8866_v40  ;;  %v8884_v32 = vcombine.high %v8818_v19, %v8834_v44  ;;  %v8916_v18 = vcombine.high %v8850_v17, %v8866_v40 }
 0xbeb   : > { %v9937_v26 = vcombine.low %v8771_v49, %v8778_v20  ;;  %v9939_v45 = vcombine.high %v8771_v49, %v8778_v20  ;;  %v9941_v9 = vcombine.low %v8787_v50, %v8794_v28  ;;  %v9943_v57 = vcombine.high %v8787_v50, %v8794_v28 }
 0xbec   : > { %v8891_v2 = vrot.slane %v8883_v51, %v11133_v15  ;;  %v8923_v42 = vrot.slane %v8915_v58, %v11133_v15  ;;  %v8898_v35 = vrot.slane %v8884_v32, %v11133_v15  ;;  %v8930_v37 = vrot.slane %v8916_v18, %v11133_v15  ;;  %v13800_v32 = vld [vmem:[#allocation2_spill] sm:$0xff] }
 0xbed   : > { %v8954_v24 = vrot.slane %v9937_v26, %v11130_v12  ;;  %v8970_v54 = vrot.slane %v9939_v45, %v11130_v12  ;;  %v8986_v29 = vrot.slane %v9941_v9, %v11130_v12  ;;  %v9002_v46 = vrot.slane %v9943_v57, %v11130_v12 }
 0xbee   : > { %v8936_v56 = vcombine.high %v8891_v2, %v8923_v42  ;;  %v8935_v7 = vcombine.low %v8891_v2, %v8923_v42  ;;  %v8938_v59 = vcombine.high %v8898_v35, %v8930_v37  ;;  %v8937_v25 = vcombine.low %v8898_v35, %v8930_v37  ;;  %v10626_v2 = vld [vmem:[%s13733_s13 + $0x74] ss:$8 sps:$4 sm:$0xff]   ;;  %v10630_v35 = vld [vmem:[%s13733_s13 + $0x50] ss:$8 sps:$4 sm:$0xff]  }
 0xbef   : > { %v9019_v33 = vcombine.low %v8954_v24, %v8970_v54  ;;  %v9051_v34 = vcombine.low %v8986_v29, %v9002_v46  ;;  %v9020_v38 = vcombine.high %v8954_v24, %v8970_v54  ;;  %v9052_v55 = vcombine.high %v8986_v29, %v9002_v46  ;;  %v10624_v46 = vld [vmem:[%s13733_s13 + $0x70] ss:$8 sps:$4 sm:$0xff]   ;;  %9373 = vmatprep.subr.bf16.mxu1 %v10626_v2  ;;  %v10632_v37 = vld [vmem:[%s13733_s13 + $0x54] ss:$8 sps:$4 sm:$0xff]  }
 0xbf0   : > { %9374 = vmatpush1.bf16.msra.mxu1 %v10624_v46 }
 0xbf1   : > { %v9027_v53 = vrot.slane %v9019_v33, %v11133_v15  ;;  %v9059_v12 = vrot.slane %v9051_v34, %v11133_v15  ;;  %v9034_v5 = vrot.slane %v9020_v38, %v11133_v15  ;;  %v9066_v11 = vrot.slane %v9052_v55, %v11133_v15  ;;  %v13801_v55 = vld [vmem:[#allocation3_spill] sm:$0xff] }
 0xbf3   : > { %v9072_v39 = vcombine.high %v9027_v53, %v9059_v12  ;;  %v9071_v6 = vcombine.low %v9027_v53, %v9059_v12  ;;  %v9074_v30 = vcombine.high %v9034_v5, %v9066_v11  ;;  %v9073_v60 = vcombine.low %v9034_v5, %v9066_v11  ;;  %v10627_v5 = vld [vmem:[%s13733_s13 + $0x60] ss:$8 sps:$4 sm:$0xff]   ;;  %v10629_v11 = vld [vmem:[%s13733_s13 + $0x64] ss:$8 sps:$4 sm:$0xff]  }
 0xbf4   : > { %9375 = vmatprep.subr.bf16.mxu1 %v10629_v11 }
 0xbf5   : > { %v10529_v36 = vpack.i.bf16 %v9072_v39, %v8936_v56  ;;  %v10524_v47 = vpack.i.bf16 %v9071_v6, %v8935_v7  ;;  %v10539_v48 = vpack.i.bf16 %v9074_v30, %v8938_v59  ;;  %v10534_v13 = vpack.i.bf16 %v9073_v60, %v8937_v25  ;;  %9376 = vmatpush1.bf16.msra.mxu1 %v10627_v5  ;;  %v10635_v56 = vld [vmem:[%s13733_s13 + $0x44] ss:$8 sps:$4 sm:$0xff]   ;;  %v10633_v39 = vld [vmem:[%s13733_s13 + $0x40] ss:$8 sps:$4 sm:$0xff]   ;;  %v10638_v7 = vld [vmem:[%s13733_s13 + $0x34] ss:$8 sps:$4 sm:$0xff]  }
 0xbf6   : > { %9377 = vmatprep.subr.bf16.mxu1 %v10632_v37  ;;  %v10636_v6 = vld [vmem:[%s13733_s13 + $0x30] ss:$8 sps:$4 sm:$0xff]   ;;  %v10644_v30 = vld [vmem:[%s13733_s13 + $0x14] ss:$8 sps:$4 sm:$0xff]   ;;  %v10647_v59 = vld [vmem:[%s13733_s13 + $0x4] ss:$8 sps:$4 sm:$0xff]  }
 0xbf7   : > { %10530 = vrot.lane.b32.xlu0 %v10529_v36, %s10825_s28  ;;  %10525 = vrot.lane.b32.xlu1 %v10524_v47, %s13781_s24  ;;  %v10641_v36 = vld [vmem:[%s13733_s13 + $0x24] ss:$8 sps:$4 sm:$0xff]   ;;  %v10639_v47 = vld [vmem:[%s13733_s13 + $0x20] ss:$8 sps:$4 sm:$0xff]  }
 0xbf8   : > { %v10642_v60 = vld [vmem:[%s13733_s13 + $0x10] ss:$8 sps:$4 sm:$0xff]   ;;  %v10645_v25 = vld [vmem:[%s13733_s13] ss:$8 sps:$4 sm:$0xff]  }
 0xbf9   : > { %9378 = vmatpush1.bf16.msra.mxu1 %v10630_v35 }
 0xbfa   : > { %9379 = vmatprep.subr.bf16.mxu1 %v10635_v56 }
 0xbfb   : > { %10540 = vrot.lane.b32.xlu0 %v10539_v48, %s13775_s27  ;;  %10535 = vrot.lane.b32.xlu1 %v10534_v13, %s13776_s23  ;;  %v10648_v48 = vld [vmem:[%s13734_s14 + $0x78] sm:$0xff]   ;;  %s13802_s27 = sshll.u32 %s13804_s19, 3 }
 0xbfc   : > { %v10649_v13 = vld [vmem:[%s13734_s14 + $0x38] sm:$0xff]   ;;  %10128 = vmatprep.subr.bf16.mxu0 %v10648_v48  ;;  %s528_s30 = scalar_lea.vmem %s13735_s15, %s13802_s27 }
 0xbfd   : > { %9380 = vmatpush1.bf16.msra.mxu1 %v10633_v39 }
 0xbfe   : > { %9381 = vmatprep.subr.bf16.mxu1 %v10638_v7 }
 0xc01   : > { %9382 = vmatpush1.bf16.msra.mxu1 %v10636_v6 }
 0xc02   : > { %9383 = vmatprep.subr.bf16.mxu1 %v10641_v36 }
 0xc05   : > { %9384 = vmatpush1.bf16.msra.mxu1 %v10639_v47 }
 0xc06   : > { %9385 = vmatprep.subr.bf16.mxu1 %v10644_v30 }
 0xc09   : > { %9386 = vmatpush1.bf16.msra.mxu1 %v10642_v60 }
 0xc0a   : > { %9387 = vmatprep.subr.bf16.mxu1 %v10647_v59 }
 0xc0d   : > { %9388 = vmatpush1.bf16.msra.mxu1 %v10645_v25 }
 0xc32   : > { %v10511_v15 = vpop.permute.xlu1 %10510  ;;  %v10516_v10 = vpop.permute.xlu0 %10515 }
 0xc33   : > { %v10513_v8 = vunpack.i.h.bf16 %v10511_v15  ;;  %v10512_v63 = vunpack.i.l.bf16 %v10511_v15  ;;  %v10518_v31 = vunpack.i.h.bf16 %v10516_v10  ;;  %v10517_v14 = vunpack.i.l.bf16 %v10516_v10  ;;  %v10650_v15 = vld [vmem:[%s13734_s14 + $0x70] sm:$0xff]  }
 0xc34   : > { %v10651_v10 = vld [vmem:[%s13734_s14 + $0x30] sm:$0xff]  }
 0xc35   : > { %v9131_v41 = vsel %vm2647_vm3, %v8931_v23, %v10512_v63  ;;  %v9132_v61 = vsel %vm2647_vm3, %v9067_v22, %v10513_v8  ;;  %v10652_v8 = vld [vmem:[%s13734_s14 + $0x68] sm:$0xff]  }
 0xc36   : > { %v10521_v62 = vpop.permute.xlu1 %10520  ;;  %v9133_v44 = vsel %vm4162_vm4, %v9131_v41, %v10517_v14  ;;  %v9134_v17 = vsel %vm4162_vm4, %v9132_v61, %v10518_v31  ;;  %v10653_v63 = vld [vmem:[%s13734_s14 + $0x28] sm:$0xff]   ;;  %v10655_v31 = vld [vmem:[%s13734_s14 + $0x20] sm:$0xff]   ;;  %v10656_v14 = vld [vmem:[%s13734_s14 + $0x58] sm:$0xff]  }
 0xc37   : > { %v10523_v21 = vunpack.i.h.bf16 %v10521_v62  ;;  %v10522_v52 = vunpack.i.l.bf16 %v10521_v62  ;;  %v10654_v62 = vld [vmem:[%s13734_s14 + $0x60] sm:$0xff]   ;;  %v10657_v41 = vld [vmem:[%s13734_s14 + $0x18] sm:$0xff]  }
 0xc39   : > { %v9135_v20 = vsel %vm4165_vm5, %v9133_v44, %v10522_v52  ;;  %v9136_v4 = vsel %vm4165_vm5, %v9134_v17, %v10523_v21 }
 0xc69   : > { %v10531_v43 = vpop.permute.xlu0 %10530  ;;  %v10526_v19 = vpop.permute.xlu1 %10525 }
 0xc6a   : > { %v10528_v40 = vunpack.i.h.bf16 %v10526_v19  ;;  %v10527_v49 = vunpack.i.l.bf16 %v10526_v19  ;;  %v10533_v27 = vunpack.i.h.bf16 %v10531_v43  ;;  %v10532_v23 = vunpack.i.l.bf16 %v10531_v43 }
 0xc6c   : > { %v9138_v0 = vsel %vm4168_vm6, %v9136_v4, %v10528_v40  ;;  %v9137_v3 = vsel %vm4168_vm6, %v9135_v20, %v10527_v49  ;;  %v9952_v20 = vld [vmem:[%s13732_s12] ss:$0 sm:$0xff] }
 0xc6d   : > { %v10541_v22 = vpop.permute.xlu0 %10540  ;;  %v10536_v50 = vpop.permute.xlu1 %10535  ;;  %v9139_v45 = vsel %vm4171_vm7, %v9137_v3, %v10532_v23  ;;  %v9140_v9 = vsel %vm4171_vm7, %v9138_v0, %v10533_v27  ;;  %v10658_v3 = vld [vmem:[%s13734_s14 + $0x50] sm:$0xff]  }
 0xc6e   : > { %v10543_v28 = vunpack.i.h.bf16 %v10541_v22  ;;  %v10542_v51 = vunpack.i.l.bf16 %v10541_v22  ;;  %v10538_v58 = vunpack.i.h.bf16 %v10536_v50  ;;  %v10537_v26 = vunpack.i.l.bf16 %v10536_v50  ;;  %v10659_v22 = vld [vmem:[%s13734_s14 + $0x10] sm:$0xff]   ;;  %v10660_v50 = vld [vmem:[%s13734_s14 + $0x48] sm:$0xff]  }
 0xc70   : > { %v9141_v57 = vsel %vm4174_vm8, %v9139_v45, %v10537_v26  ;;  %v9142_v1 = vsel %vm4174_vm8, %v9140_v9, %v10538_v58  ;;  %v10663_v58 = vld [vmem:[%s13734_s14] sm:$0xff]  }
 0xc71   : > { %v9143_v24 = vsel %vm4177_vm9, %v9141_v57, %v10542_v51  ;;  %v9144_v54 = vsel %vm4177_vm9, %v9142_v1, %v10543_v28  ;;  %v10661_v28 = vld [vmem:[%s13734_s14 + $0x8] sm:$0xff]   ;;  %v10662_v51 = vld [vmem:[%s13734_s14 + $0x40] sm:$0xff]  }
 0xc72   : > { %v9161_v29 = vpack.c.bf16 %v9144_v54, %v9143_v24 }
 0xc74   : > { %10451 = vmatmul.mubr.bf16.vlgmr.msra.gmra.mxu0 %v9161_v29 }
 0xc75   : > { %10129 = vmatpush3.bf16.msra.mxu0 %v10649_v13 }
 0xc76   : > { %10130 = vmatprep.subr.bf16.mxu0 %v10650_v15 }
 0xc79   : > { %10131 = vmatpush3.bf16.msra.mxu0 %v10651_v10 }
 0xc7a   : > { %10132 = vmatprep.subr.bf16.mxu0 %v10652_v8 }
 0xc7d   : > { %10133 = vmatpush3.bf16.msra.mxu0 %v10653_v63 }
 0xc7e   : > { %10134 = vmatprep.subr.bf16.mxu0 %v10654_v62 }
 0xc81   : > { %10135 = vmatpush3.bf16.msra.mxu0 %v10655_v31 }
 0xc82   : > { %10136 = vmatprep.subr.bf16.mxu0 %v10656_v14 }
 0xc85   : > { %10137 = vmatpush3.bf16.msra.mxu0 %v10657_v41 }
 0xc86   : > { %10138 = vmatprep.subr.bf16.mxu0 %v10658_v3 }
 0xc89   : > { %10139 = vmatpush3.bf16.msra.mxu0 %v10659_v22 }
 0xc8a   : > { %10140 = vmatprep.subr.bf16.mxu0 %v10660_v50 }
 0xc8d   : > { %10141 = vmatpush3.bf16.msra.mxu0 %v10661_v28 }
 0xc8e   : > { %10142 = vmatprep.subr.bf16.mxu0 %v10662_v51 }
 0xc91   : > { %10143 = vmatpush3.bf16.msra.mxu0 %v10663_v58 }
 0xd34   : > { %v9244_v42 = vpop.f32.mrf.mxu0 }
 0xd35   : > { %v13606_v18 = vadd.f32 %v9244_v42, %v13800_v32 }
 0xd36   : > { %v10452_v33 = vpop.f32.mrf.mxu0 }
 0xd37   : > { %v9254_v34 = vmul.f32 %v13606_v18, %v13606_v18 }
 0xd38   : > { %v9247_v38 = vpop.f32.mrf.mxu0 }
 0xd39   : > { %v13611_v16 = vadd.f32 %v9247_v38, %v13801_v55  ;;  %9256 = vadd.xlane.f32.xlu1 %v9254_v34 }
 0xd3a   : > { %v10453_v53 = vpop.f32.mrf.mxu0 }
 0xd3b   : > { %v9255_v12 = vmul.f32 %v13611_v16, %v13611_v16 }
 0xd3d   : > { %9258 = vadd.xlane.f32.xlu0 %v9255_v12 }
 0xdc2   : > { %v9257_v61 = vpop.xlane.xlu1 %9256 }
 0xdc3   : > { %v9260_v21 = vmul.f32 0.0078125, %v9257_v61 }
 0xdc5   : > { %v9262_v52 = vadd.f32 1e-06, %v9260_v21 }
 0xdc6   : > { %v9259_v43 = vpop.xlane.xlu0 %9258 }
 0xdc7   : > { %10808 = vrsqrt.f32 %v9262_v52  ;;  %v9261_v19 = vmul.f32 0.0078125, %v9259_v43 }
 0xdc9   : > { %v9263_v44 = vadd.f32 1e-06, %v9261_v19 }
 0xdcb   : > { %10810 = vrsqrt.f32 %v9263_v44 }
 0xdd4   : > { %v10809_v17 = vpop.eup %10808 }
 0xdd5   : > { %v9266_v40 = vmul.f32 %v10809_v17, %v13606_v18 }
 0xdd7   : > { %v9274_v27 = vmul.f32 %v9952_v20, %v9266_v40 }
 0xdd8   : > { %v10811_v49 = vpop.eup %10810 }
 0xdd9   : > { %v9267_v4 = vmul.f32 %v10811_v49, %v13611_v16 }
 0xddb   : > { %v9275_v23 = vmul.f32 %v9952_v20, %v9267_v4 }
 0xddd   : > { %v9292_v0 = vpack.c.bf16 %v9275_v23, %v9274_v27 }
 0xddf   : > { %9406 = vmatmul.mubr.bf16.vlgmr.msra.gmra.mxu1 %v9292_v0 }
 0xe9f   : > { %v9407_v26 = vpop.f32.mrf.mxu1 }
 0xea0   : > { %v9416_v29 = vmax.f32 %v9407_v26, 0.0 }
 0xea1   : > { %v9409_v45 = vpop.f32.mrf.mxu1 }
 0xea2   : > { %v9417_v24 = vmax.f32 %v9409_v45, 0.0 }
 0xea3   : > { %v9411_v9 = vpop.f32.mrf.mxu1 }
 0xea4   : > { %v9418_v57 = vmax.f32 %v9411_v9, 0.0 }
 0xea5   : > { %v9413_v1 = vpop.f32.mrf.mxu1 }
 0xea6   : > { %v9419_v54 = vmax.f32 %v9413_v1, 0.0  ;;  %v9452_v2 = vpack.c.bf16 %v9418_v57, %v9416_v29 }
 0xea8   : > { %v9453_v46 = vpack.c.bf16 %v9419_v54, %v9417_v24 }
 0xeaa   : > { %9582 = vmatprep.mubr.bf16.mxu0 %v9453_v46 }
 0xeab   : > { %9583 = vmatmul.mubr.bf16.vlgmr.msra.gmra.mxu0 %v9452_v2 }
 0xf6b   : > { %v10144_v42 = vpop.f32.mrf.mxu0 }
 0xf6d   : > { %v10145_v32 = vpop.f32.mrf.mxu0 }
 0xf6e   : > { %v10146_v34 = vadd.f32 %v10145_v32, %v10144_v42 }
 0xf6f   : > { %v10147_v33 = vpop.f32.mrf.mxu0 }
 0xf70   : > { %v9591_v53 = vadd.f32 %v10146_v34, %v13606_v18 }
 0xf71   : > { %v10148_v38 = vpop.f32.mrf.mxu0 }
 0xf72   : > { %v10149_v55 = vadd.f32 %v10148_v38, %v10147_v33 }
 0xf74   : > { %v9592_v12 = vadd.f32 %v10149_v55, %v13611_v16 }
 0xf76   : > { %v10009_v5 = vpack.c.bf16 %v9592_v12, %v9591_v53 }
 0xf78   : > { %10010 = vst [vmem:[%s528_s30] sm:$0xff] %v10009_v5  }
 0xf79 PF: > { %s25_s18 = sadd.s32 1, %s10818_s18  }
 0xf7a   : > { %p22_p4 = scmp.ge.s32.totalorder %s25_s18, 4  }
 0xf7c   :  { %24 = sbr.rel (!%p22_p4) target bundleno = 1 (0x1), region = 116 }

</bundles_post_ra>
